<compile_context>
chip_gen: v5e
topology: v5e:2x2
jax: 0.10.0
libtpu: 0.0.40
codegen_flags: <defaults>
</compile_context>

<pallas_src>
import functools
import math

import jax
import jax.numpy as jnp
from jax.experimental import pallas as pl
from jax.experimental.pallas import tpu as pltpu

# ----------------------------- config ---------------------------------------
IN_CHANNELS = 4
D_MODEL = 64
NHEAD = 4
D_HID = 32
NLAYERS = 2
N_CONV_LAYERS = 2
CONV1_OUT = 128
NEG_SLOPE = 0.01          # F.leaky_relu default
LN_EPS = 1e-5             # nn.LayerNorm default
MAX_LEN = 512

# vec slab row indices (per transformer layer)
_BQ, _BK, _BV, _BO, _B1, _B2, _G1, _BETA1, _G2, _BETA2 = range(10)


# --------------------------- fused Pallas kernel -----------------------------
def fused_forward_kernel(x_ref, mask_ref, addpe_ref,
                         c1w_ref, c1b_ref, c2w_ref, c2b_ref, cw_ref, cb_ref,
                         wqkv_ref, wo_ref, w1_ref, w2_ref, vec_ref,
                         out_ref,
                         pool_s, seq_s, ctx_s,
                         *, batch, conv1_len):
    """Entire forward pass for the whole (row-stacked) batch in one invocation.

    x_ref    : (B*P0, 3*Cin)  im2col'ed input, per-sample stride P0 = L = L1+2,
                              shifted by one row (row j holds the window centred
                              at input position j-1).
    mask_ref : (B*P0, 1)      0.0 at the two conv2-padding rows per sample, else 1.0
    addpe_ref: (S, D)         row0 = class_token*sqrt(D)+pe[0]; rows 1.. = pe[1:S]
    c1w_ref  : (3*Cin, 128)   c1b_ref: (1, 128)
    c2w_ref  : (3, 128, D)    c2b_ref: (1, D)
    cw_ref   : (3, D, D)      cb_ref : (1, D)
    wqkv_ref : (NLAYERS, D, 3D)  (1/sqrt(dh) already folded into the Q columns)
    wo_ref   : (NLAYERS, D, D)
    w1_ref   : (NLAYERS, D, D_HID)   w2_ref: (NLAYERS, D_HID, D)
    vec_ref  : (NLAYERS, 10, D)      packed biases / LayerNorm params
    out_ref  : (B*SP, D)      padded seq slab; class token of sample b at row b*SP
    pool_s   : (B*P0-4, D)    staging for strided max-pool reads
    seq_s    : (B*SP, D)      batch-stacked sequence slab (SP = padded stride)
    ctx_s    : (B*SP, D)      per-head attention-context slab
    """
    B = batch
    L1 = conv1_len
    P0 = L1 + 2                              # per-sample stride of the conv slabs
    D = D_MODEL
    dh = D // NHEAD
    S = addpe_ref.shape[0]                   # tokens per sample (class token + pooled)
    SP = seq_s.shape[0] // B                 # padded per-sample stride of seq slab
    PX = P0 // (2 ** N_CONV_LAYERS)          # per-sample stride after the last pool
    n_rows = B * P0
    sqrt_d = math.sqrt(D)

    def lrelu(v):
        return jnp.where(v > 0, v, NEG_SLOPE * v)

    def layer_norm(v, g, b):
        mu = jnp.mean(v, axis=-1, keepdims=True)
        var = jnp.mean((v - mu) ** 2, axis=-1, keepdims=True)
        return (v - mu) * jax.lax.rsqrt(var + LN_EPS) * g + b

    def conv_lrelu_pool(y):
        """Valid conv(k=3) + leaky_relu + maxpool(2) on the batch-stacked slab.

        Per-sample offsets are even at every stage, so pooling the whole slab
        never pairs rows from different samples; gap rows are garbage but are
        never read by a valid output row.
        """
        lc = y.shape[0] - 2
        acc = jnp.dot(y[0:lc], cw_ref[0], preferred_element_type=jnp.float32)
        acc = acc + jnp.dot(y[1:lc + 1], cw_ref[1], preferred_element_type=jnp.float32)
        acc = acc + jnp.dot(y[2:lc + 2], cw_ref[2], preferred_element_type=jnp.float32)
        yc = lrelu(acc + cb_ref[...])                       # (lc, D)
        lp = lc // 2
        pool_s[0:lc, :] = yc
        even = pool_s[pl.ds(0, lp, stride=2), :]
        odd = pool_s[pl.ds(1, lp, stride=2), :]
        return jnp.maximum(even, odd)                       # (lp, D)

    # ---- conv1: whole batch as one (B*P0, 3*Cin)x(3*Cin, 128) matmul ----
    y1 = lrelu(jnp.dot(x_ref[...], c1w_ref[...],
                       preferred_element_type=jnp.float32) + c1b_ref[...])
    # zero the two conv2 padding rows per sample (emulates Conv1d padding=1)
    y1 = y1 * mask_ref[...]                                 # (B*P0, 128)

    # ---- conv2 (padding=1) as 3 shifted matmuls on the stacked slab ----
    n_a = n_rows - 2
    acc = jnp.dot(y1[0:n_a], c2w_ref[0], preferred_element_type=jnp.float32)
    acc = acc + jnp.dot(y1[1:n_a + 1], c2w_ref[1], preferred_element_type=jnp.float32)
    acc = acc + jnp.dot(y1[2:n_a + 2], c2w_ref[2], preferred_element_type=jnp.float32)
    x_conv = lrelu(acc + c2b_ref[...])      # (B*P0-2, D); sample b valid rows [b*P0, b*P0+L1)

    # ---- n_conv_layers x (conv + leaky_relu + maxpool(2)), still stacked ----
    for _ in range(N_CONV_LAYERS):
        x_conv = conv_lrelu_pool(x_conv)
    # sample b's pooled features now sit at rows [b*PX, b*PX + S - 1)

    # ---- class token + *sqrt(d_model) + positional encoding (stacked slab) ----
    seq_s[...] = jnp.zeros(seq_s.shape, jnp.float32)        # keeps pad rows deterministic
    ctx_s[...] = jnp.zeros(ctx_s.shape, jnp.float32)        # pad rows of ctx stay zero
    for b in range(B):
        seq_s[b * SP: b * SP + 1, :] = addpe_ref[0:1, :]
        seq_s[b * SP + 1: b * SP + S, :] = (
            x_conv[b * PX: b * PX + S - 1, :] * sqrt_d + addpe_ref[1:S, :])
    seq = seq_s[...]                                        # (B*SP, D)

    # ---- transformer encoder (post-norm, ReLU FFN, eval dropout = id) ----
    for l in range(NLAYERS):
        vec = vec_ref[l]                                    # (10, D)
        qkv = jnp.dot(seq, wqkv_ref[l],
                      preferred_element_type=jnp.float32)   # (B*SP, 3D)
        q = qkv[:, 0:D] + vec[_BQ:_BQ + 1, :]               # scale already folded in
        k = qkv[:, D:2 * D] + vec[_BK:_BK + 1, :]
        v = qkv[:, 2 * D:3 * D] + vec[_BV:_BV + 1, :]

        # per-sample, per-head attention (scores are only S x S)
        for b in range(B):
            r0 = b * SP
            for h in range(NHEAD):
                c0 = h * dh
                qh = q[r0:r0 + S, c0:c0 + dh]
                kh = k[r0:r0 + S, c0:c0 + dh]
                vh = v[r0:r0 + S, c0:c0 + dh]
                sc = jax.lax.dot_general(qh, kh, (((1,), (1,)), ((), ())),
                                         preferred_element_type=jnp.float32)  # (S, S)
                sc = sc - jnp.max(sc, axis=-1, keepdims=True)
                p = jnp.exp(sc)
                p = p / jnp.sum(p, axis=-1, keepdims=True)
                ctx_s[r0:r0 + S, c0:c0 + dh] = jnp.dot(
                    p, vh, preferred_element_type=jnp.float32)                 # (S, dh)

        # single K=64 output projection for all samples / heads
        attn = jnp.dot(ctx_s[...], wo_ref[l],
                       preferred_element_type=jnp.float32) + vec[_BO:_BO + 1, :]

        h1 = layer_norm(seq + attn, vec[_G1:_G1 + 1, :], vec[_BETA1:_BETA1 + 1, :])

        f = jnp.dot(h1, w1_ref[l], preferred_element_type=jnp.float32) \
            + vec[_B1:_B1 + 1, 0:D_HID]
        f = jnp.maximum(f, 0.0)
        f = jnp.dot(f, w2_ref[l], preferred_element_type=jnp.float32) \
            + vec[_B2:_B2 + 1, :]

        seq = layer_norm(h1 + f, vec[_G2:_G2 + 1, :], vec[_BETA2:_BETA2 + 1, :])

    out_ref[...] = seq                                      # class token at row b*SP


# ------------------------------ wrapper -------------------------------------
@jax.jit
def forward(params, src):
    """src: (B, in_channels, L) float32 (PyTorch NCW layout for Conv1d)."""
    B, cin, L = src.shape
    assert L % (2 ** N_CONV_LAYERS) == 0, "stacked conv layout needs L % 4 == 0"
    L1 = L - 2                                              # conv1/conv2 output length
    P0 = L                                                  # per-sample stride of conv slabs

    # NCW -> NLC, pad one zero row at each end, im2col (k-major, channel-minor).
    # Row b*P0 + j holds the k=3 window centred at position j-1, so conv1's
    # output for position t lands at stacked row b*P0 + t + 1 and rows j==0 /
    # j==P0-1 are exactly conv2's padding=1 slots (zeroed via conv2_mask).
    xt = jnp.transpose(src, (0, 2, 1))                      # (B, L, Cin)
    xtp = jnp.pad(xt, ((0, 0), (1, 1), (0, 0)))             # (B, L+2, Cin)
    x_i2c = jnp.concatenate([xtp[:, 0:P0], xtp[:, 1:P0 + 1], xtp[:, 2:P0 + 2]],
                            axis=2).reshape(B * P0, 3 * cin)
    j = jnp.arange(B * P0, dtype=jnp.int32) % P0
    conv2_mask = jnp.where((j == 0) | (j == P0 - 1), 0.0, 1.0
                           ).astype(jnp.float32)[:, None]   # (B*P0, 1)

    ln = L1
    for _ in range(N_CONV_LAYERS):
        ln = (ln - 2) // 2
    S = ln + 1                                              # + class token
    SP = ((S + 7) // 8) * 8                                 # padded per-sample seq stride
    addpe = params['addpe'][:S]                             # (S, D)

    vmem = pl.BlockSpec(memory_space=pltpu.MemorySpace.VMEM)
    kernel = functools.partial(fused_forward_kernel, batch=B, conv1_len=L1)
    out = pl.pallas_call(
        kernel,
        out_shape=jax.ShapeDtypeStruct((B * SP, D_MODEL), jnp.float32),
        in_specs=[vmem] * 14,
        out_specs=vmem,
        scratch_shapes=[
            pltpu.VMEM((B * P0 - 4, D_MODEL), jnp.float32),  # max-pool staging
            pltpu.VMEM((B * SP, D_MODEL), jnp.float32),      # seq slab
            pltpu.VMEM((B * SP, D_MODEL), jnp.float32),      # per-head ctx slab
        ],
    )(x_i2c, conv2_mask, addpe,
      params['conv1_w'], params['conv1_b'],
      params['conv2_w'], params['conv2_b'],
      params['conv_w'], params['conv_b'],
      params['wqkv'], params['wo'], params['w1'], params['w2'], params['vec'])
    # class-token hidden features
    return out.reshape(B, SP, D_MODEL)[:, 0, :]


# ------------------------- deterministic params -------------------------------
def make_positional_encoding(d_model, max_len):
    position = jnp.arange(max_len, dtype=jnp.float32)[:, None]
    div_term = jnp.exp(jnp.arange(0, d_model, 2, dtype=jnp.float32)
                       * (-math.log(10000.0) / d_model))
    pe = jnp.zeros((max_len, d_model), jnp.float32)
    pe = pe.at[:, 0::2].set(jnp.sin(position * div_term))
    pe = pe.at[:, 1::2].set(jnp.cos(position * div_term))   # d_model is even
    return pe


def init_params(key):
    keys = iter(jax.random.split(key, 32))

    def nrm(shape, fan_in):
        return jax.random.normal(next(keys), shape, jnp.float32) / math.sqrt(fan_in)

    p = {}
    # conv1: PyTorch (Cout=128, Cin, K) -> im2col weight (K*Cin, Cout), k-major rows
    w = nrm((CONV1_OUT, IN_CHANNELS, 3), IN_CHANNELS * 3)
    p['conv1_w'] = jnp.transpose(w, (2, 1, 0)).reshape(3 * IN_CHANNELS, CONV1_OUT)
    p['conv1_b'] = nrm((CONV1_OUT,), IN_CHANNELS * 3).reshape(1, CONV1_OUT)
    # conv2 / conv stored as (K, Cin, Cout) for shifted matmuls
    w = nrm((D_MODEL, CONV1_OUT, 3), CONV1_OUT * 3)
    p['conv2_w'] = jnp.transpose(w, (2, 1, 0))
    p['conv2_b'] = nrm((D_MODEL,), CONV1_OUT * 3).reshape(1, D_MODEL)
    w = nrm((D_MODEL, D_MODEL, 3), D_MODEL * 3)
    p['conv_w'] = jnp.transpose(w, (2, 1, 0))
    p['conv_b'] = nrm((D_MODEL,), D_MODEL * 3).reshape(1, D_MODEL)

    class_token = jax.random.normal(next(keys), (D_MODEL,), jnp.float32)
    pe = make_positional_encoding(D_MODEL, MAX_LEN)                  # (max_len, D)
    # row 0 of the sequence is class_token*sqrt(d)+pe[0]; rows>=1 add pe directly
    p['addpe'] = pe.at[0].add(class_token * math.sqrt(D_MODEL))

    head_scale = 1.0 / math.sqrt(D_MODEL // NHEAD)                   # folded into Q proj
    wqkv, wo, w1, w2, vec = [], [], [], [], []
    for _ in range(NLAYERS):
        in_proj_w = nrm((3 * D_MODEL, D_MODEL), D_MODEL)             # PyTorch (3D, D)
        in_proj_b = nrm((3 * D_MODEL,), D_MODEL)
        wqkv_l = in_proj_w.T                                         # (D, 3D)
        wqkv_l = wqkv_l.at[:, 0:D_MODEL].multiply(head_scale)        # fold 1/sqrt(dh)
        bq = in_proj_b[0:D_MODEL] * head_scale
        wqkv.append(wqkv_l)
        wo.append(nrm((D_MODEL, D_MODEL), D_MODEL).T)                # (D, D)
        bo = nrm((D_MODEL,), D_MODEL)
        w1.append(nrm((D_HID, D_MODEL), D_MODEL).T)                  # (D, D_HID)
        b1 = nrm((D_HID,), D_MODEL)
        w2.append(nrm((D_MODEL, D_HID), D_HID).T)                    # (D_HID, D)
        b2 = nrm((D_MODEL,), D_HID)
        vec.append(jnp.stack([
            bq,                                                      # bq (pre-scaled)
            in_proj_b[D_MODEL:2 * D_MODEL],                          # bk
            in_proj_b[2 * D_MODEL:3 * D_MODEL],                      # bv
            bo,                                                      # bo
            jnp.pad(b1, (0, D_MODEL - D_HID)),                       # b1 (padded)
            b2,                                                      # b2
            jnp.ones((D_MODEL,), jnp.float32),                       # g1
            jnp.zeros((D_MODEL,), jnp.float32),                      # beta1
            jnp.ones((D_MODEL,), jnp.float32),                       # g2
            jnp.zeros((D_MODEL,), jnp.float32),                      # beta2
        ], axis=0))
    p['wqkv'] = jnp.stack(wqkv)      # (NLAYERS, D, 3D)
    p['wo'] = jnp.stack(wo)          # (NLAYERS, D, D)
    p['w1'] = jnp.stack(w1)          # (NLAYERS, D, D_HID)
    p['w2'] = jnp.stack(w2)          # (NLAYERS, D_HID, D)
    p['vec'] = jnp.stack(vec)        # (NLAYERS, 10, D)
    return p


# ---------------------------------- main --------------------------------------
if __name__ == "__main__":
    key = jax.random.PRNGKey(0)
    kp, kx = jax.random.split(key)
    params = init_params(kp)

    # NOTE: per-call launch/DMA overhead amortizes with a larger batch; kept small here.
    B, L = 2, 64
    src = jax.random.normal(kx, (B, IN_CHANNELS, L), jnp.float32)

    out = forward(params, src)
    out = jax.block_until_ready(out)

    assert out.shape == (B, D_MODEL), out.shape
    assert bool(jnp.all(jnp.isfinite(out)))
    print("KERNEL_OK")
</pallas_src>

<mosaic_0001>
module attributes {stable_mosaic.version = 11 : i64} {
  func.func @fused_forward_kernel(%arg0: memref<128x12xf32, #tpu.memory_space<vmem>>, %arg1: memref<128x1xf32, #tpu.memory_space<vmem>>, %arg2: memref<15x64xf32, #tpu.memory_space<vmem>>, %arg3: memref<12x128xf32, #tpu.memory_space<vmem>>, %arg4: memref<1x128xf32, #tpu.memory_space<vmem>>, %arg5: memref<3x128x64xf32, #tpu.memory_space<vmem>>, %arg6: memref<1x64xf32, #tpu.memory_space<vmem>>, %arg7: memref<3x64x64xf32, #tpu.memory_space<vmem>>, %arg8: memref<1x64xf32, #tpu.memory_space<vmem>>, %arg9: memref<2x64x192xf32, #tpu.memory_space<vmem>>, %arg10: memref<2x64x64xf32, #tpu.memory_space<vmem>>, %arg11: memref<2x64x32xf32, #tpu.memory_space<vmem>>, %arg12: memref<2x32x64xf32, #tpu.memory_space<vmem>>, %arg13: memref<2x10x64xf32, #tpu.memory_space<vmem>>, %arg14: memref<32x64xf32, #tpu.memory_space<vmem>>, %arg15: memref<124x64xf32, #tpu.memory_space<vmem>>, %arg16: memref<32x64xf32, #tpu.memory_space<vmem>>, %arg17: memref<32x64xf32, #tpu.memory_space<vmem>>) attributes {dimension_semantics = [], scalar_prefetch = 0 : i64, scratch_operands = 3 : i64, tpu.core_type = #tpu.core_type<tc>} {
    %c0 = arith.constant 0 : index
    %c0_0 = arith.constant 0 : index
    %0 = vector.load %arg0[%c0, %c0_0] : memref<128x12xf32, #tpu.memory_space<vmem>>, vector<128x12xf32>
    %c0_1 = arith.constant 0 : index
    %c0_2 = arith.constant 0 : index
    %1 = vector.load %arg3[%c0_1, %c0_2] : memref<12x128xf32, #tpu.memory_space<vmem>>, vector<12x128xf32>
    %cst = arith.constant dense<0.000000e+00> : vector<128x128xf32>
    %2 = tpu.matmul %0, %1, %cst {dimension_numbers = #tpu.dot_dimension_numbers<[1], [0], [0], [1], [0, 0, 1, 1], [], []>} : vector<128x12xf32>, vector<12x128xf32>, vector<128x128xf32> -> vector<128x128xf32>
    %c0_3 = arith.constant 0 : index
    %c0_4 = arith.constant 0 : index
    %3 = vector.load %arg4[%c0_3, %c0_4] : memref<1x128xf32, #tpu.memory_space<vmem>>, vector<1x128xf32>
    %4 = vector.broadcast %3 : vector<1x128xf32> to vector<128x128xf32>
    %5 = arith.addf %2, %4 : vector<128x128xf32>
    %cst_5 = arith.constant 0.000000e+00 : f32
    %6 = vector.broadcast %cst_5 : f32 to vector<128x128xf32>
    %7 = arith.cmpf ogt, %5, %6 : vector<128x128xf32>
    %cst_6 = arith.constant 0.00999999977 : f32
    %8 = vector.broadcast %cst_6 : f32 to vector<128x128xf32>
    %9 = arith.mulf %8, %5 : vector<128x128xf32>
    %10 = arith.select %7, %5, %9 : vector<128x128xi1>, vector<128x128xf32>
    %c0_7 = arith.constant 0 : index
    %c0_8 = arith.constant 0 : index
    %11 = vector.load %arg1[%c0_7, %c0_8] : memref<128x1xf32, #tpu.memory_space<vmem>>, vector<128x1xf32>
    %12 = vector.broadcast %11 : vector<128x1xf32> to vector<128x128xf32>
    %13 = arith.mulf %10, %12 : vector<128x128xf32>
    %14 = vector.extract_strided_slice %13 {offsets = [0, 0], sizes = [126, 128], strides = [1, 1]} : vector<128x128xf32> to vector<126x128xf32>
    %c0_9 = arith.constant 0 : index
    %c0_10 = arith.constant 0 : index
    %c0_11 = arith.constant 0 : index
    %15 = vector.load %arg5[%c0_9, %c0_10, %c0_11] : memref<3x128x64xf32, #tpu.memory_space<vmem>>, vector<1x128x64xf32>
    %16 = vector.shape_cast %15 : vector<1x128x64xf32> to vector<128x64xf32>
    %cst_12 = arith.constant dense<0.000000e+00> : vector<126x64xf32>
    %17 = tpu.matmul %14, %16, %cst_12 {dimension_numbers = #tpu.dot_dimension_numbers<[1], [0], [0], [1], [0, 0, 1, 1], [], []>} : vector<126x128xf32>, vector<128x64xf32>, vector<126x64xf32> -> vector<126x64xf32>
    %18 = vector.extract_strided_slice %13 {offsets = [1, 0], sizes = [126, 128], strides = [1, 1]} : vector<128x128xf32> to vector<126x128xf32>
    %c1 = arith.constant 1 : index
    %c0_13 = arith.constant 0 : index
    %c0_14 = arith.constant 0 : index
    %19 = vector.load %arg5[%c1, %c0_13, %c0_14] : memref<3x128x64xf32, #tpu.memory_space<vmem>>, vector<1x128x64xf32>
    %20 = vector.shape_cast %19 : vector<1x128x64xf32> to vector<128x64xf32>
    %cst_15 = arith.constant dense<0.000000e+00> : vector<126x64xf32>
    %21 = tpu.matmul %18, %20, %cst_15 {dimension_numbers = #tpu.dot_dimension_numbers<[1], [0], [0], [1], [0, 0, 1, 1], [], []>} : vector<126x128xf32>, vector<128x64xf32>, vector<126x64xf32> -> vector<126x64xf32>
    %22 = arith.addf %17, %21 : vector<126x64xf32>
    %23 = vector.extract_strided_slice %13 {offsets = [2, 0], sizes = [126, 128], strides = [1, 1]} : vector<128x128xf32> to vector<126x128xf32>
    %c2 = arith.constant 2 : index
    %c0_16 = arith.constant 0 : index
    %c0_17 = arith.constant 0 : index
    %24 = vector.load %arg5[%c2, %c0_16, %c0_17] : memref<3x128x64xf32, #tpu.memory_space<vmem>>, vector<1x128x64xf32>
    %25 = vector.shape_cast %24 : vector<1x128x64xf32> to vector<128x64xf32>
    %cst_18 = arith.constant dense<0.000000e+00> : vector<126x64xf32>
    %26 = tpu.matmul %23, %25, %cst_18 {dimension_numbers = #tpu.dot_dimension_numbers<[1], [0], [0], [1], [0, 0, 1, 1], [], []>} : vector<126x128xf32>, vector<128x64xf32>, vector<126x64xf32> -> vector<126x64xf32>
    %27 = arith.addf %22, %26 : vector<126x64xf32>
    %c0_19 = arith.constant 0 : index
    %c0_20 = arith.constant 0 : index
    %28 = vector.load %arg6[%c0_19, %c0_20] : memref<1x64xf32, #tpu.memory_space<vmem>>, vector<1x64xf32>
    %29 = vector.broadcast %28 : vector<1x64xf32> to vector<126x64xf32>
    %30 = arith.addf %27, %29 : vector<126x64xf32>
    %cst_21 = arith.constant 0.000000e+00 : f32
    %31 = vector.broadcast %cst_21 : f32 to vector<126x64xf32>
    %32 = arith.cmpf ogt, %30, %31 : vector<126x64xf32>
    %cst_22 = arith.constant 0.00999999977 : f32
    %33 = vector.broadcast %cst_22 : f32 to vector<126x64xf32>
    %34 = arith.mulf %33, %30 : vector<126x64xf32>
    %35 = arith.select %32, %30, %34 : vector<126x64xi1>, vector<126x64xf32>
    %36 = vector.extract_strided_slice %35 {offsets = [0, 0], sizes = [124, 64], strides = [1, 1]} : vector<126x64xf32> to vector<124x64xf32>
    %c0_23 = arith.constant 0 : index
    %c0_24 = arith.constant 0 : index
    %c0_25 = arith.constant 0 : index
    %37 = vector.load %arg7[%c0_23, %c0_24, %c0_25] : memref<3x64x64xf32, #tpu.memory_space<vmem>>, vector<1x64x64xf32>
    %38 = vector.shape_cast %37 : vector<1x64x64xf32> to vector<64x64xf32>
    %cst_26 = arith.constant dense<0.000000e+00> : vector<124x64xf32>
    %39 = tpu.matmul %36, %38, %cst_26 {dimension_numbers = #tpu.dot_dimension_numbers<[1], [0], [0], [1], [0, 0, 1, 1], [], []>} : vector<124x64xf32>, vector<64x64xf32>, vector<124x64xf32> -> vector<124x64xf32>
    %40 = vector.extract_strided_slice %35 {offsets = [1, 0], sizes = [124, 64], strides = [1, 1]} : vector<126x64xf32> to vector<124x64xf32>
    %c1_27 = arith.constant 1 : index
    %c0_28 = arith.constant 0 : index
    %c0_29 = arith.constant 0 : index
    %41 = vector.load %arg7[%c1_27, %c0_28, %c0_29] : memref<3x64x64xf32, #tpu.memory_space<vmem>>, vector<1x64x64xf32>
    %42 = vector.shape_cast %41 : vector<1x64x64xf32> to vector<64x64xf32>
    %cst_30 = arith.constant dense<0.000000e+00> : vector<124x64xf32>
    %43 = tpu.matmul %40, %42, %cst_30 {dimension_numbers = #tpu.dot_dimension_numbers<[1], [0], [0], [1], [0, 0, 1, 1], [], []>} : vector<124x64xf32>, vector<64x64xf32>, vector<124x64xf32> -> vector<124x64xf32>
    %44 = arith.addf %39, %43 : vector<124x64xf32>
    %45 = vector.extract_strided_slice %35 {offsets = [2, 0], sizes = [124, 64], strides = [1, 1]} : vector<126x64xf32> to vector<124x64xf32>
    %c2_31 = arith.constant 2 : index
    %c0_32 = arith.constant 0 : index
    %c0_33 = arith.constant 0 : index
    %46 = vector.load %arg7[%c2_31, %c0_32, %c0_33] : memref<3x64x64xf32, #tpu.memory_space<vmem>>, vector<1x64x64xf32>
    %47 = vector.shape_cast %46 : vector<1x64x64xf32> to vector<64x64xf32>
    %cst_34 = arith.constant dense<0.000000e+00> : vector<124x64xf32>
    %48 = tpu.matmul %45, %47, %cst_34 {dimension_numbers = #tpu.dot_dimension_numbers<[1], [0], [0], [1], [0, 0, 1, 1], [], []>} : vector<124x64xf32>, vector<64x64xf32>, vector<124x64xf32> -> vector<124x64xf32>
    %49 = arith.addf %44, %48 : vector<124x64xf32>
    %c0_35 = arith.constant 0 : index
    %c0_36 = arith.constant 0 : index
    %50 = vector.load %arg8[%c0_35, %c0_36] : memref<1x64xf32, #tpu.memory_space<vmem>>, vector<1x64xf32>
    %51 = vector.broadcast %50 : vector<1x64xf32> to vector<124x64xf32>
    %52 = arith.addf %49, %51 : vector<124x64xf32>
    %cst_37 = arith.constant 0.000000e+00 : f32
    %53 = vector.broadcast %cst_37 : f32 to vector<124x64xf32>
    %54 = arith.cmpf ogt, %52, %53 : vector<124x64xf32>
    %cst_38 = arith.constant 0.00999999977 : f32
    %55 = vector.broadcast %cst_38 : f32 to vector<124x64xf32>
    %56 = arith.mulf %55, %52 : vector<124x64xf32>
    %57 = arith.select %54, %52, %56 : vector<124x64xi1>, vector<124x64xf32>
    %c0_39 = arith.constant 0 : index
    %c0_40 = arith.constant 0 : index
    %58 = vector.load %arg15[%c0_39, %c0_40] : memref<124x64xf32, #tpu.memory_space<vmem>>, vector<124x64xf32>
    tpu.vector_store %arg15[%c0_39, %c0_40], %57 {strides = array<i32>} : memref<124x64xf32, #tpu.memory_space<vmem>>, vector<124x64xf32>,
    %c0_41 = arith.constant 0 : index
    %c0_42 = arith.constant 0 : index
    %59 = tpu.strided_load %arg15[%c0_41, %c0_42] {strides = array<i32: 2, 1>} : memref<124x64xf32, #tpu.memory_space<vmem>>, vector<62x64xf32>
    %c1_43 = arith.constant 1 : index
    %c0_44 = arith.constant 0 : index
    %60 = tpu.strided_load %arg15[%c1_43, %c0_44] {strides = array<i32: 2, 1>} : memref<124x64xf32, #tpu.memory_space<vmem>>, vector<62x64xf32>
    %61 = arith.maximumf %59, %60 : vector<62x64xf32>
    %62 = vector.extract_strided_slice %61 {offsets = [0, 0], sizes = [60, 64], strides = [1, 1]} : vector<62x64xf32> to vector<60x64xf32>
    %c0_45 = arith.constant 0 : index
    %c0_46 = arith.constant 0 : index
    %c0_47 = arith.constant 0 : index
    %63 = vector.load %arg7[%c0_45, %c0_46, %c0_47] : memref<3x64x64xf32, #tpu.memory_space<vmem>>, vector<1x64x64xf32>
    %64 = vector.shape_cast %63 : vector<1x64x64xf32> to vector<64x64xf32>
    %cst_48 = arith.constant dense<0.000000e+00> : vector<60x64xf32>
    %65 = tpu.matmul %62, %64, %cst_48 {dimension_numbers = #tpu.dot_dimension_numbers<[1], [0], [0], [1], [0, 0, 1, 1], [], []>} : vector<60x64xf32>, vector<64x64xf32>, vector<60x64xf32> -> vector<60x64xf32>
    %66 = vector.extract_strided_slice %61 {offsets = [1, 0], sizes = [60, 64], strides = [1, 1]} : vector<62x64xf32> to vector<60x64xf32>
    %c1_49 = arith.constant 1 : index
    %c0_50 = arith.constant 0 : index
    %c0_51 = arith.constant 0 : index
    %67 = vector.load %arg7[%c1_49, %c0_50, %c0_51] : memref<3x64x64xf32, #tpu.memory_space<vmem>>, vector<1x64x64xf32>
    %68 = vector.shape_cast %67 : vector<1x64x64xf32> to vector<64x64xf32>
    %cst_52 = arith.constant dense<0.000000e+00> : vector<60x64xf32>
    %69 = tpu.matmul %66, %68, %cst_52 {dimension_numbers = #tpu.dot_dimension_numbers<[1], [0], [0], [1], [0, 0, 1, 1], [], []>} : vector<60x64xf32>, vector<64x64xf32>, vector<60x64xf32> -> vector<60x64xf32>
    %70 = arith.addf %65, %69 : vector<60x64xf32>
    %71 = vector.extract_strided_slice %61 {offsets = [2, 0], sizes = [60, 64], strides = [1, 1]} : vector<62x64xf32> to vector<60x64xf32>
    %c2_53 = arith.constant 2 : index
    %c0_54 = arith.constant 0 : index
    %c0_55 = arith.constant 0 : index
    %72 = vector.load %arg7[%c2_53, %c0_54, %c0_55] : memref<3x64x64xf32, #tpu.memory_space<vmem>>, vector<1x64x64xf32>
    %73 = vector.shape_cast %72 : vector<1x64x64xf32> to vector<64x64xf32>
    %cst_56 = arith.constant dense<0.000000e+00> : vector<60x64xf32>
    %74 = tpu.matmul %71, %73, %cst_56 {dimension_numbers = #tpu.dot_dimension_numbers<[1], [0], [0], [1], [0, 0, 1, 1], [], []>} : vector<60x64xf32>, vector<64x64xf32>, vector<60x64xf32> -> vector<60x64xf32>
    %75 = arith.addf %70, %74 : vector<60x64xf32>
    %c0_57 = arith.constant 0 : index
    %c0_58 = arith.constant 0 : index
    %76 = vector.load %arg8[%c0_57, %c0_58] : memref<1x64xf32, #tpu.memory_space<vmem>>, vector<1x64xf32>
    %77 = vector.broadcast %76 : vector<1x64xf32> to vector<60x64xf32>
    %78 = arith.addf %75, %77 : vector<60x64xf32>
    %cst_59 = arith.constant 0.000000e+00 : f32
    %79 = vector.broadcast %cst_59 : f32 to vector<60x64xf32>
    %80 = arith.cmpf ogt, %78, %79 : vector<60x64xf32>
    %cst_60 = arith.constant 0.00999999977 : f32
    %81 = vector.broadcast %cst_60 : f32 to vector<60x64xf32>
    %82 = arith.mulf %81, %78 : vector<60x64xf32>
    %83 = arith.select %80, %78, %82 : vector<60x64xi1>, vector<60x64xf32>
    %c0_61 = arith.constant 0 : index
    %c0_62 = arith.constant 0 : index
    %84 = vector.load %arg15[%c0_61, %c0_62] : memref<124x64xf32, #tpu.memory_space<vmem>>, vector<60x64xf32>
    tpu.vector_store %arg15[%c0_61, %c0_62], %83 {strides = array<i32>} : memref<124x64xf32, #tpu.memory_space<vmem>>, vector<60x64xf32>,
    %c0_63 = arith.constant 0 : index
    %c0_64 = arith.constant 0 : index
    %85 = tpu.strided_load %arg15[%c0_63, %c0_64] {strides = array<i32: 2, 1>} : memref<124x64xf32, #tpu.memory_space<vmem>>, vector<30x64xf32>
    %c1_65 = arith.constant 1 : index
    %c0_66 = arith.constant 0 : index
    %86 = tpu.strided_load %arg15[%c1_65, %c0_66] {strides = array<i32: 2, 1>} : memref<124x64xf32, #tpu.memory_space<vmem>>, vector<30x64xf32>
    %87 = arith.maximumf %85, %86 : vector<30x64xf32>
    %cst_67 = arith.constant 0.000000e+00 : f32
    %88 = vector.broadcast %cst_67 : f32 to vector<32x64xf32>
    %c0_68 = arith.constant 0 : index
    %c0_69 = arith.constant 0 : index
    %89 = vector.load %arg16[%c0_68, %c0_69] : memref<32x64xf32, #tpu.memory_space<vmem>>, vector<32x64xf32>
    tpu.vector_store %arg16[%c0_68, %c0_69], %88 {strides = array<i32>} : memref<32x64xf32, #tpu.memory_space<vmem>>, vector<32x64xf32>,
    %cst_70 = arith.constant 0.000000e+00 : f32
    %90 = vector.broadcast %cst_70 : f32 to vector<32x64xf32>
    %c0_71 = arith.constant 0 : index
    %c0_72 = arith.constant 0 : index
    %91 = vector.load %arg17[%c0_71, %c0_72] : memref<32x64xf32, #tpu.memory_space<vmem>>, vector<32x64xf32>
    tpu.vector_store %arg17[%c0_71, %c0_72], %90 {strides = array<i32>} : memref<32x64xf32, #tpu.memory_space<vmem>>, vector<32x64xf32>,
    %c0_73 = arith.constant 0 : index
    %c0_74 = arith.constant 0 : index
    %92 = vector.load %arg2[%c0_73, %c0_74] : memref<15x64xf32, #tpu.memory_space<vmem>>, vector<1x64xf32>
    %c0_75 = arith.constant 0 : index
    %c0_76 = arith.constant 0 : index
    %93 = vector.load %arg16[%c0_75, %c0_76] : memref<32x64xf32, #tpu.memory_space<vmem>>, vector<1x64xf32>
    tpu.vector_store %arg16[%c0_75, %c0_76], %92 {strides = array<i32>} : memref<32x64xf32, #tpu.memory_space<vmem>>, vector<1x64xf32>,
    %94 = vector.extract_strided_slice %87 {offsets = [0, 0], sizes = [14, 64], strides = [1, 1]} : vector<30x64xf32> to vector<14x64xf32>
    %cst_77 = arith.constant 8.000000e+00 : f32
    %95 = vector.broadcast %cst_77 : f32 to vector<14x64xf32>
    %96 = arith.mulf %94, %95 : vector<14x64xf32>
    %c1_78 = arith.constant 1 : index
    %c0_79 = arith.constant 0 : index
    %97 = vector.load %arg2[%c1_78, %c0_79] : memref<15x64xf32, #tpu.memory_space<vmem>>, vector<14x64xf32>
    %98 = arith.addf %96, %97 : vector<14x64xf32>
    %c1_80 = arith.constant 1 : index
    %c0_81 = arith.constant 0 : index
    %99 = vector.load %arg16[%c1_80, %c0_81] : memref<32x64xf32, #tpu.memory_space<vmem>>, vector<14x64xf32>
    tpu.vector_store %arg16[%c1_80, %c0_81], %98 {strides = array<i32>} : memref<32x64xf32, #tpu.memory_space<vmem>>, vector<14x64xf32>,
    %c0_82 = arith.constant 0 : index
    %c0_83 = arith.constant 0 : index
    %100 = vector.load %arg2[%c0_82, %c0_83] : memref<15x64xf32, #tpu.memory_space<vmem>>, vector<1x64xf32>
    %c16 = arith.constant 16 : index
    %c0_84 = arith.constant 0 : index
    %101 = vector.load %arg16[%c16, %c0_84] : memref<32x64xf32, #tpu.memory_space<vmem>>, vector<1x64xf32>
    tpu.vector_store %arg16[%c16, %c0_84], %100 {strides = array<i32>} : memref<32x64xf32, #tpu.memory_space<vmem>>, vector<1x64xf32>,
    %102 = vector.extract_strided_slice %87 {offsets = [16, 0], sizes = [14, 64], strides = [1, 1]} : vector<30x64xf32> to vector<14x64xf32>
    %cst_85 = arith.constant 8.000000e+00 : f32
    %103 = vector.broadcast %cst_85 : f32 to vector<14x64xf32>
    %104 = arith.mulf %102, %103 : vector<14x64xf32>
    %c1_86 = arith.constant 1 : index
    %c0_87 = arith.constant 0 : index
    %105 = vector.load %arg2[%c1_86, %c0_87] : memref<15x64xf32, #tpu.memory_space<vmem>>, vector<14x64xf32>
    %106 = arith.addf %104, %105 : vector<14x64xf32>
    %c17 = arith.constant 17 : index
    %c0_88 = arith.constant 0 : index
    %107 = vector.load %arg16[%c17, %c0_88] : memref<32x64xf32, #tpu.memory_space<vmem>>, vector<14x64xf32>
    tpu.vector_store %arg16[%c17, %c0_88], %106 {strides = array<i32>} : memref<32x64xf32, #tpu.memory_space<vmem>>, vector<14x64xf32>,
    %c0_89 = arith.constant 0 : index
    %c0_90 = arith.constant 0 : index
    %108 = vector.load %arg16[%c0_89, %c0_90] : memref<32x64xf32, #tpu.memory_space<vmem>>, vector<32x64xf32>
    %c0_91 = arith.constant 0 : index
    %c0_92 = arith.constant 0 : index
    %c0_93 = arith.constant 0 : index
    %109 = vector.load %arg13[%c0_91, %c0_92, %c0_93] : memref<2x10x64xf32, #tpu.memory_space<vmem>>, vector<1x10x64xf32>
    %110 = vector.shape_cast %109 : vector<1x10x64xf32> to vector<10x64xf32>
    %c0_94 = arith.constant 0 : index
    %c0_95 = arith.constant 0 : index
    %c0_96 = arith.constant 0 : index
    %111 = vector.load %arg9[%c0_94, %c0_95, %c0_96] : memref<2x64x192xf32, #tpu.memory_space<vmem>>, vector<1x64x192xf32>
    %112 = vector.shape_cast %111 : vector<1x64x192xf32> to vector<64x192xf32>
    %cst_97 = arith.constant dense<0.000000e+00> : vector<32x192xf32>
    %113 = tpu.matmul %108, %112, %cst_97 {dimension_numbers = #tpu.dot_dimension_numbers<[1], [0], [0], [1], [0, 0, 1, 1], [], []>} : vector<32x64xf32>, vector<64x192xf32>, vector<32x192xf32> -> vector<32x192xf32>
    %114 = vector.extract_strided_slice %113 {offsets = [0, 0], sizes = [32, 64], strides = [1, 1]} : vector<32x192xf32> to vector<32x64xf32>
    %115 = vector.extract_strided_slice %110 {offsets = [0, 0], sizes = [1, 64], strides = [1, 1]} : vector<10x64xf32> to vector<1x64xf32>
    %116 = vector.broadcast %115 : vector<1x64xf32> to vector<32x64xf32>
    %117 = arith.addf %114, %116 : vector<32x64xf32>
    %118 = vector.extract_strided_slice %113 {offsets = [0, 64], sizes = [32, 64], strides = [1, 1]} : vector<32x192xf32> to vector<32x64xf32>
    %119 = vector.extract_strided_slice %110 {offsets = [1, 0], sizes = [1, 64], strides = [1, 1]} : vector<10x64xf32> to vector<1x64xf32>
    %120 = vector.broadcast %119 : vector<1x64xf32> to vector<32x64xf32>
    %121 = arith.addf %118, %120 : vector<32x64xf32>
    %122 = vector.extract_strided_slice %113 {offsets = [0, 128], sizes = [32, 64], strides = [1, 1]} : vector<32x192xf32> to vector<32x64xf32>
    %123 = vector.extract_strided_slice %110 {offsets = [2, 0], sizes = [1, 64], strides = [1, 1]} : vector<10x64xf32> to vector<1x64xf32>
    %124 = vector.broadcast %123 : vector<1x64xf32> to vector<32x64xf32>
    %125 = arith.addf %122, %124 : vector<32x64xf32>
    %126 = vector.extract_strided_slice %117 {offsets = [0, 0], sizes = [15, 16], strides = [1, 1]} : vector<32x64xf32> to vector<15x16xf32>
    %127 = vector.extract_strided_slice %121 {offsets = [0, 0], sizes = [15, 16], strides = [1, 1]} : vector<32x64xf32> to vector<15x16xf32>
    %128 = vector.extract_strided_slice %125 {offsets = [0, 0], sizes = [15, 16], strides = [1, 1]} : vector<32x64xf32> to vector<15x16xf32>
    %cst_98 = arith.constant dense<0.000000e+00> : vector<15x15xf32>
    %129 = tpu.matmul %126, %127, %cst_98 {dimension_numbers = #tpu.dot_dimension_numbers<[1], [1], [0], [0], [0, 0, 1, 0], [], []>} : vector<15x16xf32>, vector<15x16xf32>, vector<15x15xf32> -> vector<15x15xf32>
    %cst_99 = arith.constant dense<0xFF800000> : vector<15xf32>
    %130 = vector.multi_reduction <maximumf>, %129, %cst_99 [1] : vector<15x15xf32> to vector<15xf32>
    %131 = vector.shape_cast %130 : vector<15xf32> to vector<15x1xf32>
    %132 = vector.broadcast %131 : vector<15x1xf32> to vector<15x15xf32>
    %133 = arith.subf %129, %132 : vector<15x15xf32>
    %134 = math.exp %133 : vector<15x15xf32>
    %cst_100 = arith.constant dense<0.000000e+00> : vector<15xf32>
    %135 = vector.multi_reduction <add>, %134, %cst_100 [1] : vector<15x15xf32> to vector<15xf32>
    %136 = vector.shape_cast %135 : vector<15xf32> to vector<15x1xf32>
    %137 = vector.broadcast %136 : vector<15x1xf32> to vector<15x15xf32>
    %138 = arith.divf %134, %137 : vector<15x15xf32>
    %cst_101 = arith.constant dense<0.000000e+00> : vector<15x16xf32>
    %139 = tpu.matmul %138, %128, %cst_101 {dimension_numbers = #tpu.dot_dimension_numbers<[1], [0], [0], [1], [0, 0, 1, 1], [], []>} : vector<15x15xf32>, vector<15x16xf32>, vector<15x16xf32> -> vector<15x16xf32>
    %c0_102 = arith.constant 0 : index
    %c0_103 = arith.constant 0 : index
    %140 = vector.load %arg17[%c0_102, %c0_103] : memref<32x64xf32, #tpu.memory_space<vmem>>, vector<15x16xf32>
    tpu.vector_store %arg17[%c0_102, %c0_103], %139 {strides = array<i32>} : memref<32x64xf32, #tpu.memory_space<vmem>>, vector<15x16xf32>,
    %141 = vector.extract_strided_slice %117 {offsets = [0, 16], sizes = [15, 16], strides = [1, 1]} : vector<32x64xf32> to vector<15x16xf32>
    %142 = vector.extract_strided_slice %121 {offsets = [0, 16], sizes = [15, 16], strides = [1, 1]} : vector<32x64xf32> to vector<15x16xf32>
    %143 = vector.extract_strided_slice %125 {offsets = [0, 16], sizes = [15, 16], strides = [1, 1]} : vector<32x64xf32> to vector<15x16xf32>
    %cst_104 = arith.constant dense<0.000000e+00> : vector<15x15xf32>
    %144 = tpu.matmul %141, %142, %cst_104 {dimension_numbers = #tpu.dot_dimension_numbers<[1], [1], [0], [0], [0, 0, 1, 0], [], []>} : vector<15x16xf32>, vector<15x16xf32>, vector<15x15xf32> -> vector<15x15xf32>
    %cst_105 = arith.constant dense<0xFF800000> : vector<15xf32>
    %145 = vector.multi_reduction <maximumf>, %144, %cst_105 [1] : vector<15x15xf32> to vector<15xf32>
    %146 = vector.shape_cast %145 : vector<15xf32> to vector<15x1xf32>
    %147 = vector.broadcast %146 : vector<15x1xf32> to vector<15x15xf32>
    %148 = arith.subf %144, %147 : vector<15x15xf32>
    %149 = math.exp %148 : vector<15x15xf32>
    %cst_106 = arith.constant dense<0.000000e+00> : vector<15xf32>
    %150 = vector.multi_reduction <add>, %149, %cst_106 [1] : vector<15x15xf32> to vector<15xf32>
    %151 = vector.shape_cast %150 : vector<15xf32> to vector<15x1xf32>
    %152 = vector.broadcast %151 : vector<15x1xf32> to vector<15x15xf32>
    %153 = arith.divf %149, %152 : vector<15x15xf32>
    %cst_107 = arith.constant dense<0.000000e+00> : vector<15x16xf32>
    %154 = tpu.matmul %153, %143, %cst_107 {dimension_numbers = #tpu.dot_dimension_numbers<[1], [0], [0], [1], [0, 0, 1, 1], [], []>} : vector<15x15xf32>, vector<15x16xf32>, vector<15x16xf32> -> vector<15x16xf32>
    %c0_108 = arith.constant 0 : index
    %c16_109 = arith.constant 16 : index
    %155 = vector.load %arg17[%c0_108, %c16_109] : memref<32x64xf32, #tpu.memory_space<vmem>>, vector<15x16xf32>
    tpu.vector_store %arg17[%c0_108, %c16_109], %154 {strides = array<i32>} : memref<32x64xf32, #tpu.memory_space<vmem>>, vector<15x16xf32>,
    %156 = vector.extract_strided_slice %117 {offsets = [0, 32], sizes = [15, 16], strides = [1, 1]} : vector<32x64xf32> to vector<15x16xf32>
    %157 = vector.extract_strided_slice %121 {offsets = [0, 32], sizes = [15, 16], strides = [1, 1]} : vector<32x64xf32> to vector<15x16xf32>
    %158 = vector.extract_strided_slice %125 {offsets = [0, 32], sizes = [15, 16], strides = [1, 1]} : vector<32x64xf32> to vector<15x16xf32>
    %cst_110 = arith.constant dense<0.000000e+00> : vector<15x15xf32>
    %159 = tpu.matmul %156, %157, %cst_110 {dimension_numbers = #tpu.dot_dimension_numbers<[1], [1], [0], [0], [0, 0, 1, 0], [], []>} : vector<15x16xf32>, vector<15x16xf32>, vector<15x15xf32> -> vector<15x15xf32>
    %cst_111 = arith.constant dense<0xFF800000> : vector<15xf32>
    %160 = vector.multi_reduction <maximumf>, %159, %cst_111 [1] : vector<15x15xf32> to vector<15xf32>
    %161 = vector.shape_cast %160 : vector<15xf32> to vector<15x1xf32>
    %162 = vector.broadcast %161 : vector<15x1xf32> to vector<15x15xf32>
    %163 = arith.subf %159, %162 : vector<15x15xf32>
    %164 = math.exp %163 : vector<15x15xf32>
    %cst_112 = arith.constant dense<0.000000e+00> : vector<15xf32>
    %165 = vector.multi_reduction <add>, %164, %cst_112 [1] : vector<15x15xf32> to vector<15xf32>
    %166 = vector.shape_cast %165 : vector<15xf32> to vector<15x1xf32>
    %167 = vector.broadcast %166 : vector<15x1xf32> to vector<15x15xf32>
    %168 = arith.divf %164, %167 : vector<15x15xf32>
    %cst_113 = arith.constant dense<0.000000e+00> : vector<15x16xf32>
    %169 = tpu.matmul %168, %158, %cst_113 {dimension_numbers = #tpu.dot_dimension_numbers<[1], [0], [0], [1], [0, 0, 1, 1], [], []>} : vector<15x15xf32>, vector<15x16xf32>, vector<15x16xf32> -> vector<15x16xf32>
    %c0_114 = arith.constant 0 : index
    %c32 = arith.constant 32 : index
    %170 = vector.load %arg17[%c0_114, %c32] : memref<32x64xf32, #tpu.memory_space<vmem>>, vector<15x16xf32>
    tpu.vector_store %arg17[%c0_114, %c32], %169 {strides = array<i32>} : memref<32x64xf32, #tpu.memory_space<vmem>>, vector<15x16xf32>,
    %171 = vector.extract_strided_slice %117 {offsets = [0, 48], sizes = [15, 16], strides = [1, 1]} : vector<32x64xf32> to vector<15x16xf32>
    %172 = vector.extract_strided_slice %121 {offsets = [0, 48], sizes = [15, 16], strides = [1, 1]} : vector<32x64xf32> to vector<15x16xf32>
    %173 = vector.extract_strided_slice %125 {offsets = [0, 48], sizes = [15, 16], strides = [1, 1]} : vector<32x64xf32> to vector<15x16xf32>
    %cst_115 = arith.constant dense<0.000000e+00> : vector<15x15xf32>
    %174 = tpu.matmul %171, %172, %cst_115 {dimension_numbers = #tpu.dot_dimension_numbers<[1], [1], [0], [0], [0, 0, 1, 0], [], []>} : vector<15x16xf32>, vector<15x16xf32>, vector<15x15xf32> -> vector<15x15xf32>
    %cst_116 = arith.constant dense<0xFF800000> : vector<15xf32>
    %175 = vector.multi_reduction <maximumf>, %174, %cst_116 [1] : vector<15x15xf32> to vector<15xf32>
    %176 = vector.shape_cast %175 : vector<15xf32> to vector<15x1xf32>
    %177 = vector.broadcast %176 : vector<15x1xf32> to vector<15x15xf32>
    %178 = arith.subf %174, %177 : vector<15x15xf32>
    %179 = math.exp %178 : vector<15x15xf32>
    %cst_117 = arith.constant dense<0.000000e+00> : vector<15xf32>
    %180 = vector.multi_reduction <add>, %179, %cst_117 [1] : vector<15x15xf32> to vector<15xf32>
    %181 = vector.shape_cast %180 : vector<15xf32> to vector<15x1xf32>
    %182 = vector.broadcast %181 : vector<15x1xf32> to vector<15x15xf32>
    %183 = arith.divf %179, %182 : vector<15x15xf32>
    %cst_118 = arith.constant dense<0.000000e+00> : vector<15x16xf32>
    %184 = tpu.matmul %183, %173, %cst_118 {dimension_numbers = #tpu.dot_dimension_numbers<[1], [0], [0], [1], [0, 0, 1, 1], [], []>} : vector<15x15xf32>, vector<15x16xf32>, vector<15x16xf32> -> vector<15x16xf32>
    %c0_119 = arith.constant 0 : index
    %c48 = arith.constant 48 : index
    %185 = vector.load %arg17[%c0_119, %c48] : memref<32x64xf32, #tpu.memory_space<vmem>>, vector<15x16xf32>
    tpu.vector_store %arg17[%c0_119, %c48], %184 {strides = array<i32>} : memref<32x64xf32, #tpu.memory_space<vmem>>, vector<15x16xf32>,
    %186 = vector.extract_strided_slice %117 {offsets = [16, 0], sizes = [15, 16], strides = [1, 1]} : vector<32x64xf32> to vector<15x16xf32>
    %187 = vector.extract_strided_slice %121 {offsets = [16, 0], sizes = [15, 16], strides = [1, 1]} : vector<32x64xf32> to vector<15x16xf32>
    %188 = vector.extract_strided_slice %125 {offsets = [16, 0], sizes = [15, 16], strides = [1, 1]} : vector<32x64xf32> to vector<15x16xf32>
    %cst_120 = arith.constant dense<0.000000e+00> : vector<15x15xf32>
    %189 = tpu.matmul %186, %187, %cst_120 {dimension_numbers = #tpu.dot_dimension_numbers<[1], [1], [0], [0], [0, 0, 1, 0], [], []>} : vector<15x16xf32>, vector<15x16xf32>, vector<15x15xf32> -> vector<15x15xf32>
    %cst_121 = arith.constant dense<0xFF800000> : vector<15xf32>
    %190 = vector.multi_reduction <maximumf>, %189, %cst_121 [1] : vector<15x15xf32> to vector<15xf32>
    %191 = vector.shape_cast %190 : vector<15xf32> to vector<15x1xf32>
    %192 = vector.broadcast %191 : vector<15x1xf32> to vector<15x15xf32>
    %193 = arith.subf %189, %192 : vector<15x15xf32>
    %194 = math.exp %193 : vector<15x15xf32>
    %cst_122 = arith.constant dense<0.000000e+00> : vector<15xf32>
    %195 = vector.multi_reduction <add>, %194, %cst_122 [1] : vector<15x15xf32> to vector<15xf32>
    %196 = vector.shape_cast %195 : vector<15xf32> to vector<15x1xf32>
    %197 = vector.broadcast %196 : vector<15x1xf32> to vector<15x15xf32>
    %198 = arith.divf %194, %197 : vector<15x15xf32>
    %cst_123 = arith.constant dense<0.000000e+00> : vector<15x16xf32>
    %199 = tpu.matmul %198, %188, %cst_123 {dimension_numbers = #tpu.dot_dimension_numbers<[1], [0], [0], [1], [0, 0, 1, 1], [], []>} : vector<15x15xf32>, vector<15x16xf32>, vector<15x16xf32> -> vector<15x16xf32>
    %c16_124 = arith.constant 16 : index
    %c0_125 = arith.constant 0 : index
    %200 = vector.load %arg17[%c16_124, %c0_125] : memref<32x64xf32, #tpu.memory_space<vmem>>, vector<15x16xf32>
    tpu.vector_store %arg17[%c16_124, %c0_125], %199 {strides = array<i32>} : memref<32x64xf32, #tpu.memory_space<vmem>>, vector<15x16xf32>,
    %201 = vector.extract_strided_slice %117 {offsets = [16, 16], sizes = [15, 16], strides = [1, 1]} : vector<32x64xf32> to vector<15x16xf32>
    %202 = vector.extract_strided_slice %121 {offsets = [16, 16], sizes = [15, 16], strides = [1, 1]} : vector<32x64xf32> to vector<15x16xf32>
    %203 = vector.extract_strided_slice %125 {offsets = [16, 16], sizes = [15, 16], strides = [1, 1]} : vector<32x64xf32> to vector<15x16xf32>
    %cst_126 = arith.constant dense<0.000000e+00> : vector<15x15xf32>
    %204 = tpu.matmul %201, %202, %cst_126 {dimension_numbers = #tpu.dot_dimension_numbers<[1], [1], [0], [0], [0, 0, 1, 0], [], []>} : vector<15x16xf32>, vector<15x16xf32>, vector<15x15xf32> -> vector<15x15xf32>
    %cst_127 = arith.constant dense<0xFF800000> : vector<15xf32>
    %205 = vector.multi_reduction <maximumf>, %204, %cst_127 [1] : vector<15x15xf32> to vector<15xf32>
    %206 = vector.shape_cast %205 : vector<15xf32> to vector<15x1xf32>
    %207 = vector.broadcast %206 : vector<15x1xf32> to vector<15x15xf32>
    %208 = arith.subf %204, %207 : vector<15x15xf32>
    %209 = math.exp %208 : vector<15x15xf32>
    %cst_128 = arith.constant dense<0.000000e+00> : vector<15xf32>
    %210 = vector.multi_reduction <add>, %209, %cst_128 [1] : vector<15x15xf32> to vector<15xf32>
    %211 = vector.shape_cast %210 : vector<15xf32> to vector<15x1xf32>
    %212 = vector.broadcast %211 : vector<15x1xf32> to vector<15x15xf32>
    %213 = arith.divf %209, %212 : vector<15x15xf32>
    %cst_129 = arith.constant dense<0.000000e+00> : vector<15x16xf32>
    %214 = tpu.matmul %213, %203, %cst_129 {dimension_numbers = #tpu.dot_dimension_numbers<[1], [0], [0], [1], [0, 0, 1, 1], [], []>} : vector<15x15xf32>, vector<15x16xf32>, vector<15x16xf32> -> vector<15x16xf32>
    %c16_130 = arith.constant 16 : index
    %c16_131 = arith.constant 16 : index
    %215 = vector.load %arg17[%c16_130, %c16_131] : memref<32x64xf32, #tpu.memory_space<vmem>>, vector<15x16xf32>
    tpu.vector_store %arg17[%c16_130, %c16_131], %214 {strides = array<i32>} : memref<32x64xf32, #tpu.memory_space<vmem>>, vector<15x16xf32>,
    %216 = vector.extract_strided_slice %117 {offsets = [16, 32], sizes = [15, 16], strides = [1, 1]} : vector<32x64xf32> to vector<15x16xf32>
    %217 = vector.extract_strided_slice %121 {offsets = [16, 32], sizes = [15, 16], strides = [1, 1]} : vector<32x64xf32> to vector<15x16xf32>
    %218 = vector.extract_strided_slice %125 {offsets = [16, 32], sizes = [15, 16], strides = [1, 1]} : vector<32x64xf32> to vector<15x16xf32>
    %cst_132 = arith.constant dense<0.000000e+00> : vector<15x15xf32>
    %219 = tpu.matmul %216, %217, %cst_132 {dimension_numbers = #tpu.dot_dimension_numbers<[1], [1], [0], [0], [0, 0, 1, 0], [], []>} : vector<15x16xf32>, vector<15x16xf32>, vector<15x15xf32> -> vector<15x15xf32>
    %cst_133 = arith.constant dense<0xFF800000> : vector<15xf32>
    %220 = vector.multi_reduction <maximumf>, %219, %cst_133 [1] : vector<15x15xf32> to vector<15xf32>
    %221 = vector.shape_cast %220 : vector<15xf32> to vector<15x1xf32>
    %222 = vector.broadcast %221 : vector<15x1xf32> to vector<15x15xf32>
    %223 = arith.subf %219, %222 : vector<15x15xf32>
    %224 = math.exp %223 : vector<15x15xf32>
    %cst_134 = arith.constant dense<0.000000e+00> : vector<15xf32>
    %225 = vector.multi_reduction <add>, %224, %cst_134 [1] : vector<15x15xf32> to vector<15xf32>
    %226 = vector.shape_cast %225 : vector<15xf32> to vector<15x1xf32>
    %227 = vector.broadcast %226 : vector<15x1xf32> to vector<15x15xf32>
    %228 = arith.divf %224, %227 : vector<15x15xf32>
    %cst_135 = arith.constant dense<0.000000e+00> : vector<15x16xf32>
    %229 = tpu.matmul %228, %218, %cst_135 {dimension_numbers = #tpu.dot_dimension_numbers<[1], [0], [0], [1], [0, 0, 1, 1], [], []>} : vector<15x15xf32>, vector<15x16xf32>, vector<15x16xf32> -> vector<15x16xf32>
    %c16_136 = arith.constant 16 : index
    %c32_137 = arith.constant 32 : index
    %230 = vector.load %arg17[%c16_136, %c32_137] : memref<32x64xf32, #tpu.memory_space<vmem>>, vector<15x16xf32>
    tpu.vector_store %arg17[%c16_136, %c32_137], %229 {strides = array<i32>} : memref<32x64xf32, #tpu.memory_space<vmem>>, vector<15x16xf32>,
    %231 = vector.extract_strided_slice %117 {offsets = [16, 48], sizes = [15, 16], strides = [1, 1]} : vector<32x64xf32> to vector<15x16xf32>
    %232 = vector.extract_strided_slice %121 {offsets = [16, 48], sizes = [15, 16], strides = [1, 1]} : vector<32x64xf32> to vector<15x16xf32>
    %233 = vector.extract_strided_slice %125 {offsets = [16, 48], sizes = [15, 16], strides = [1, 1]} : vector<32x64xf32> to vector<15x16xf32>
    %cst_138 = arith.constant dense<0.000000e+00> : vector<15x15xf32>
    %234 = tpu.matmul %231, %232, %cst_138 {dimension_numbers = #tpu.dot_dimension_numbers<[1], [1], [0], [0], [0, 0, 1, 0], [], []>} : vector<15x16xf32>, vector<15x16xf32>, vector<15x15xf32> -> vector<15x15xf32>
    %cst_139 = arith.constant dense<0xFF800000> : vector<15xf32>
    %235 = vector.multi_reduction <maximumf>, %234, %cst_139 [1] : vector<15x15xf32> to vector<15xf32>
    %236 = vector.shape_cast %235 : vector<15xf32> to vector<15x1xf32>
    %237 = vector.broadcast %236 : vector<15x1xf32> to vector<15x15xf32>
    %238 = arith.subf %234, %237 : vector<15x15xf32>
    %239 = math.exp %238 : vector<15x15xf32>
    %cst_140 = arith.constant dense<0.000000e+00> : vector<15xf32>
    %240 = vector.multi_reduction <add>, %239, %cst_140 [1] : vector<15x15xf32> to vector<15xf32>
    %241 = vector.shape_cast %240 : vector<15xf32> to vector<15x1xf32>
    %242 = vector.broadcast %241 : vector<15x1xf32> to vector<15x15xf32>
    %243 = arith.divf %239, %242 : vector<15x15xf32>
    %cst_141 = arith.constant dense<0.000000e+00> : vector<15x16xf32>
    %244 = tpu.matmul %243, %233, %cst_141 {dimension_numbers = #tpu.dot_dimension_numbers<[1], [0], [0], [1], [0, 0, 1, 1], [], []>} : vector<15x15xf32>, vector<15x16xf32>, vector<15x16xf32> -> vector<15x16xf32>
    %c16_142 = arith.constant 16 : index
    %c48_143 = arith.constant 48 : index
    %245 = vector.load %arg17[%c16_142, %c48_143] : memref<32x64xf32, #tpu.memory_space<vmem>>, vector<15x16xf32>
    tpu.vector_store %arg17[%c16_142, %c48_143], %244 {strides = array<i32>} : memref<32x64xf32, #tpu.memory_space<vmem>>, vector<15x16xf32>,
    %c0_144 = arith.constant 0 : index
    %c0_145 = arith.constant 0 : index
    %246 = vector.load %arg17[%c0_144, %c0_145] : memref<32x64xf32, #tpu.memory_space<vmem>>, vector<32x64xf32>
    %c0_146 = arith.constant 0 : index
    %c0_147 = arith.constant 0 : index
    %c0_148 = arith.constant 0 : index
    %247 = vector.load %arg10[%c0_146, %c0_147, %c0_148] : memref<2x64x64xf32, #tpu.memory_space<vmem>>, vector<1x64x64xf32>
    %248 = vector.shape_cast %247 : vector<1x64x64xf32> to vector<64x64xf32>
    %cst_149 = arith.constant dense<0.000000e+00> : vector<32x64xf32>
    %249 = tpu.matmul %246, %248, %cst_149 {dimension_numbers = #tpu.dot_dimension_numbers<[1], [0], [0], [1], [0, 0, 1, 1], [], []>} : vector<32x64xf32>, vector<64x64xf32>, vector<32x64xf32> -> vector<32x64xf32>
    %250 = vector.extract_strided_slice %110 {offsets = [3, 0], sizes = [1, 64], strides = [1, 1]} : vector<10x64xf32> to vector<1x64xf32>
    %251 = vector.broadcast %250 : vector<1x64xf32> to vector<32x64xf32>
    %252 = arith.addf %249, %251 : vector<32x64xf32>
    %253 = arith.addf %108, %252 : vector<32x64xf32>
    %254 = vector.extract_strided_slice %110 {offsets = [6, 0], sizes = [1, 64], strides = [1, 1]} : vector<10x64xf32> to vector<1x64xf32>
    %255 = vector.extract_strided_slice %110 {offsets = [7, 0], sizes = [1, 64], strides = [1, 1]} : vector<10x64xf32> to vector<1x64xf32>
    %cst_150 = arith.constant dense<0.000000e+00> : vector<32xf32>
    %256 = vector.multi_reduction <add>, %253, %cst_150 [1] : vector<32x64xf32> to vector<32xf32>
    %257 = vector.shape_cast %256 : vector<32xf32> to vector<32x1xf32>
    %cst_151 = arith.constant 6.400000e+01 : f32
    %258 = vector.broadcast %cst_151 : f32 to vector<32x1xf32>
    %259 = arith.divf %257, %258 : vector<32x1xf32>
    %260 = vector.broadcast %259 : vector<32x1xf32> to vector<32x64xf32>
    %261 = arith.subf %253, %260 : vector<32x64xf32>
    %262 = arith.mulf %261, %261 : vector<32x64xf32>
    %cst_152 = arith.constant dense<0.000000e+00> : vector<32xf32>
    %263 = vector.multi_reduction <add>, %262, %cst_152 [1] : vector<32x64xf32> to vector<32xf32>
    %264 = vector.shape_cast %263 : vector<32xf32> to vector<32x1xf32>
    %cst_153 = arith.constant 6.400000e+01 : f32
    %265 = vector.broadcast %cst_153 : f32 to vector<32x1xf32>
    %266 = arith.divf %264, %265 : vector<32x1xf32>
    %267 = vector.broadcast %259 : vector<32x1xf32> to vector<32x64xf32>
    %268 = arith.subf %253, %267 : vector<32x64xf32>
    %cst_154 = arith.constant 9.99999974E-6 : f32
    %269 = vector.broadcast %cst_154 : f32 to vector<32x1xf32>
    %270 = arith.addf %266, %269 : vector<32x1xf32>
    %271 = math.rsqrt %270 : vector<32x1xf32>
    %272 = vector.broadcast %271 : vector<32x1xf32> to vector<32x64xf32>
    %273 = arith.mulf %268, %272 : vector<32x64xf32>
    %274 = vector.broadcast %254 : vector<1x64xf32> to vector<32x64xf32>
    %275 = arith.mulf %273, %274 : vector<32x64xf32>
    %276 = vector.broadcast %255 : vector<1x64xf32> to vector<32x64xf32>
    %277 = arith.addf %275, %276 : vector<32x64xf32>
    %c0_155 = arith.constant 0 : index
    %c0_156 = arith.constant 0 : index
    %c0_157 = arith.constant 0 : index
    %278 = vector.load %arg11[%c0_155, %c0_156, %c0_157] : memref<2x64x32xf32, #tpu.memory_space<vmem>>, vector<1x64x32xf32>
    %279 = vector.shape_cast %278 : vector<1x64x32xf32> to vector<64x32xf32>
    %cst_158 = arith.constant dense<0.000000e+00> : vector<32x32xf32>
    %280 = tpu.matmul %277, %279, %cst_158 {dimension_numbers = #tpu.dot_dimension_numbers<[1], [0], [0], [1], [0, 0, 1, 1], [], []>} : vector<32x64xf32>, vector<64x32xf32>, vector<32x32xf32> -> vector<32x32xf32>
    %281 = vector.extract_strided_slice %110 {offsets = [4, 0], sizes = [1, 32], strides = [1, 1]} : vector<10x64xf32> to vector<1x32xf32>
    %282 = vector.broadcast %281 : vector<1x32xf32> to vector<32x32xf32>
    %283 = arith.addf %280, %282 : vector<32x32xf32>
    %cst_159 = arith.constant 0.000000e+00 : f32
    %284 = vector.broadcast %cst_159 : f32 to vector<32x32xf32>
    %285 = arith.maximumf %283, %284 : vector<32x32xf32>
    %c0_160 = arith.constant 0 : index
    %c0_161 = arith.constant 0 : index
    %c0_162 = arith.constant 0 : index
    %286 = vector.load %arg12[%c0_160, %c0_161, %c0_162] : memref<2x32x64xf32, #tpu.memory_space<vmem>>, vector<1x32x64xf32>
    %287 = vector.shape_cast %286 : vector<1x32x64xf32> to vector<32x64xf32>
    %cst_163 = arith.constant dense<0.000000e+00> : vector<32x64xf32>
    %288 = tpu.matmul %285, %287, %cst_163 {dimension_numbers = #tpu.dot_dimension_numbers<[1], [0], [0], [1], [0, 0, 1, 1], [], []>} : vector<32x32xf32>, vector<32x64xf32>, vector<32x64xf32> -> vector<32x64xf32>
    %289 = vector.extract_strided_slice %110 {offsets = [5, 0], sizes = [1, 64], strides = [1, 1]} : vector<10x64xf32> to vector<1x64xf32>
    %290 = vector.broadcast %289 : vector<1x64xf32> to vector<32x64xf32>
    %291 = arith.addf %288, %290 : vector<32x64xf32>
    %292 = arith.addf %277, %291 : vector<32x64xf32>
    %293 = vector.extract_strided_slice %110 {offsets = [8, 0], sizes = [1, 64], strides = [1, 1]} : vector<10x64xf32> to vector<1x64xf32>
    %294 = vector.extract_strided_slice %110 {offsets = [9, 0], sizes = [1, 64], strides = [1, 1]} : vector<10x64xf32> to vector<1x64xf32>
    %cst_164 = arith.constant dense<0.000000e+00> : vector<32xf32>
    %295 = vector.multi_reduction <add>, %292, %cst_164 [1] : vector<32x64xf32> to vector<32xf32>
    %296 = vector.shape_cast %295 : vector<32xf32> to vector<32x1xf32>
    %cst_165 = arith.constant 6.400000e+01 : f32
    %297 = vector.broadcast %cst_165 : f32 to vector<32x1xf32>
    %298 = arith.divf %296, %297 : vector<32x1xf32>
    %299 = vector.broadcast %298 : vector<32x1xf32> to vector<32x64xf32>
    %300 = arith.subf %292, %299 : vector<32x64xf32>
    %301 = arith.mulf %300, %300 : vector<32x64xf32>
    %cst_166 = arith.constant dense<0.000000e+00> : vector<32xf32>
    %302 = vector.multi_reduction <add>, %301, %cst_166 [1] : vector<32x64xf32> to vector<32xf32>
    %303 = vector.shape_cast %302 : vector<32xf32> to vector<32x1xf32>
    %cst_167 = arith.constant 6.400000e+01 : f32
    %304 = vector.broadcast %cst_167 : f32 to vector<32x1xf32>
    %305 = arith.divf %303, %304 : vector<32x1xf32>
    %306 = vector.broadcast %298 : vector<32x1xf32> to vector<32x64xf32>
    %307 = arith.subf %292, %306 : vector<32x64xf32>
    %cst_168 = arith.constant 9.99999974E-6 : f32
    %308 = vector.broadcast %cst_168 : f32 to vector<32x1xf32>
    %309 = arith.addf %305, %308 : vector<32x1xf32>
    %310 = math.rsqrt %309 : vector<32x1xf32>
    %311 = vector.broadcast %310 : vector<32x1xf32> to vector<32x64xf32>
    %312 = arith.mulf %307, %311 : vector<32x64xf32>
    %313 = vector.broadcast %293 : vector<1x64xf32> to vector<32x64xf32>
    %314 = arith.mulf %312, %313 : vector<32x64xf32>
    %315 = vector.broadcast %294 : vector<1x64xf32> to vector<32x64xf32>
    %316 = arith.addf %314, %315 : vector<32x64xf32>
    %c1_169 = arith.constant 1 : index
    %c0_170 = arith.constant 0 : index
    %c0_171 = arith.constant 0 : index
    %317 = vector.load %arg13[%c1_169, %c0_170, %c0_171] : memref<2x10x64xf32, #tpu.memory_space<vmem>>, vector<1x10x64xf32>
    %318 = vector.shape_cast %317 : vector<1x10x64xf32> to vector<10x64xf32>
    %c1_172 = arith.constant 1 : index
    %c0_173 = arith.constant 0 : index
    %c0_174 = arith.constant 0 : index
    %319 = vector.load %arg9[%c1_172, %c0_173, %c0_174] : memref<2x64x192xf32, #tpu.memory_space<vmem>>, vector<1x64x192xf32>
    %320 = vector.shape_cast %319 : vector<1x64x192xf32> to vector<64x192xf32>
    %cst_175 = arith.constant dense<0.000000e+00> : vector<32x192xf32>
    %321 = tpu.matmul %316, %320, %cst_175 {dimension_numbers = #tpu.dot_dimension_numbers<[1], [0], [0], [1], [0, 0, 1, 1], [], []>} : vector<32x64xf32>, vector<64x192xf32>, vector<32x192xf32> -> vector<32x192xf32>
    %322 = vector.extract_strided_slice %321 {offsets = [0, 0], sizes = [32, 64], strides = [1, 1]} : vector<32x192xf32> to vector<32x64xf32>
    %323 = vector.extract_strided_slice %318 {offsets = [0, 0], sizes = [1, 64], strides = [1, 1]} : vector<10x64xf32> to vector<1x64xf32>
    %324 = vector.broadcast %323 : vector<1x64xf32> to vector<32x64xf32>
    %325 = arith.addf %322, %324 : vector<32x64xf32>
    %326 = vector.extract_strided_slice %321 {offsets = [0, 64], sizes = [32, 64], strides = [1, 1]} : vector<32x192xf32> to vector<32x64xf32>
    %327 = vector.extract_strided_slice %318 {offsets = [1, 0], sizes = [1, 64], strides = [1, 1]} : vector<10x64xf32> to vector<1x64xf32>
    %328 = vector.broadcast %327 : vector<1x64xf32> to vector<32x64xf32>
    %329 = arith.addf %326, %328 : vector<32x64xf32>
    %330 = vector.extract_strided_slice %321 {offsets = [0, 128], sizes = [32, 64], strides = [1, 1]} : vector<32x192xf32> to vector<32x64xf32>
    %331 = vector.extract_strided_slice %318 {offsets = [2, 0], sizes = [1, 64], strides = [1, 1]} : vector<10x64xf32> to vector<1x64xf32>
    %332 = vector.broadcast %331 : vector<1x64xf32> to vector<32x64xf32>
    %333 = arith.addf %330, %332 : vector<32x64xf32>
    %334 = vector.extract_strided_slice %325 {offsets = [0, 0], sizes = [15, 16], strides = [1, 1]} : vector<32x64xf32> to vector<15x16xf32>
    %335 = vector.extract_strided_slice %329 {offsets = [0, 0], sizes = [15, 16], strides = [1, 1]} : vector<32x64xf32> to vector<15x16xf32>
    %336 = vector.extract_strided_slice %333 {offsets = [0, 0], sizes = [15, 16], strides = [1, 1]} : vector<32x64xf32> to vector<15x16xf32>
    %cst_176 = arith.constant dense<0.000000e+00> : vector<15x15xf32>
    %337 = tpu.matmul %334, %335, %cst_176 {dimension_numbers = #tpu.dot_dimension_numbers<[1], [1], [0], [0], [0, 0, 1, 0], [], []>} : vector<15x16xf32>, vector<15x16xf32>, vector<15x15xf32> -> vector<15x15xf32>
    %cst_177 = arith.constant dense<0xFF800000> : vector<15xf32>
    %338 = vector.multi_reduction <maximumf>, %337, %cst_177 [1] : vector<15x15xf32> to vector<15xf32>
    %339 = vector.shape_cast %338 : vector<15xf32> to vector<15x1xf32>
    %340 = vector.broadcast %339 : vector<15x1xf32> to vector<15x15xf32>
    %341 = arith.subf %337, %340 : vector<15x15xf32>
    %342 = math.exp %341 : vector<15x15xf32>
    %cst_178 = arith.constant dense<0.000000e+00> : vector<15xf32>
    %343 = vector.multi_reduction <add>, %342, %cst_178 [1] : vector<15x15xf32> to vector<15xf32>
    %344 = vector.shape_cast %343 : vector<15xf32> to vector<15x1xf32>
    %345 = vector.broadcast %344 : vector<15x1xf32> to vector<15x15xf32>
    %346 = arith.divf %342, %345 : vector<15x15xf32>
    %cst_179 = arith.constant dense<0.000000e+00> : vector<15x16xf32>
    %347 = tpu.matmul %346, %336, %cst_179 {dimension_numbers = #tpu.dot_dimension_numbers<[1], [0], [0], [1], [0, 0, 1, 1], [], []>} : vector<15x15xf32>, vector<15x16xf32>, vector<15x16xf32> -> vector<15x16xf32>
    %c0_180 = arith.constant 0 : index
    %c0_181 = arith.constant 0 : index
    %348 = vector.load %arg17[%c0_180, %c0_181] : memref<32x64xf32, #tpu.memory_space<vmem>>, vector<15x16xf32>
    tpu.vector_store %arg17[%c0_180, %c0_181], %347 {strides = array<i32>} : memref<32x64xf32, #tpu.memory_space<vmem>>, vector<15x16xf32>,
    %349 = vector.extract_strided_slice %325 {offsets = [0, 16], sizes = [15, 16], strides = [1, 1]} : vector<32x64xf32> to vector<15x16xf32>
    %350 = vector.extract_strided_slice %329 {offsets = [0, 16], sizes = [15, 16], strides = [1, 1]} : vector<32x64xf32> to vector<15x16xf32>
    %351 = vector.extract_strided_slice %333 {offsets = [0, 16], sizes = [15, 16], strides = [1, 1]} : vector<32x64xf32> to vector<15x16xf32>
    %cst_182 = arith.constant dense<0.000000e+00> : vector<15x15xf32>
    %352 = tpu.matmul %349, %350, %cst_182 {dimension_numbers = #tpu.dot_dimension_numbers<[1], [1], [0], [0], [0, 0, 1, 0], [], []>} : vector<15x16xf32>, vector<15x16xf32>, vector<15x15xf32> -> vector<15x15xf32>
    %cst_183 = arith.constant dense<0xFF800000> : vector<15xf32>
    %353 = vector.multi_reduction <maximumf>, %352, %cst_183 [1] : vector<15x15xf32> to vector<15xf32>
    %354 = vector.shape_cast %353 : vector<15xf32> to vector<15x1xf32>
    %355 = vector.broadcast %354 : vector<15x1xf32> to vector<15x15xf32>
    %356 = arith.subf %352, %355 : vector<15x15xf32>
    %357 = math.exp %356 : vector<15x15xf32>
    %cst_184 = arith.constant dense<0.000000e+00> : vector<15xf32>
    %358 = vector.multi_reduction <add>, %357, %cst_184 [1] : vector<15x15xf32> to vector<15xf32>
    %359 = vector.shape_cast %358 : vector<15xf32> to vector<15x1xf32>
    %360 = vector.broadcast %359 : vector<15x1xf32> to vector<15x15xf32>
    %361 = arith.divf %357, %360 : vector<15x15xf32>
    %cst_185 = arith.constant dense<0.000000e+00> : vector<15x16xf32>
    %362 = tpu.matmul %361, %351, %cst_185 {dimension_numbers = #tpu.dot_dimension_numbers<[1], [0], [0], [1], [0, 0, 1, 1], [], []>} : vector<15x15xf32>, vector<15x16xf32>, vector<15x16xf32> -> vector<15x16xf32>
    %c0_186 = arith.constant 0 : index
    %c16_187 = arith.constant 16 : index
    %363 = vector.load %arg17[%c0_186, %c16_187] : memref<32x64xf32, #tpu.memory_space<vmem>>, vector<15x16xf32>
    tpu.vector_store %arg17[%c0_186, %c16_187], %362 {strides = array<i32>} : memref<32x64xf32, #tpu.memory_space<vmem>>, vector<15x16xf32>,
    %364 = vector.extract_strided_slice %325 {offsets = [0, 32], sizes = [15, 16], strides = [1, 1]} : vector<32x64xf32> to vector<15x16xf32>
    %365 = vector.extract_strided_slice %329 {offsets = [0, 32], sizes = [15, 16], strides = [1, 1]} : vector<32x64xf32> to vector<15x16xf32>
    %366 = vector.extract_strided_slice %333 {offsets = [0, 32], sizes = [15, 16], strides = [1, 1]} : vector<32x64xf32> to vector<15x16xf32>
    %cst_188 = arith.constant dense<0.000000e+00> : vector<15x15xf32>
    %367 = tpu.matmul %364, %365, %cst_188 {dimension_numbers = #tpu.dot_dimension_numbers<[1], [1], [0], [0], [0, 0, 1, 0], [], []>} : vector<15x16xf32>, vector<15x16xf32>, vector<15x15xf32> -> vector<15x15xf32>
    %cst_189 = arith.constant dense<0xFF800000> : vector<15xf32>
    %368 = vector.multi_reduction <maximumf>, %367, %cst_189 [1] : vector<15x15xf32> to vector<15xf32>
    %369 = vector.shape_cast %368 : vector<15xf32> to vector<15x1xf32>
    %370 = vector.broadcast %369 : vector<15x1xf32> to vector<15x15xf32>
    %371 = arith.subf %367, %370 : vector<15x15xf32>
    %372 = math.exp %371 : vector<15x15xf32>
    %cst_190 = arith.constant dense<0.000000e+00> : vector<15xf32>
    %373 = vector.multi_reduction <add>, %372, %cst_190 [1] : vector<15x15xf32> to vector<15xf32>
    %374 = vector.shape_cast %373 : vector<15xf32> to vector<15x1xf32>
    %375 = vector.broadcast %374 : vector<15x1xf32> to vector<15x15xf32>
    %376 = arith.divf %372, %375 : vector<15x15xf32>
    %cst_191 = arith.constant dense<0.000000e+00> : vector<15x16xf32>
    %377 = tpu.matmul %376, %366, %cst_191 {dimension_numbers = #tpu.dot_dimension_numbers<[1], [0], [0], [1], [0, 0, 1, 1], [], []>} : vector<15x15xf32>, vector<15x16xf32>, vector<15x16xf32> -> vector<15x16xf32>
    %c0_192 = arith.constant 0 : index
    %c32_193 = arith.constant 32 : index
    %378 = vector.load %arg17[%c0_192, %c32_193] : memref<32x64xf32, #tpu.memory_space<vmem>>, vector<15x16xf32>
    tpu.vector_store %arg17[%c0_192, %c32_193], %377 {strides = array<i32>} : memref<32x64xf32, #tpu.memory_space<vmem>>, vector<15x16xf32>,
    %379 = vector.extract_strided_slice %325 {offsets = [0, 48], sizes = [15, 16], strides = [1, 1]} : vector<32x64xf32> to vector<15x16xf32>
    %380 = vector.extract_strided_slice %329 {offsets = [0, 48], sizes = [15, 16], strides = [1, 1]} : vector<32x64xf32> to vector<15x16xf32>
    %381 = vector.extract_strided_slice %333 {offsets = [0, 48], sizes = [15, 16], strides = [1, 1]} : vector<32x64xf32> to vector<15x16xf32>
    %cst_194 = arith.constant dense<0.000000e+00> : vector<15x15xf32>
    %382 = tpu.matmul %379, %380, %cst_194 {dimension_numbers = #tpu.dot_dimension_numbers<[1], [1], [0], [0], [0, 0, 1, 0], [], []>} : vector<15x16xf32>, vector<15x16xf32>, vector<15x15xf32> -> vector<15x15xf32>
    %cst_195 = arith.constant dense<0xFF800000> : vector<15xf32>
    %383 = vector.multi_reduction <maximumf>, %382, %cst_195 [1] : vector<15x15xf32> to vector<15xf32>
    %384 = vector.shape_cast %383 : vector<15xf32> to vector<15x1xf32>
    %385 = vector.broadcast %384 : vector<15x1xf32> to vector<15x15xf32>
    %386 = arith.subf %382, %385 : vector<15x15xf32>
    %387 = math.exp %386 : vector<15x15xf32>
    %cst_196 = arith.constant dense<0.000000e+00> : vector<15xf32>
    %388 = vector.multi_reduction <add>, %387, %cst_196 [1] : vector<15x15xf32> to vector<15xf32>
    %389 = vector.shape_cast %388 : vector<15xf32> to vector<15x1xf32>
    %390 = vector.broadcast %389 : vector<15x1xf32> to vector<15x15xf32>
    %391 = arith.divf %387, %390 : vector<15x15xf32>
    %cst_197 = arith.constant dense<0.000000e+00> : vector<15x16xf32>
    %392 = tpu.matmul %391, %381, %cst_197 {dimension_numbers = #tpu.dot_dimension_numbers<[1], [0], [0], [1], [0, 0, 1, 1], [], []>} : vector<15x15xf32>, vector<15x16xf32>, vector<15x16xf32> -> vector<15x16xf32>
    %c0_198 = arith.constant 0 : index
    %c48_199 = arith.constant 48 : index
    %393 = vector.load %arg17[%c0_198, %c48_199] : memref<32x64xf32, #tpu.memory_space<vmem>>, vector<15x16xf32>
    tpu.vector_store %arg17[%c0_198, %c48_199], %392 {strides = array<i32>} : memref<32x64xf32, #tpu.memory_space<vmem>>, vector<15x16xf32>,
    %394 = vector.extract_strided_slice %325 {offsets = [16, 0], sizes = [15, 16], strides = [1, 1]} : vector<32x64xf32> to vector<15x16xf32>
    %395 = vector.extract_strided_slice %329 {offsets = [16, 0], sizes = [15, 16], strides = [1, 1]} : vector<32x64xf32> to vector<15x16xf32>
    %396 = vector.extract_strided_slice %333 {offsets = [16, 0], sizes = [15, 16], strides = [1, 1]} : vector<32x64xf32> to vector<15x16xf32>
    %cst_200 = arith.constant dense<0.000000e+00> : vector<15x15xf32>
    %397 = tpu.matmul %394, %395, %cst_200 {dimension_numbers = #tpu.dot_dimension_numbers<[1], [1], [0], [0], [0, 0, 1, 0], [], []>} : vector<15x16xf32>, vector<15x16xf32>, vector<15x15xf32> -> vector<15x15xf32>
    %cst_201 = arith.constant dense<0xFF800000> : vector<15xf32>
    %398 = vector.multi_reduction <maximumf>, %397, %cst_201 [1] : vector<15x15xf32> to vector<15xf32>
    %399 = vector.shape_cast %398 : vector<15xf32> to vector<15x1xf32>
    %400 = vector.broadcast %399 : vector<15x1xf32> to vector<15x15xf32>
    %401 = arith.subf %397, %400 : vector<15x15xf32>
    %402 = math.exp %401 : vector<15x15xf32>
    %cst_202 = arith.constant dense<0.000000e+00> : vector<15xf32>
    %403 = vector.multi_reduction <add>, %402, %cst_202 [1] : vector<15x15xf32> to vector<15xf32>
    %404 = vector.shape_cast %403 : vector<15xf32> to vector<15x1xf32>
    %405 = vector.broadcast %404 : vector<15x1xf32> to vector<15x15xf32>
    %406 = arith.divf %402, %405 : vector<15x15xf32>
    %cst_203 = arith.constant dense<0.000000e+00> : vector<15x16xf32>
    %407 = tpu.matmul %406, %396, %cst_203 {dimension_numbers = #tpu.dot_dimension_numbers<[1], [0], [0], [1], [0, 0, 1, 1], [], []>} : vector<15x15xf32>, vector<15x16xf32>, vector<15x16xf32> -> vector<15x16xf32>
    %c16_204 = arith.constant 16 : index
    %c0_205 = arith.constant 0 : index
    %408 = vector.load %arg17[%c16_204, %c0_205] : memref<32x64xf32, #tpu.memory_space<vmem>>, vector<15x16xf32>
    tpu.vector_store %arg17[%c16_204, %c0_205], %407 {strides = array<i32>} : memref<32x64xf32, #tpu.memory_space<vmem>>, vector<15x16xf32>,
    %409 = vector.extract_strided_slice %325 {offsets = [16, 16], sizes = [15, 16], strides = [1, 1]} : vector<32x64xf32> to vector<15x16xf32>
    %410 = vector.extract_strided_slice %329 {offsets = [16, 16], sizes = [15, 16], strides = [1, 1]} : vector<32x64xf32> to vector<15x16xf32>
    %411 = vector.extract_strided_slice %333 {offsets = [16, 16], sizes = [15, 16], strides = [1, 1]} : vector<32x64xf32> to vector<15x16xf32>
    %cst_206 = arith.constant dense<0.000000e+00> : vector<15x15xf32>
    %412 = tpu.matmul %409, %410, %cst_206 {dimension_numbers = #tpu.dot_dimension_numbers<[1], [1], [0], [0], [0, 0, 1, 0], [], []>} : vector<15x16xf32>, vector<15x16xf32>, vector<15x15xf32> -> vector<15x15xf32>
    %cst_207 = arith.constant dense<0xFF800000> : vector<15xf32>
    %413 = vector.multi_reduction <maximumf>, %412, %cst_207 [1] : vector<15x15xf32> to vector<15xf32>
    %414 = vector.shape_cast %413 : vector<15xf32> to vector<15x1xf32>
    %415 = vector.broadcast %414 : vector<15x1xf32> to vector<15x15xf32>
    %416 = arith.subf %412, %415 : vector<15x15xf32>
    %417 = math.exp %416 : vector<15x15xf32>
    %cst_208 = arith.constant dense<0.000000e+00> : vector<15xf32>
    %418 = vector.multi_reduction <add>, %417, %cst_208 [1] : vector<15x15xf32> to vector<15xf32>
    %419 = vector.shape_cast %418 : vector<15xf32> to vector<15x1xf32>
    %420 = vector.broadcast %419 : vector<15x1xf32> to vector<15x15xf32>
    %421 = arith.divf %417, %420 : vector<15x15xf32>
    %cst_209 = arith.constant dense<0.000000e+00> : vector<15x16xf32>
    %422 = tpu.matmul %421, %411, %cst_209 {dimension_numbers = #tpu.dot_dimension_numbers<[1], [0], [0], [1], [0, 0, 1, 1], [], []>} : vector<15x15xf32>, vector<15x16xf32>, vector<15x16xf32> -> vector<15x16xf32>
    %c16_210 = arith.constant 16 : index
    %c16_211 = arith.constant 16 : index
    %423 = vector.load %arg17[%c16_210, %c16_211] : memref<32x64xf32, #tpu.memory_space<vmem>>, vector<15x16xf32>
    tpu.vector_store %arg17[%c16_210, %c16_211], %422 {strides = array<i32>} : memref<32x64xf32, #tpu.memory_space<vmem>>, vector<15x16xf32>,
    %424 = vector.extract_strided_slice %325 {offsets = [16, 32], sizes = [15, 16], strides = [1, 1]} : vector<32x64xf32> to vector<15x16xf32>
    %425 = vector.extract_strided_slice %329 {offsets = [16, 32], sizes = [15, 16], strides = [1, 1]} : vector<32x64xf32> to vector<15x16xf32>
    %426 = vector.extract_strided_slice %333 {offsets = [16, 32], sizes = [15, 16], strides = [1, 1]} : vector<32x64xf32> to vector<15x16xf32>
    %cst_212 = arith.constant dense<0.000000e+00> : vector<15x15xf32>
    %427 = tpu.matmul %424, %425, %cst_212 {dimension_numbers = #tpu.dot_dimension_numbers<[1], [1], [0], [0], [0, 0, 1, 0], [], []>} : vector<15x16xf32>, vector<15x16xf32>, vector<15x15xf32> -> vector<15x15xf32>
    %cst_213 = arith.constant dense<0xFF800000> : vector<15xf32>
    %428 = vector.multi_reduction <maximumf>, %427, %cst_213 [1] : vector<15x15xf32> to vector<15xf32>
    %429 = vector.shape_cast %428 : vector<15xf32> to vector<15x1xf32>
    %430 = vector.broadcast %429 : vector<15x1xf32> to vector<15x15xf32>
    %431 = arith.subf %427, %430 : vector<15x15xf32>
    %432 = math.exp %431 : vector<15x15xf32>
    %cst_214 = arith.constant dense<0.000000e+00> : vector<15xf32>
    %433 = vector.multi_reduction <add>, %432, %cst_214 [1] : vector<15x15xf32> to vector<15xf32>
    %434 = vector.shape_cast %433 : vector<15xf32> to vector<15x1xf32>
    %435 = vector.broadcast %434 : vector<15x1xf32> to vector<15x15xf32>
    %436 = arith.divf %432, %435 : vector<15x15xf32>
    %cst_215 = arith.constant dense<0.000000e+00> : vector<15x16xf32>
    %437 = tpu.matmul %436, %426, %cst_215 {dimension_numbers = #tpu.dot_dimension_numbers<[1], [0], [0], [1], [0, 0, 1, 1], [], []>} : vector<15x15xf32>, vector<15x16xf32>, vector<15x16xf32> -> vector<15x16xf32>
    %c16_216 = arith.constant 16 : index
    %c32_217 = arith.constant 32 : index
    %438 = vector.load %arg17[%c16_216, %c32_217] : memref<32x64xf32, #tpu.memory_space<vmem>>, vector<15x16xf32>
    tpu.vector_store %arg17[%c16_216, %c32_217], %437 {strides = array<i32>} : memref<32x64xf32, #tpu.memory_space<vmem>>, vector<15x16xf32>,
    %439 = vector.extract_strided_slice %325 {offsets = [16, 48], sizes = [15, 16], strides = [1, 1]} : vector<32x64xf32> to vector<15x16xf32>
    %440 = vector.extract_strided_slice %329 {offsets = [16, 48], sizes = [15, 16], strides = [1, 1]} : vector<32x64xf32> to vector<15x16xf32>
    %441 = vector.extract_strided_slice %333 {offsets = [16, 48], sizes = [15, 16], strides = [1, 1]} : vector<32x64xf32> to vector<15x16xf32>
    %cst_218 = arith.constant dense<0.000000e+00> : vector<15x15xf32>
    %442 = tpu.matmul %439, %440, %cst_218 {dimension_numbers = #tpu.dot_dimension_numbers<[1], [1], [0], [0], [0, 0, 1, 0], [], []>} : vector<15x16xf32>, vector<15x16xf32>, vector<15x15xf32> -> vector<15x15xf32>
    %cst_219 = arith.constant dense<0xFF800000> : vector<15xf32>
    %443 = vector.multi_reduction <maximumf>, %442, %cst_219 [1] : vector<15x15xf32> to vector<15xf32>
    %444 = vector.shape_cast %443 : vector<15xf32> to vector<15x1xf32>
    %445 = vector.broadcast %444 : vector<15x1xf32> to vector<15x15xf32>
    %446 = arith.subf %442, %445 : vector<15x15xf32>
    %447 = math.exp %446 : vector<15x15xf32>
    %cst_220 = arith.constant dense<0.000000e+00> : vector<15xf32>
    %448 = vector.multi_reduction <add>, %447, %cst_220 [1] : vector<15x15xf32> to vector<15xf32>
    %449 = vector.shape_cast %448 : vector<15xf32> to vector<15x1xf32>
    %450 = vector.broadcast %449 : vector<15x1xf32> to vector<15x15xf32>
    %451 = arith.divf %447, %450 : vector<15x15xf32>
    %cst_221 = arith.constant dense<0.000000e+00> : vector<15x16xf32>
    %452 = tpu.matmul %451, %441, %cst_221 {dimension_numbers = #tpu.dot_dimension_numbers<[1], [0], [0], [1], [0, 0, 1, 1], [], []>} : vector<15x15xf32>, vector<15x16xf32>, vector<15x16xf32> -> vector<15x16xf32>
    %c16_222 = arith.constant 16 : index
    %c48_223 = arith.constant 48 : index
    %453 = vector.load %arg17[%c16_222, %c48_223] : memref<32x64xf32, #tpu.memory_space<vmem>>, vector<15x16xf32>
    tpu.vector_store %arg17[%c16_222, %c48_223], %452 {strides = array<i32>} : memref<32x64xf32, #tpu.memory_space<vmem>>, vector<15x16xf32>,
    %c0_224 = arith.constant 0 : index
    %c0_225 = arith.constant 0 : index
    %454 = vector.load %arg17[%c0_224, %c0_225] : memref<32x64xf32, #tpu.memory_space<vmem>>, vector<32x64xf32>
    %c1_226 = arith.constant 1 : index
    %c0_227 = arith.constant 0 : index
    %c0_228 = arith.constant 0 : index
    %455 = vector.load %arg10[%c1_226, %c0_227, %c0_228] : memref<2x64x64xf32, #tpu.memory_space<vmem>>, vector<1x64x64xf32>
    %456 = vector.shape_cast %455 : vector<1x64x64xf32> to vector<64x64xf32>
    %cst_229 = arith.constant dense<0.000000e+00> : vector<32x64xf32>
    %457 = tpu.matmul %454, %456, %cst_229 {dimension_numbers = #tpu.dot_dimension_numbers<[1], [0], [0], [1], [0, 0, 1, 1], [], []>} : vector<32x64xf32>, vector<64x64xf32>, vector<32x64xf32> -> vector<32x64xf32>
    %458 = vector.extract_strided_slice %318 {offsets = [3, 0], sizes = [1, 64], strides = [1, 1]} : vector<10x64xf32> to vector<1x64xf32>
    %459 = vector.broadcast %458 : vector<1x64xf32> to vector<32x64xf32>
    %460 = arith.addf %457, %459 : vector<32x64xf32>
    %461 = arith.addf %316, %460 : vector<32x64xf32>
    %462 = vector.extract_strided_slice %318 {offsets = [6, 0], sizes = [1, 64], strides = [1, 1]} : vector<10x64xf32> to vector<1x64xf32>
    %463 = vector.extract_strided_slice %318 {offsets = [7, 0], sizes = [1, 64], strides = [1, 1]} : vector<10x64xf32> to vector<1x64xf32>
    %cst_230 = arith.constant dense<0.000000e+00> : vector<32xf32>
    %464 = vector.multi_reduction <add>, %461, %cst_230 [1] : vector<32x64xf32> to vector<32xf32>
    %465 = vector.shape_cast %464 : vector<32xf32> to vector<32x1xf32>
    %cst_231 = arith.constant 6.400000e+01 : f32
    %466 = vector.broadcast %cst_231 : f32 to vector<32x1xf32>
    %467 = arith.divf %465, %466 : vector<32x1xf32>
    %468 = vector.broadcast %467 : vector<32x1xf32> to vector<32x64xf32>
    %469 = arith.subf %461, %468 : vector<32x64xf32>
    %470 = arith.mulf %469, %469 : vector<32x64xf32>
    %cst_232 = arith.constant dense<0.000000e+00> : vector<32xf32>
    %471 = vector.multi_reduction <add>, %470, %cst_232 [1] : vector<32x64xf32> to vector<32xf32>
    %472 = vector.shape_cast %471 : vector<32xf32> to vector<32x1xf32>
    %cst_233 = arith.constant 6.400000e+01 : f32
    %473 = vector.broadcast %cst_233 : f32 to vector<32x1xf32>
    %474 = arith.divf %472, %473 : vector<32x1xf32>
    %475 = vector.broadcast %467 : vector<32x1xf32> to vector<32x64xf32>
    %476 = arith.subf %461, %475 : vector<32x64xf32>
    %cst_234 = arith.constant 9.99999974E-6 : f32
    %477 = vector.broadcast %cst_234 : f32 to vector<32x1xf32>
    %478 = arith.addf %474, %477 : vector<32x1xf32>
    %479 = math.rsqrt %478 : vector<32x1xf32>
    %480 = vector.broadcast %479 : vector<32x1xf32> to vector<32x64xf32>
    %481 = arith.mulf %476, %480 : vector<32x64xf32>
    %482 = vector.broadcast %462 : vector<1x64xf32> to vector<32x64xf32>
    %483 = arith.mulf %481, %482 : vector<32x64xf32>
    %484 = vector.broadcast %463 : vector<1x64xf32> to vector<32x64xf32>
    %485 = arith.addf %483, %484 : vector<32x64xf32>
    %c1_235 = arith.constant 1 : index
    %c0_236 = arith.constant 0 : index
    %c0_237 = arith.constant 0 : index
    %486 = vector.load %arg11[%c1_235, %c0_236, %c0_237] : memref<2x64x32xf32, #tpu.memory_space<vmem>>, vector<1x64x32xf32>
    %487 = vector.shape_cast %486 : vector<1x64x32xf32> to vector<64x32xf32>
    %cst_238 = arith.constant dense<0.000000e+00> : vector<32x32xf32>
    %488 = tpu.matmul %485, %487, %cst_238 {dimension_numbers = #tpu.dot_dimension_numbers<[1], [0], [0], [1], [0, 0, 1, 1], [], []>} : vector<32x64xf32>, vector<64x32xf32>, vector<32x32xf32> -> vector<32x32xf32>
    %489 = vector.extract_strided_slice %318 {offsets = [4, 0], sizes = [1, 32], strides = [1, 1]} : vector<10x64xf32> to vector<1x32xf32>
    %490 = vector.broadcast %489 : vector<1x32xf32> to vector<32x32xf32>
    %491 = arith.addf %488, %490 : vector<32x32xf32>
    %cst_239 = arith.constant 0.000000e+00 : f32
    %492 = vector.broadcast %cst_239 : f32 to vector<32x32xf32>
    %493 = arith.maximumf %491, %492 : vector<32x32xf32>
    %c1_240 = arith.constant 1 : index
    %c0_241 = arith.constant 0 : index
    %c0_242 = arith.constant 0 : index
    %494 = vector.load %arg12[%c1_240, %c0_241, %c0_242] : memref<2x32x64xf32, #tpu.memory_space<vmem>>, vector<1x32x64xf32>
    %495 = vector.shape_cast %494 : vector<1x32x64xf32> to vector<32x64xf32>
    %cst_243 = arith.constant dense<0.000000e+00> : vector<32x64xf32>
    %496 = tpu.matmul %493, %495, %cst_243 {dimension_numbers = #tpu.dot_dimension_numbers<[1], [0], [0], [1], [0, 0, 1, 1], [], []>} : vector<32x32xf32>, vector<32x64xf32>, vector<32x64xf32> -> vector<32x64xf32>
    %497 = vector.extract_strided_slice %318 {offsets = [5, 0], sizes = [1, 64], strides = [1, 1]} : vector<10x64xf32> to vector<1x64xf32>
    %498 = vector.broadcast %497 : vector<1x64xf32> to vector<32x64xf32>
    %499 = arith.addf %496, %498 : vector<32x64xf32>
    %500 = arith.addf %485, %499 : vector<32x64xf32>
    %501 = vector.extract_strided_slice %318 {offsets = [8, 0], sizes = [1, 64], strides = [1, 1]} : vector<10x64xf32> to vector<1x64xf32>
    %502 = vector.extract_strided_slice %318 {offsets = [9, 0], sizes = [1, 64], strides = [1, 1]} : vector<10x64xf32> to vector<1x64xf32>
    %cst_244 = arith.constant dense<0.000000e+00> : vector<32xf32>
    %503 = vector.multi_reduction <add>, %500, %cst_244 [1] : vector<32x64xf32> to vector<32xf32>
    %504 = vector.shape_cast %503 : vector<32xf32> to vector<32x1xf32>
    %cst_245 = arith.constant 6.400000e+01 : f32
    %505 = vector.broadcast %cst_245 : f32 to vector<32x1xf32>
    %506 = arith.divf %504, %505 : vector<32x1xf32>
    %507 = vector.broadcast %506 : vector<32x1xf32> to vector<32x64xf32>
    %508 = arith.subf %500, %507 : vector<32x64xf32>
    %509 = arith.mulf %508, %508 : vector<32x64xf32>
    %cst_246 = arith.constant dense<0.000000e+00> : vector<32xf32>
    %510 = vector.multi_reduction <add>, %509, %cst_246 [1] : vector<32x64xf32> to vector<32xf32>
    %511 = vector.shape_cast %510 : vector<32xf32> to vector<32x1xf32>
    %cst_247 = arith.constant 6.400000e+01 : f32
    %512 = vector.broadcast %cst_247 : f32 to vector<32x1xf32>
    %513 = arith.divf %511, %512 : vector<32x1xf32>
    %514 = vector.broadcast %506 : vector<32x1xf32> to vector<32x64xf32>
    %515 = arith.subf %500, %514 : vector<32x64xf32>
    %cst_248 = arith.constant 9.99999974E-6 : f32
    %516 = vector.broadcast %cst_248 : f32 to vector<32x1xf32>
    %517 = arith.addf %513, %516 : vector<32x1xf32>
    %518 = math.rsqrt %517 : vector<32x1xf32>
    %519 = vector.broadcast %518 : vector<32x1xf32> to vector<32x64xf32>
    %520 = arith.mulf %515, %519 : vector<32x64xf32>
    %521 = vector.broadcast %501 : vector<1x64xf32> to vector<32x64xf32>
    %522 = arith.mulf %520, %521 : vector<32x64xf32>
    %523 = vector.broadcast %502 : vector<1x64xf32> to vector<32x64xf32>
    %524 = arith.addf %522, %523 : vector<32x64xf32>
    %c0_249 = arith.constant 0 : index
    %c0_250 = arith.constant 0 : index
    %525 = vector.load %arg14[%c0_249, %c0_250] : memref<32x64xf32, #tpu.memory_space<vmem>>, vector<32x64xf32>
    tpu.vector_store %arg14[%c0_249, %c0_250], %524 {strides = array<i32>} : memref<32x64xf32, #tpu.memory_space<vmem>>, vector<32x64xf32>,
    return
  }
}

</mosaic_0001>

<bundles_post_ra>
// kernel: forward.1
= control target key start
LH: loop header
LB: loop body
LE: loop exit
PB: predicated region body
PF: predicated region fallthrough
CT: control target
= control target key end

     0   :  { %vm118_vm0 = vcmask 1043456   ;;  %v5232_v0 = vmov 0   ;;  %vm69_vm1 = vcmask 97280   ;;  %vm396_vm4 = vcmask 1046528   ;;  %s5234_s30 = smov 64   ;;  %s5237_s20 = smov 16   ;;  %s7289_s3 = inlined_call_operand.vmem [shape: f32[12,128], index: 3, kind: input, shape index: {}]   ;;  %s7290_s1 = inlined_call_operand.vmem [shape: f32[128,1], index: 1, kind: input, shape index: {}]   ;;  %s7291_s0 = inlined_call_operand.vmem [shape: f32[128,12], index: 0, kind: input, shape index: {}]   ;;  %s7292_s4 = inlined_call_operand.vmem [shape: f32[1,128], index: 4, kind: input, shape index: {}]   ;;  %s7293_s5 = inlined_call_operand.vmem [shape: f32[3,128,64], index: 5, kind: input, shape index: {}]   ;;  %s7294_s6 = inlined_call_operand.vmem [shape: f32[1,64], index: 6, kind: input, shape index: {}]   ;;  %s7295_s7 = inlined_call_operand.vmem [shape: f32[3,64,64], index: 7, kind: input, shape index: {}]   ;;  %s7296_s8 = inlined_call_operand.vmem [shape: f32[1,64], index: 8, kind: input, shape index: {}]   ;;  %s7297_s9 = inlined_call_operand.vmem [shape: f32[2,64,192], index: 9, kind: input, shape index: {}]   ;;  %s7298_s2 = inlined_call_operand.vmem [shape: f32[15,64], index: 2, kind: input, shape index: {}]   ;;  %s7299_s13 = inlined_call_operand.vmem [shape: f32[2,10,64], index: 13, kind: input, shape index: {}]   ;;  %s7300_s10 = inlined_call_operand.vmem [shape: f32[2,64,64], index: 10, kind: input, shape index: {}]   ;;  %s7301_s11 = inlined_call_operand.vmem [shape: f32[2,64,32], index: 11, kind: input, shape index: {}]   ;;  %s7302_s12 = inlined_call_operand.vmem [shape: f32[2,32,64], index: 12, kind: input, shape index: {}]   ;;  %s7303_s14 = inlined_call_operand.vmem [shape: f32[32,64], index: 14, kind: output, shape index: {}]  }
   0x1   :  { %5057 = vset.pattern.permute.xlu0 %v5232_v0  ;;  %v64_v1 = vld [vmem:[%s7289_s3 + $0x8] sm:$0xf]  ;;  %v235_v2 = vld [vmem:[%s7290_s1] sm:$0xff]  ;;  %5058 = vset.pattern.permute.xlu1 %v5232_v0  ;;  %v237_v4 = vld [vmem:[%s7290_s1 + $0x10] sm:$0xff]  ;;  %vm591_vm5 = vcmask 1045504   ;;  %s5238_s21 = smov 96  }
   0x2   :  { %v63_v3 = vld [vmem:[%s7289_s3] sm:$0xff]  ;;  %4700 = vmatpush.msk.msra.mxu0 %vm118_vm0, %v64_v1  ;;  %253 = vperm.xlu0 %5057, %v235_v2   ;;  %v236_v6 = vld [vmem:[%s7290_s1 + $0x8] sm:$0xff]  ;;  %v238_v7 = vld [vmem:[%s7290_s1 + $0x18] sm:$0xff]  ;;  %s5239_s22 = smov 32   ;;  %s5240_s23 = smov 80  }
   0x3   :  { %v47_v5 = vld [vmem:[%s7291_s0] sm:$0xff]  ;;  %263 = vperm.xlu1 %5058, %v237_v4   ;;  %5059 = vset.pattern.permute.xlu2 %v5232_v0  ;;  %v48_v8 = vld [vmem:[%s7291_s0 + $0x8] sm:$0xff]  ;;  %v241_v10 = vld [vmem:[%s7290_s1 + $0x30] sm:$0xff] }
   0x4   :  { %137 = vmatpush.msra.mxu0 %v63_v3  ;;  %v239_v9 = vld [vmem:[%s7290_s1 + $0x20] sm:$0xff]  ;;  %v242_v11 = vld [vmem:[%s7290_s1 + $0x38] sm:$0xff]  ;;  %v240_v12 = vld [vmem:[%s7290_s1 + $0x28] sm:$0xff] }
   0x5   :  { %4701 = vmatmul.msk.f32.vlgmr.msra.gmra.mxu0 %vm69_vm1, %v47_v5  ;;  %273 = vperm.xlu2 %5059, %v239_v9   ;;  %v49_v13 = vld [vmem:[%s7291_s0 + $0x10] sm:$0xff]  ;;  %v244_v14 = vld [vmem:[%s7290_s1 + $0x48] sm:$0xff]  ;;  %v243_v16 = vld [vmem:[%s7290_s1 + $0x40] sm:$0xff] }
   0x6   :  { %v245_v15 = vld [vmem:[%s7290_s1 + $0x50] sm:$0xff]  ;;  %v50_v17 = vld [vmem:[%s7291_s0 + $0x18] sm:$0xff]  ;;  %v247_v18 = vld [vmem:[%s7290_s1 + $0x60] sm:$0xff] }
   0x7   :  { %v248_v19 = vld [vmem:[%s7290_s1 + $0x68] sm:$0xff]  ;;  %v246_v20 = vld [vmem:[%s7290_s1 + $0x58] sm:$0xff]  ;;  %v51_v21 = vld [vmem:[%s7291_s0 + $0x20] sm:$0xff] }
   0x8   :  { %v250_v22 = vld [vmem:[%s7290_s1 + $0x78] sm:$0xff]  ;;  %v249_v23 = vld [vmem:[%s7290_s1 + $0x70] sm:$0xff]  ;;  %v52_v24 = vld [vmem:[%s7291_s0 + $0x28] sm:$0xff] }
   0x9   :  { %v53_v25 = vld [vmem:[%s7291_s0 + $0x30] sm:$0xff]  ;;  %v54_v26 = vld [vmem:[%s7291_s0 + $0x38] sm:$0xff]  ;;  %v55_v27 = vld [vmem:[%s7291_s0 + $0x40] sm:$0xff] }
   0xa   :  { %258 = vperm.xlu0 %5057, %v236_v6   ;;  %v362_v28 = vld [vmem:[%s7293_s5 + $0x78] sm:$0xff]  ;;  %v56_v29 = vld [vmem:[%s7291_s0 + $0x48] sm:$0xff]  ;;  %v361_v30 = vld [vmem:[%s7293_s5 + $0x70] sm:$0xff] }
   0xb   :  { %268 = vperm.xlu1 %5058, %v238_v7   ;;  %509 = vmatpush.msra.mxu2 %v362_v28  ;;  %v360_v31 = vld [vmem:[%s7293_s5 + $0x68] sm:$0xff]  ;;  %v359_v32 = vld [vmem:[%s7293_s5 + $0x60] sm:$0xff]  ;;  %v358_v33 = vld [vmem:[%s7293_s5 + $0x58] sm:$0xff] }
   0xc   :  { %v57_v34 = vld [vmem:[%s7291_s0 + $0x50] sm:$0xff]  ;;  %v4732_v36 = vld [vmem:[%s7293_s5 + $0xf8] sm:$0xff]  ;;  %v356_v38 = vld [vmem:[%s7293_s5 + $0x48] sm:$0xff] }
   0xd   :  { %4702 = vmatmul.msk.f32.gmra.mxu0 %vm69_vm1, %v48_v8  ;;  %278 = vperm.xlu2 %5059, %v240_v12   ;;  %v357_v35 = vld [vmem:[%s7293_s5 + $0x50] sm:$0xff]  ;;  %v4748_v37 = vld [vmem:[%s7293_s5 + $0x178] sm:$0xff]  ;;  %v355_v41 = vld [vmem:[%s7293_s5 + $0x40] sm:$0xff] }
   0xe   :  { %510 = vmatpush.msra.mxu2 %v361_v30  ;;  %444 = vmatpush.msra.mxu1 %v4732_v36  ;;  %v4731_v39 = vld [vmem:[%s7293_s5 + $0xf0] sm:$0xff]  ;;  %v4730_v42 = vld [vmem:[%s7293_s5 + $0xe8] sm:$0xff]  ;;  %v354_v44 = vld [vmem:[%s7293_s5 + $0x38] sm:$0xff] }
   0xf   :  { %639 = vmatpush.msra.mxu3 %v4748_v37  ;;  %v4747_v40 = vld [vmem:[%s7293_s5 + $0x170] sm:$0xff]  ;;  %v4746_v43 = vld [vmem:[%s7293_s5 + $0x168] sm:$0xff]  ;;  %v4729_v45 = vld [vmem:[%s7293_s5 + $0xe0] sm:$0xff] }
  0x10   :  { %511 = vmatpush.msra.mxu2 %v360_v31  ;;  %445 = vmatpush.msra.mxu1 %v4731_v39  ;;  %v4745_v46 = vld [vmem:[%s7293_s5 + $0x160] sm:$0xff]  ;;  %v58_v47 = vld [vmem:[%s7291_s0 + $0x58] sm:$0xff]  ;;  %v353_v48 = vld [vmem:[%s7293_s5 + $0x30] sm:$0xff] }
  0x11   :  { %640 = vmatpush.msra.mxu3 %v4747_v40  ;;  %v4728_v49 = vld [vmem:[%s7293_s5 + $0xd8] sm:$0xff]  ;;  %v352_v51 = vld [vmem:[%s7293_s5 + $0x28] sm:$0xff]  ;;  %v4727_v52 = vld [vmem:[%s7293_s5 + $0xd0] sm:$0xff] }
  0x12   :  { %283 = vperm.xlu0 %5057, %v241_v10   ;;  %512 = vmatpush.msra.mxu2 %v359_v32  ;;  %v4744_v50 = vld [vmem:[%s7293_s5 + $0x158] sm:$0xff]  ;;  %v4743_v53 = vld [vmem:[%s7293_s5 + $0x150] sm:$0xff]  ;;  %v351_v54 = vld [vmem:[%s7293_s5 + $0x20] sm:$0xff] }
  0x13   :  { %288 = vperm.xlu1 %5058, %v242_v11   ;;  %446 = vmatpush.msra.mxu1 %v4730_v42  ;;  %v4726_v55 = vld [vmem:[%s7293_s5 + $0xc8] sm:$0xff]  ;;  %v59_v57 = vld [vmem:[%s7291_s0 + $0x60] sm:$0xff]  ;;  %v350_v58 = vld [vmem:[%s7293_s5 + $0x18] sm:$0xff] }
  0x14   :  { %513 = vmatpush.msra.mxu2 %v358_v33  ;;  %641 = vmatpush.msra.mxu3 %v4746_v43  ;;  %v4742_v56 = vld [vmem:[%s7293_s5 + $0x148] sm:$0xff]  ;;  %v4725_v59 = vld [vmem:[%s7293_s5 + $0xc0] sm:$0xff]  ;;  %v349_v61 = vld [vmem:[%s7293_s5 + $0x10] sm:$0xff] }
  0x15   :  { %4703 = vmatmul.msk.f32.gmra.mxu0 %vm69_vm1, %v49_v13  ;;  %293 = vperm.xlu2 %5059, %v243_v16   ;;  %v4741_v60 = vld [vmem:[%s7293_s5 + $0x140] sm:$0xff]  ;;  %v4724_v62 = vld [vmem:[%s7293_s5 + $0xb8] sm:$0xff]  ;;  %v348_v0 = vld [vmem:[%s7293_s5 + $0x8] sm:$0xff] }
  0x16   :  { %514 = vmatpush.msra.mxu2 %v357_v35  ;;  %447 = vmatpush.msra.mxu1 %v4729_v45  ;;  %v4740_v63 = vld [vmem:[%s7293_s5 + $0x138] sm:$0xff]  ;;  %v4723_v1 = vld [vmem:[%s7293_s5 + $0xb0] sm:$0xff]  ;;  %v347_v3 = vld [vmem:[%s7293_s5] sm:$0xff] }
  0x17   :  { %642 = vmatpush.msra.mxu3 %v4745_v46  ;;  %v4739_v2 = vld [vmem:[%s7293_s5 + $0x130] sm:$0xff]  ;;  %v4722_v4 = vld [vmem:[%s7293_s5 + $0xa8] sm:$0xff]  ;;  %v4721_v7 = vld [vmem:[%s7293_s5 + $0xa0] sm:$0xff] }
  0x18   :  { %515 = vmatpush.msra.mxu2 %v356_v38  ;;  %448 = vmatpush.msra.mxu1 %v4728_v49  ;;  %v4738_v5 = vld [vmem:[%s7293_s5 + $0x128] sm:$0xff]  ;;  %v4737_v8 = vld [vmem:[%s7293_s5 + $0x120] sm:$0xff]  ;;  %v4720_v9 = vld [vmem:[%s7293_s5 + $0x98] sm:$0xff] }
  0x19   :  { %643 = vmatpush.msra.mxu3 %v4744_v50  ;;  %v60_v6 = vld [vmem:[%s7291_s0 + $0x68] sm:$0xff]  ;;  %v4736_v10 = vld [vmem:[%s7293_s5 + $0x118] sm:$0xff]  ;;  %v4719_v11 = vld [vmem:[%s7293_s5 + $0x90] sm:$0xff] }
  0x1a   :  { %298 = vperm.xlu0 %5057, %v244_v14   ;;  %516 = vmatpush.msra.mxu2 %v355_v41  ;;  %v4735_v12 = vld [vmem:[%s7293_s5 + $0x110] sm:$0xff]  ;;  %v4718_v13 = vld [vmem:[%s7293_s5 + $0x88] sm:$0xff]  ;;  %v4717_v16 = vld [vmem:[%s7293_s5 + $0x80] sm:$0xff] }
  0x1b   :  { %303 = vperm.xlu1 %5058, %v245_v15   ;;  %449 = vmatpush.msra.mxu1 %v4727_v52  ;;  %v4734_v14 = vld [vmem:[%s7293_s5 + $0x108] sm:$0xff]  ;;  %v61_v15 = vld [vmem:[%s7291_s0 + $0x70] sm:$0xff] }
  0x1c   :  { %517 = vmatpush.msra.mxu2 %v354_v44  ;;  %644 = vmatpush.msra.mxu3 %v4743_v53 }
  0x1d   :  { %4704 = vmatmul.msk.f32.gmra.mxu0 %vm69_vm1, %v50_v17  ;;  %308 = vperm.xlu2 %5059, %v246_v20   ;;  %v4733_v17 = vld [vmem:[%s7293_s5 + $0x100] sm:$0xff] }
  0x1e   :  { %518 = vmatpush.msra.mxu2 %v353_v48  ;;  %450 = vmatpush.msra.mxu1 %v4726_v55 }
  0x1f   :  { %645 = vmatpush.msra.mxu3 %v4742_v56 }
  0x20   :  { %519 = vmatpush.msra.mxu2 %v352_v51  ;;  %451 = vmatpush.msra.mxu1 %v4725_v59 }
  0x21   :  { %646 = vmatpush.msra.mxu3 %v4741_v60 }
  0x22   :  { %313 = vperm.xlu0 %5057, %v247_v18   ;;  %520 = vmatpush.msra.mxu2 %v351_v54  ;;  %v62_v18 = vld [vmem:[%s7291_s0 + $0x78] sm:$0xff] }
  0x23   :  { %318 = vperm.xlu1 %5058, %v248_v19   ;;  %452 = vmatpush.msra.mxu1 %v4724_v62  ;;  %v5582_v19 = vld [vmem:[%s7292_s4] ss:$0 sm:$0xff] }
  0x24   :  { %521 = vmatpush.msra.mxu2 %v350_v58  ;;  %647 = vmatpush.msra.mxu3 %v4740_v63 }
  0x25   :  { %4705 = vmatmul.msk.f32.gmra.mxu0 %vm69_vm1, %v51_v21  ;;  %323 = vperm.xlu2 %5059, %v249_v23  }
  0x26   :  { %522 = vmatpush.msra.mxu2 %v349_v61  ;;  %453 = vmatpush.msra.mxu1 %v4723_v1 }
  0x27   :  { %648 = vmatpush.msra.mxu3 %v4739_v2 }
  0x28   :  { %523 = vmatpush.msra.mxu2 %v348_v0  ;;  %454 = vmatpush.msra.mxu1 %v4722_v4 }
  0x29   :  { %649 = vmatpush.msra.mxu3 %v4738_v5 }
  0x2a   :  { %328 = vperm.xlu0 %5057, %v250_v22   ;;  %524 = vmatpush.msra.mxu2 %v347_v3 }
  0x2b   :  { %455 = vmatpush.msra.mxu1 %v4721_v7  ;;  %650 = vmatpush.msra.mxu3 %v4737_v8 }
  0x2d   :  { %4706 = vmatmul.msk.f32.gmra.mxu0 %vm69_vm1, %v52_v24  ;;  %456 = vmatpush.msra.mxu1 %v4720_v9 }
  0x2e   :  { %651 = vmatpush.msra.mxu3 %v4736_v10 }
  0x2f   :  { %457 = vmatpush.msra.mxu1 %v4719_v11 }
  0x30   :  { %652 = vmatpush.msra.mxu3 %v4735_v12 }
  0x31   :  { %458 = vmatpush.msra.mxu1 %v4718_v13 }
  0x32   :  { %653 = vmatpush.msra.mxu3 %v4734_v14 }
  0x33   :  { %459 = vmatpush.msra.mxu1 %v4717_v16 }
  0x34   :  { %654 = vmatpush.msra.mxu3 %v4733_v17  ;;  %v5604_v17 = vld [vmem:[%s7295_s7 + $0xb8] sm:$0xff] }
  0x35   :  { %4707 = vmatmul.msk.f32.gmra.mxu0 %vm69_vm1, %v53_v25  ;;  %1127 = vmatpush.msrb.mxu2 %v5604_v17 }
  0x3d   :  { %4708 = vmatmul.msk.f32.gmra.mxu0 %vm69_vm1, %v54_v26 }
  0x45   :  { %4709 = vmatmul.msk.f32.gmra.mxu0 %vm69_vm1, %v55_v27 }
  0x4d   :  { %4710 = vmatmul.msk.f32.gmra.mxu0 %vm69_vm1, %v56_v29 }
  0x55   :  { %4711 = vmatmul.msk.f32.gmra.mxu0 %vm69_vm1, %v57_v34 }
  0x5d   :  { %4712 = vmatmul.msk.f32.gmra.mxu0 %vm69_vm1, %v58_v47 }
  0x5f   :  { %v274_v60 = vpop.permute.xlu2 %273 }
  0x65   :  { %4713 = vmatmul.msk.f32.gmra.mxu0 %vm69_vm1, %v59_v57 }
  0x67   :  { %v279_v7 = vpop.permute.xlu2 %278 }
  0x6d   :  { %4714 = vmatmul.msk.f32.gmra.mxu0 %vm69_vm1, %v60_v6 }
  0x74   :  { %v254_v22 = vpop.permute.xlu0 %253 }
  0x75   :  { %4715 = vmatmul.msk.f32.gmra.mxu0 %vm69_vm1, %v61_v15  ;;  %v264_v40 = vpop.permute.xlu1 %263 }
  0x7c   :  { %v259_v29 = vpop.permute.xlu0 %258 }
  0x7d   :  { %4716 = vmatmul.msk.f32.gmra.mxu0 %vm69_vm1, %v62_v18  ;;  %v269_v51 = vpop.permute.xlu1 %268  ;;  %v4756_v18 = vld [vmem:[%s7295_s7 + $0x78] sm:$0xff] }
  0x7e   :  { %893 = vmatpush.msrb.mxu0 %v4756_v18  ;;  %1387 = vmatpush.msrb.mxu3 %v4756_v18 }
  0x82   :  { %v139_v20 = vpop.f32.mrf.mxu0 }
  0x83   :  { %v140_v21 = vadd.f32 %v5582_v19, %v139_v20  ;;  %v795_v20 = vld [vmem:[%s7295_s7 + $0x38] sm:$0xff] }
  0x84   :  { %990 = vmatpush.msrb.mxu1 %v795_v20 }
  0x85   :  { %vm187_vm2 = vcmp.gt.f32.partialorder %v140_v21, 0.0  ;;  %v203_v23 = vmul.f32 0.01, %v140_v21 }
  0x87   :  { %v219_v24 = vsel %vm187_vm2, %v140_v21, %v203_v23  ;;  %v284_v21 = vpop.permute.xlu0 %283 }
  0x88   :  { %v331_v25 = vmul.f32 %v254_v22, %v219_v24 }
  0x8a   :  { %v142_v26 = vpop.f32.mrf.mxu0  ;;  %525 = vmatmul.f32.vlgmr.msra.gmra.mxu2 %v331_v25  ;;  %v397_v33 = vrot.slane %v331_v25, 1  ;;  %v592_v35 = vrot.slane %v331_v25, 2 }
  0x8b   :  { %v143_v27 = vadd.f32 %v5582_v19, %v142_v26 }
  0x8d   :  { %vm188_vm3 = vcmp.gt.f32.partialorder %v143_v27, 0.0  ;;  %v204_v28 = vmul.f32 0.01, %v143_v27 }
  0x8f   :  { %v220_v30 = vsel %vm188_vm3, %v143_v27, %v204_v28 }
  0x90   :  { %v332_v31 = vmul.f32 %v259_v29, %v220_v30 }
  0x92   :  { %v145_v32 = vpop.f32.mrf.mxu0  ;;  %528 = vmatmul.f32.gmra.mxu2 %v332_v31  ;;  %v398_v34 = vrot.slane %v332_v31, 1  ;;  %v593_v36 = vrot.slane %v332_v31, 2  ;;  %v289_v31 = vpop.permute.xlu1 %288 }
  0x93   :  { %v146_v37 = vadd.f32 %v5582_v19, %v145_v32 }
  0x94   :  { %v399_v38 = vsel %vm396_vm4, %v397_v33, %v398_v34  ;;  %v594_v39 = vsel %vm591_vm5, %v592_v35, %v593_v36 }
  0x95   :  { %vm189_vm6 = vcmp.gt.f32.partialorder %v146_v37, 0.0  ;;  %v205_v41 = vmul.f32 0.01, %v146_v37  ;;  %460 = vmatmul.f32.vlgmr.msra.gmra.mxu1 %v399_v38  ;;  %655 = vmatmul.f32.vlgmr.msra.gmra.mxu3 %v594_v39 }
  0x97   :  { %v221_v42 = vsel %vm189_vm6, %v146_v37, %v205_v41  ;;  %v5622_v41 = vld [vmem:[%s7295_s7 + $0xb0] sm:$0xff] }
  0x98   :  { %v333_v43 = vmul.f32 %v264_v40, %v221_v42  ;;  %v4755_v42 = vld [vmem:[%s7295_s7 + $0x70] sm:$0xff]  ;;  %1128 = vmatpush.msrb.mxu2 %v5622_v41 }
  0x99   :  { %894 = vmatpush.msrb.mxu0 %v4755_v42  ;;  %1388 = vmatpush.msrb.mxu3 %v4755_v42 }
  0x9a   :  { %v148_v44 = vpop.f32.mrf.mxu0  ;;  %531 = vmatmul.f32.gmra.mxu2 %v333_v43  ;;  %v400_v45 = vrot.slane %v333_v43, 1  ;;  %v595_v46 = vrot.slane %v333_v43, 2  ;;  %v794_v43 = vld [vmem:[%s7295_s7 + $0x30] sm:$0xff] }
  0x9b   :  { %v149_v47 = vadd.f32 %v5582_v19, %v148_v44  ;;  %v294_v44 = vpop.permute.xlu2 %293  ;;  %991 = vmatpush.msrb.mxu1 %v794_v43 }
  0x9c   :  { %v401_v48 = vsel %vm396_vm4, %v398_v34, %v400_v45  ;;  %v596_v49 = vsel %vm591_vm5, %v593_v36, %v595_v46 }
  0x9d   :  { %vm190_vm7 = vcmp.gt.f32.partialorder %v149_v47, 0.0  ;;  %v206_v50 = vmul.f32 0.01, %v149_v47  ;;  %463 = vmatmul.f32.gmra.mxu1 %v401_v48  ;;  %658 = vmatmul.f32.gmra.mxu3 %v596_v49 }
  0x9f   :  { %v222_v52 = vsel %vm190_vm7, %v149_v47, %v206_v50  ;;  %vm852_vm7 = vcmask 523264  }
  0xa0   :  { %v334_v53 = vmul.f32 %v269_v51, %v222_v52 }
  0xa2   :  { %v151_v54 = vpop.f32.mrf.mxu0  ;;  %534 = vmatmul.f32.gmra.mxu2 %v334_v53  ;;  %v402_v55 = vrot.slane %v334_v53, 1  ;;  %v597_v56 = vrot.slane %v334_v53, 2 }
  0xa3   :  { %v152_v57 = vadd.f32 %v5582_v19, %v151_v54  ;;  %v299_v54 = vpop.permute.xlu0 %298 }
  0xa4   :  { %v403_v58 = vsel %vm396_vm4, %v400_v45, %v402_v55  ;;  %v598_v59 = vsel %vm591_vm5, %v595_v46, %v597_v56 }
  0xa5   :  { %vm191_vm8 = vcmp.gt.f32.partialorder %v152_v57, 0.0  ;;  %v207_v61 = vmul.f32 0.01, %v152_v57  ;;  %466 = vmatmul.f32.gmra.mxu1 %v403_v58  ;;  %661 = vmatmul.f32.gmra.mxu3 %v598_v59 }
  0xa7   :  { %v223_v62 = vsel %vm191_vm8, %v152_v57, %v207_v61 }
  0xa8   :  { %v335_v63 = vmul.f32 %v274_v60, %v223_v62 }
  0xaa   :  { %v154_v0 = vpop.f32.mrf.mxu0  ;;  %537 = vmatmul.f32.gmra.mxu2 %v335_v63  ;;  %v404_v1 = vrot.slane %v335_v63, 1  ;;  %v599_v2 = vrot.slane %v335_v63, 2 }
  0xab   :  { %v155_v3 = vadd.f32 %v5582_v19, %v154_v0  ;;  %v5640_v0 = vld [vmem:[%s7295_s7 + $0xa8] sm:$0xff] }
  0xac   :  { %v405_v4 = vsel %vm396_vm4, %v402_v55, %v404_v1  ;;  %v600_v5 = vsel %vm591_vm5, %v597_v56, %v599_v2  ;;  %1129 = vmatpush.msrb.mxu2 %v5640_v0 }
  0xad   :  { %vm192_vm9 = vcmp.gt.f32.partialorder %v155_v3, 0.0  ;;  %v208_v6 = vmul.f32 0.01, %v155_v3  ;;  %469 = vmatmul.f32.gmra.mxu1 %v405_v4  ;;  %664 = vmatmul.f32.gmra.mxu3 %v600_v5 }
  0xaf   :  { %v224_v8 = vsel %vm192_vm9, %v155_v3, %v208_v6  ;;  %v304_v3 = vpop.permute.xlu1 %303 }
  0xb0   :  { %v336_v9 = vmul.f32 %v279_v7, %v224_v8 }
  0xb2   :  { %v157_v10 = vpop.f32.mrf.mxu0  ;;  %540 = vmatmul.f32.gmra.mxu2 %v336_v9  ;;  %v406_v11 = vrot.slane %v336_v9, 1  ;;  %v601_v12 = vrot.slane %v336_v9, 2 }
  0xb3   :  { %v158_v13 = vadd.f32 %v5582_v19, %v157_v10 }
  0xb4   :  { %v407_v14 = vsel %vm396_vm4, %v404_v1, %v406_v11  ;;  %v602_v15 = vsel %vm591_vm5, %v599_v2, %v601_v12  ;;  %v4754_v1 = vld [vmem:[%s7295_s7 + $0x68] sm:$0xff] }
  0xb5   :  { %vm193_vm10 = vcmp.gt.f32.partialorder %v158_v13, 0.0  ;;  %v209_v16 = vmul.f32 0.01, %v158_v13  ;;  %472 = vmatmul.f32.gmra.mxu1 %v407_v14  ;;  %667 = vmatmul.f32.gmra.mxu3 %v602_v15  ;;  %v793_v2 = vld [vmem:[%s7295_s7 + $0x28] sm:$0xff] }
  0xb6   :  { %895 = vmatpush.msrb.mxu0 %v4754_v1  ;;  %992 = vmatpush.msrb.mxu1 %v793_v2 }
  0xb7   :  { %v225_v22 = vsel %vm193_vm10, %v158_v13, %v209_v16  ;;  %1389 = vmatpush.msrb.mxu3 %v4754_v1  ;;  %v309_v13 = vpop.permute.xlu2 %308 }
  0xb8   :  { %v337_v23 = vmul.f32 %v284_v21, %v225_v22  ;;  %v5655_v21 = vld [vmem:[%s7295_s7 + $0xa0] sm:$0xff] }
  0xb9   :  { %1130 = vmatpush.msrb.mxu2 %v5655_v21 }
  0xba   :  { %v160_v24 = vpop.f32.mrf.mxu0  ;;  %543 = vmatmul.f32.gmra.mxu2 %v337_v23  ;;  %v408_v25 = vrot.slane %v337_v23, 1  ;;  %v603_v26 = vrot.slane %v337_v23, 2 }
  0xbb   :  { %v161_v27 = vadd.f32 %v5582_v19, %v160_v24 }
  0xbc   :  { %v409_v28 = vsel %vm396_vm4, %v406_v11, %v408_v25  ;;  %v604_v29 = vsel %vm591_vm5, %v601_v12, %v603_v26 }
  0xbd   :  { %vm194_vm11 = vcmp.gt.f32.partialorder %v161_v27, 0.0  ;;  %v210_v30 = vmul.f32 0.01, %v161_v27  ;;  %475 = vmatmul.f32.gmra.mxu1 %v409_v28  ;;  %670 = vmatmul.f32.gmra.mxu3 %v604_v29  ;;  %v314_v28 = vpop.permute.xlu0 %313 }
  0xbf   :  { %v226_v32 = vsel %vm194_vm11, %v161_v27, %v210_v30  ;;  %v792_v27 = vld [vmem:[%s7295_s7 + $0x20] sm:$0xff] }
  0xc0   :  { %v338_v33 = vmul.f32 %v289_v31, %v226_v32  ;;  %993 = vmatpush.msrb.mxu1 %v792_v27 }
  0xc2   :  { %v163_v34 = vpop.f32.mrf.mxu0  ;;  %546 = vmatmul.f32.gmra.mxu2 %v338_v33  ;;  %v410_v35 = vrot.slane %v338_v33, 1  ;;  %v605_v36 = vrot.slane %v338_v33, 2 }
  0xc3   :  { %v164_v37 = vadd.f32 %v5582_v19, %v163_v34 }
  0xc4   :  { %v411_v38 = vsel %vm396_vm4, %v408_v25, %v410_v35  ;;  %v606_v39 = vsel %vm591_vm5, %v603_v26, %v605_v36  ;;  %v4753_v26 = vld [vmem:[%s7295_s7 + $0x60] sm:$0xff] }
  0xc5   :  { %vm195_vm12 = vcmp.gt.f32.partialorder %v164_v37, 0.0  ;;  %v211_v40 = vmul.f32 0.01, %v164_v37  ;;  %478 = vmatmul.f32.gmra.mxu1 %v411_v38  ;;  %673 = vmatmul.f32.gmra.mxu3 %v606_v39  ;;  %v319_v38 = vpop.permute.xlu1 %318  ;;  %v329_v1 = vpop.permute.xlu0 %328 }
  0xc6   :  { %896 = vmatpush.msrb.mxu0 %v4753_v26  ;;  %1390 = vmatpush.msrb.mxu3 %v4753_v26 }
  0xc7   :  { %v227_v45 = vsel %vm195_vm12, %v164_v37, %v211_v40 }
  0xc8   :  { %v339_v46 = vmul.f32 %v294_v44, %v227_v45 }
  0xca   :  { %v166_v47 = vpop.f32.mrf.mxu0  ;;  %549 = vmatmul.f32.gmra.mxu2 %v339_v46  ;;  %v412_v48 = vrot.slane %v339_v46, 1  ;;  %v607_v49 = vrot.slane %v339_v46, 2  ;;  %v5674_v46 = vld [vmem:[%s7295_s7 + $0x98] sm:$0xff] }
  0xcb   :  { %v167_v50 = vadd.f32 %v5582_v19, %v166_v47  ;;  %1131 = vmatpush.msrb.mxu2 %v5674_v46 }
  0xcc   :  { %v413_v51 = vsel %vm396_vm4, %v410_v35, %v412_v48  ;;  %v608_v52 = vsel %vm591_vm5, %v605_v36, %v607_v49 }
  0xcd   :  { %vm196_vm13 = vcmp.gt.f32.partialorder %v167_v50, 0.0  ;;  %v212_v53 = vmul.f32 0.01, %v167_v50  ;;  %481 = vmatmul.f32.gmra.mxu1 %v413_v51  ;;  %676 = vmatmul.f32.gmra.mxu3 %v608_v52 }
  0xcf   :  { %v228_v55 = vsel %vm196_vm13, %v167_v50, %v212_v53  ;;  %v324_v50 = vpop.permute.xlu2 %323  ;;  %v791_v53 = vld [vmem:[%s7295_s7 + $0x18] sm:$0xff] }
  0xd0   :  { %v340_v56 = vmul.f32 %v299_v54, %v228_v55  ;;  %994 = vmatpush.msrb.mxu1 %v791_v53 }
  0xd2   :  { %v169_v57 = vpop.f32.mrf.mxu0  ;;  %552 = vmatmul.f32.gmra.mxu2 %v340_v56  ;;  %v414_v58 = vrot.slane %v340_v56, 1  ;;  %v609_v59 = vrot.slane %v340_v56, 2 }
  0xd3   :  { %v170_v60 = vadd.f32 %v5582_v19, %v169_v57  ;;  %v790_v57 = vld [vmem:[%s7295_s7 + $0x10] sm:$0xff] }
  0xd4   :  { %v415_v61 = vsel %vm396_vm4, %v412_v48, %v414_v58  ;;  %v610_v62 = vsel %vm591_vm5, %v607_v49, %v609_v59  ;;  %995 = vmatpush.msrb.mxu1 %v790_v57 }
  0xd5   :  { %vm197_vm14 = vcmp.gt.f32.partialorder %v170_v60, 0.0  ;;  %v213_v63 = vmul.f32 0.01, %v170_v60  ;;  %484 = vmatmul.f32.gmra.mxu1 %v415_v61  ;;  %679 = vmatmul.f32.gmra.mxu3 %v610_v62  ;;  %v789_v62 = vld [vmem:[%s7295_s7 + $0x8] sm:$0xff] }
  0xd6   :  { %996 = vmatpush.msrb.mxu1 %v789_v62 }
  0xd7   :  { %v229_v4 = vsel %vm197_vm14, %v170_v60, %v213_v63 }
  0xd8   :  { %v341_v5 = vmul.f32 %v304_v3, %v229_v4 }
  0xda   :  { %v172_v6 = vpop.f32.mrf.mxu0  ;;  %555 = vmatmul.f32.gmra.mxu2 %v341_v5  ;;  %v416_v7 = vrot.slane %v341_v5, 1  ;;  %v611_v8 = vrot.slane %v341_v5, 2 }
  0xdb   :  { %v173_v9 = vadd.f32 %v5582_v19, %v172_v6  ;;  %v4791_v6 = vld [vmem:[%s7295_s7 + $0x90] sm:$0xff] }
  0xdc   :  { %v417_v10 = vsel %vm396_vm4, %v414_v58, %v416_v7  ;;  %v612_v11 = vsel %vm591_vm5, %v609_v59, %v611_v8  ;;  %v4752_v59 = vld [vmem:[%s7295_s7 + $0x58] sm:$0xff]  ;;  %1132 = vmatpush.msrb.mxu2 %v4791_v6 }
  0xdd   :  { %vm198_vm15 = vcmp.gt.f32.partialorder %v173_v9, 0.0  ;;  %v214_v12 = vmul.f32 0.01, %v173_v9  ;;  %487 = vmatmul.f32.gmra.mxu1 %v417_v10  ;;  %682 = vmatmul.f32.gmra.mxu3 %v612_v11  ;;  %v4750_v10 = vld [vmem:[%s7295_s7 + $0x48] sm:$0xff] }
  0xde   :  { %897 = vmatpush.msrb.mxu0 %v4752_v59  ;;  %1391 = vmatpush.msrb.mxu3 %v4752_v59  ;;  %v4790_v11 = vld [vmem:[%s7295_s7 + $0x88] sm:$0xff] }
  0xdf   :  { %v230_v14 = vsel %vm198_vm15, %v173_v9, %v214_v12  ;;  %v4751_v9 = vld [vmem:[%s7295_s7 + $0x50] sm:$0xff]  ;;  %1133 = vmatpush.msrb.mxu2 %v4790_v11  ;;  %v4749_v12 = vld [vmem:[%s7295_s7 + $0x40] sm:$0xff] }
  0xe0   :  { %v342_v15 = vmul.f32 %v309_v13, %v230_v14  ;;  %898 = vmatpush.msrb.mxu0 %v4751_v9  ;;  %1392 = vmatpush.msrb.mxu3 %v4751_v9  ;;  %v4789_v13 = vld [vmem:[%s7295_s7 + $0x80] sm:$0xff] }
  0xe1   :  { %1134 = vmatpush.msrb.mxu2 %v4789_v13 }
  0xe2   :  { %v175_v16 = vpop.f32.mrf.mxu0  ;;  %558 = vmatmul.f32.gmra.mxu2 %v342_v15  ;;  %v418_v18 = vrot.slane %v342_v15, 1  ;;  %v613_v20 = vrot.slane %v342_v15, 2  ;;  %899 = vmatpush.msrb.mxu0 %v4750_v10 }
  0xe3   :  { %v176_v22 = vadd.f32 %v5582_v19, %v175_v16  ;;  %1393 = vmatpush.msrb.mxu3 %v4750_v10 }
  0xe4   :  { %v419_v23 = vsel %vm396_vm4, %v416_v7, %v418_v18  ;;  %v614_v24 = vsel %vm591_vm5, %v611_v8, %v613_v20  ;;  %900 = vmatpush.msrb.mxu0 %v4749_v12 }
  0xe5   :  { %vm199_vm0 = vcmp.gt.f32.partialorder %v176_v22, 0.0  ;;  %v215_v25 = vmul.f32 0.01, %v176_v22  ;;  %490 = vmatmul.f32.gmra.mxu1 %v419_v23  ;;  %685 = vmatmul.f32.gmra.mxu3 %v614_v24 }
  0xe6   :  { %1524 = vmatpush.msra.mxu0 %v5604_v17  ;;  %1394 = vmatpush.msrb.mxu3 %v4749_v12  ;;  %v5725_v17 = vld [vmem:[%s7294_s6] ss:$0 sm:$0xff] }
  0xe7   :  { %v231_v29 = vsel %vm199_vm0, %v176_v22, %v215_v25 }
  0xe8   :  { %v343_v30 = vmul.f32 %v314_v28, %v231_v29  ;;  %1525 = vmatpush.msra.mxu0 %v5622_v41 }
  0xea   :  { %v178_v31 = vpop.f32.mrf.mxu0  ;;  %561 = vmatmul.f32.gmra.mxu2 %v343_v30  ;;  %v420_v32 = vrot.slane %v343_v30, 1  ;;  %v615_v33 = vrot.slane %v343_v30, 2  ;;  %1526 = vmatpush.msra.mxu0 %v5640_v0 }
  0xeb   :  { %v179_v34 = vadd.f32 %v5582_v19, %v178_v31 }
  0xec   :  { %v421_v35 = vsel %vm396_vm4, %v418_v18, %v420_v32  ;;  %v616_v36 = vsel %vm591_vm5, %v613_v20, %v615_v33  ;;  %1527 = vmatpush.msra.mxu0 %v5655_v21 }
  0xed   :  { %vm200_vm1 = vcmp.gt.f32.partialorder %v179_v34, 0.0  ;;  %v216_v37 = vmul.f32 0.01, %v179_v34  ;;  %493 = vmatmul.f32.gmra.mxu1 %v421_v35  ;;  %688 = vmatmul.f32.gmra.mxu3 %v616_v36 }
  0xee   :  { %1528 = vmatpush.msra.mxu0 %v5674_v46 }
  0xef   :  { %v232_v39 = vsel %vm200_vm1, %v179_v34, %v216_v37 }
  0xf0   :  { %v344_v40 = vmul.f32 %v319_v38, %v232_v39  ;;  %1529 = vmatpush.msra.mxu0 %v4791_v6 }
  0xf2   :  { %v181_v42 = vpop.f32.mrf.mxu0  ;;  %564 = vmatmul.f32.gmra.mxu2 %v344_v40  ;;  %v422_v43 = vrot.slane %v344_v40, 1  ;;  %v617_v44 = vrot.slane %v344_v40, 2  ;;  %1530 = vmatpush.msra.mxu0 %v4790_v11 }
  0xf3   :  { %v182_v45 = vadd.f32 %v5582_v19, %v181_v42 }
  0xf4   :  { %v423_v47 = vsel %vm396_vm4, %v420_v32, %v422_v43  ;;  %v618_v48 = vsel %vm591_vm5, %v615_v33, %v617_v44  ;;  %1531 = vmatpush.msra.mxu0 %v4789_v13 }
  0xf5   :  { %vm201_vm2 = vcmp.gt.f32.partialorder %v182_v45, 0.0  ;;  %v217_v49 = vmul.f32 0.01, %v182_v45  ;;  %496 = vmatmul.f32.gmra.mxu1 %v423_v47  ;;  %691 = vmatmul.f32.gmra.mxu3 %v618_v48 }
  0xf7   :  { %v233_v51 = vsel %vm201_vm2, %v182_v45, %v217_v49 }
  0xf8   :  { %v345_v52 = vmul.f32 %v324_v50, %v233_v51 }
  0xfa   :  { %v184_v54 = vpop.f32.mrf.mxu0  ;;  %567 = vmatmul.f32.gmra.mxu2 %v345_v52  ;;  %v424_v55 = vrot.slane %v345_v52, 1  ;;  %v619_v56 = vrot.slane %v345_v52, 2 }
  0xfb   :  { %v185_v58 = vadd.f32 %v5582_v19, %v184_v54  ;;  %v788_v19 = vld [vmem:[%s7295_s7] sm:$0xff] }
  0xfc   :  { %v425_v60 = vsel %vm396_vm4, %v422_v43, %v424_v55  ;;  %v620_v61 = vsel %vm591_vm5, %v617_v44, %v619_v56  ;;  %997 = vmatpush.msrb.mxu1 %v788_v19 }
  0xfd   :  { %vm202_vm3 = vcmp.gt.f32.partialorder %v185_v58, 0.0  ;;  %v218_v63 = vmul.f32 0.01, %v185_v58  ;;  %499 = vmatmul.f32.gmra.mxu1 %v425_v60  ;;  %694 = vmatmul.f32.gmra.mxu3 %v620_v61 }
  0xff   :  { %v234_v2 = vsel %vm202_vm3, %v185_v58, %v218_v63 }
 0x100   :  { %v346_v3 = vmul.f32 %v329_v1, %v234_v2 }
 0x102   :  { %570 = vmatmul.f32.gmra.mxu2 %v346_v3  ;;  %v426_v4 = vrot.slane %v346_v3, 1  ;;  %v621_v5 = vrot.slane %v346_v3, 2 }
 0x104   :  { %v427_v7 = vsel %vm396_vm4, %v424_v55, %v426_v4  ;;  %v622_v8 = vsel %vm591_vm5, %v619_v56, %v621_v5 }
 0x105   :  { %502 = vmatmul.f32.gmra.mxu1 %v427_v7  ;;  %697 = vmatmul.f32.gmra.mxu3 %v622_v8 }
 0x10d   :  { %505 = vmatmul.f32.gmra.mxu1 %v426_v4  ;;  %v526_v14 = vpop.f32.mrf.mxu2  ;;  %700 = vmatmul.f32.gmra.mxu3 %v621_v5 }
 0x112   :  { %v461_v15 = vpop.f32.mrf.mxu1 }
 0x113   :  { %v527_v18 = vadd.f32 %v526_v14, %v461_v15 }
 0x115   :  { %v529_v16 = vpop.f32.mrf.mxu2 }
 0x118   :  { %v656_v20 = vpop.f32.mrf.mxu3 }
 0x119   :  { %v704_v22 = vadd.f32 %v656_v20, %v527_v18 }
 0x11a   :  { %v464_v23 = vpop.f32.mrf.mxu1 }
 0x11b   :  { %v724_v41 = vadd.f32 %v5725_v17, %v704_v22  ;;  %v530_v24 = vadd.f32 %v529_v16, %v464_v23 }
 0x11d   :  { %v532_v0 = vpop.f32.mrf.mxu2  ;;  %vm740_vm6 = vcmp.gt.f32.partialorder %v724_v41, 0.0  ;;  %v756_v21 = vmul.f32 0.01, %v724_v41 }
 0x11f   :  { %v772_v25 = vsel %vm740_vm6, %v724_v41, %v756_v21 }
 0x120   :  { %v659_v26 = vpop.f32.mrf.mxu3  ;;  %4773 = vmatmul.msk.f32.vlgmr.msrb.gmra.mxu1 %vm852_vm7, %v772_v25  ;;  %v821_v34 = vrot.slane %v772_v25, 1  ;;  %v1056_v35 = vrot.slane %v772_v25, 2 }
 0x121   :  { %v705_v27 = vadd.f32 %v659_v26, %v530_v24 }
 0x122   :  { %v467_v28 = vpop.f32.mrf.mxu1 }
 0x123   :  { %v725_v29 = vadd.f32 %v5725_v17, %v705_v27  ;;  %v533_v32 = vadd.f32 %v532_v0, %v467_v28 }
 0x125   :  { %v535_v30 = vpop.f32.mrf.mxu2  ;;  %vm741_vm8 = vcmp.gt.f32.partialorder %v725_v29, 0.0  ;;  %v757_v31 = vmul.f32 0.01, %v725_v29 }
 0x127   :  { %v773_v33 = vsel %vm741_vm8, %v725_v29, %v757_v31 }
 0x128   :  { %v662_v36 = vpop.f32.mrf.mxu3  ;;  %v822_v37 = vrot.slane %v773_v33, 1  ;;  %4774 = vmatmul.msk.f32.gmra.mxu1 %vm852_vm7, %v773_v33  ;;  %v1057_v38 = vrot.slane %v773_v33, 2 }
 0x129   :  { %v706_v39 = vadd.f32 %v662_v36, %v533_v32 }
 0x12a   :  { %v470_v40 = vpop.f32.mrf.mxu1  ;;  %v823_v42 = vsel %vm396_vm4, %v821_v34, %v822_v37  ;;  %v1058_v43 = vsel %vm591_vm5, %v1056_v35, %v1057_v38 }
 0x12b   :  { %v726_v44 = vadd.f32 %v5725_v17, %v706_v39  ;;  %4757 = vmatmul.msk.f32.vlgmr.msrb.gmra.mxu0 %vm852_vm7, %v823_v42  ;;  %4797 = vmatmul.msk.f32.vlgmr.msrb.gmra.mxu2 %vm852_vm7, %v1058_v43  ;;  %v536_v47 = vadd.f32 %v535_v30, %v470_v40 }
 0x12d   :  { %v538_v45 = vpop.f32.mrf.mxu2  ;;  %vm742_vm9 = vcmp.gt.f32.partialorder %v726_v44, 0.0  ;;  %v758_v46 = vmul.f32 0.01, %v726_v44 }
 0x12f   :  { %v774_v48 = vsel %vm742_vm9, %v726_v44, %v758_v46 }
 0x130   :  { %v665_v49 = vpop.f32.mrf.mxu3  ;;  %v824_v50 = vrot.slane %v774_v48, 1  ;;  %4775 = vmatmul.msk.f32.gmra.mxu1 %vm852_vm7, %v774_v48  ;;  %v1059_v51 = vrot.slane %v774_v48, 2 }
 0x131   :  { %v707_v52 = vadd.f32 %v665_v49, %v536_v47 }
 0x132   :  { %v473_v53 = vpop.f32.mrf.mxu1  ;;  %v825_v54 = vsel %vm396_vm4, %v822_v37, %v824_v50  ;;  %v1060_v55 = vsel %vm591_vm5, %v1057_v38, %v1059_v51 }
 0x133   :  { %v727_v56 = vadd.f32 %v5725_v17, %v707_v52  ;;  %4758 = vmatmul.msk.f32.gmra.mxu0 %vm852_vm7, %v825_v54  ;;  %4798 = vmatmul.msk.f32.gmra.mxu2 %vm852_vm7, %v1060_v55  ;;  %v539_v59 = vadd.f32 %v538_v45, %v473_v53 }
 0x135   :  { %v541_v57 = vpop.f32.mrf.mxu2  ;;  %vm743_vm10 = vcmp.gt.f32.partialorder %v727_v56, 0.0  ;;  %v759_v58 = vmul.f32 0.01, %v727_v56 }
 0x137   :  { %v775_v60 = vsel %vm743_vm10, %v727_v56, %v759_v58 }
 0x138   :  { %v668_v61 = vpop.f32.mrf.mxu3  ;;  %v826_v62 = vrot.slane %v775_v60, 1  ;;  %4776 = vmatmul.msk.f32.gmra.mxu1 %vm852_vm7, %v775_v60  ;;  %v1061_v63 = vrot.slane %v775_v60, 2 }
 0x139   :  { %v708_v19 = vadd.f32 %v668_v61, %v539_v59 }
 0x13a   :  { %v476_v1 = vpop.f32.mrf.mxu1  ;;  %v827_v2 = vsel %vm396_vm4, %v824_v50, %v826_v62  ;;  %v1062_v3 = vsel %vm591_vm5, %v1059_v51, %v1061_v63 }
 0x13b   :  { %v728_v4 = vadd.f32 %v5725_v17, %v708_v19  ;;  %4759 = vmatmul.msk.f32.gmra.mxu0 %vm852_vm7, %v827_v2  ;;  %4799 = vmatmul.msk.f32.gmra.mxu2 %vm852_vm7, %v1062_v3  ;;  %v542_v7 = vadd.f32 %v541_v57, %v476_v1 }
 0x13d   :  { %v544_v5 = vpop.f32.mrf.mxu2  ;;  %vm744_vm11 = vcmp.gt.f32.partialorder %v728_v4, 0.0  ;;  %v760_v6 = vmul.f32 0.01, %v728_v4 }
 0x13f   :  { %v776_v8 = vsel %vm744_vm11, %v728_v4, %v760_v6 }
 0x140   :  { %v671_v9 = vpop.f32.mrf.mxu3  ;;  %v828_v10 = vrot.slane %v776_v8, 1  ;;  %4777 = vmatmul.msk.f32.gmra.mxu1 %vm852_vm7, %v776_v8  ;;  %v1063_v11 = vrot.slane %v776_v8, 2 }
 0x141   :  { %v709_v12 = vadd.f32 %v671_v9, %v542_v7 }
 0x142   :  { %v479_v13 = vpop.f32.mrf.mxu1  ;;  %v829_v14 = vsel %vm396_vm4, %v826_v62, %v828_v10  ;;  %v1064_v15 = vsel %vm591_vm5, %v1061_v63, %v1063_v11 }
 0x143   :  { %v729_v16 = vadd.f32 %v5725_v17, %v709_v12  ;;  %4760 = vmatmul.msk.f32.gmra.mxu0 %vm852_vm7, %v829_v14  ;;  %4800 = vmatmul.msk.f32.gmra.mxu2 %vm852_vm7, %v1064_v15  ;;  %v545_v22 = vadd.f32 %v544_v5, %v479_v13 }
 0x145   :  { %v547_v18 = vpop.f32.mrf.mxu2  ;;  %vm745_vm12 = vcmp.gt.f32.partialorder %v729_v16, 0.0  ;;  %v761_v20 = vmul.f32 0.01, %v729_v16 }
 0x147   :  { %v777_v23 = vsel %vm745_vm12, %v729_v16, %v761_v20 }
 0x148   :  { %v674_v41 = vpop.f32.mrf.mxu3  ;;  %v830_v0 = vrot.slane %v777_v23, 1  ;;  %4778 = vmatmul.msk.f32.gmra.mxu1 %vm852_vm7, %v777_v23  ;;  %v1065_v21 = vrot.slane %v777_v23, 2 }
 0x149   :  { %v710_v24 = vadd.f32 %v674_v41, %v545_v22 }
 0x14a   :  { %v482_v25 = vpop.f32.mrf.mxu1  ;;  %v831_v26 = vsel %vm396_vm4, %v828_v10, %v830_v0  ;;  %v1066_v27 = vsel %vm591_vm5, %v1063_v11, %v1065_v21 }
 0x14b   :  { %v730_v28 = vadd.f32 %v5725_v17, %v710_v24  ;;  %4761 = vmatmul.msk.f32.gmra.mxu0 %vm852_vm7, %v831_v26  ;;  %4801 = vmatmul.msk.f32.gmra.mxu2 %vm852_vm7, %v1066_v27  ;;  %v548_v31 = vadd.f32 %v547_v18, %v482_v25 }
 0x14d   :  { %v550_v29 = vpop.f32.mrf.mxu2  ;;  %vm746_vm13 = vcmp.gt.f32.partialorder %v730_v28, 0.0  ;;  %v762_v30 = vmul.f32 0.01, %v730_v28 }
 0x14f   :  { %v778_v32 = vsel %vm746_vm13, %v730_v28, %v762_v30 }
 0x150   :  { %v677_v33 = vpop.f32.mrf.mxu3  ;;  %v832_v34 = vrot.slane %v778_v32, 1  ;;  %4779 = vmatmul.msk.f32.gmra.mxu1 %vm852_vm7, %v778_v32  ;;  %v1067_v35 = vrot.slane %v778_v32, 2 }
 0x151   :  { %v711_v36 = vadd.f32 %v677_v33, %v548_v31 }
 0x152   :  { %v485_v37 = vpop.f32.mrf.mxu1  ;;  %v833_v38 = vsel %vm396_vm4, %v830_v0, %v832_v34  ;;  %v1068_v39 = vsel %vm591_vm5, %v1065_v21, %v1067_v35 }
 0x153   :  { %v731_v40 = vadd.f32 %v5725_v17, %v711_v36  ;;  %4762 = vmatmul.msk.f32.gmra.mxu0 %vm852_vm7, %v833_v38  ;;  %4802 = vmatmul.msk.f32.gmra.mxu2 %vm852_vm7, %v1068_v39  ;;  %v551_v44 = vadd.f32 %v550_v29, %v485_v37 }
 0x155   :  { %v553_v42 = vpop.f32.mrf.mxu2  ;;  %vm747_vm14 = vcmp.gt.f32.partialorder %v731_v40, 0.0  ;;  %v763_v43 = vmul.f32 0.01, %v731_v40 }
 0x157   :  { %v779_v45 = vsel %vm747_vm14, %v731_v40, %v763_v43 }
 0x158   :  { %v680_v46 = vpop.f32.mrf.mxu3  ;;  %v834_v47 = vrot.slane %v779_v45, 1  ;;  %4780 = vmatmul.msk.f32.gmra.mxu1 %vm852_vm7, %v779_v45  ;;  %v1069_v48 = vrot.slane %v779_v45, 2 }
 0x159   :  { %v712_v49 = vadd.f32 %v680_v46, %v551_v44 }
 0x15a   :  { %v488_v50 = vpop.f32.mrf.mxu1  ;;  %v835_v51 = vsel %vm396_vm4, %v832_v34, %v834_v47  ;;  %v1070_v52 = vsel %vm591_vm5, %v1067_v35, %v1069_v48 }
 0x15b   :  { %v732_v53 = vadd.f32 %v5725_v17, %v712_v49  ;;  %4763 = vmatmul.msk.f32.gmra.mxu0 %vm852_vm7, %v835_v51  ;;  %4803 = vmatmul.msk.f32.gmra.mxu2 %vm852_vm7, %v1070_v52  ;;  %v554_v56 = vadd.f32 %v553_v42, %v488_v50 }
 0x15d   :  { %v556_v54 = vpop.f32.mrf.mxu2  ;;  %vm748_vm15 = vcmp.gt.f32.partialorder %v732_v53, 0.0  ;;  %v764_v55 = vmul.f32 0.01, %v732_v53 }
 0x15f   :  { %v780_v57 = vsel %vm748_vm15, %v732_v53, %v764_v55 }
 0x160   :  { %v683_v58 = vpop.f32.mrf.mxu3  ;;  %v836_v59 = vrot.slane %v780_v57, 1  ;;  %4781 = vmatmul.msk.f32.gmra.mxu1 %vm852_vm7, %v780_v57  ;;  %v1071_v60 = vrot.slane %v780_v57, 2 }
 0x161   :  { %v713_v61 = vadd.f32 %v683_v58, %v554_v56 }
 0x162   :  { %v491_v62 = vpop.f32.mrf.mxu1  ;;  %v837_v63 = vsel %vm396_vm4, %v834_v47, %v836_v59  ;;  %v1072_v19 = vsel %vm591_vm5, %v1069_v48, %v1071_v60 }
 0x163   :  { %v733_v1 = vadd.f32 %v5725_v17, %v713_v61  ;;  %4764 = vmatmul.msk.f32.gmra.mxu0 %vm852_vm7, %v837_v63  ;;  %4804 = vmatmul.msk.f32.gmra.mxu2 %vm852_vm7, %v1072_v19  ;;  %v557_v4 = vadd.f32 %v556_v54, %v491_v62 }
 0x165   :  { %vm749_vm0 = vcmp.gt.f32.partialorder %v733_v1, 0.0  ;;  %v765_v2 = vmul.f32 0.01, %v733_v1  ;;  %v559_v3 = vpop.f32.mrf.mxu2 }
 0x167   :  { %v781_v5 = vsel %vm749_vm0, %v733_v1, %v765_v2 }
 0x168   :  { %v686_v6 = vpop.f32.mrf.mxu3  ;;  %v838_v7 = vrot.slane %v781_v5, 1  ;;  %4782 = vmatmul.msk.f32.gmra.mxu1 %vm852_vm7, %v781_v5  ;;  %v1073_v8 = vrot.slane %v781_v5, 2 }
 0x169   :  { %v714_v9 = vadd.f32 %v686_v6, %v557_v4 }
 0x16a   :  { %v494_v10 = vpop.f32.mrf.mxu1  ;;  %v839_v11 = vsel %vm396_vm4, %v836_v59, %v838_v7  ;;  %v1074_v12 = vsel %vm591_vm5, %v1071_v60, %v1073_v8 }
 0x16b   :  { %v734_v13 = vadd.f32 %v5725_v17, %v714_v9  ;;  %4765 = vmatmul.msk.f32.gmra.mxu0 %vm852_vm7, %v839_v11  ;;  %4805 = vmatmul.msk.f32.gmra.mxu2 %vm852_vm7, %v1074_v12  ;;  %v560_v15 = vadd.f32 %v559_v3, %v494_v10 }
 0x16d   :  { %vm750_vm1 = vcmp.gt.f32.partialorder %v734_v13, 0.0  ;;  %v766_v14 = vmul.f32 0.01, %v734_v13  ;;  %v562_v18 = vpop.f32.mrf.mxu2 }
 0x16f   :  { %v782_v16 = vsel %vm750_vm1, %v734_v13, %v766_v14 }
 0x170   :  { %v689_v20 = vpop.f32.mrf.mxu3  ;;  %v840_v22 = vrot.slane %v782_v16, 1  ;;  %4783 = vmatmul.msk.f32.gmra.mxu1 %vm852_vm7, %v782_v16  ;;  %v1075_v23 = vrot.slane %v782_v16, 2 }
 0x171   :  { %v715_v41 = vadd.f32 %v689_v20, %v560_v15 }
 0x172   :  { %v497_v0 = vpop.f32.mrf.mxu1  ;;  %v841_v21 = vsel %vm396_vm4, %v838_v7, %v840_v22  ;;  %v1076_v24 = vsel %vm591_vm5, %v1073_v8, %v1075_v23 }
 0x173   :  { %v735_v25 = vadd.f32 %v5725_v17, %v715_v41  ;;  %4766 = vmatmul.msk.f32.gmra.mxu0 %vm852_vm7, %v841_v21  ;;  %4806 = vmatmul.msk.f32.gmra.mxu2 %vm852_vm7, %v1076_v24  ;;  %v563_v27 = vadd.f32 %v562_v18, %v497_v0 }
 0x175   :  { %vm751_vm2 = vcmp.gt.f32.partialorder %v735_v25, 0.0  ;;  %v767_v26 = vmul.f32 0.01, %v735_v25  ;;  %v565_v33 = vpop.f32.mrf.mxu2 }
 0x177   :  { %v783_v28 = vsel %vm751_vm2, %v735_v25, %v767_v26 }
 0x178   :  { %v692_v29 = vpop.f32.mrf.mxu3  ;;  %v842_v30 = vrot.slane %v783_v28, 1  ;;  %4784 = vmatmul.msk.f32.gmra.mxu1 %vm852_vm7, %v783_v28  ;;  %v1077_v31 = vrot.slane %v783_v28, 2 }
 0x179   :  { %v716_v32 = vadd.f32 %v692_v29, %v563_v27 }
 0x17a   :  { %v500_v34 = vpop.f32.mrf.mxu1  ;;  %v843_v35 = vsel %vm396_vm4, %v840_v22, %v842_v30  ;;  %v1078_v36 = vsel %vm591_vm5, %v1075_v23, %v1077_v31  ;;  %v5824_v22 = vld [vmem:[%s7296_s8] ss:$0 sm:$0xff] }
 0x17b   :  { %v736_v37 = vadd.f32 %v5725_v17, %v716_v32  ;;  %4767 = vmatmul.msk.f32.gmra.mxu0 %vm852_vm7, %v843_v35  ;;  %4807 = vmatmul.msk.f32.gmra.mxu2 %vm852_vm7, %v1078_v36  ;;  %v566_v39 = vadd.f32 %v565_v33, %v500_v34 }
 0x17d   :  { %vm752_vm3 = vcmp.gt.f32.partialorder %v736_v37, 0.0  ;;  %v768_v38 = vmul.f32 0.01, %v736_v37  ;;  %v568_v50 = vpop.f32.mrf.mxu2 }
 0x17f   :  { %v784_v40 = vsel %vm752_vm3, %v736_v37, %v768_v38 }
 0x180   :  { %v695_v42 = vpop.f32.mrf.mxu3  ;;  %v844_v43 = vrot.slane %v784_v40, 1  ;;  %4785 = vmatmul.msk.f32.gmra.mxu1 %vm852_vm7, %v784_v40  ;;  %v1079_v44 = vrot.slane %v784_v40, 2 }
 0x181   :  { %v717_v45 = vadd.f32 %v695_v42, %v566_v39 }
 0x182   :  { %v503_v46 = vpop.f32.mrf.mxu1  ;;  %v845_v47 = vsel %vm396_vm4, %v842_v30, %v844_v43  ;;  %v1080_v48 = vsel %vm591_vm5, %v1077_v31, %v1079_v44 }
 0x183   :  { %v737_v49 = vadd.f32 %v5725_v17, %v717_v45  ;;  %4768 = vmatmul.msk.f32.gmra.mxu0 %vm852_vm7, %v845_v47  ;;  %4808 = vmatmul.msk.f32.gmra.mxu2 %vm852_vm7, %v1080_v48  ;;  %v569_v52 = vadd.f32 %v568_v50, %v503_v46 }
 0x185   :  { %vm753_vm6 = vcmp.gt.f32.partialorder %v737_v49, 0.0  ;;  %v769_v51 = vmul.f32 0.01, %v737_v49  ;;  %v571_v63 = vpop.f32.mrf.mxu2 }
 0x187   :  { %v785_v53 = vsel %vm753_vm6, %v737_v49, %v769_v51 }
 0x188   :  { %v698_v54 = vpop.f32.mrf.mxu3  ;;  %v846_v55 = vrot.slane %v785_v53, 1  ;;  %4786 = vmatmul.msk.f32.gmra.mxu1 %vm852_vm7, %v785_v53  ;;  %v1081_v56 = vrot.slane %v785_v53, 2 }
 0x189   :  { %v718_v57 = vadd.f32 %v698_v54, %v569_v52 }
 0x18a   :  { %v847_v58 = vsel %vm396_vm4, %v844_v43, %v846_v55  ;;  %v1082_v59 = vsel %vm591_vm5, %v1079_v44, %v1081_v56  ;;  %v506_v61 = vpop.f32.mrf.mxu1 }
 0x18b   :  { %v738_v60 = vadd.f32 %v5725_v17, %v718_v57  ;;  %4769 = vmatmul.msk.f32.gmra.mxu0 %vm852_vm7, %v847_v58  ;;  %4809 = vmatmul.msk.f32.gmra.mxu2 %vm852_vm7, %v1082_v59  ;;  %v572_v19 = vadd.f32 %v571_v63, %v506_v61 }
 0x18d   :  { %vm754_vm8 = vcmp.gt.f32.partialorder %v738_v60, 0.0  ;;  %v770_v62 = vmul.f32 0.01, %v738_v60 }
 0x18f   :  { %v786_v1 = vsel %vm754_vm8, %v738_v60, %v770_v62 }
 0x190   :  { %v701_v2 = vpop.f32.mrf.mxu3  ;;  %v848_v3 = vrot.slane %v786_v1, 1  ;;  %4787 = vmatmul.msk.f32.gmra.mxu1 %vm852_vm7, %v786_v1  ;;  %v1083_v4 = vrot.slane %v786_v1, 2 }
 0x191   :  { %v719_v5 = vadd.f32 %v701_v2, %v572_v19 }
 0x192   :  { %v849_v6 = vsel %vm396_vm4, %v846_v55, %v848_v3  ;;  %v1084_v7 = vsel %vm591_vm5, %v1081_v56, %v1083_v4 }
 0x193   :  { %v739_v8 = vadd.f32 %v5725_v17, %v719_v5  ;;  %4770 = vmatmul.msk.f32.gmra.mxu0 %vm852_vm7, %v849_v6  ;;  %4810 = vmatmul.msk.f32.gmra.mxu2 %vm852_vm7, %v1084_v7 }
 0x195   :  { %vm755_vm9 = vcmp.gt.f32.partialorder %v739_v8, 0.0  ;;  %v771_v9 = vmul.f32 0.01, %v739_v8 }
 0x197   :  { %v787_v10 = vsel %vm755_vm9, %v739_v8, %v771_v9 }
 0x198   :  { %v850_v11 = vrot.slane %v787_v10, 1  ;;  %4788 = vmatmul.msk.f32.gmra.mxu1 %vm852_vm7, %v787_v10  ;;  %v1085_v12 = vrot.slane %v787_v10, 2 }
 0x19a   :  { %v851_v13 = vsel %vm396_vm4, %v848_v3, %v850_v11  ;;  %v1086_v14 = vsel %vm591_vm5, %v1083_v4, %v1085_v12 }
 0x19b   :  { %4771 = vmatmul.msk.f32.gmra.mxu0 %vm852_vm7, %v851_v13  ;;  %4811 = vmatmul.msk.f32.gmra.mxu2 %vm852_vm7, %v1086_v14 }
 0x19d   :  { %v999_v17 = vpop.f32.mrf.mxu1 }
 0x1a3   :  { %4772 = vmatmul.msk.f32.gmra.mxu0 %vm852_vm7, %v850_v11  ;;  %4812 = vmatmul.msk.f32.gmra.mxu2 %vm852_vm7, %v1085_v12 }
 0x1a5   :  { %v1002_v15 = vpop.f32.mrf.mxu1 }
 0x1a8   :  { %v902_v16 = vpop.f32.mrf.mxu0 }
 0x1a9   :  { %v1000_v18 = vadd.f32 %v999_v17, %v902_v16 }
 0x1ad   :  { %v1005_v20 = vpop.f32.mrf.mxu1 }
 0x1ae   :  { %v1136_v23 = vpop.f32.mrf.mxu2 }
 0x1af   :  { %v1184_v41 = vadd.f32 %v1136_v23, %v1000_v18 }
 0x1b0   :  { %v905_v0 = vpop.f32.mrf.mxu0 }
 0x1b1   :  { %v1204_v21 = vadd.f32 %v5824_v22, %v1184_v41  ;;  %v1003_v26 = vadd.f32 %v1002_v15, %v905_v0 }
 0x1b3   :  { %vm1220_vm10 = vcmp.gt.f32.partialorder %v1204_v21, 0.0  ;;  %v1236_v24 = vmul.f32 0.01, %v1204_v21 }
 0x1b5   :  { %v1252_v25 = vsel %vm1220_vm10, %v1204_v21, %v1236_v24  ;;  %v1008_v27 = vpop.f32.mrf.mxu1 }
 0x1b6   :  { %1268 = vst.msk [vmem:[#allocation2] sm:$0xff] %vm852_vm7, %v1252_v25  ;;  %v1139_v28 = vpop.f32.mrf.mxu2 }
 0x1b7   :  { %v1185_v29 = vadd.f32 %v1139_v28, %v1003_v26 }
 0x1b8   :  { %v908_v30 = vpop.f32.mrf.mxu0 }
 0x1b9   :  { %v1205_v31 = vadd.f32 %v5824_v22, %v1185_v29  ;;  %v1006_v34 = vadd.f32 %v1005_v20, %v908_v30 }
 0x1bb   :  { %vm1221_vm11 = vcmp.gt.f32.partialorder %v1205_v31, 0.0  ;;  %v1237_v32 = vmul.f32 0.01, %v1205_v31 }
 0x1bd   :  { %v1253_v33 = vsel %vm1221_vm11, %v1205_v31, %v1237_v32  ;;  %v1011_v35 = vpop.f32.mrf.mxu1 }
 0x1be   :  { %1269 = vst.msk [vmem:[#allocation2 + $0x8] sm:$0xff] %vm852_vm7, %v1253_v33  ;;  %v1142_v36 = vpop.f32.mrf.mxu2 }
 0x1bf   :  { %v1186_v37 = vadd.f32 %v1142_v36, %v1006_v34 }
 0x1c0   :  { %v911_v38 = vpop.f32.mrf.mxu0 }
 0x1c1   :  { %v1206_v39 = vadd.f32 %v5824_v22, %v1186_v37  ;;  %v1009_v43 = vadd.f32 %v1008_v27, %v911_v38 }
 0x1c3   :  { %vm1222_vm12 = vcmp.gt.f32.partialorder %v1206_v39, 0.0  ;;  %v1238_v40 = vmul.f32 0.01, %v1206_v39 }
 0x1c5   :  { %v1254_v42 = vsel %vm1222_vm12, %v1206_v39, %v1238_v40  ;;  %v1014_v44 = vpop.f32.mrf.mxu1  ;;  %v1285_v57 = vld [vmem:[#allocation2] ss:$2 sm:$0xff]  ;;  %v1301_v58 = vld [vmem:[#allocation2 + $0x1] ss:$2 sm:$0xff] }
 0x1c6   :  { %1270 = vst.msk [vmem:[#allocation2 + $0x10] sm:$0xff] %vm852_vm7, %v1254_v42  ;;  %v1145_v45 = vpop.f32.mrf.mxu2  ;;  %v5835_v60 = vmax.f32 %v1285_v57, %v1301_v58 }
 0x1c7   :  { %v1187_v46 = vadd.f32 %v1145_v45, %v1009_v43 }
 0x1c8   :  { %v914_v47 = vpop.f32.mrf.mxu0  ;;  %v1348_v6 = vrot.slane %v5835_v60, 1  ;;  %v1485_v8 = vrot.slane %v5835_v60, 2 }
 0x1c9   :  { %v1207_v48 = vadd.f32 %v5824_v22, %v1187_v46  ;;  %v1012_v51 = vadd.f32 %v1011_v35, %v914_v47 }
 0x1cb   :  { %vm1223_vm13 = vcmp.gt.f32.partialorder %v1207_v48, 0.0  ;;  %v1239_v49 = vmul.f32 0.01, %v1207_v48 }
 0x1cd   :  { %v1255_v50 = vsel %vm1223_vm13, %v1207_v48, %v1239_v49  ;;  %v1017_v52 = vpop.f32.mrf.mxu1  ;;  %vm1283_vm13 = vcmask 519168  }
 0x1ce   :  { %1271 = vst.msk [vmem:[#allocation2 + $0x18] sm:$0xff] %vm852_vm7, %v1255_v50  ;;  %v1148_v53 = vpop.f32.mrf.mxu2 }
 0x1cf   :  { %v1188_v54 = vadd.f32 %v1148_v53, %v1012_v51 }
 0x1d0   :  { %v917_v55 = vpop.f32.mrf.mxu0 }
 0x1d1   :  { %v1208_v56 = vadd.f32 %v5824_v22, %v1188_v54  ;;  %v1015_v62 = vadd.f32 %v1014_v44, %v917_v55 }
 0x1d3   :  { %vm1224_vm14 = vcmp.gt.f32.partialorder %v1208_v56, 0.0  ;;  %v1240_v59 = vmul.f32 0.01, %v1208_v56 }
 0x1d5   :  { %v1256_v61 = vsel %vm1224_vm14, %v1208_v56, %v1240_v59  ;;  %v1020_v63 = vpop.f32.mrf.mxu1  ;;  %v1287_v19 = vld [vmem:[#allocation2 + $0x10] ss:$2 sm:$0xff]  ;;  %v1303_v1 = vld [vmem:[#allocation2 + $0x11] ss:$2 sm:$0xff] }
 0x1d6   :  { %1272 = vst.msk [vmem:[#allocation2 + $0x20] sm:$0xff] %vm852_vm7, %v1256_v61  ;;  %v1151_v2 = vpop.f32.mrf.mxu2  ;;  %v5838_v3 = vmax.f32 %v1287_v19, %v1303_v1 }
 0x1d7   :  { %v1189_v4 = vadd.f32 %v1151_v2, %v1015_v62 }
 0x1d8   :  { %v920_v5 = vpop.f32.mrf.mxu0  ;;  %v1349_v7 = vrot.slane %v5838_v3, 1  ;;  %v1486_v9 = vrot.slane %v5838_v3, 2 }
 0x1d9   :  { %v1209_v10 = vadd.f32 %v5824_v22, %v1189_v4  ;;  %v1018_v17 = vadd.f32 %v1017_v52, %v920_v5 }
 0x1da   :  { %v1350_v11 = vsel %vm396_vm4, %v1348_v6, %v1349_v7  ;;  %v1487_v12 = vsel %vm591_vm5, %v1485_v8, %v1486_v9 }
 0x1db   :  { %vm1225_vm15 = vcmp.gt.f32.partialorder %v1209_v10, 0.0  ;;  %v1241_v13 = vmul.f32 0.01, %v1209_v10  ;;  %4821 = vmatmul.msk.f32.vlgmr.msrb.gmra.mxu3 %vm852_vm7, %v1350_v11  ;;  %4845 = vmatmul.msk.f32.vlgmr.msra.gmra.mxu0 %vm852_vm7, %v1487_v12 }
 0x1dd   :  { %v1257_v14 = vsel %vm1225_vm15, %v1209_v10, %v1241_v13  ;;  %v1023_v15 = vpop.f32.mrf.mxu1 }
 0x1de   :  { %1273 = vst.msk [vmem:[#allocation2 + $0x28] sm:$0xff] %vm852_vm7, %v1257_v14  ;;  %v1154_v16 = vpop.f32.mrf.mxu2 }
 0x1df   :  { %v1190_v18 = vadd.f32 %v1154_v16, %v1018_v17 }
 0x1e0   :  { %v923_v20 = vpop.f32.mrf.mxu0 }
 0x1e1   :  { %v1210_v23 = vadd.f32 %v5824_v22, %v1190_v18  ;;  %v1021_v21 = vadd.f32 %v1020_v63, %v923_v20 }
 0x1e3   :  { %vm1226_vm0 = vcmp.gt.f32.partialorder %v1210_v23, 0.0  ;;  %v1242_v41 = vmul.f32 0.01, %v1210_v23 }
 0x1e5   :  { %v1258_v0 = vsel %vm1226_vm0, %v1210_v23, %v1242_v41  ;;  %v1289_v24 = vld [vmem:[#allocation2 + $0x20] ss:$2 sm:$0xff]  ;;  %v1305_v25 = vld [vmem:[#allocation2 + $0x21] ss:$2 sm:$0xff]  ;;  %v1026_v29 = vpop.f32.mrf.mxu1 }
 0x1e6   :  { %1274 = vst.msk [vmem:[#allocation2 + $0x30] sm:$0xff] %vm852_vm7, %v1258_v0  ;;  %v1157_v26 = vpop.f32.mrf.mxu2  ;;  %v5852_v27 = vmax.f32 %v1289_v24, %v1305_v25  ;;  %v1331_v24 = vld [vmem:[%s7295_s7 + $0x38] sm:$0xff] }
 0x1e7   :  { %v1191_v28 = vadd.f32 %v1157_v26, %v1021_v21  ;;  %1444 = vmatpush.msra.mxu3 %v1331_v24 }
 0x1e8   :  { %v926_v30 = vpop.f32.mrf.mxu0  ;;  %v1351_v31 = vrot.slane %v5852_v27, 1  ;;  %v1488_v32 = vrot.slane %v5852_v27, 2 }
 0x1e9   :  { %v1211_v33 = vadd.f32 %v5824_v22, %v1191_v28  ;;  %v1024_v38 = vadd.f32 %v1023_v15, %v926_v30 }
 0x1ea   :  { %v1352_v34 = vsel %vm396_vm4, %v1349_v7, %v1351_v31  ;;  %v1489_v35 = vsel %vm591_vm5, %v1486_v9, %v1488_v32 }
 0x1eb   :  { %vm1227_vm1 = vcmp.gt.f32.partialorder %v1211_v33, 0.0  ;;  %v1243_v36 = vmul.f32 0.01, %v1211_v33  ;;  %4822 = vmatmul.msk.f32.gmra.mxu3 %vm852_vm7, %v1352_v34  ;;  %4846 = vmatmul.msk.f32.gmra.mxu0 %vm852_vm7, %v1489_v35 }
 0x1ed   :  { %v1259_v37 = vsel %vm1227_vm1, %v1211_v33, %v1243_v36  ;;  %v1029_v44 = vpop.f32.mrf.mxu1 }
 0x1ee   :  { %1275 = vst.msk [vmem:[#allocation2 + $0x38] sm:$0xff] %vm852_vm7, %v1259_v37  ;;  %v1160_v39 = vpop.f32.mrf.mxu2 }
 0x1ef   :  { %v1192_v40 = vadd.f32 %v1160_v39, %v1024_v38 }
 0x1f0   :  { %v929_v42 = vpop.f32.mrf.mxu0 }
 0x1f1   :  { %v1212_v43 = vadd.f32 %v5824_v22, %v1192_v40  ;;  %v1027_v47 = vadd.f32 %v1026_v29, %v929_v42 }
 0x1f3   :  { %vm1228_vm2 = vcmp.gt.f32.partialorder %v1212_v43, 0.0  ;;  %v1244_v45 = vmul.f32 0.01, %v1212_v43 }
 0x1f5   :  { %v1260_v46 = vsel %vm1228_vm2, %v1212_v43, %v1244_v45  ;;  %v1291_v48 = vld [vmem:[#allocation2 + $0x30] ss:$2 sm:$0xff]  ;;  %v1307_v49 = vld [vmem:[#allocation2 + $0x31] ss:$2 sm:$0xff]  ;;  %v1032_v61 = vpop.f32.mrf.mxu1 }
 0x1f6   :  { %1276 = vst.msk [vmem:[#allocation2 + $0x40] sm:$0xff] %vm852_vm7, %v1260_v46  ;;  %v1163_v50 = vpop.f32.mrf.mxu2  ;;  %v5864_v51 = vmax.f32 %v1291_v48, %v1307_v49  ;;  %v1329_v48 = vld [vmem:[%s7295_s7 + $0x28] sm:$0xff] }
 0x1f7   :  { %v1193_v52 = vadd.f32 %v1163_v50, %v1027_v47  ;;  %v1330_v47 = vld [vmem:[%s7295_s7 + $0x30] sm:$0xff] }
 0x1f8   :  { %v932_v53 = vpop.f32.mrf.mxu0  ;;  %v1353_v54 = vrot.slane %v5864_v51, 1  ;;  %v1490_v55 = vrot.slane %v5864_v51, 2  ;;  %1445 = vmatpush.msra.mxu3 %v1330_v47  ;;  %v1660_v47 = vld [vmem:[%s7297_s9 + $0x18] sm:$0xff] }
 0x1f9   :  { %v1213_v56 = vadd.f32 %v5824_v22, %v1193_v52  ;;  %v1030_v63 = vadd.f32 %v1029_v44, %v932_v53  ;;  %v1328_v52 = vld [vmem:[%s7295_s7 + $0x20] sm:$0xff] }
 0x1fa   :  { %v1354_v57 = vsel %vm396_vm4, %v1351_v31, %v1353_v54  ;;  %v1491_v58 = vsel %vm591_vm5, %v1488_v32, %v1490_v55  ;;  %1446 = vmatpush.msra.mxu3 %v1329_v48 }
 0x1fb   :  { %vm1229_vm3 = vcmp.gt.f32.partialorder %v1213_v56, 0.0  ;;  %v1245_v59 = vmul.f32 0.01, %v1213_v56  ;;  %4823 = vmatmul.msk.f32.gmra.mxu3 %vm852_vm7, %v1354_v57  ;;  %4847 = vmatmul.msk.f32.gmra.mxu0 %vm852_vm7, %v1491_v58  ;;  %v1327_v58 = vld [vmem:[%s7295_s7 + $0x18] sm:$0xff] }
 0x1fc   :  { %1447 = vmatpush.msra.mxu3 %v1328_v52 }
 0x1fd   :  { %v1261_v62 = vsel %vm1229_vm3, %v1213_v56, %v1245_v59  ;;  %v1035_v10 = vpop.f32.mrf.mxu1  ;;  %v1326_v59 = vld [vmem:[%s7295_s7 + $0x10] sm:$0xff]  ;;  %vm1639_vm3 = vcmask 521216  }
 0x1fe   :  { %1277 = vst.msk [vmem:[#allocation2 + $0x48] sm:$0xff] %vm852_vm7, %v1261_v62  ;;  %v1166_v19 = vpop.f32.mrf.mxu2  ;;  %1448 = vmatpush.msra.mxu3 %v1327_v58 }
 0x1ff   :  { %v1194_v1 = vadd.f32 %v1166_v19, %v1030_v63 }
 0x200   :  { %v935_v2 = vpop.f32.mrf.mxu0  ;;  %1449 = vmatpush.msra.mxu3 %v1326_v59 }
 0x201   :  { %v1214_v4 = vadd.f32 %v5824_v22, %v1194_v1  ;;  %v1033_v7 = vadd.f32 %v1032_v61, %v935_v2  ;;  %v1325_v2 = vld [vmem:[%s7295_s7 + $0x8] sm:$0xff] }
 0x202   :  { %1450 = vmatpush.msra.mxu3 %v1325_v2 }
 0x203   :  { %vm1230_vm6 = vcmp.gt.f32.partialorder %v1214_v4, 0.0  ;;  %v1246_v5 = vmul.f32 0.01, %v1214_v4 }
 0x205   :  { %v1262_v6 = vsel %vm1230_vm6, %v1214_v4, %v1246_v5  ;;  %v1293_v8 = vld [vmem:[#allocation2 + $0x40] ss:$2 sm:$0xff]  ;;  %v1309_v9 = vld [vmem:[#allocation2 + $0x41] ss:$2 sm:$0xff]  ;;  %v1038_v26 = vpop.f32.mrf.mxu1 }
 0x206   :  { %1278 = vst.msk [vmem:[#allocation2 + $0x50] sm:$0xff] %vm852_vm7, %v1262_v6  ;;  %v1169_v11 = vpop.f32.mrf.mxu2  ;;  %v5876_v12 = vmax.f32 %v1293_v8, %v1309_v9 }
 0x207   :  { %v1195_v13 = vadd.f32 %v1169_v11, %v1033_v7  ;;  %v1324_v7 = vld [vmem:[%s7295_s7] sm:$0xff]  ;;  %s5236_s7 = smov 48  }
 0x208   :  { %v938_v14 = vpop.f32.mrf.mxu0  ;;  %v1355_v17 = vrot.slane %v5876_v12, 1  ;;  %v1492_v15 = vrot.slane %v5876_v12, 2  ;;  %1451 = vmatpush.msra.mxu3 %v1324_v7 }
 0x209   :  { %v1215_v16 = vadd.f32 %v5824_v22, %v1195_v13  ;;  %v1036_v0 = vadd.f32 %v1035_v10, %v938_v14 }
 0x20a   :  { %v1356_v18 = vsel %vm396_vm4, %v1353_v54, %v1355_v17  ;;  %v1493_v20 = vsel %vm591_vm5, %v1490_v55, %v1492_v15 }
 0x20b   :  { %vm1231_vm8 = vcmp.gt.f32.partialorder %v1215_v16, 0.0  ;;  %v1247_v23 = vmul.f32 0.01, %v1215_v16  ;;  %4824 = vmatmul.msk.f32.gmra.mxu3 %vm852_vm7, %v1356_v18  ;;  %4848 = vmatmul.msk.f32.gmra.mxu0 %vm852_vm7, %v1493_v20 }
 0x20d   :  { %v1263_v41 = vsel %vm1231_vm8, %v1215_v16, %v1247_v23  ;;  %v1041_v43 = vpop.f32.mrf.mxu1 }
 0x20e   :  { %1279 = vst.msk [vmem:[#allocation2 + $0x58] sm:$0xff] %vm852_vm7, %v1263_v41  ;;  %v1172_v21 = vpop.f32.mrf.mxu2 }
 0x20f   :  { %v1196_v25 = vadd.f32 %v1172_v21, %v1036_v0  ;;  %v1667_v21 = vld [vmem:[%s7297_s9 + $0x50] sm:$0xff] }
 0x210   :  { %v941_v28 = vpop.f32.mrf.mxu0 }
 0x211   :  { %v1216_v29 = vadd.f32 %v5824_v22, %v1196_v25  ;;  %v1039_v32 = vadd.f32 %v1038_v26, %v941_v28 }
 0x213   :  { %vm1232_vm9 = vcmp.gt.f32.partialorder %v1216_v29, 0.0  ;;  %v1248_v30 = vmul.f32 0.01, %v1216_v29 }
 0x215   :  { %v1264_v31 = vsel %vm1232_vm9, %v1216_v29, %v1248_v30  ;;  %v1295_v33 = vld [vmem:[#allocation2 + $0x50] ss:$2 sm:$0xff]  ;;  %v1311_v34 = vld [vmem:[#allocation2 + $0x51] ss:$2 sm:$0xff]  ;;  %v1044_v61 = vpop.f32.mrf.mxu1  ;;  %v1670_v30 = vld [vmem:[%s7297_s9 + $0x68] sm:$0xff] }
 0x216   :  { %1280 = vst.msk [vmem:[#allocation2 + $0x60] sm:$0xff] %vm852_vm7, %v1264_v31  ;;  %v1175_v35 = vpop.f32.mrf.mxu2  ;;  %v5891_v36 = vmax.f32 %v1295_v33, %v1311_v34  ;;  %v1672_v29 = vld [vmem:[%s7297_s9 + $0x78] sm:$0xff]  ;;  %v1665_v31 = vld [vmem:[%s7297_s9 + $0x40] sm:$0xff]  ;;  %v1666_v33 = vld [vmem:[%s7297_s9 + $0x48] sm:$0xff]  ;;  %v5233_v34 = vmov 0.0  }
 0x217   :  { %v1197_v37 = vadd.f32 %v1175_v35, %v1039_v32  ;;  %1722 = vmatpush.msra.mxu2 %v1672_v29  ;;  %v1668_v32 = vld [vmem:[%s7297_s9 + $0x58] sm:$0xff]  ;;  %1621 = vst.msk [vmem:[#allocation3] sm:$0xff] %vm852_vm7, %v5233_v34  ;;  %v1629_v35 = vld [vmem:[%s7298_s2] sm:$0x1] }
 0x218   :  { %v944_v38 = vpop.f32.mrf.mxu0  ;;  %v1357_v39 = vrot.slane %v5891_v36, 1  ;;  %v1494_v40 = vrot.slane %v5891_v36, 2  ;;  %1622 = vst.msk [vmem:[#allocation3 + $0x8] sm:$0xff] %vm852_vm7, %v5233_v34 }
 0x219   :  { %v1217_v42 = vadd.f32 %v5824_v22, %v1197_v37  ;;  %v1042_v50 = vadd.f32 %v1041_v43, %v944_v38  ;;  %1723 = vmatpush.msra.mxu2 %v1670_v30  ;;  %v1663_v38 = vld [vmem:[%s7297_s9 + $0x30] sm:$0xff]  ;;  %v1661_v43 = vld [vmem:[%s7297_s9 + $0x20] sm:$0xff]  ;;  %1623 = vst.msk [vmem:[#allocation3 + $0x10] sm:$0xff] %vm852_vm7, %v5233_v34 }
 0x21a   :  { %v1358_v44 = vsel %vm396_vm4, %v1355_v17, %v1357_v39  ;;  %v1495_v45 = vsel %vm591_vm5, %v1492_v15, %v1494_v40  ;;  %1624 = vst.msk [vmem:[#allocation3 + $0x18] sm:$0xff] %vm852_vm7, %v5233_v34 }
 0x21b   :  { %vm1233_vm10 = vcmp.gt.f32.partialorder %v1217_v42, 0.0  ;;  %v1249_v46 = vmul.f32 0.01, %v1217_v42  ;;  %4825 = vmatmul.msk.f32.gmra.mxu3 %vm852_vm7, %v1358_v44  ;;  %4849 = vmatmul.msk.f32.gmra.mxu0 %vm852_vm7, %v1495_v45  ;;  %v1662_v44 = vld [vmem:[%s7297_s9 + $0x28] sm:$0xff]  ;;  %1625 = vst.msk [vmem:[#allocation4] sm:$0xff] %vm852_vm7, %v5233_v34 }
 0x21c   :  { %1724 = vmatpush.msra.mxu2 %v1668_v32  ;;  %1626 = vst.msk [vmem:[#allocation4 + $0x8] sm:$0xff] %vm852_vm7, %v5233_v34 }
 0x21d   :  { %v1265_v49 = vsel %vm1233_vm10, %v1217_v42, %v1249_v46  ;;  %v6000_v42 = vld [vmem:[%s7296_s8] ss:$0 sm:$0xff]  ;;  %v1659_v46 = vld [vmem:[%s7297_s9 + $0x10] sm:$0xff]  ;;  %1627 = vst.msk [vmem:[#allocation4 + $0x10] sm:$0xff] %vm852_vm7, %v5233_v34  ;;  %vm1768_vm10 = vcmask 130048  }
 0x21e   :  { %1281 = vst.msk [vmem:[#allocation2 + $0x68] sm:$0xff] %vm852_vm7, %v1265_v49  ;;  %v1178_v53 = vpop.f32.mrf.mxu2  ;;  %1725 = vmatpush.msra.mxu2 %v1666_v33  ;;  %v1657_v49 = vld [vmem:[%s7297_s9] sm:$0xff] }
 0x21f   :  { %v1198_v54 = vadd.f32 %v1178_v53, %v1042_v50  ;;  %v1658_v50 = vld [vmem:[%s7297_s9 + $0x8] sm:$0xff]  ;;  %1628 = vst.msk [vmem:[#allocation4 + $0x18] sm:$0xff] %vm852_vm7, %v5233_v34 }
 0x220   :  { %v947_v56 = vpop.f32.mrf.mxu0 }
 0x221   :  { %v1218_v55 = vadd.f32 %v5824_v22, %v1198_v54  ;;  %v1045_v63 = vadd.f32 %v1044_v61, %v947_v56 }
 0x223   :  { %vm1234_vm11 = vcmp.gt.f32.partialorder %v1218_v55, 0.0  ;;  %v1250_v57 = vmul.f32 0.01, %v1218_v55 }
 0x225   :  { %v1266_v62 = vsel %vm1234_vm11, %v1218_v55, %v1250_v57  ;;  %v1297_v19 = vld [vmem:[#allocation2 + $0x60] ss:$2 sm:$0xff]  ;;  %v1313_v1 = vld [vmem:[#allocation2 + $0x61] ss:$2 sm:$0xff]  ;;  %vm1802_vm11 = vcmask 121856  }
 0x226   :  { %1282 = vst.msk [vmem:[#allocation2 + $0x70] sm:$0xff] %vm852_vm7, %v1266_v62  ;;  %v1181_v4 = vpop.f32.mrf.mxu2  ;;  %v1322_v5 = vmax.f32 %v1297_v19, %v1313_v1 }
 0x227   :  { %v1199_v6 = vadd.f32 %v1181_v4, %v1045_v63  ;;  %v6033_v63 = vld [vmem:[%s7299_s13] sm:$0xff] }
 0x228   :  { %v1359_v8 = vrot.slane %v1322_v5, 1  ;;  %v1496_v9 = vrot.slane %v1322_v5, 2  ;;  %v1748_v2 = vperm.slane %v6033_v63, 1 }
 0x229   :  { %v1219_v10 = vadd.f32 %v5824_v22, %v1199_v6 }
 0x22a   :  { %v1360_v11 = vsel %vm396_vm4, %v1357_v39, %v1359_v8  ;;  %v1497_v13 = vsel %vm591_vm5, %v1494_v40, %v1496_v9  ;;  %v1664_v39 = vld [vmem:[%s7297_s9 + $0x38] sm:$0xff]  ;;  %1750 = vrot.lane.b32.xlu1 %v1748_v2, %s5234_s30 }
 0x22b   :  { %vm1235_vm12 = vcmp.gt.f32.partialorder %v1219_v10, 0.0  ;;  %v1251_v14 = vmul.f32 0.01, %v1219_v10  ;;  %4826 = vmatmul.msk.f32.gmra.mxu3 %vm852_vm7, %v1360_v11  ;;  %4850 = vmatmul.msk.f32.gmra.mxu0 %vm852_vm7, %v1497_v13 }
 0x22c   :  { %1726 = vmatpush.msra.mxu2 %v1664_v39 }
 0x22d   :  { %v1267_v17 = vsel %vm1235_vm12, %v1219_v10, %v1251_v14  ;;  %vm7304_vm12 = vcmask 120832  }
 0x22e   :  { %1284 = vst.msk [vmem:[#allocation2 + $0x78] sm:$0xf] %vm1283_vm13, %v1267_v17  ;;  %1727 = vmatpush.msra.mxu2 %v1662_v44 }
 0x230   :  { %1728 = vmatpush.msra.mxu2 %v1660_v47 }
 0x232   :  { %1729 = vmatpush.msra.mxu2 %v1658_v50 }
 0x235   :  { %v1299_v15 = vld [vmem:[#allocation2 + $0x70] ss:$2 sm:$0x3f]  ;;  %v1315_v16 = vld [vmem:[#allocation2 + $0x71] ss:$2 sm:$0x3f] }
 0x236   :  { %v1323_v18 = vmax.f32 %v1299_v15, %v1315_v16  ;;  %v1634_v15 = vld [vmem:[%s7298_s2 + $0x1] sm:$0xff] }
 0x238   :  { %v1361_v20 = vrot.slane %v1323_v18, 1  ;;  %v1498_v22 = vrot.slane %v1323_v18, 2 }
 0x23a   :  { %v1362_v23 = vsel %vm396_vm4, %v1359_v8, %v1361_v20  ;;  %v1499_v41 = vsel %vm591_vm5, %v1496_v9, %v1498_v22  ;;  %vm1630_vm5 = vcmask 516096  }
 0x23b   :  { %4827 = vmatmul.msk.f32.gmra.mxu3 %vm852_vm7, %v1362_v23  ;;  %4851 = vmatmul.msk.f32.gmra.mxu0 %vm852_vm7, %v1499_v41  ;;  %1631 = vst.msk [vmem:[#allocation3] sm:$0x1] %vm1630_vm5, %v1629_v35  ;;  %v1641_v23 = vld [vmem:[%s7298_s2] sm:$0x1] }
 0x23c   :  { %1642 = vst.msk [vmem:[#allocation3 + $0x10] sm:$0x1] %vm1630_vm5, %v1641_v23 }
 0x243   :  { %4828 = vmatmul.msk.f32.gmra.mxu3 %vm852_vm7, %v1361_v20  ;;  %4852 = vmatmul.msk.f32.gmra.mxu0 %vm852_vm7, %v1498_v22 }
 0x24b   :  { %4829 = vmatmul.msk.f32.vlgmr.msra.gmra.mxu3 %vm852_vm7, %v5835_v60  ;;  %v1671_v60 = vld [vmem:[%s7297_s9 + $0x70] sm:$0xff] }
 0x24c   :  { %1693 = vmatpush.msra.mxu1 %v1671_v60 }
 0x253   :  { %4830 = vmatmul.msk.f32.gmra.mxu3 %vm852_vm7, %v5838_v3 }
 0x25b   :  { %4831 = vmatmul.msk.f32.gmra.mxu3 %vm852_vm7, %v5852_v27  ;;  %v1669_v27 = vld [vmem:[%s7297_s9 + $0x60] sm:$0xff] }
 0x25c   :  { %1694 = vmatpush.msra.mxu1 %v1669_v27 }
 0x25e   :  { %v1396_v3 = vpop.f32.mrf.mxu3  ;;  %1695 = vmatpush.msra.mxu1 %v1667_v21 }
 0x260   :  { %1696 = vmatpush.msra.mxu1 %v1665_v31 }
 0x262   :  { %1697 = vmatpush.msra.mxu1 %v1663_v38 }
 0x263   :  { %4832 = vmatmul.msk.f32.gmra.mxu3 %vm852_vm7, %v5864_v51 }
 0x264   :  { %1698 = vmatpush.msra.mxu1 %v1661_v43 }
 0x266   :  { %1699 = vmatpush.msra.mxu1 %v1659_v46 }
 0x268   :  { %1700 = vmatpush.msra.mxu1 %v1657_v49 }
 0x26b   :  { %4833 = vmatmul.msk.f32.gmra.mxu3 %vm852_vm7, %v5876_v12 }
 0x26e   :  { %v1399_v51 = vpop.f32.mrf.mxu3 }
 0x273   :  { %4834 = vmatmul.msk.f32.gmra.mxu3 %vm852_vm7, %v5891_v36  ;;  %v1533_v36 = vpop.f32.mrf.mxu0 }
 0x27b   :  { %4835 = vmatmul.msk.f32.gmra.mxu3 %vm852_vm7, %v1322_v5  ;;  %v1536_v53 = vpop.f32.mrf.mxu0 }
 0x27e   :  { %v5956_v12 = vpop.f32.mrf.mxu3 }
 0x283   :  { %4836 = vmatmul.msk.f32.gmra.mxu3 %vm852_vm7, %v1323_v18  ;;  %v1539_v61 = vpop.f32.mrf.mxu0 }
 0x28b   :  { %v1542_v7 = vpop.f32.mrf.mxu0 }
 0x28e   :  { %v5958_v0 = vpop.f32.mrf.mxu3 }
 0x298   :  { %v1545_v41 = vpop.f32.mrf.mxu0 }
 0x29e   :  { %v5963_v24 = vpop.f32.mrf.mxu3 }
 0x2a8   :  { %v1548_v29 = vpop.f32.mrf.mxu0 }
 0x2ae   :  { %v5965_v25 = vpop.f32.mrf.mxu3 }
 0x2b8   :  { %v1551_v43 = vpop.f32.mrf.mxu0 }
 0x2be   :  { %v5967_v26 = vpop.f32.mrf.mxu3 }
 0x2c6   :  { %v5969_v28 = vpop.f32.mrf.mxu3 }
 0x2ce   :  { %v1453_v37 = vpop.f32.mrf.mxu3 }
 0x2cf   :  { %v1454_v40 = vadd.f32 %v1453_v37, %v1396_v3 }
 0x2d1   :  { %v1557_v45 = vadd.f32 %v1533_v36, %v1454_v40  ;;  %v1635_v36 = vld [vmem:[%s7298_s2 + $0x9] sm:$0x3f] }
 0x2d3   :  { %v1569_v48 = vadd.f32 %v6000_v42, %v1557_v45 }
 0x2d5   :  { %vm1577_vm14 = vcmp.gt.f32.partialorder %v1569_v48, 0.0  ;;  %v1585_v52 = vmul.f32 0.01, %v1569_v48 }
 0x2d6   :  { %v1456_v54 = vpop.f32.mrf.mxu3 }
 0x2d7   :  { %v1593_v55 = vsel %vm1577_vm14, %v1569_v48, %v1585_v52  ;;  %v1457_v56 = vadd.f32 %v1456_v54, %v1399_v51 }
 0x2d8   :  { %1601 = vst.msk [vmem:[#allocation2] sm:$0xff] %vm852_vm7, %v1593_v55 }
 0x2d9   :  { %v1558_v57 = vadd.f32 %v1536_v53, %v1457_v56  ;;  %v1554_v56 = vpop.f32.mrf.mxu0 }
 0x2db   :  { %v1570_v58 = vadd.f32 %v6000_v42, %v1558_v57 }
 0x2dd   :  { %vm1578_vm15 = vcmp.gt.f32.partialorder %v1570_v58, 0.0  ;;  %v1586_v59 = vmul.f32 0.01, %v1570_v58 }
 0x2de   :  { %v1459_v62 = vpop.f32.mrf.mxu3 }
 0x2df   :  { %v1594_v19 = vsel %vm1578_vm15, %v1570_v58, %v1586_v59  ;;  %v1460_v1 = vadd.f32 %v1459_v62, %v5956_v12 }
 0x2e0   :  { %1602 = vst.msk [vmem:[#allocation2 + $0x8] sm:$0xff] %vm852_vm7, %v1594_v19 }
 0x2e1   :  { %v1559_v4 = vadd.f32 %v1539_v61, %v1460_v1 }
 0x2e3   :  { %v1571_v5 = vadd.f32 %v6000_v42, %v1559_v4 }
 0x2e5   :  { %vm1579_vm0 = vcmp.gt.f32.partialorder %v1571_v5, 0.0  ;;  %v1587_v6 = vmul.f32 0.01, %v1571_v5 }
 0x2e6   :  { %v1462_v8 = vpop.f32.mrf.mxu3 }
 0x2e7   :  { %v1609_v9 = vld [vmem:[#allocation2] ss:$2 sm:$0xff]  ;;  %v1613_v10 = vld [vmem:[#allocation2 + $0x1] ss:$2 sm:$0xff]  ;;  %v1595_v11 = vsel %vm1579_vm0, %v1571_v5, %v1587_v6  ;;  %v1463_v13 = vadd.f32 %v1462_v8, %v5958_v0  ;;  %v6081_v8 = vpop.permute.xlu1 %1750 }
 0x2e8   :  { %v1617_v14 = vmax.f32 %v1609_v9, %v1613_v10  ;;  %1603 = vst.msk [vmem:[#allocation2 + $0x10] sm:$0xff] %vm852_vm7, %v1595_v11  ;;  %v6086_v11 = vperm.slane %v6033_v63, 0 }
 0x2e9   :  { %v1560_v17 = vadd.f32 %v1542_v7, %v1463_v13 }
 0x2ea   :  { %v1632_v16 = vmul.f32 8.0, %v1617_v14 }
 0x2eb   :  { %v1572_v18 = vadd.f32 %v6000_v42, %v1560_v17 }
 0x2ec   :  { %v1636_v20 = vadd.f32 %v1634_v15, %v1632_v16 }
 0x2ed   :  { %vm1580_vm1 = vcmp.gt.f32.partialorder %v1572_v18, 0.0  ;;  %v1588_v22 = vmul.f32 0.01, %v1572_v18 }
 0x2ee   :  { %v1465_v60 = vpop.f32.mrf.mxu3  ;;  %1638 = vst.msk [vmem:[#allocation3 + $0x1] sm:$0xff] %vm852_vm7, %v1636_v20  ;;  %v6097_v20 = vperm.slane %v6033_v63, 2 }
 0x2ef   :  { %v1596_v3 = vsel %vm1580_vm1, %v1572_v18, %v1588_v22  ;;  %v1466_v27 = vadd.f32 %v1465_v60, %v5963_v24 }
 0x2f0   :  { %1604 = vst.msk [vmem:[#allocation2 + $0x18] sm:$0xff] %vm852_vm7, %v1596_v3 }
 0x2f1   :  { %v1561_v51 = vadd.f32 %v1545_v41, %v1466_v27 }
 0x2f3   :  { %v1573_v12 = vadd.f32 %v6000_v42, %v1561_v51 }
 0x2f5   :  { %vm1581_vm2 = vcmp.gt.f32.partialorder %v1573_v12, 0.0  ;;  %v1589_v0 = vmul.f32 0.01, %v1573_v12  ;;  %v1651_v21 = vld [vmem:[#allocation3] sm:$0xff] }
 0x2f6   :  { %v1468_v30 = vpop.f32.mrf.mxu3  ;;  %4853 = vmatmul.msk.f32.vlgmr.msra.gmra.mxu1 %vm852_vm7, %v1651_v21  ;;  %4857 = vmatmul.msk.f32.vlgmr.msra.gmra.mxu2 %vm852_vm7, %v1651_v21 }
 0x2f7   :  { %v1597_v31 = vsel %vm1581_vm2, %v1573_v12, %v1589_v0  ;;  %v1469_v32 = vadd.f32 %v1468_v30, %v5965_v25  ;;  %v1610_v24 = vld [vmem:[#allocation2 + $0x10] ss:$2 sm:$0xff]  ;;  %v1614_v33 = vld [vmem:[#allocation2 + $0x11] ss:$2 sm:$0xff] }
 0x2f8   :  { %1605 = vst.msk [vmem:[#allocation2 + $0x20] sm:$0xff] %vm852_vm7, %v1597_v31  ;;  %v1618_v34 = vmax.f32 %v1610_v24, %v1614_v33 }
 0x2f9   :  { %v1562_v35 = vadd.f32 %v1548_v29, %v1469_v32 }
 0x2fa   :  { %v1633_v37 = vmul.f32 8.0, %v1618_v34 }
 0x2fb   :  { %v1574_v38 = vadd.f32 %v6000_v42, %v1562_v35 }
 0x2fc   :  { %v1637_v39 = vadd.f32 %v1635_v36, %v1633_v37 }
 0x2fd   :  { %vm1582_vm6 = vcmp.gt.f32.partialorder %v1574_v38, 0.0  ;;  %v1590_v40 = vmul.f32 0.01, %v1574_v38 }
 0x2fe   :  { %v1471_v44 = vpop.f32.mrf.mxu3  ;;  %1640 = vst.msk [vmem:[#allocation3 + $0x9] sm:$0x3f] %vm1639_vm3, %v1637_v39 }
 0x2ff   :  { %v1598_v25 = vsel %vm1582_vm6, %v1574_v38, %v1590_v40  ;;  %v1472_v45 = vadd.f32 %v1471_v44, %v5967_v26 }
 0x300   :  { %1606 = vst.msk [vmem:[#allocation2 + $0x28] sm:$0xff] %vm852_vm7, %v1598_v25 }
 0x301   :  { %v1563_v46 = vadd.f32 %v1551_v43, %v1472_v45 }
 0x303   :  { %v1575_v47 = vadd.f32 %v6000_v42, %v1563_v46 }
 0x305   :  { %vm1583_vm8 = vcmp.gt.f32.partialorder %v1575_v47, 0.0  ;;  %v1591_v48 = vmul.f32 0.01, %v1575_v47  ;;  %v1652_v49 = vld [vmem:[#allocation3 + $0x8] sm:$0xff] }
 0x306   :  { %v1474_v50 = vpop.f32.mrf.mxu3  ;;  %4854 = vmatmul.msk.f32.gmra.mxu1 %vm852_vm7, %v1652_v49  ;;  %4858 = vmatmul.msk.f32.gmra.mxu2 %vm852_vm7, %v1652_v49 }
 0x307   :  { %v1599_v52 = vsel %vm1583_vm8, %v1575_v47, %v1591_v48  ;;  %v1475_v53 = vadd.f32 %v1474_v50, %v5969_v28  ;;  %v1611_v54 = vld [vmem:[#allocation2 + $0x20] ss:$2 sm:$0xff]  ;;  %v1615_v55 = vld [vmem:[#allocation2 + $0x21] ss:$2 sm:$0xff] }
 0x308   :  { %1607 = vst.msk [vmem:[#allocation2 + $0x30] sm:$0xff] %vm852_vm7, %v1599_v52  ;;  %v1619_v26 = vmax.f32 %v1611_v54, %v1615_v55 }
 0x309   :  { %v1564_v57 = vadd.f32 %v1554_v56, %v1475_v53 }
 0x30a   :  { %v1643_v58 = vmul.f32 8.0, %v1619_v26 }
 0x30b   :  { %v1576_v59 = vadd.f32 %v6000_v42, %v1564_v57  ;;  %v1646_v42 = vld [vmem:[%s7298_s2 + $0x9] sm:$0x3f]  ;;  %s5235_s2 = smov 112  }
 0x30c   :  { %v1647_v61 = vadd.f32 %v1643_v58, %v1634_v15 }
 0x30d   :  { %vm1584_vm9 = vcmp.gt.f32.partialorder %v1576_v59, 0.0  ;;  %v1592_v62 = vmul.f32 0.01, %v1576_v59 }
 0x30e   :  { %1649 = vst.msk [vmem:[#allocation3 + $0x11] sm:$0xff] %vm852_vm7, %v1647_v61 }
 0x30f   :  { %v1600_v19 = vsel %vm1584_vm9, %v1576_v59, %v1592_v62 }
 0x310   :  { %1608 = vst.msk [vmem:[#allocation2 + $0x38] sm:$0xf] %vm1283_vm13, %v1600_v19 }
 0x315   :  { %v1653_v1 = vld [vmem:[#allocation3 + $0x10] sm:$0xff] }
 0x316   :  { %4855 = vmatmul.msk.f32.gmra.mxu1 %vm852_vm7, %v1653_v1  ;;  %4859 = vmatmul.msk.f32.gmra.mxu2 %vm852_vm7, %v1653_v1 }
 0x317   :  { %v1612_v28 = vld [vmem:[#allocation2 + $0x30] ss:$2 sm:$0x3f]  ;;  %v1616_v2 = vld [vmem:[#allocation2 + $0x31] ss:$2 sm:$0x3f] }
 0x318   :  { %v1620_v4 = vmax.f32 %v1612_v28, %v1616_v2 }
 0x31a   :  { %v1644_v5 = vmul.f32 8.0, %v1620_v4 }
 0x31c   :  { %v1648_v6 = vadd.f32 %v1646_v42, %v1644_v5 }
 0x31e   :  { %1650 = vst.msk [vmem:[#allocation3 + $0x19] sm:$0x3f] %vm1639_vm3, %v1648_v6 }
 0x325   :  { %v1654_v7 = vld [vmem:[#allocation3 + $0x18] sm:$0xff] }
 0x326   :  { %4856 = vmatmul.msk.f32.gmra.mxu1 %vm852_vm7, %v1654_v7  ;;  %4860 = vmatmul.msk.f32.gmra.mxu2 %vm852_vm7, %v1654_v7 }
 0x373   :  { %v1702_v9 = vpop.f32.mrf.mxu1 }
 0x374   :  { %v1753_v10 = vadd.f32 %v6081_v8, %v1702_v9  ;;  %v1744_v13 = vadd.f32 %v6086_v11, %v1702_v9 }
 0x376   :  { %1764 = vrot.lane.b32.xlu0 %v1753_v10, %s5234_s30 }
 0x379   :  { %v1731_v15 = vpop.f32.mrf.mxu2 }
 0x37a   :  { %v6110_v60 = vadd.f32 %v6097_v20, %v1731_v15 }
 0x37e   :  { %1887 = vrot.lane.b32.xlu0 %v1744_v13, %s5235_s2 }
 0x383   :  { %v1705_v14 = vpop.f32.mrf.mxu1 }
 0x384   :  { %v1754_v17 = vadd.f32 %v6081_v8, %v1705_v14  ;;  %v6105_v41 = vadd.f32 %v6086_v11, %v1705_v14 }
 0x386   :  { %1893 = vrot.lane.b32.xlu1 %v1754_v17, %s5236_s7  ;;  %1766 = vrot.lane.b32.xlu2 %v1754_v17, %s5234_s30 }
 0x389   :  { %v1734_v18 = vpop.f32.mrf.mxu2 }
 0x38a   :  { %v6100_v22 = vadd.f32 %v6097_v20, %v1734_v18 }
 0x38e   :  { %1891 = vrot.lane.b32.xlu2 %v1753_v10, %s5236_s7 }
 0x393   :  { %v6152_v52 = vpop.f32.mrf.mxu1 }
 0x394   :  { %v6175_v26 = vadd.f32 %v6081_v8, %v6152_v52 }
 0x3a3   :  { %v6158_v54 = vpop.f32.mrf.mxu1 }
 0x3a4   :  { %v6165_v56 = vadd.f32 %v6081_v8, %v6158_v54 }
 0x3e0   :  { %v1767_v16 = vpop.permute.xlu2 %1766 }
 0x3e1   :  { %4861 = vmatpush.xpose.msk.msrb.mxu0 %vm1768_vm10, %v1767_v16  ;;  %5043 = vmatpush.xpose.msk.msrb.mxu3 %vm1768_vm10, %v1767_v16 }
 0x3e8   :  { %v1765_v23 = vpop.permute.xlu0 %1764  ;;  %v1892_v3 = vpop.permute.xlu2 %1891 }
 0x3e9   :  { %4862 = vmatpush.xpose.msk.msrb.mxu0 %vm1768_vm10, %v1765_v23  ;;  %5044 = vmatpush.xpose.msk.msrb.mxu3 %vm1768_vm10, %v1765_v23 }
 0x3ec   :  { %4863 = vmatmul.msk.f32.vlgmr.msrb.gmra.mxu0 %vm1768_vm10, %v1744_v13  ;;  %4864 = vmatmul.msk.f32.vlgmr.msrb.gmra.mxu3 %vm1768_vm10, %v6105_v41 }
 0x3ed   :  { %4865 = vmatpush.msk.msra.mxu3 %vm396_vm4, %v6100_v22 }
 0x3ef   :  { %1876 = vmatpush.msra.mxu3 %v6110_v60 }
 0x3f0   :  { %v1888_v27 = vpop.permute.xlu0 %1887 }
 0x3f8   :  { %v1894_v63 = vpop.permute.xlu1 %1893 }
 0x3f9   :  { %4868 = vmatpush.xpose.msk.msra.mxu0 %vm1768_vm10, %v1894_v63 }
 0x3fd   :  { %4869 = vmatpush.xpose.msk.msra.mxu0 %vm1768_vm10, %v1892_v3 }
 0x400   :  { %4870 = vmatmul.msk.f32.vlgmr.msra.gmra.mxu0 %vm1768_vm10, %v1888_v27 }
 0x469   :  { %v1796_v51 = vpop.f32.mrf.mxu0 }
 0x46a   :  { %v1803_v12 = vsel %vm1802_vm11, %v1796_v51, -inf }
 0x46b   :  { %1804 = vmax.xlane.f32.xlu1 %v1803_v12 }
 0x46f   :  { %v1799_v0 = vpop.f32.mrf.mxu3 }
 0x470   :  { %v1807_v21 = vsel %vm7304_vm12, %v1799_v0, -inf }
 0x471   :  { %1808 = vmax.xlane.f32.xlu2 %v1807_v21 }
 0x47d   :  { %v1920_v29 = vpop.f32.mrf.mxu0 }
 0x47e   :  { %v1926_v30 = vsel %vm1802_vm11, %v1920_v29, -inf }
 0x47f   :  { %1927 = vmax.xlane.f32.xlu0 %v1926_v30 }
 0x484   :  { %1975 = vrot.lane.b32.xlu1 %v6110_v60, %s5235_s2 }
 0x489   :  { %1889 = vrot.lane.b32.xlu2 %v6105_v41, %s5235_s2 }
 0x48c   :  { %2164 = vrot.lane.b32.xlu1 %v1754_v17, %s5237_s20 }
 0x491   :  { %2162 = vrot.lane.b32.xlu2 %v1753_v10, %s5237_s20 }
 0x493   :  { %1977 = vrot.lane.b32.xlu0 %v6100_v22, %s5235_s2 }
 0x494   :  { %2023 = vrot.lane.b32.xlu1 %v1744_v13, %s5238_s21 }
 0x49b   :  { %2029 = vrot.lane.b32.xlu0 %v1754_v17, %s5239_s22 }
 0x4a3   :  { %2027 = vrot.lane.b32.xlu0 %v1753_v10, %s5239_s22 }
 0x4ab   :  { %2158 = vrot.lane.b32.xlu0 %v1744_v13, %s5240_s23 }
 0x4de   :  { %v1805_v31 = vpop.xlane.xlu1 %1804 }
 0x4df   :  { %v1810_v32 = vsub.f32 %v1796_v51, %v1805_v31 }
 0x4e1   :  { %v1812_v24 = vmul.f32 1.442695, %v1810_v32 }
 0x4e3   :  { %5064 = vpow2.f32 %v1812_v24 }
 0x4e4   :  { %v1809_v33 = vpop.xlane.xlu2 %1808 }
 0x4e5   :  { %v1811_v34 = vsub.f32 %v1799_v0, %v1809_v33 }
 0x4e7   :  { %v1814_v35 = vmul.f32 1.442695, %v1811_v34 }
 0x4e9   :  { %v6134_v36 = vpop.eup %5064  ;;  %5066 = vpow2.f32 %v1814_v35 }
 0x4ea   :  { %v1816_v37 = vsel %vm1802_vm11, %v6134_v36, 0.0 }
 0x4eb   :  { %1817 = vadd.xlane.f32.xlu2 %v1816_v37 }
 0x4ec   :  { %v1890_v38 = vpop.permute.xlu2 %1889 }
 0x4ed   :  { %4871 = vmatmul.msk.f32.gmra.mxu0 %vm1768_vm10, %v1890_v38 }
 0x4ef   :  { %v6139_v39 = vpop.eup %5066 }
 0x4f0   :  { %v1819_v40 = vsel %vm7304_vm12, %v6139_v39, 0.0 }
 0x4f1   :  { %1820 = vadd.xlane.f32.xlu1 %v1819_v40 }
 0x4f2   :  { %v1928_v43 = vpop.xlane.xlu0 %1927 }
 0x4f3   :  { %v1932_v44 = vsub.f32 %v1920_v29, %v1928_v43 }
 0x4f4   :  { %v2163_v50 = vpop.permute.xlu2 %2162 }
 0x4f5   :  { %v1934_v25 = vmul.f32 1.442695, %v1932_v44  ;;  %v1737_v44 = vpop.f32.mrf.mxu2 }
 0x4f6   :  { %v1976_v46 = vpop.permute.xlu1 %1975 }
 0x4f7   :  { %5068 = vpow2.f32 %v1934_v25 }
 0x4fd   :  { %v6143_v45 = vpop.eup %5068 }
 0x4fe   :  { %v1938_v47 = vsel %vm1802_vm11, %v6143_v45, 0.0  ;;  %v2165_v49 = vpop.permute.xlu1 %2164 }
 0x4ff   :  { %1939 = vadd.xlane.f32.xlu2 %v1938_v47 }
 0x505   :  { %v1978_v48 = vpop.permute.xlu0 %1977 }
 0x506   :  { %4872 = vmatpush.msk.msrb.mxu1 %vm396_vm4, %v1978_v48  ;;  %5045 = vmatpush.msk.msrb.mxu2 %vm396_vm4, %v1978_v48  ;;  %v2024_v57 = vpop.permute.xlu1 %2023 }
 0x508   :  { %2003 = vmatpush.msrb.mxu1 %v1976_v46  ;;  %5046 = vmatpush.msrb.mxu2 %v1976_v46  ;;  %v1740_v46 = vpop.f32.mrf.mxu2 }
 0x509   :  { %v6205_v48 = vadd.f32 %v6097_v20, %v1740_v46 }
 0x50a   :  { %4882 = vmatpush.xpose.msk.msra.mxu1 %vm1768_vm10, %v2165_v49  ;;  %2160 = vrot.lane.b32.xlu1 %v6105_v41, %s5240_s23 }
 0x50d   :  { %v2030_v53 = vpop.permute.xlu0 %2029 }
 0x50e   :  { %4883 = vmatpush.xpose.msk.msra.mxu1 %vm1768_vm10, %v2163_v50  ;;  %4875 = vmatpush.xpose.msk.msrb.mxu3 %vm1768_vm10, %v2030_v53  ;;  %v6208_v53 = vadd.f32 %v6097_v20, %v1737_v44  ;;  %v6219_v20 = vadd.f32 %v6086_v11, %v6152_v52 }
 0x512   :  { %2245 = vrot.lane.b32.xlu1 %v6110_v60, %s5240_s23 }
 0x515   :  { %v2028_v55 = vpop.permute.xlu0 %2027 }
 0x516   :  { %4876 = vmatpush.xpose.msk.msrb.mxu3 %vm1768_vm10, %v2028_v55 }
 0x517   :  { %2025 = vrot.lane.b32.xlu2 %v6105_v41, %s5238_s21 }
 0x51a   :  { %2420 = vrot.lane.b32.xlu1 %v6165_v56, %s5236_s7 }
 0x51d   :  { %v2159_v38 = vpop.permute.xlu0 %2158 }
 0x51f   :  { %2247 = vrot.lane.b32.xlu2 %v6100_v22, %s5240_s23 }
 0x527   :  { %2110 = vrot.lane.b32.xlu2 %v6110_v60, %s5238_s21 }
 0x52f   :  { %2295 = vrot.lane.b32.xlu2 %v6175_v26, %s5234_s30 }
 0x55e   :  { %v1818_v58 = vpop.xlane.xlu2 %1817 }
 0x55f   :  { %5070 = vrcp.f32 %v1818_v58  ;;  %v1833_v1 = vand.u32 2147483648, %v1818_v58  ;;  %v1831_v2 = vand.u32 2147483647, %v1818_v58  ;;  %vm1827_vm5 = vweird.f32 %v1818_v58 }
 0x561   :  { %v1834_v8 = vor.u32 1.1754944e-38, %v1833_v1  ;;  %vm1832_vm15 = vcmp.eq.f32.partialorder %v1831_v2, 8.507059e+37  ;;  %v6229_v1 = vadd.f32 %v6086_v11, %v6158_v54 }
 0x564   :  { %v1821_v59 = vpop.xlane.xlu1 %1820 }
 0x565   :  { %v5071_v61 = vpop.eup %5070  ;;  %5072 = vrcp.f32 %v1821_v59  ;;  %v1848_v14 = vand.u32 2147483648, %v1821_v59  ;;  %v1846_v16 = vand.u32 2147483647, %v1821_v59  ;;  %vm1842_vm1 = vweird.f32 %v1821_v59 }
 0x566   :  { %v1823_v62 = vmul.f32 %v5071_v61, %v1818_v58  ;;  %vm1828_vm13 = vweird.f32 %v5071_v61 }
 0x567   :  { %vm1829_vm14 = vmor %vm1827_vm5, %vm1828_vm13  ;;  %v1849_v41 = vor.u32 1.1754944e-38, %v1848_v14  ;;  %vm1847_vm3 = vcmp.eq.f32.partialorder %v1846_v16, 8.507059e+37  ;;  %vm1885_vm5 = vcmask 129024  }
 0x568   :  { %v1824_v19 = vsub.f32 1.0, %v1823_v62 }
 0x56a   :  { %v1825_v28 = vmul.f32 %v5071_v61, %v1824_v19  ;;  %v6179_v4 = vpop.f32.mrf.mxu0 }
 0x56b   :  { %v5073_v42 = vpop.eup %5072  ;;  %v1929_v5 = vsel %vm7304_vm12, %v6179_v4, -inf }
 0x56c   :  { %v1826_v6 = vadd.f32 %v5071_v61, %v1825_v28  ;;  %v1838_v7 = vmul.f32 %v5073_v42, %v1821_v59  ;;  %1930 = vmax.xlane.f32.xlu0 %v1929_v5  ;;  %vm1843_vm0 = vweird.f32 %v5073_v42 }
 0x56d   :  { %vm1844_vm2 = vmor %vm1842_vm1, %vm1843_vm0 }
 0x56e   :  { %v1830_v9 = vsel %vm1829_vm14, %v5071_v61, %v1826_v6  ;;  %v1839_v10 = vsub.f32 1.0, %v1838_v7 }
 0x56f   :  { %v1835_v13 = vsel %vm1832_vm15, %v1834_v8, %v1830_v9 }
 0x570   :  { %v1836_v17 = vmul.f32 %v6134_v36, %v1835_v13  ;;  %v1840_v15 = vmul.f32 %v5073_v42, %v1839_v10 }
 0x572   :  { %4866 = vmatmul.msk.f32.vlgmr.msra.gmra.mxu3 %vm1802_vm11, %v1836_v17  ;;  %v1940_v18 = vpop.xlane.xlu2 %1939  ;;  %v1841_v23 = vadd.f32 %v5073_v42, %v1840_v15 }
 0x573   :  { %5074 = vrcp.f32 %v1940_v18  ;;  %v1955_v29 = vand.u32 2147483648, %v1940_v18  ;;  %v1953_v31 = vand.u32 2147483647, %v1940_v18  ;;  %vm1949_vm8 = vweird.f32 %v1940_v18 }
 0x574   :  { %v1845_v60 = vsel %vm1844_vm2, %v5073_v42, %v1841_v23 }
 0x575   :  { %v1850_v63 = vsel %vm1847_vm3, %v1849_v41, %v1845_v60  ;;  %v1956_v24 = vor.u32 1.1754944e-38, %v1955_v29  ;;  %vm1954_vm13 = vcmp.eq.f32.partialorder %v1953_v31, 8.507059e+37 }
 0x576   :  { %v1851_v3 = vmul.f32 %v6139_v39, %v1850_v63 }
 0x579   :  { %v5075_v27 = vpop.eup %5074 }
 0x57a   :  { %v1945_v51 = vmul.f32 %v5075_v27, %v1940_v18  ;;  %4867 = vmatmul.msk.f32.gmra.mxu3 %vm1802_vm11, %v1851_v3  ;;  %v2026_v12 = vpop.permute.xlu2 %2025  ;;  %vm1950_vm6 = vweird.f32 %v5075_v27 }
 0x57b   :  { %vm1951_vm9 = vmor %vm1949_vm8, %vm1950_vm6 }
 0x57c   :  { %v1946_v0 = vsub.f32 1.0, %v1945_v51  ;;  %v2161_v21 = vpop.permute.xlu1 %2160 }
 0x57e   :  { %v1947_v30 = vmul.f32 %v5075_v27, %v1946_v0 }
 0x580   :  { %v1948_v32 = vadd.f32 %v5075_v27, %v1947_v30  ;;  %2112 = vrot.lane.b32.xlu0 %v6100_v22, %s5238_s21 }
 0x582   :  { %v1952_v33 = vsel %vm1951_vm9, %v5075_v27, %v1948_v32  ;;  %4877 = vmatmul.msk.f32.vlgmr.msrb.gmra.mxu3 %vm1768_vm10, %v2024_v57  ;;  %v2248_v34 = vpop.permute.xlu2 %2247 }
 0x583   :  { %v1957_v35 = vsel %vm1954_vm13, %v1956_v24, %v1952_v33  ;;  %4886 = vmatpush.msk.msra.mxu2 %vm396_vm4, %v2248_v34 }
 0x584   :  { %v1958_v36 = vmul.f32 %v6143_v45, %v1957_v35  ;;  %v2246_v37 = vpop.permute.xlu1 %2245 }
 0x585   :  { %2273 = vmatpush.msra.mxu2 %v2246_v37 }
 0x586   :  { %4873 = vmatmul.msk.f32.vlgmr.msrb.gmra.mxu1 %vm1802_vm11, %v1958_v36 }
 0x588   :  { %2297 = vrot.lane.b32.xlu0 %v6165_v56, %s5234_s30 }
 0x58a   :  { %4878 = vmatmul.msk.f32.gmra.mxu3 %vm1768_vm10, %v2026_v12  ;;  %v2111_v49 = vpop.permute.xlu2 %2110 }
 0x58c   :  { %v2421_v22 = vpop.permute.xlu1 %2420 }
 0x58d   :  { %4896 = vmatpush.xpose.msk.msrb.mxu1 %vm1768_vm10, %v2421_v22 }
 0x58e   :  { %4884 = vmatmul.msk.f32.vlgmr.msra.gmra.mxu1 %vm1768_vm10, %v2159_v38 }
 0x590   :  { %2418 = vrot.lane.b32.xlu0 %v6175_v26, %s5236_s7 }
 0x592   :  { %v2296_v58 = vpop.permute.xlu2 %2295 }
 0x596   :  { %4885 = vmatmul.msk.f32.gmra.mxu1 %vm1768_vm10, %v2161_v21 }
 0x5df   :  { %v1931_v39 = vpop.xlane.xlu0 %1930 }
 0x5e0   :  { %v1933_v40 = vsub.f32 %v6179_v4, %v1931_v39 }
 0x5e2   :  { %v1936_v43 = vmul.f32 1.442695, %v1933_v40 }
 0x5e4   :  { %5076 = vpow2.f32 %v1936_v43 }
 0x5ea   :  { %v5077_v25 = vpop.eup %5076 }
 0x5eb   :  { %v1941_v45 = vsel %vm7304_vm12, %v5077_v25, 0.0 }
 0x5ec   :  { %1942 = vadd.xlane.f32.xlu1 %v1941_v45 }
 0x5f2   :  { %v2113_v47 = vpop.permute.xlu0 %2112 }
 0x5f3   :  { %4879 = vmatpush.msk.msrb.mxu0 %vm396_vm4, %v2113_v47 }
 0x5f5   :  { %v1878_v50 = vpop.f32.mrf.mxu3  ;;  %2138 = vmatpush.msrb.mxu0 %v2111_v49 }
 0x5f6   :  { %1884 = vst.msk [vmem:[#allocation4] sm:$0xff] %vm1768_vm10, %v1878_v50 }
 0x5f7   :  { %4893 = vmatpush.msk.msra.mxu0 %vm396_vm4, %v6205_v48 }
 0x5f9   :  { %2404 = vmatpush.msra.mxu0 %v6208_v53 }
 0x5fa   :  { %v2298_v55 = vpop.permute.xlu0 %2297 }
 0x5fb   :  { %4889 = vmatpush.xpose.msk.msra.mxu3 %vm1768_vm10, %v2298_v55 }
 0x5fd   :  { %v1881_v57 = vpop.f32.mrf.mxu3 }
 0x5fe   :  { %1886 = vst.msk [vmem:[#allocation4 + $0x8] sm:$0x7f] %vm1885_vm5, %v1881_v57 }
 0x5ff   :  { %4890 = vmatpush.xpose.msk.msra.mxu3 %vm1768_vm10, %v2296_v58 }
 0x602   :  { %4891 = vmatmul.msk.f32.vlgmr.msra.gmra.mxu3 %vm1768_vm10, %v6219_v20  ;;  %v2419_v59 = vpop.permute.xlu0 %2418 }
 0x603   :  { %v6223_v61 = vpop.f32.mrf.mxu1  ;;  %4897 = vmatpush.xpose.msk.msrb.mxu1 %vm1768_vm10, %v2419_v59 }
 0x605   :  { %v2056_v62 = vpop.f32.mrf.mxu3 }
 0x606   :  { %v2062_v19 = vsel %vm1802_vm11, %v2056_v62, -inf }
 0x607   :  { %2063 = vmax.xlane.f32.xlu1 %v2062_v19 }
 0x60a   :  { %4892 = vmatmul.msk.f32.gmra.mxu3 %vm1768_vm10, %v6229_v1 }
 0x60b   :  { %v2191_v52 = vpop.f32.mrf.mxu1 }
 0x60c   :  { %v2197_v28 = vsel %vm1802_vm11, %v2191_v52, -inf }
 0x60d   :  { %2198 = vmax.xlane.f32.xlu2 %v2197_v28  ;;  %v2059_v2 = vpop.f32.mrf.mxu3 }
 0x60e   :  { %v2065_v42 = vsel %vm7304_vm12, %v2059_v2, -inf }
 0x613   :  { %v2194_v4 = vpop.f32.mrf.mxu1 }
 0x614   :  { %v2200_v5 = vsel %vm7304_vm12, %v2194_v4, -inf }
 0x615   :  { %2066 = vmax.xlane.f32.xlu2 %v2065_v42  ;;  %2201 = vmax.xlane.f32.xlu0 %v2200_v5 }
 0x620   :  { %2414 = vrot.lane.b32.xlu1 %v6219_v20, %s5235_s2 }
 0x629   :  { %2554 = vrot.lane.b32.xlu0 %v6165_v56, %s5239_s22 }
 0x62d   :  { %2416 = vrot.lane.b32.xlu2 %v6229_v1, %s5235_s2 }
 0x65f   :  { %v1943_v11 = vpop.xlane.xlu1 %1942 }
 0x660   :  { %5078 = vrcp.f32 %v1943_v11  ;;  %v1970_v8 = vand.u32 2147483648, %v1943_v11  ;;  %v1968_v10 = vand.u32 2147483647, %v1943_v11  ;;  %vm1964_vm15 = vweird.f32 %v1943_v11 }
 0x662   :  { %v1971_v14 = vor.u32 1.1754944e-38, %v1970_v8  ;;  %vm1969_vm1 = vcmp.eq.f32.partialorder %v1968_v10, 8.507059e+37 }
 0x666   :  { %v5079_v54 = vpop.eup %5078 }
 0x667   :  { %v1960_v6 = vmul.f32 %v5079_v54, %v1943_v11  ;;  %vm1965_vm14 = vweird.f32 %v5079_v54 }
 0x668   :  { %vm1966_vm0 = vmor %vm1964_vm15, %vm1965_vm14 }
 0x669   :  { %v1961_v7 = vsub.f32 1.0, %v1960_v6 }
 0x66b   :  { %v1962_v9 = vmul.f32 %v5079_v54, %v1961_v7 }
 0x66d   :  { %v1963_v13 = vadd.f32 %v5079_v54, %v1962_v9 }
 0x66f   :  { %v1967_v17 = vsel %vm1966_vm0, %v5079_v54, %v1963_v13  ;;  %vm2019_vm0 = vcmask 261248  }
 0x670   :  { %v1972_v15 = vsel %vm1969_vm1, %v1971_v14, %v1967_v17 }
 0x671   :  { %v1973_v16 = vmul.f32 %v5077_v25, %v1972_v15 }
 0x673   :  { %4874 = vmatmul.msk.f32.vlgmr.msrb.gmra.mxu2 %vm1802_vm11, %v1973_v16 }
 0x67a   :  { %v2064_v18 = vpop.xlane.xlu1 %2063 }
 0x67b   :  { %v2068_v23 = vsub.f32 %v2056_v62, %v2064_v18 }
 0x67d   :  { %v2070_v41 = vmul.f32 1.442695, %v2068_v23 }
 0x67f   :  { %5080 = vpow2.f32 %v2070_v41 }
 0x680   :  { %v2199_v60 = vpop.xlane.xlu2 %2198 }
 0x681   :  { %v2203_v63 = vsub.f32 %v2191_v52, %v2199_v60 }
 0x683   :  { %v2205_v3 = vmul.f32 1.442695, %v2203_v63 }
 0x685   :  { %v6243_v27 = vpop.eup %5080  ;;  %5082 = vpow2.f32 %v2205_v3  ;;  %v6278_v39 = vpop.f32.mrf.mxu3 }
 0x686   :  { %v2074_v51 = vsel %vm1802_vm11, %v6243_v27, 0.0 }
 0x687   :  { %2075 = vadd.xlane.f32.xlu2 %v2074_v51 }
 0x688   :  { %v2067_v12 = vpop.xlane.xlu2 %2066  ;;  %v2202_v0 = vpop.xlane.xlu0 %2201 }
 0x689   :  { %v2069_v21 = vsub.f32 %v2059_v2, %v2067_v12  ;;  %v2204_v29 = vsub.f32 %v2194_v4, %v2202_v0 }
 0x68b   :  { %v6247_v30 = vpop.eup %5082  ;;  %v2072_v31 = vmul.f32 1.442695, %v2069_v21  ;;  %v2207_v32 = vmul.f32 1.442695, %v2204_v29 }
 0x68c   :  { %v2209_v24 = vsel %vm1802_vm11, %v6247_v30, 0.0 }
 0x68d   :  { %5084 = vpow2.f32 %v2072_v31  ;;  %2210 = vadd.xlane.f32.xlu0 %v2209_v24 }
 0x68e   :  { %5086 = vpow2.f32 %v2207_v32 }
 0x690   :  { %v2417_v22 = vpop.permute.xlu2 %2416 }
 0x692   :  { %v2415_v33 = vpop.permute.xlu1 %2414 }
 0x693   :  { %v6251_v34 = vpop.eup %5084  ;;  %4898 = vmatmul.msk.f32.vlgmr.msrb.gmra.mxu1 %vm1768_vm10, %v2415_v33 }
 0x694   :  { %v6254_v35 = vpop.eup %5086  ;;  %v2077_v36 = vsel %vm7304_vm12, %v6251_v34, 0.0 }
 0x695   :  { %2078 = vadd.xlane.f32.xlu0 %v2077_v36  ;;  %v2212_v37 = vsel %vm7304_vm12, %v6254_v35, 0.0 }
 0x696   :  { %2213 = vadd.xlane.f32.xlu1 %v2212_v37 }
 0x69b   :  { %v2555_v38 = vpop.permute.xlu0 %2554  ;;  %4899 = vmatmul.msk.f32.gmra.mxu1 %vm1768_vm10, %v2417_v22 }
 0x69c   :  { %4903 = vmatpush.xpose.msk.msrb.mxu3 %vm1768_vm10, %v2555_v38  ;;  %v2329_v38 = vpop.f32.mrf.mxu3 }
 0x69f   :  { %2552 = vrot.lane.b32.xlu2 %v6175_v26, %s5239_s22 }
 0x6a7   :  { %2681 = vrot.lane.b32.xlu2 %v6219_v20, %s5240_s23 }
 0x6a9   :  { %2685 = vrot.lane.b32.xlu0 %v6175_v26, %s5237_s20  ;;  %v2332_v26 = vsel %vm1802_vm11, %v6278_v39, -inf }
 0x6af   :  { %2687 = vrot.lane.b32.xlu1 %v6165_v56, %s5237_s20  ;;  %2013 = vrot.lane.b32.xlu2 %v6223_v61, %s5237_s20 }
 0x6b1   :  { %2550 = vrot.lane.b32.xlu0 %v6229_v1, %s5238_s21 }
 0x6b7   :  { %2548 = vrot.lane.b32.xlu1 %v6219_v20, %s5238_s21 }
 0x6bf   :  { %2683 = vrot.lane.b32.xlu1 %v6229_v1, %s5240_s23 }
 0x6db   :  { %2333 = vmax.xlane.f32.xlu0 %v2332_v26 }
 0x6f6   :  { %v2008_v40 = vpop.f32.mrf.mxu2 }
 0x6f7   :  { %2015 = vrot.lane.b32.xlu2 %v2008_v40, %s5237_s20 }
 0x6fa   :  { %v2076_v56 = vpop.xlane.xlu2 %2075 }
 0x6fb   :  { %5088 = vrcp.f32 %v2076_v56  ;;  %v2091_v47 = vand.u32 2147483648, %v2076_v56  ;;  %v2089_v50 = vand.u32 2147483647, %v2076_v56  ;;  %vm2085_vm3 = vweird.f32 %v2076_v56 }
 0x6fd   :  { %v2092_v59 = vor.u32 1.1754944e-38, %v2091_v47  ;;  %vm2090_vm8 = vcmp.eq.f32.partialorder %v2089_v50, 8.507059e+37 }
 0x700   :  { %v2211_v43 = vpop.xlane.xlu0 %2210 }
 0x701   :  { %v5089_v44 = vpop.eup %5088  ;;  %5090 = vrcp.f32 %v2211_v43  ;;  %v2226_v28 = vand.u32 2147483648, %v2211_v43  ;;  %v2224_v42 = vand.u32 2147483647, %v2211_v43  ;;  %vm2220_vm13 = vweird.f32 %v2211_v43 }
 0x702   :  { %v2081_v25 = vmul.f32 %v5089_v44, %v2076_v56  ;;  %v2553_v45 = vpop.permute.xlu2 %2552  ;;  %vm2086_vm2 = vweird.f32 %v5089_v44 }
 0x703   :  { %4904 = vmatpush.xpose.msk.msrb.mxu3 %vm1768_vm10, %v2553_v45  ;;  %vm2087_vm6 = vmor %vm2085_vm3, %vm2086_vm2  ;;  %v2227_v54 = vor.u32 1.1754944e-38, %v2226_v28  ;;  %vm2225_vm15 = vcmp.eq.f32.partialorder %v2224_v42, 8.507059e+37 }
 0x704   :  { %v2082_v46 = vsub.f32 1.0, %v2081_v25 }
 0x706   :  { %v2083_v49 = vmul.f32 %v5089_v44, %v2082_v46 }
 0x707   :  { %v5091_v55 = vpop.eup %5090 }
 0x708   :  { %v2084_v57 = vadd.f32 %v5089_v44, %v2083_v49  ;;  %v2216_v58 = vmul.f32 %v5091_v55, %v2211_v43  ;;  %v2079_v20 = vpop.xlane.xlu0 %2078  ;;  %vm2221_vm9 = vweird.f32 %v5091_v55 }
 0x709   :  { %v2214_v61 = vpop.xlane.xlu1 %2213  ;;  %5092 = vrcp.f32 %v2079_v20  ;;  %vm2222_vm14 = vmor %vm2220_vm13, %vm2221_vm9  ;;  %v2106_v18 = vand.u32 2147483648, %v2079_v20  ;;  %v2104_v60 = vand.u32 2147483647, %v2079_v20  ;;  %vm2100_vm3 = vweird.f32 %v2079_v20 }
 0x70a   :  { %v2088_v62 = vsel %vm2087_vm6, %v5089_v44, %v2084_v57  ;;  %v2217_v19 = vsub.f32 1.0, %v2216_v58  ;;  %5094 = vrcp.f32 %v2214_v61  ;;  %v6284_v1 = vpop.permute.xlu2 %2681  ;;  %v2241_v23 = vand.u32 2147483648, %v2214_v61 }
 0x70b   :  { %v2093_v52 = vsel %vm2090_vm8, %v2092_v59, %v2088_v62  ;;  %v2239_v3 = vand.u32 2147483647, %v2214_v61  ;;  %vm2235_vm6 = vweird.f32 %v2214_v61  ;;  %v2107_v51 = vor.u32 1.1754944e-38, %v2106_v18 }
 0x70c   :  { %v2094_v2 = vmul.f32 %v6243_v27, %v2093_v52  ;;  %v2218_v4 = vmul.f32 %v5091_v55, %v2217_v19  ;;  %v2242_v0 = vor.u32 1.1754944e-38, %v2241_v23  ;;  %vm2105_vm13 = vcmp.eq.f32.partialorder %v2104_v60, 8.507059e+37  ;;  %v2822_v23 = vld [vmem:[%s7300_s10 + $0x20] sm:$0xff]  ;;  %v2821_v60 = vld [vmem:[%s7300_s10 + $0x18] sm:$0xff] }
 0x70e   :  { %v2219_v5 = vadd.f32 %v5091_v55, %v2218_v4  ;;  %4880 = vmatmul.msk.f32.vlgmr.msrb.gmra.mxu0 %vm1802_vm11, %v2094_v2 }
 0x70f   :  { %v5093_v11 = vpop.eup %5092 }
 0x710   :  { %v5095_v6 = vpop.eup %5094  ;;  %v2223_v7 = vsel %vm2222_vm14, %v5091_v55, %v2219_v5  ;;  %v2096_v8 = vmul.f32 %v5093_v11, %v2079_v20  ;;  %v6288_v9 = vpop.f32.mrf.mxu1  ;;  %vm2101_vm1 = vweird.f32 %v5093_v11  ;;  %vm2240_vm14 = vcmp.eq.f32.partialorder %v2239_v3, 8.507059e+37  ;;  %v2820_v3 = vld [vmem:[%s7300_s10 + $0x10] sm:$0xff] }
 0x711   :  { %v2228_v10 = vsel %vm2225_vm15, %v2227_v54, %v2223_v7  ;;  %v2231_v13 = vmul.f32 %v5095_v6, %v2214_v61  ;;  %vm2236_vm2 = vweird.f32 %v5095_v6  ;;  %vm2102_vm8 = vmor %vm2100_vm3, %vm2101_vm1  ;;  %v2453_v37 = vsel %vm1802_vm11, %v6288_v9, -inf }
 0x712   :  { %v2229_v14 = vmul.f32 %v6247_v30, %v2228_v10  ;;  %v2097_v17 = vsub.f32 1.0, %v2096_v8  ;;  %v2014_v15 = vpop.permute.xlu2 %2013  ;;  %vm2237_vm9 = vmor %vm2235_vm6, %vm2236_vm2  ;;  %vm2021_vm15 = vcmask 260224   ;;  %vm7308_vm1 = vcmask 392448  }
 0x713   :  { %v2232_v16 = vsub.f32 1.0, %v2231_v13  ;;  %2020 = vst.msk [vmem:[#allocation4] sm:$0xff] %vm2019_vm0, %v2014_v15  ;;  %v2824_v15 = vld [vmem:[%s7300_s10 + $0x30] sm:$0xff]  ;;  %vm7306_vm2 = vcmask 391424   ;;  %vm7307_vm6 = vcmask 523648  }
 0x714   :  { %v2098_v41 = vmul.f32 %v5093_v11, %v2097_v17  ;;  %4887 = vmatmul.msk.f32.vlgmr.msra.gmra.mxu2 %vm1802_vm11, %v2229_v14  ;;  %v2825_v17 = vld [vmem:[%s7300_s10 + $0x38] sm:$0xff] }
 0x715   :  { %v2233_v63 = vmul.f32 %v5095_v6, %v2232_v16  ;;  %2847 = vmatpush.msra.mxu3 %v2825_v17  ;;  %v2823_v16 = vld [vmem:[%s7300_s10 + $0x28] sm:$0xff] }
 0x716   :  { %v2099_v27 = vadd.f32 %v5093_v11, %v2098_v41 }
 0x717   :  { %v2234_v12 = vadd.f32 %v5095_v6, %v2233_v63  ;;  %2848 = vmatpush.msra.mxu3 %v2824_v15 }
 0x718   :  { %v2450_v21 = vpop.f32.mrf.mxu1  ;;  %v2103_v29 = vsel %vm2102_vm8, %v5093_v11, %v2099_v27  ;;  %v2819_v27 = vld [vmem:[%s7300_s10 + $0x8] sm:$0xff] }
 0x719   :  { %v2456_v30 = vsel %vm7304_vm12, %v2450_v21, -inf  ;;  %v2108_v31 = vsel %vm2105_vm13, %v2107_v51, %v2103_v29  ;;  %v2238_v32 = vsel %vm2237_vm9, %v5095_v6, %v2234_v12  ;;  %2849 = vmatpush.msra.mxu3 %v2823_v16  ;;  %v2818_v51 = vld [vmem:[%s7300_s10] sm:$0xff] }
 0x71a   :  { %2457 = vmax.xlane.f32.xlu1 %v2456_v30  ;;  %v2109_v24 = vmul.f32 %v6251_v34, %v2108_v31  ;;  %v2243_v33 = vsel %vm2240_vm14, %v2242_v0, %v2238_v32  ;;  %v2335_v34 = vsel %vm7304_vm12, %v2329_v38, -inf  ;;  %vm7305_vm14 = vcmask 522624  }
 0x71b   :  { %v2244_v36 = vmul.f32 %v6254_v35, %v2243_v33  ;;  %v2686_v26 = vpop.permute.xlu0 %2685  ;;  %2850 = vmatpush.msra.mxu3 %v2822_v23 }
 0x71c   :  { %4881 = vmatmul.msk.f32.gmra.mxu0 %vm1802_vm11, %v2109_v24 }
 0x71d   :  { %4888 = vmatmul.msk.f32.gmra.mxu2 %vm1802_vm11, %v2244_v36  ;;  %2851 = vmatpush.msra.mxu3 %v2821_v60 }
 0x71f   :  { %2852 = vmatpush.msra.mxu3 %v2820_v3 }
 0x720   :  { %2454 = vmax.xlane.f32.xlu2 %v2453_v37 }
 0x721   :  { %v2688_v22 = vpop.permute.xlu1 %2687  ;;  %2853 = vmatpush.msra.mxu3 %v2819_v27 }
 0x722   :  { %4910 = vmatpush.xpose.msk.msra.mxu1 %vm1768_vm10, %v2688_v22 }
 0x723   :  { %v2551_v35 = vpop.permute.xlu0 %2550  ;;  %2854 = vmatpush.msra.mxu3 %v2818_v51 }
 0x726   :  { %4911 = vmatpush.xpose.msk.msra.mxu1 %vm1768_vm10, %v2686_v26 }
 0x728   :  { %2336 = vmax.xlane.f32.xlu2 %v2335_v34 }
 0x729   :  { %v2549_v40 = vpop.permute.xlu1 %2548  ;;  %4912 = vmatmul.msk.f32.vlgmr.msra.gmra.mxu1 %vm1768_vm10, %v6284_v1 }
 0x72a   :  { %4905 = vmatmul.msk.f32.vlgmr.msrb.gmra.mxu3 %vm1768_vm10, %v2549_v40 }
 0x731   :  { %v2684_v56 = vpop.permute.xlu1 %2683 }
 0x732   :  { %4906 = vmatmul.msk.f32.gmra.mxu3 %vm1768_vm10, %v2551_v35  ;;  %4913 = vmatmul.msk.f32.gmra.mxu1 %vm1768_vm10, %v2684_v56 }
 0x74e   :  { %v2334_v44 = vpop.xlane.xlu0 %2333 }
 0x74f   :  { %v2338_v45 = vsub.f32 %v6278_v39, %v2334_v44 }
 0x751   :  { %v2016_v43 = vpop.permute.xlu2 %2015  ;;  %v2340_v47 = vmul.f32 1.442695, %v2338_v45 }
 0x752   :  { %2022 = vst.msk [vmem:[#allocation4 + $0x8] sm:$0x7f] %vm2021_vm15, %v2016_v43 }
 0x753   :  { %5096 = vpow2.f32 %v2340_v47 }
 0x759   :  { %v6319_v58 = vpop.eup %5096 }
 0x75a   :  { %v2344_v39 = vsel %vm1802_vm11, %v6319_v58, 0.0 }
 0x78b   :  { %v2140_v20 = vpop.f32.mrf.mxu0 }
 0x78d   :  { %v2458_v19 = vpop.xlane.xlu1 %2457 }
 0x78e   :  { %v2460_v52 = vsub.f32 %v2450_v21, %v2458_v19 }
 0x790   :  { %v2463_v28 = vmul.f32 1.442695, %v2460_v52 }
 0x792   :  { %5098 = vpow2.f32 %v2463_v28 }
 0x793   :  { %v2455_v1 = vpop.xlane.xlu2 %2454 }
 0x794   :  { %v2459_v2 = vsub.f32 %v6288_v9, %v2455_v1 }
 0x796   :  { %v2461_v42 = vmul.f32 1.442695, %v2459_v2 }
 0x797   :  { %v2275_v61 = vpop.f32.mrf.mxu2 }
 0x798   :  { %5100 = vpow2.f32 %v2461_v42  ;;  %v6332_v6 = vpop.eup %5098 }
 0x799   :  { %v2143_v59 = vpop.f32.mrf.mxu0  ;;  %v2468_v8 = vsel %vm7304_vm12, %v6332_v6, 0.0 }
 0x79b   :  { %v2337_v5 = vpop.xlane.xlu2 %2336 }
 0x79c   :  { %v2339_v54 = vsub.f32 %v2329_v38, %v2337_v5 }
 0x79e   :  { %v2342_v7 = vmul.f32 1.442695, %v2339_v54  ;;  %v6336_v10 = vpop.eup %5100 }
 0x79f   :  { %v2465_v9 = vsel %vm1802_vm11, %v6336_v10, 0.0 }
 0x7a0   :  { %v2278_v62 = vpop.f32.mrf.mxu2  ;;  %5102 = vpow2.f32 %v2342_v7 }
 0x7a6   :  { %v2714_v25 = vpop.f32.mrf.mxu1  ;;  %v6340_v13 = vpop.eup %5102 }
 0x7a7   :  { %v2720_v46 = vsel %vm1802_vm11, %v2714_v25, -inf  ;;  %v2347_v14 = vsel %vm7304_vm12, %v6340_v13, 0.0 }
 0x7a8   :  { %2721 = vmax.xlane.f32.xlu0 %v2720_v46 }
 0x7ad   :  { %v6311_v49 = vpop.f32.mrf.mxu3 }
 0x7ae   :  { %v2587_v50 = vsel %vm1802_vm11, %v6311_v49, -inf }
 0x7af   :  { %v6315_v55 = vpop.f32.mrf.mxu1  ;;  %2588 = vmax.xlane.f32.xlu1 %v2587_v50 }
 0x7b0   :  { %v2723_v57 = vsel %vm7304_vm12, %v6315_v55, -inf }
 0x7b1   :  { %2724 = vmax.xlane.f32.xlu2 %v2723_v57 }
 0x7b5   :  { %v6328_v4 = vpop.f32.mrf.mxu3 }
 0x7b6   :  { %v2590_v11 = vsel %vm7304_vm12, %v6328_v4, -inf }
 0x7b9   :  { %2345 = vadd.xlane.f32.xlu2 %v2344_v39 }
 0x7bc   :  { %2148 = vrot.lane.b32.xlu0 %v2140_v20, %s5239_s22 }
 0x7c4   :  { %2150 = vrot.lane.b32.xlu0 %v2143_v59, %s5239_s22 }
 0x7c8   :  { %2283 = vrot.lane.b32.xlu1 %v2275_v61, %s5236_s7 }
 0x7d0   :  { %2285 = vrot.lane.b32.xlu1 %v2278_v62, %s5236_s7 }
 0x7ee   :  { %2591 = vmax.xlane.f32.xlu0 %v2590_v11 }
 0x7f6   :  { %2469 = vadd.xlane.f32.xlu0 %v2468_v8 }
 0x7fa   :  { %2466 = vadd.xlane.f32.xlu1 %v2465_v9 }
 0x802   :  { %2348 = vadd.xlane.f32.xlu1 %v2347_v14 }
 0x80a   :  { %2504 = vrot.lane.b32.xlu0 %v6205_v48, %s5235_s2 }
 0x81b   :  { %v2722_v18 = vpop.xlane.xlu0 %2721  ;;  %2502 = vrot.lane.b32.xlu1 %v6208_v53, %s5235_s2 }
 0x81c   :  { %v2726_v41 = vsub.f32 %v2714_v25, %v2722_v18 }
 0x81e   :  { %v2728_v63 = vmul.f32 1.442695, %v2726_v41 }
 0x820   :  { %5104 = vpow2.f32 %v2728_v63 }
 0x822   :  { %v2589_v12 = vpop.xlane.xlu1 %2588 }
 0x823   :  { %v2593_v0 = vsub.f32 %v6311_v49, %v2589_v12  ;;  %2768 = vrot.lane.b32.xlu1 %v6208_v53, %s5240_s23 }
 0x824   :  { %v2725_v21 = vpop.xlane.xlu2 %2724 }
 0x825   :  { %v2595_v29 = vmul.f32 1.442695, %v2593_v0  ;;  %v2727_v31 = vsub.f32 %v6315_v55, %v2725_v21 }
 0x826   :  { %v6375_v30 = vpop.eup %5104 }
 0x827   :  { %5106 = vpow2.f32 %v2595_v29  ;;  %v2732_v32 = vsel %vm1802_vm11, %v6375_v30, 0.0  ;;  %v2730_v24 = vmul.f32 1.442695, %v2727_v31 }
 0x828   :  { %2733 = vadd.xlane.f32.xlu2 %v2732_v32 }
 0x82b   :  { %2637 = vrot.lane.b32.xlu1 %v6205_v48, %s5238_s21 }
 0x82c   :  { %v2346_v33 = vpop.xlane.xlu2 %2345 }
 0x82d   :  { %v6382_v36 = vpop.eup %5106  ;;  %5108 = vrcp.f32 %v2346_v33  ;;  %v2361_v56 = vand.u32 2147483648, %v2346_v33  ;;  %v2359_v25 = vand.u32 2147483647, %v2346_v33  ;;  %vm2355_vm8 = vweird.f32 %v2346_v33 }
 0x82e   :  { %5110 = vpow2.f32 %v2730_v24  ;;  %v2149_v37 = vpop.permute.xlu0 %2148  ;;  %v2599_v22 = vsel %vm1802_vm11, %v6382_v36, 0.0 }
 0x82f   :  { %2155 = vst.msk [vmem:[#allocation4] sm:$0xff] %vm7308_vm1, %v2149_v37  ;;  %v2362_v46 = vor.u32 1.1754944e-38, %v2361_v56  ;;  %vm2360_vm13 = vcmp.eq.f32.partialorder %v2359_v25, 8.507059e+37 }
 0x830   :  { %2600 = vadd.xlane.f32.xlu2 %v2599_v22 }
 0x833   :  { %v5109_v38 = vpop.eup %5108  ;;  %2635 = vrot.lane.b32.xlu1 %v6208_v53, %s5238_s21 }
 0x834   :  { %v6389_v26 = vpop.eup %5110  ;;  %v2351_v34 = vmul.f32 %v5109_v38, %v2346_v33  ;;  %vm2356_vm3 = vweird.f32 %v5109_v38 }
 0x835   :  { %v2735_v43 = vsel %vm7304_vm12, %v6389_v26, 0.0  ;;  %vm2357_vm9 = vmor %vm2355_vm8, %vm2356_vm3 }
 0x836   :  { %v2352_v40 = vsub.f32 1.0, %v2351_v34  ;;  %v2151_v35 = vpop.permute.xlu0 %2150 }
 0x837   :  { %2157 = vst.msk [vmem:[#allocation4 + $0x8] sm:$0x7f] %vm7306_vm2, %v2151_v35 }
 0x838   :  { %v2353_v44 = vmul.f32 %v5109_v38, %v2352_v40  ;;  %2736 = vadd.xlane.f32.xlu2 %v2735_v43 }
 0x83a   :  { %v2354_v45 = vadd.f32 %v5109_v38, %v2353_v44  ;;  %v2284_v53 = vpop.permute.xlu1 %2283 }
 0x83b   :  { %2290 = vst.msk [vmem:[#allocation4] sm:$0xff] %vm7307_vm6, %v2284_v53 }
 0x83c   :  { %v2358_v47 = vsel %vm2357_vm9, %v5109_v38, %v2354_v45 }
 0x83d   :  { %v2363_v49 = vsel %vm2360_vm13, %v2362_v46, %v2358_v47 }
 0x83e   :  { %v2364_v50 = vmul.f32 %v6319_v58, %v2363_v49 }
 0x840   :  { %4894 = vmatmul.msk.f32.vlgmr.msra.gmra.mxu0 %vm1802_vm11, %v2364_v50 }
 0x842   :  { %v2286_v55 = vpop.permute.xlu1 %2285  ;;  %v2814_v57 = vld [vmem:[#allocation4] sm:$0xff] }
 0x843   :  { %2292 = vst.msk [vmem:[#allocation4 + $0x8] sm:$0x7f] %vm7305_vm14, %v2286_v55  ;;  %4917 = vmatmul.msk.f32.vlgmr.msra.gmra.mxu3 %vm852_vm7, %v2814_v57 }
 0x84a   :  { %v2815_v39 = vld [vmem:[#allocation4 + $0x8] sm:$0xff] }
 0x84b   :  { %4918 = vmatmul.msk.f32.gmra.mxu3 %vm852_vm7, %v2815_v39 }
 0x850   :  { %2770 = vrot.lane.b32.xlu2 %v6205_v48, %s5240_s23 }
 0x861   :  { %v2592_v20 = vpop.xlane.xlu0 %2591 }
 0x862   :  { %v2594_v59 = vsub.f32 %v6328_v4, %v2592_v20 }
 0x864   :  { %v2597_v61 = vmul.f32 1.442695, %v2594_v59 }
 0x866   :  { %5112 = vpow2.f32 %v2597_v61 }
 0x869   :  { %v2470_v1 = vpop.xlane.xlu0 %2469 }
 0x86a   :  { %v2497_v31 = vand.u32 2147483648, %v2470_v1  ;;  %v2495_v32 = vand.u32 2147483647, %v2470_v1 }
 0x86c   :  { %v6403_v58 = vpop.eup %5112  ;;  %v2498_v22 = vor.u32 1.1754944e-38, %v2497_v31 }
 0x86d   :  { %v2467_v62 = vpop.xlane.xlu1 %2466  ;;  %v2602_v19 = vsel %vm7304_vm12, %v6403_v58, 0.0 }
 0x86e   :  { %5114 = vrcp.f32 %v2467_v62  ;;  %2603 = vadd.xlane.f32.xlu0 %v2602_v19  ;;  %v2482_v23 = vand.u32 2147483648, %v2467_v62  ;;  %vm2476_vm12 = vweird.f32 %v2467_v62  ;;  %v2480_v60 = vand.u32 2147483647, %v2467_v62 }
 0x86f   :  { %5116 = vrcp.f32 %v2470_v1 }
 0x870   :  { %v2483_v0 = vor.u32 1.1754944e-38, %v2482_v23  ;;  %vm2481_vm6 = vcmp.eq.f32.partialorder %v2480_v60, 8.507059e+37  ;;  %v5227_v60 = vld [vmem:[#allocation3] sm:$0xff] }
 0x874   :  { %v5115_v52 = vpop.eup %5114 }
 0x875   :  { %v2349_v28 = vpop.xlane.xlu1 %2348  ;;  %v2472_v2 = vmul.f32 %v5115_v52, %v2467_v62  ;;  %v5117_v48 = vpop.eup %5116  ;;  %vm2477_vm8 = vweird.f32 %v5115_v52 }
 0x876   :  { %5118 = vrcp.f32 %v2349_v28  ;;  %v2487_v54 = vmul.f32 %v5117_v48, %v2470_v1  ;;  %v2376_v9 = vand.u32 2147483648, %v2349_v28  ;;  %v2374_v17 = vand.u32 2147483647, %v2349_v28  ;;  %vm2478_vm2 = vmor %vm2476_vm12, %vm2477_vm8 }
 0x877   :  { %v2473_v42 = vsub.f32 1.0, %v2472_v2  ;;  %vm2370_vm9 = vweird.f32 %v2349_v28  ;;  %vm2492_vm1 = vweird.f32 %v5117_v48  ;;  %vm2496_vm12 = vcmp.eq.f32.partialorder %v2495_v32, 8.507059e+37 }
 0x878   :  { %v2488_v15 = vsub.f32 1.0, %v2487_v54  ;;  %v2377_v41 = vor.u32 1.1754944e-38, %v2376_v9  ;;  %vm2375_vm14 = vcmp.eq.f32.partialorder %v2374_v17, 8.507059e+37 }
 0x879   :  { %v2474_v7 = vmul.f32 %v5115_v52, %v2473_v42 }
 0x87a   :  { %v2489_v27 = vmul.f32 %v5117_v48, %v2488_v15 }
 0x87b   :  { %v2475_v16 = vadd.f32 %v5115_v52, %v2474_v7 }
 0x87c   :  { %v5119_v5 = vpop.eup %5118  ;;  %v2505_v4 = vpop.permute.xlu0 %2504  ;;  %v2490_v29 = vadd.f32 %v5117_v48, %v2489_v27 }
 0x87d   :  { %v2366_v11 = vmul.f32 %v5119_v5, %v2349_v28  ;;  %4900 = vmatpush.msk.msrb.mxu2 %vm396_vm4, %v2505_v4  ;;  %vm2371_vm3 = vweird.f32 %v5119_v5  ;;  %v2479_v51 = vsel %vm2478_vm2, %v5115_v52, %v2475_v16  ;;  %v6426_v16 = vld [vmem:[%s7299_s13] sm:$0xff] }
 0x87e   :  { %vm2372_vm13 = vmor %vm2370_vm9, %vm2371_vm3  ;;  %v2484_v21 = vsel %vm2481_vm6, %v2483_v0, %v2479_v51  ;;  %vm2491_vm3 = vweird.f32 %v2470_v1  ;;  %v5228_v51 = vld [vmem:[#allocation3 + $0x8] sm:$0xff] }
 0x87f   :  { %v2367_v8 = vsub.f32 1.0, %v2366_v11  ;;  %v2485_v24 = vmul.f32 %v6336_v10, %v2484_v21  ;;  %vm2493_vm9 = vmor %vm2491_vm3, %vm2492_vm1 }
 0x880   :  { %v2494_v37 = vsel %vm2493_vm9, %v5117_v48, %v2490_v29 }
 0x881   :  { %v2368_v14 = vmul.f32 %v5119_v5, %v2367_v8 }
 0x883   :  { %v2369_v18 = vadd.f32 %v5119_v5, %v2368_v14 }
 0x885   :  { %v2373_v63 = vsel %vm2372_vm13, %v5119_v5, %v2369_v18  ;;  %v6429_v18 = vperm.slane %v6426_v16, 3 }
 0x886   :  { %v2378_v3 = vsel %vm2375_vm14, %v2377_v41, %v2373_v63 }
 0x887   :  { %v2379_v12 = vmul.f32 %v6340_v13, %v2378_v3  ;;  %v2499_v13 = vsel %vm2496_vm12, %v2498_v22, %v2494_v37 }
 0x888   :  { %v2500_v34 = vmul.f32 %v6332_v6, %v2499_v13 }
 0x889   :  { %4895 = vmatmul.msk.f32.gmra.mxu0 %vm1802_vm11, %v2379_v12 }
 0x88d   :  { %v2503_v33 = vpop.permute.xlu1 %2502 }
 0x88e   :  { %2530 = vmatpush.msrb.mxu2 %v2503_v33 }
 0x88f   :  { %4901 = vmatmul.msk.f32.vlgmr.msrb.gmra.mxu2 %vm1802_vm11, %v2485_v24 }
 0x895   :  { %v2769_v38 = vpop.permute.xlu1 %2768 }
 0x897   :  { %4902 = vmatmul.msk.f32.gmra.mxu2 %vm1802_vm11, %v2500_v34 }
 0x89b   :  { %v2734_v40 = vpop.xlane.xlu2 %2733 }
 0x89c   :  { %5120 = vrcp.f32 %v2734_v40  ;;  %v2749_v49 = vand.u32 2147483648, %v2734_v40  ;;  %vm2743_vm2 = vweird.f32 %v2734_v40  ;;  %v2747_v50 = vand.u32 2147483647, %v2734_v40 }
 0x89d   :  { %v2638_v35 = vpop.permute.xlu1 %2637 }
 0x89e   :  { %4907 = vmatpush.msk.msrb.mxu0 %vm396_vm4, %v2638_v35  ;;  %v2750_v61 = vor.u32 1.1754944e-38, %v2749_v49  ;;  %vm2748_vm8 = vcmp.eq.f32.partialorder %v2747_v50, 8.507059e+37 }
 0x8a2   :  { %v5121_v10 = vpop.eup %5120 }
 0x8a3   :  { %v2739_v56 = vmul.f32 %v5121_v10, %v2734_v40  ;;  %v2601_v43 = vpop.xlane.xlu2 %2600  ;;  %vm2744_vm1 = vweird.f32 %v5121_v10 }
 0x8a4   :  { %5122 = vrcp.f32 %v2601_v43  ;;  %vm2745_vm6 = vmor %vm2743_vm2, %vm2744_vm1  ;;  %v2616_v57 = vand.u32 2147483648, %v2601_v43  ;;  %v2614_v59 = vand.u32 2147483647, %v2601_v43  ;;  %vm2610_vm13 = vweird.f32 %v2601_v43 }
 0x8a5   :  { %v2740_v44 = vsub.f32 1.0, %v2739_v56  ;;  %v2636_v25 = vpop.permute.xlu1 %2635 }
 0x8a6   :  { %2663 = vmatpush.msrb.mxu0 %v2636_v25  ;;  %v2617_v52 = vor.u32 1.1754944e-38, %v2616_v57  ;;  %vm2615_vm9 = vcmp.eq.f32.partialorder %v2614_v59, 8.507059e+37 }
 0x8a7   :  { %v2741_v45 = vmul.f32 %v5121_v10, %v2740_v44 }
 0x8a9   :  { %v2742_v46 = vadd.f32 %v5121_v10, %v2741_v45 }
 0x8aa   :  { %v5123_v53 = vpop.eup %5122 }
 0x8ab   :  { %v2606_v47 = vmul.f32 %v5123_v53, %v2601_v43  ;;  %v2737_v6 = vpop.xlane.xlu2 %2736  ;;  %v2746_v39 = vsel %vm2745_vm6, %v5121_v10, %v2742_v46  ;;  %vm2611_vm14 = vweird.f32 %v5123_v53  ;;  %v5241_v43 = vmov 64.0  }
 0x8ac   :  { %5124 = vrcp.f32 %v2737_v6  ;;  %v2751_v1 = vsel %vm2748_vm8, %v2750_v61, %v2746_v39  ;;  %vm2612_vm3 = vmor %vm2610_vm13, %vm2611_vm14  ;;  %v2764_v54 = vand.u32 2147483648, %v2737_v6  ;;  %v2762_v8 = vand.u32 2147483647, %v2737_v6 }
 0x8ad   :  { %v2607_v55 = vsub.f32 1.0, %v2606_v47  ;;  %v2752_v5 = vmul.f32 %v6375_v30, %v2751_v1  ;;  %vm2758_vm1 = vweird.f32 %v2737_v6 }
 0x8ae   :  { %v2765_v14 = vor.u32 1.1754944e-38, %v2764_v54  ;;  %vm2763_vm6 = vcmp.eq.f32.partialorder %v2762_v8, 8.507059e+37  ;;  %v2981_v54 = vld [vmem:[%s7301_s11 + $0x20] sm:$0xff]  ;;  %v2979_v8 = vld [vmem:[%s7301_s11 + $0x10] sm:$0xff] }
 0x8af   :  { %v2608_v20 = vmul.f32 %v5123_v53, %v2607_v55 }
 0x8b1   :  { %v2609_v62 = vadd.f32 %v5123_v53, %v2608_v20 }
 0x8b2   :  { %v5125_v19 = vpop.eup %5124 }
 0x8b3   :  { %v2613_v28 = vsel %vm2612_vm3, %v5123_v53, %v2609_v62  ;;  %v2754_v2 = vmul.f32 %v5125_v19, %v2737_v6  ;;  %v2771_v48 = vpop.permute.xlu2 %2770  ;;  %vm2759_vm12 = vweird.f32 %v5125_v19 }
 0x8b4   :  { %v2618_v42 = vsel %vm2615_vm9, %v2617_v52, %v2613_v28  ;;  %4914 = vmatpush.msk.msra.mxu2 %vm396_vm4, %v2771_v48  ;;  %vm2760_vm2 = vmor %vm2758_vm1, %vm2759_vm12  ;;  %vm7309_vm12 = vcmask 392448   ;;  %vm7310_vm1 = vcmask 523648  }
 0x8b5   :  { %v2619_v4 = vmul.f32 %v6382_v36, %v2618_v42  ;;  %v2755_v11 = vsub.f32 1.0, %v2754_v2  ;;  %v2984_v42 = vld [vmem:[%s7301_s11 + $0x38] sm:$0xff] }
 0x8b6   :  { %2796 = vmatpush.msra.mxu2 %v2769_v38  ;;  %3006 = vmatpush.msra.mxu0 %v2984_v42 }
 0x8b7   :  { %v2756_v7 = vmul.f32 %v5125_v19, %v2755_v11  ;;  %4908 = vmatmul.msk.f32.vlgmr.msrb.gmra.mxu0 %vm1802_vm11, %v2619_v4  ;;  %4915 = vmatmul.msk.f32.vlgmr.msra.gmra.mxu2 %vm1802_vm11, %v2752_v5  ;;  %v2983_v5 = vld [vmem:[%s7301_s11 + $0x30] sm:$0xff]  ;;  %v2982_v11 = vld [vmem:[%s7301_s11 + $0x28] sm:$0xff] }
 0x8b8   :  { %3007 = vmatpush.msra.mxu0 %v2983_v5 }
 0x8b9   :  { %v2757_v9 = vadd.f32 %v5125_v19, %v2756_v7  ;;  %v2980_v7 = vld [vmem:[%s7301_s11 + $0x18] sm:$0xff] }
 0x8ba   :  { %3008 = vmatpush.msra.mxu0 %v2982_v11 }
 0x8bb   :  { %v2761_v17 = vsel %vm2760_vm2, %v5125_v19, %v2757_v9 }
 0x8bc   :  { %v2766_v15 = vsel %vm2763_vm6, %v2765_v14, %v2761_v17  ;;  %3009 = vmatpush.msra.mxu0 %v2981_v54  ;;  %v2978_v14 = vld [vmem:[%s7301_s11 + $0x8] sm:$0xff]  ;;  %v2977_v17 = vld [vmem:[%s7301_s11] sm:$0xff] }
 0x8bd   :  { %v2406_v30 = vpop.f32.mrf.mxu0  ;;  %v2767_v36 = vmul.f32 %v6389_v26, %v2766_v15 }
 0x8be   :  { %2412 = vst.msk [vmem:[#allocation4 + $0x10] sm:$0xff] %vm1768_vm10, %v2406_v30  ;;  %3010 = vmatpush.msra.mxu0 %v2980_v7 }
 0x8bf   :  { %4916 = vmatmul.msk.f32.gmra.mxu2 %vm1802_vm11, %v2767_v36 }
 0x8c0   :  { %3011 = vmatpush.msra.mxu0 %v2979_v8  ;;  %v6532_v8 = vperm.slane %v6426_v16, 5 }
 0x8c2   :  { %3012 = vmatpush.msra.mxu0 %v2978_v14 }
 0x8c4   :  { %3013 = vmatpush.msra.mxu0 %v2977_v17 }
 0x8c6   :  { %v2856_v23 = vpop.f32.mrf.mxu3 }
 0x8c7   :  { %v2857_v41 = vadd.f32 %v2856_v23, %v6429_v18 }
 0x8c9   :  { %v2868_v63 = vadd.f32 %v5227_v60, %v2857_v41 }
 0x8cb   :  { %v2872_v3 = vsel %vm852_vm7, %v2868_v63, 0.0 }
 0x8cc   :  { %2873 = vadd.xlane.f32.xlu2 %v2872_v3 }
 0x8ce   :  { %v2859_v26 = vpop.f32.mrf.mxu3 }
 0x8cf   :  { %v2860_v27 = vadd.f32 %v2859_v26, %v6429_v18 }
 0x8d1   :  { %v2869_v12 = vadd.f32 %v5228_v51, %v2860_v27 }
 0x8d3   :  { %v2875_v0 = vsel %vm852_vm7, %v2869_v12, 0.0 }
 0x8d4   :  { %2876 = vadd.xlane.f32.xlu1 %v2875_v0 }
 0x8e1   :  { %v2604_v21 = vpop.xlane.xlu0 %2603 }
 0x8e2   :  { %5126 = vrcp.f32 %v2604_v21  ;;  %v2631_v24 = vand.u32 2147483648, %v2604_v21  ;;  %v2629_v37 = vand.u32 2147483647, %v2604_v21  ;;  %vm2625_vm8 = vweird.f32 %v2604_v21 }
 0x8e3   :  { %5128 = vrcp.f32 %v5241_v43 }
 0x8e4   :  { %v2632_v13 = vor.u32 1.1754944e-38, %v2631_v24  ;;  %vm2630_vm3 = vcmp.eq.f32.partialorder %v2629_v37, 8.507059e+37  ;;  %v6493_v24 = vperm.slane %v6426_v16, 7 }
 0x8e8   :  { %v5127_v29 = vpop.eup %5126 }
 0x8e9   :  { %v2621_v31 = vmul.f32 %v5127_v29, %v2604_v21  ;;  %vm2626_vm14 = vweird.f32 %v5127_v29  ;;  %v5129_v44 = vpop.eup %5128 }
 0x8ea   :  { %vm2627_vm13 = vmor %vm2625_vm8, %vm2626_vm14  ;;  %v2885_v25 = vmul.f32 64.0, %v5129_v44  ;;  %vm2889_vm9 = vweird.f32 %v5129_v44 }
 0x8eb   :  { %v2622_v32 = vsub.f32 1.0, %v2621_v31 }
 0x8ec   :  { %v2886_v45 = vsub.f32 1.0, %v2885_v25 }
 0x8ed   :  { %v2623_v33 = vmul.f32 %v5127_v29, %v2622_v32 }
 0x8ef   :  { %v2624_v22 = vadd.f32 %v5127_v29, %v2623_v33 }
 0x8f1   :  { %v2628_v38 = vsel %vm2627_vm13, %v5127_v29, %v2624_v22  ;;  %v6490_v29 = vperm.slane %v6426_v16, 6 }
 0x8f2   :  { %v2633_v34 = vsel %vm2630_vm3, %v2632_v13, %v2628_v38 }
 0x8f3   :  { %v2634_v40 = vmul.f32 %v6403_v58, %v2633_v34  ;;  %v2887_v58 = vmul.f32 %v5129_v44, %v2886_v45  ;;  %v3034_v45 = vld [vmem:[%s7302_s12 + $0x18] sm:$0xff] }
 0x8f4   :  { %3061 = vmatpush.msrb.mxu1 %v3034_v45 }
 0x8f5   :  { %4909 = vmatmul.msk.f32.gmra.mxu0 %vm1802_vm11, %v2634_v40  ;;  %v2888_v46 = vadd.f32 %v5129_v44, %v2887_v58  ;;  %v3032_v58 = vld [vmem:[%s7302_s12 + $0x8] sm:$0xff] }
 0x8f7   :  { %v6442_v6 = vsel %vm2889_vm9, %v5129_v44, %v2888_v46  ;;  %vm7311_vm9 = vcmask 391424   ;;  %v3031_v46 = vld [vmem:[%s7302_s12] sm:$0xff] }
 0x906   :  { %v2409_v35 = vpop.f32.mrf.mxu0 }
 0x907   :  { %2413 = vst.msk [vmem:[#allocation4 + $0x18] sm:$0x7f] %vm1885_vm5, %v2409_v35 }
 0x912   :  { %v2532_v10 = vpop.f32.mrf.mxu2 }
 0x913   :  { %2540 = vrot.lane.b32.xlu0 %v2532_v10, %s5237_s20 }
 0x91a   :  { %v2535_v56 = vpop.f32.mrf.mxu2 }
 0x91b   :  { %2542 = vrot.lane.b32.xlu0 %v2535_v56, %s5237_s20 }
 0x934   :  { %v2665_v53 = vpop.f32.mrf.mxu0 }
 0x935   :  { %2673 = vrot.lane.b32.xlu2 %v2665_v53, %s5239_s22  ;;  %v3033_v53 = vld [vmem:[%s7302_s12 + $0x10] sm:$0xff] }
 0x936   :  { %3062 = vmatpush.msrb.mxu1 %v3033_v53 }
 0x938   :  { %3063 = vmatpush.msrb.mxu1 %v3032_v58 }
 0x93a   :  { %v2798_v47 = vpop.f32.mrf.mxu2  ;;  %3064 = vmatpush.msrb.mxu1 %v3031_v46 }
 0x93b   :  { %2806 = vrot.lane.b32.xlu1 %v2798_v47, %s5236_s7 }
 0x93f   :  { %v2874_v49 = vpop.xlane.xlu2 %2873 }
 0x940   :  { %v2891_v50 = vmul.f32 %v6442_v6, %v2874_v49 }
 0x942   :  { %v6445_v55 = vsub.f32 %v2868_v63, %v2891_v50  ;;  %v2801_v57 = vpop.f32.mrf.mxu2  ;;  %v5229_v50 = vld [vmem:[#allocation3 + $0x10] sm:$0xff] }
 0x943   :  { %2808 = vrot.lane.b32.xlu2 %v2801_v57, %s5236_s7 }
 0x944   :  { %v2899_v39 = vmul.f32 %v6445_v55, %v6445_v55 }
 0x946   :  { %v2903_v20 = vsel %vm852_vm7, %v2899_v39, 0.0  ;;  %v6521_v39 = vperm.slane %v6426_v16, 4 }
 0x947   :  { %v2877_v59 = vpop.xlane.xlu1 %2876  ;;  %2904 = vadd.xlane.f32.xlu0 %v2903_v20 }
 0x948   :  { %v2892_v61 = vmul.f32 %v6442_v6, %v2877_v59 }
 0x94a   :  { %v6452_v62 = vsub.f32 %v2869_v12, %v2892_v61 }
 0x94c   :  { %v2900_v19 = vmul.f32 %v6452_v62, %v6452_v62 }
 0x94e   :  { %v2906_v1 = vsel %vm852_vm7, %v2900_v19, 0.0 }
 0x94f   :  { %2907 = vadd.xlane.f32.xlu0 %v2906_v1 }
 0x972   :  { %v2668_v52 = vpop.f32.mrf.mxu0 }
 0x973   :  { %2675 = vrot.lane.b32.xlu0 %v2668_v52, %s5239_s22 }
 0x985   :  { %v2541_v28 = vpop.permute.xlu0 %2540 }
 0x986   :  { %2546 = vst.msk [vmem:[#allocation4 + $0x10] sm:$0xff] %vm2019_vm0, %v2541_v28 }
 0x98d   :  { %v2543_v2 = vpop.permute.xlu0 %2542 }
 0x98e   :  { %2547 = vst.msk [vmem:[#allocation4 + $0x18] sm:$0x7f] %vm2021_vm15, %v2543_v2  ;;  %v5230_v2 = vld [vmem:[#allocation3 + $0x18] sm:$0xff] }
 0x98f   :  { %v2674_v48 = vpop.permute.xlu2 %2673 }
 0x990   :  { %2679 = vst.msk [vmem:[#allocation4 + $0x10] sm:$0xff] %vm7309_vm12, %v2674_v48  ;;  %vm7312_vm12 = vcmask 522624  }
 0x99d   :  { %v2809_v44 = vpop.permute.xlu2 %2808 }
 0x9ad   :  { %v2807_v4 = vpop.permute.xlu1 %2806 }
 0x9ae   :  { %2812 = vst.msk [vmem:[#allocation4 + $0x10] sm:$0xff] %vm7310_vm1, %v2807_v4  ;;  %vm3036_vm1 = vcmask 261120  }
 0x9b5   :  { %v2816_v9 = vld [vmem:[#allocation4 + $0x10] sm:$0xff] }
 0x9b6   :  { %4919 = vmatmul.msk.f32.gmra.mxu3 %vm852_vm7, %v2816_v9 }
 0x9ba   :  { %v2905_v15 = vpop.xlane.xlu0 %2904 }
 0x9bb   :  { %v2915_v30 = vmul.f32 %v2905_v15, %v6442_v6 }
 0x9bd   :  { %v2919_v36 = vadd.f32 1e-05, %v2915_v30 }
 0x9bf   :  { %5130 = vrsqrt.f32 %v2919_v36  ;;  %vm2929_vm6 = vweird.f32 %v2919_v36 }
 0x9c2   :  { %v2908_v23 = vpop.xlane.xlu0 %2907 }
 0x9c3   :  { %v2916_v41 = vmul.f32 %v2908_v23, %v6442_v6 }
 0x9c5   :  { %v5131_v60 = vpop.eup %5130  ;;  %v2920_v63 = vadd.f32 1e-05, %v2916_v41 }
 0x9c6   :  { %v2924_v3 = vmul.f32 %v5131_v60, %v2919_v36  ;;  %vm2930_vm2 = vweird.f32 %v5131_v60 }
 0x9c7   :  { %5132 = vrsqrt.f32 %v2920_v63  ;;  %vm2931_vm14 = vmor %vm2929_vm6, %vm2930_vm2  ;;  %vm2939_vm13 = vweird.f32 %v2920_v63 }
 0x9c8   :  { %v2925_v26 = vmul.f32 %v5131_v60, %v2924_v3 }
 0x9ca   :  { %v2926_v27 = vmul.f32 0.5, %v2925_v26 }
 0x9cc   :  { %v2927_v51 = vsub.f32 1.5, %v2926_v27 }
 0x9cd   :  { %v5133_v12 = vpop.eup %5132 }
 0x9ce   :  { %v2928_v0 = vmul.f32 %v5131_v60, %v2927_v51  ;;  %v2934_v21 = vmul.f32 %v5133_v12, %v2920_v63  ;;  %vm2940_vm8 = vweird.f32 %v5133_v12 }
 0x9cf   :  { %vm2941_vm3 = vmor %vm2939_vm13, %vm2940_vm8 }
 0x9d0   :  { %v2932_v31 = vsel %vm2931_vm14, %v5131_v60, %v2928_v0  ;;  %v2935_v32 = vmul.f32 %v5133_v12, %v2934_v21 }
 0x9d1   :  { %v2963_v33 = vmul.f32 %v2932_v31, %v6445_v55 }
 0x9d2   :  { %v2936_v37 = vmul.f32 0.5, %v2935_v32 }
 0x9d3   :  { %v2968_v22 = vmul.f32 %v6490_v29, %v2963_v33 }
 0x9d4   :  { %v2937_v13 = vsub.f32 1.5, %v2936_v37 }
 0x9d5   :  { %v2973_v38 = vadd.f32 %v6493_v24, %v2968_v22 }
 0x9d6   :  { %v2938_v34 = vmul.f32 %v5133_v12, %v2937_v13 }
 0x9d7   :  { %4921 = vmatmul.msk.f32.vlgmr.msra.gmra.mxu0 %vm852_vm7, %v2973_v38 }
 0x9d8   :  { %v2942_v40 = vsel %vm2941_vm3, %v5133_v12, %v2938_v34 }
 0x9d9   :  { %v2964_v35 = vmul.f32 %v2942_v40, %v6452_v62 }
 0x9db   :  { %v2969_v10 = vmul.f32 %v6490_v29, %v2964_v35 }
 0x9dd   :  { %v2974_v56 = vadd.f32 %v6493_v24, %v2969_v10 }
 0x9df   :  { %4922 = vmatmul.msk.f32.gmra.mxu0 %vm852_vm7, %v2974_v56 }
 0x9e5   :  { %v2676_v43 = vpop.permute.xlu0 %2675 }
 0x9e6   :  { %2680 = vst.msk [vmem:[#allocation4 + $0x18] sm:$0x7f] %vm7311_vm9, %v2676_v43 }
 0x9e7   :  { %2813 = vst.msk [vmem:[#allocation4 + $0x18] sm:$0x7f] %vm7312_vm12, %v2809_v44 }
 0x9ee   :  { %v2817_v25 = vld [vmem:[#allocation4 + $0x18] sm:$0xff] }
 0x9ef   :  { %4920 = vmatmul.msk.f32.gmra.mxu3 %vm852_vm7, %v2817_v25 }
 0xa39   :  { %v2862_v47 = vpop.f32.mrf.mxu3 }
 0xa3a   :  { %v2863_v49 = vadd.f32 %v2862_v47, %v6429_v18 }
 0xa3c   :  { %v2870_v55 = vadd.f32 %v5229_v50, %v2863_v49 }
 0xa3e   :  { %v2878_v57 = vsel %vm852_vm7, %v2870_v55, 0.0 }
 0xa3f   :  { %2879 = vadd.xlane.f32.xlu0 %v2878_v57 }
 0xa54   :  { %v3015_v20 = vpop.f32.mrf.mxu0 }
 0xa55   :  { %v3016_v59 = vadd.f32 %v3015_v20, %v6521_v39 }
 0xa57   :  { %v3027_v61 = vmax.f32 %v3016_v59, 0.0 }
 0xa59   :  { %4925 = vmatmul.msk.f32.vlgmr.msrb.gmra.mxu1 %vm3036_vm1, %v3027_v61 }
 0xa5c   :  { %v3018_v62 = vpop.f32.mrf.mxu0 }
 0xa5d   :  { %v3019_v19 = vadd.f32 %v3018_v62, %v6521_v39 }
 0xa5f   :  { %v3028_v1 = vmax.f32 %v3019_v19, 0.0 }
 0xa61   :  { %4926 = vmatmul.msk.f32.gmra.mxu1 %vm3036_vm1, %v3028_v1 }
 0xa72   :  { %v2865_v52 = vpop.f32.mrf.mxu3 }
 0xa73   :  { %v2866_v28 = vadd.f32 %v2865_v52, %v6429_v18  ;;  %v4945_v52 = vld [vmem:[%s7297_s9 + $0xf0] sm:$0xff] }
 0xa74   :  { %3220 = vmatpush.msrb.mxu2 %v4945_v52 }
 0xa75   :  { %v2871_v48 = vadd.f32 %v5230_v2, %v2866_v28  ;;  %v4946_v28 = vld [vmem:[%s7297_s9 + $0xf8] sm:$0xff]  ;;  %v4941_v2 = vld [vmem:[%s7297_s9 + $0xd0] sm:$0xff] }
 0xa76   :  { %3249 = vmatpush.msrb.mxu3 %v4946_v28 }
 0xa77   :  { %v2881_v42 = vsel %vm852_vm7, %v2871_v48, 0.0 }
 0xa78   :  { %2882 = vadd.xlane.f32.xlu1 %v2881_v42  ;;  %v4939_v42 = vld [vmem:[%s7297_s9 + $0xc0] sm:$0xff] }
 0xab2   :  { %v2880_v5 = vpop.xlane.xlu0 %2879 }
 0xab3   :  { %v2893_v4 = vmul.f32 %v6442_v6, %v2880_v5  ;;  %v4940_v5 = vld [vmem:[%s7297_s9 + $0xc8] sm:$0xff] }
 0xab5   :  { %v2897_v11 = vsub.f32 %v2870_v55, %v2893_v4  ;;  %v4937_v4 = vld [vmem:[%s7297_s9 + $0xb0] sm:$0xff] }
 0xab7   :  { %v2901_v54 = vmul.f32 %v2897_v11, %v2897_v11 }
 0xab9   :  { %v2909_v7 = vsel %vm852_vm7, %v2901_v54, 0.0  ;;  %v4935_v54 = vld [vmem:[%s7297_s9 + $0xa0] sm:$0xff] }
 0xaba   :  { %2910 = vadd.xlane.f32.xlu2 %v2909_v7  ;;  %v4936_v7 = vld [vmem:[%s7297_s9 + $0xa8] sm:$0xff] }
 0xad6   :  { %v3066_v9 = vpop.f32.mrf.mxu1 }
 0xad7   :  { %v3067_v14 = vadd.f32 %v3066_v9, %v6532_v8  ;;  %v4933_v9 = vld [vmem:[%s7297_s9 + $0x90] sm:$0xff] }
 0xad9   :  { %v3078_v18 = vadd.f32 %v3067_v14, %v2973_v38  ;;  %v4934_v14 = vld [vmem:[%s7297_s9 + $0x98] sm:$0xff] }
 0xadb   :  { %v3082_v17 = vsel %vm852_vm7, %v3078_v18, 0.0 }
 0xadc   :  { %3083 = vadd.xlane.f32.xlu2 %v3082_v17  ;;  %v4931_v17 = vld [vmem:[%s7297_s9 + $0x80] sm:$0xff] }
 0xade   :  { %v3069_v15 = vpop.f32.mrf.mxu1 }
 0xadf   :  { %v3070_v30 = vadd.f32 %v3069_v15, %v6532_v8  ;;  %v4932_v15 = vld [vmem:[%s7297_s9 + $0x88] sm:$0xff] }
 0xae1   :  { %v3079_v36 = vadd.f32 %v3070_v30, %v2974_v56 }
 0xae3   :  { %v3085_v23 = vsel %vm852_vm7, %v3079_v36, 0.0 }
 0xae4   :  { %3086 = vadd.xlane.f32.xlu1 %v3085_v23 }
 0xaeb   :  { %v2883_v41 = vpop.xlane.xlu1 %2882 }
 0xaec   :  { %v2894_v60 = vmul.f32 %v6442_v6, %v2883_v41 }
 0xaee   :  { %v2898_v63 = vsub.f32 %v2871_v48, %v2894_v60  ;;  %v4942_v48 = vld [vmem:[%s7297_s9 + $0xd8] sm:$0xff] }
 0xaf0   :  { %v2902_v16 = vmul.f32 %v2898_v63, %v2898_v63 }
 0xaf2   :  { %v2912_v3 = vsel %vm852_vm7, %v2902_v16, 0.0 }
 0xaf3   :  { %2913 = vadd.xlane.f32.xlu0 %v2912_v3 }
 0xb2d   :  { %v2911_v26 = vpop.xlane.xlu2 %2910 }
 0xb2e   :  { %v2917_v27 = vmul.f32 %v2911_v26, %v6442_v6 }
 0xb30   :  { %v2921_v51 = vadd.f32 1e-05, %v2917_v27 }
 0xb32   :  { %5134 = vrsqrt.f32 %v2921_v51  ;;  %vm2949_vm6 = vweird.f32 %v2921_v51 }
 0xb38   :  { %v5135_v12 = vpop.eup %5134 }
 0xb39   :  { %v2944_v0 = vmul.f32 %v5135_v12, %v2921_v51  ;;  %vm2950_vm2 = vweird.f32 %v5135_v12 }
 0xb3a   :  { %vm2951_vm14 = vmor %vm2949_vm6, %vm2950_vm2 }
 0xb3b   :  { %v2945_v21 = vmul.f32 %v5135_v12, %v2944_v0 }
 0xb3d   :  { %v2946_v31 = vmul.f32 0.5, %v2945_v21 }
 0xb3f   :  { %v2947_v32 = vsub.f32 1.5, %v2946_v31  ;;  %v1656_v31 = vld [vmem:[%s7299_s13 + $0x8] sm:$0x3] }
 0xb41   :  { %v2948_v33 = vmul.f32 %v5135_v12, %v2947_v32 }
 0xb43   :  { %v2952_v37 = vsel %vm2951_vm14, %v5135_v12, %v2948_v33 }
 0xb44   :  { %v2965_v22 = vmul.f32 %v2952_v37, %v2897_v11  ;;  %v4938_v11 = vld [vmem:[%s7297_s9 + $0xb8] sm:$0xff] }
 0xb46   :  { %v2970_v13 = vmul.f32 %v6490_v29, %v2965_v22 }
 0xb48   :  { %v6543_v38 = vadd.f32 %v6493_v24, %v2970_v13  ;;  %v6628_v13 = vperm.slane %v1656_v31, 0 }
 0xb4a   :  { %4923 = vmatmul.msk.f32.gmra.mxu0 %vm852_vm7, %v6543_v38 }
 0xb4f   :  { %v3084_v34 = vpop.xlane.xlu2 %3083 }
 0xb50   :  { %v3094_v40 = vmul.f32 %v3084_v34, %v6442_v6 }
 0xb52   :  { %v6548_v35 = vsub.f32 %v3078_v18, %v3094_v40 }
 0xb54   :  { %v3102_v10 = vmul.f32 %v6548_v35, %v6548_v35 }
 0xb56   :  { %v3106_v56 = vsel %vm852_vm7, %v3102_v10, 0.0  ;;  %v6630_v10 = vperm.slane %v1656_v31, 1 }
 0xb57   :  { %v3087_v43 = vpop.xlane.xlu1 %3086  ;;  %3107 = vadd.xlane.f32.xlu0 %v3106_v56 }
 0xb58   :  { %v3095_v44 = vmul.f32 %v3087_v43, %v6442_v6 }
 0xb5a   :  { %v6554_v25 = vsub.f32 %v3079_v36, %v3095_v44 }
 0xb5c   :  { %v3103_v45 = vmul.f32 %v6554_v25, %v6554_v25 }
 0xb5e   :  { %v3109_v53 = vsel %vm852_vm7, %v3103_v45, 0.0 }
 0xb5f   :  { %3110 = vadd.xlane.f32.xlu2 %v3109_v53 }
 0xb66   :  { %v2914_v58 = vpop.xlane.xlu0 %2913 }
 0xb67   :  { %v2918_v46 = vmul.f32 %v2914_v58, %v6442_v6 }
 0xb69   :  { %v2922_v47 = vadd.f32 1e-05, %v2918_v46 }
 0xb6b   :  { %5136 = vrsqrt.f32 %v2922_v47  ;;  %vm2959_vm13 = vweird.f32 %v2922_v47 }
 0xb71   :  { %v5137_v49 = vpop.eup %5136 }
 0xb72   :  { %v2954_v50 = vmul.f32 %v5137_v49, %v2922_v47  ;;  %vm2960_vm8 = vweird.f32 %v5137_v49 }
 0xb73   :  { %vm2961_vm3 = vmor %vm2959_vm13, %vm2960_vm8  ;;  %vm7313_vm13 = vcmask 120832  }
 0xb74   :  { %v2955_v55 = vmul.f32 %v5137_v49, %v2954_v50 }
 0xb76   :  { %v2956_v57 = vmul.f32 0.5, %v2955_v55 }
 0xb78   :  { %v2957_v20 = vsub.f32 1.5, %v2956_v57 }
 0xb7a   :  { %v2958_v59 = vmul.f32 %v5137_v49, %v2957_v20 }
 0xb7c   :  { %v2962_v61 = vsel %vm2961_vm3, %v5137_v49, %v2958_v59 }
 0xb7d   :  { %v2966_v62 = vmul.f32 %v2962_v61, %v2898_v63  ;;  %v6620_v63 = vld [vmem:[%s7299_s13 + $0x10] sm:$0xff] }
 0xb7e   :  { %v3275_v16 = vperm.slane %v6620_v63, 1 }
 0xb7f   :  { %v2971_v19 = vmul.f32 %v6490_v29, %v2966_v62  ;;  %v4943_v29 = vld [vmem:[%s7297_s9 + $0xe0] sm:$0xff]  ;;  %v6660_v62 = vperm.slane %v6620_v63, 2 }
 0xb80   :  { %3221 = vmatpush.msrb.mxu2 %v4943_v29  ;;  %3277 = vrot.lane.b32.xlu1 %v3275_v16, %s5234_s30 }
 0xb81   :  { %v6562_v1 = vadd.f32 %v6493_v24, %v2971_v19  ;;  %v4944_v24 = vld [vmem:[%s7297_s9 + $0xe8] sm:$0xff] }
 0xb82   :  { %3250 = vmatpush.msrb.mxu3 %v4944_v24  ;;  %3222 = vmatpush.msrb.mxu2 %v4941_v2 }
 0xb83   :  { %4924 = vmatmul.msk.f32.gmra.mxu0 %vm852_vm7, %v6562_v1 }
 0xb84   :  { %3251 = vmatpush.msrb.mxu3 %v4942_v48  ;;  %3223 = vmatpush.msrb.mxu2 %v4939_v42 }
 0xb86   :  { %3252 = vmatpush.msrb.mxu3 %v4940_v5  ;;  %3224 = vmatpush.msrb.mxu2 %v4937_v4 }
 0xb88   :  { %3253 = vmatpush.msrb.mxu3 %v4938_v11  ;;  %3225 = vmatpush.msrb.mxu2 %v4935_v54 }
 0xb8a   :  { %3254 = vmatpush.msrb.mxu3 %v4936_v7  ;;  %3226 = vmatpush.msrb.mxu2 %v4933_v9  ;;  %v6681_v9 = vperm.slane %v6620_v63, 0 }
 0xb8c   :  { %3255 = vmatpush.msrb.mxu3 %v4934_v14  ;;  %3227 = vmatpush.msrb.mxu2 %v4931_v17 }
 0xb8e   :  { %3256 = vmatpush.msrb.mxu3 %v4932_v15 }
 0xbc7   :  { %v3021_v18 = vpop.f32.mrf.mxu0 }
 0xbc8   :  { %v3022_v30 = vadd.f32 %v3021_v18, %v6521_v39 }
 0xbca   :  { %v3029_v36 = vmax.f32 %v3022_v30, 0.0  ;;  %v3108_v23 = vpop.xlane.xlu0 %3107 }
 0xbcb   :  { %v3118_v41 = vmul.f32 %v3108_v23, %v6442_v6 }
 0xbcc   :  { %4927 = vmatmul.msk.f32.gmra.mxu1 %vm3036_vm1, %v3029_v36 }
 0xbcd   :  { %v3122_v60 = vadd.f32 1e-05, %v3118_v41 }
 0xbcf   :  { %5138 = vrsqrt.f32 %v3122_v60  ;;  %vm3132_vm12 = vweird.f32 %v3122_v60 }
 0xbd2   :  { %v3111_v3 = vpop.xlane.xlu2 %3110 }
 0xbd3   :  { %v3119_v26 = vmul.f32 %v3111_v3, %v6442_v6 }
 0xbd5   :  { %v5139_v27 = vpop.eup %5138  ;;  %v3123_v51 = vadd.f32 1e-05, %v3119_v26 }
 0xbd6   :  { %v3127_v12 = vmul.f32 %v5139_v27, %v3122_v60  ;;  %vm3133_vm9 = vweird.f32 %v5139_v27 }
 0xbd7   :  { %5140 = vrsqrt.f32 %v3123_v51  ;;  %vm3134_vm2 = vmor %vm3132_vm12, %vm3133_vm9  ;;  %vm3142_vm14 = vweird.f32 %v3123_v51 }
 0xbd8   :  { %v3128_v0 = vmul.f32 %v5139_v27, %v3127_v12 }
 0xbda   :  { %v3129_v21 = vmul.f32 0.5, %v3128_v0 }
 0xbdc   :  { %v3130_v32 = vsub.f32 1.5, %v3129_v21 }
 0xbdd   :  { %v5141_v33 = vpop.eup %5140 }
 0xbde   :  { %v3131_v37 = vmul.f32 %v5139_v27, %v3130_v32  ;;  %v3137_v22 = vmul.f32 %v5141_v33, %v3123_v51  ;;  %vm3143_vm6 = vweird.f32 %v5141_v33 }
 0xbdf   :  { %vm3144_vm8 = vmor %vm3142_vm14, %vm3143_vm6 }
 0xbe0   :  { %v3135_v34 = vsel %vm3134_vm2, %v5139_v27, %v3131_v37  ;;  %v3138_v40 = vmul.f32 %v5141_v33, %v3137_v22 }
 0xbe1   :  { %v3166_v56 = vmul.f32 %v3135_v34, %v6548_v35 }
 0xbe2   :  { %v3139_v43 = vmul.f32 0.5, %v3138_v40 }
 0xbe3   :  { %v3171_v44 = vmul.f32 %v6628_v13, %v3166_v56 }
 0xbe4   :  { %v3140_v45 = vsub.f32 1.5, %v3139_v43 }
 0xbe5   :  { %v6635_v53 = vadd.f32 %v6630_v10, %v3171_v44 }
 0xbe6   :  { %v3141_v58 = vmul.f32 %v5141_v33, %v3140_v45 }
 0xbe7   :  { %4947 = vmatmul.msk.f32.vlgmr.msrb.gmra.mxu2 %vm852_vm7, %v6635_v53  ;;  %4951 = vmatmul.msk.f32.vlgmr.msrb.gmra.mxu3 %vm852_vm7, %v6635_v53 }
 0xbe8   :  { %v3145_v46 = vsel %vm3144_vm8, %v5141_v33, %v3141_v58  ;;  %vm7314_vm8 = vmmov %vm7313_vm13 }
 0xbe9   :  { %v3167_v35 = vmul.f32 %v3145_v46, %v6554_v25 }
 0xbeb   :  { %v3172_v47 = vmul.f32 %v6628_v13, %v3167_v35 }
 0xbed   :  { %v6644_v49 = vadd.f32 %v6630_v10, %v3172_v47 }
 0xbef   :  { %4948 = vmatmul.msk.f32.gmra.mxu2 %vm852_vm7, %v6644_v49  ;;  %4952 = vmatmul.msk.f32.gmra.mxu3 %vm852_vm7, %v6644_v49 }
 0xbf2   :  { %v6652_v20 = vpop.permute.xlu1 %3277 }
 0xc00   :  { %v3024_v50 = vpop.f32.mrf.mxu0 }
 0xc01   :  { %v3025_v55 = vadd.f32 %v3024_v50, %v6521_v39 }
 0xc03   :  { %v3030_v57 = vmax.f32 %v3025_v55, 0.0 }
 0xc05   :  { %4928 = vmatmul.msk.f32.gmra.mxu1 %vm3036_vm1, %v3030_v57 }
 0xc49   :  { %v3072_v24 = vpop.f32.mrf.mxu1 }
 0xc4a   :  { %v3073_v4 = vadd.f32 %v3072_v24, %v6532_v8 }
 0xc4c   :  { %v3080_v11 = vadd.f32 %v3073_v4, %v6543_v38 }
 0xc4e   :  { %v3088_v54 = vsel %vm852_vm7, %v3080_v11, 0.0 }
 0xc6a   :  { %v3229_v25 = vpop.f32.mrf.mxu2  ;;  %v3258_v59 = vpop.f32.mrf.mxu3 }
 0xc6b   :  { %v6655_v61 = vadd.f32 %v6652_v20, %v3229_v25  ;;  %v6667_v29 = vadd.f32 %v6660_v62, %v3258_v59 }
 0xc6d   :  { %3291 = vrot.lane.b32.xlu2 %v6655_v61, %s5234_s30 }
 0xc72   :  { %v3232_v19 = vpop.f32.mrf.mxu2  ;;  %v3261_v52 = vpop.f32.mrf.mxu3 }
 0xc73   :  { %v3281_v39 = vadd.f32 %v6652_v20, %v3232_v19  ;;  %v6664_v28 = vadd.f32 %v6660_v62, %v3261_v52 }
 0xc75   :  { %4959 = vmatpush.msk.msra.mxu1 %vm396_vm4, %v6664_v28  ;;  %3293 = vrot.lane.b32.xlu0 %v3281_v39, %s5234_s30 }
 0xc77   :  { %3400 = vmatpush.msra.mxu1 %v6667_v29 }
 0xc82   :  { %v3075_v2 = vpop.f32.mrf.mxu1 }
 0xc83   :  { %v3076_v48 = vadd.f32 %v3075_v2, %v6532_v8  ;;  %v3272_v8 = vadd.f32 %v6681_v9, %v3232_v19 }
 0xc85   :  { %v3081_v42 = vadd.f32 %v3076_v48, %v6562_v1  ;;  %v3271_v1 = vadd.f32 %v6681_v9, %v3229_v25 }
 0xc87   :  { %v3091_v5 = vsel %vm852_vm7, %v3081_v42, 0.0 }
 0xc88   :  { %3092 = vadd.xlane.f32.xlu1 %v3091_v5 }
 0xc9f   :  { %3089 = vadd.xlane.f32.xlu0 %v3088_v54 }
 0xcc7   :  { %v3292_v14 = vpop.permute.xlu2 %3291 }
 0xce7   :  { %v3294_v7 = vpop.permute.xlu0 %3293 }
 0xce8   :  { %4955 = vmatpush.xpose.msk.msrb.mxu0 %vm1768_vm10, %v3294_v7 }
 0xcec   :  { %4956 = vmatpush.xpose.msk.msrb.mxu0 %vm1768_vm10, %v3292_v14 }
 0xcef   :  { %4957 = vmatmul.msk.f32.vlgmr.msrb.gmra.mxu0 %vm1768_vm10, %v3271_v1 }
 0xcf7   :  { %4958 = vmatmul.msk.f32.gmra.mxu0 %vm1768_vm10, %v3272_v8 }
 0xcfb   :  { %v3093_v38 = vpop.xlane.xlu1 %3092 }
 0xcfc   :  { %v3097_v18 = vmul.f32 %v3093_v38, %v6442_v6 }
 0xcfe   :  { %v3101_v17 = vsub.f32 %v3081_v42, %v3097_v18 }
 0xd00   :  { %v3105_v15 = vmul.f32 %v3101_v17, %v3101_v17 }
 0xd02   :  { %v3115_v30 = vsel %vm852_vm7, %v3105_v15, 0.0 }
 0xd03   :  { %3116 = vadd.xlane.f32.xlu0 %v3115_v30 }
 0xd12   :  { %v3090_v36 = vpop.xlane.xlu0 %3089 }
 0xd13   :  { %v3096_v23 = vmul.f32 %v3090_v36, %v6442_v6 }
 0xd15   :  { %v3100_v41 = vsub.f32 %v3080_v11, %v3096_v23 }
 0xd17   :  { %3414 = vrot.lane.b32.xlu0 %v6655_v61, %s5236_s7  ;;  %v3104_v60 = vmul.f32 %v3100_v41, %v3100_v41 }
 0xd19   :  { %v3112_v63 = vsel %vm852_vm7, %v3104_v60, 0.0 }
 0xd1a   :  { %3113 = vadd.xlane.f32.xlu2 %v3112_v63 }
 0xd1f   :  { %3412 = vrot.lane.b32.xlu0 %v3272_v8, %s5235_s2 }
 0xd27   :  { %3548 = vrot.lane.b32.xlu0 %v6655_v61, %s5239_s22 }
 0xd2f   :  { %3677 = vrot.lane.b32.xlu0 %v3271_v1, %s5240_s23 }
 0xd6c   :  { %v6698_v16 = vpop.f32.mrf.mxu0 }
 0xd6d   :  { %v3328_v3 = vsel %vm1802_vm11, %v6698_v16, -inf }
 0xd6e   :  { %3329 = vmax.xlane.f32.xlu1 %v3328_v3 }
 0xd74   :  { %v6702_v26 = vpop.f32.mrf.mxu0 }
 0xd75   :  { %v3331_v27 = vsel %vm7313_vm13, %v6702_v26, -inf  ;;  %vm7315_vm13 = vmmov %vm7314_vm8 }
 0xd76   :  { %3332 = vmax.xlane.f32.xlu2 %v3331_v27  ;;  %v3117_v51 = vpop.xlane.xlu0 %3116 }
 0xd77   :  { %v3121_v12 = vmul.f32 %v3117_v51, %v6442_v6 }
 0xd79   :  { %v3125_v0 = vadd.f32 1e-05, %v3121_v12 }
 0xd7b   :  { %5142 = vrsqrt.f32 %v3125_v0  ;;  %vm3162_vm6 = vweird.f32 %v3125_v0 }
 0xd81   :  { %v5143_v31 = vpop.eup %5142 }
 0xd82   :  { %v3157_v37 = vmul.f32 %v5143_v31, %v3125_v0  ;;  %vm3163_vm9 = vweird.f32 %v5143_v31 }
 0xd83   :  { %vm3164_vm14 = vmor %vm3162_vm6, %vm3163_vm9 }
 0xd84   :  { %v3158_v22 = vmul.f32 %v5143_v31, %v3157_v37 }
 0xd86   :  { %v3159_v40 = vmul.f32 0.5, %v3158_v22 }
 0xd87   :  { %3410 = vrot.lane.b32.xlu1 %v3271_v1, %s5235_s2 }
 0xd88   :  { %v3160_v44 = vsub.f32 1.5, %v3159_v40 }
 0xd89   :  { %v3415_v52 = vpop.permute.xlu0 %3414 }
 0xd8a   :  { %v3161_v46 = vmul.f32 %v5143_v31, %v3160_v44 }
 0xd8c   :  { %v3165_v55 = vsel %vm3164_vm14, %v5143_v31, %v3161_v46 }
 0xd8d   :  { %v3114_v21 = vpop.xlane.xlu2 %3113  ;;  %v3169_v25 = vmul.f32 %v3165_v55, %v3101_v17 }
 0xd8e   :  { %v3120_v32 = vmul.f32 %v3114_v21, %v6442_v6  ;;  %3416 = vrot.lane.b32.xlu2 %v3281_v39, %s5236_s7 }
 0xd8f   :  { %3683 = vrot.lane.b32.xlu1 %v3281_v39, %s5237_s20 }
 0xd90   :  { %v3124_v33 = vadd.f32 1e-05, %v3120_v32 }
 0xd91   :  { %v3413_v48 = vpop.permute.xlu0 %3412 }
 0xd92   :  { %5144 = vrsqrt.f32 %v3124_v33  ;;  %vm3152_vm12 = vweird.f32 %v3124_v33 }
 0xd96   :  { %3550 = vrot.lane.b32.xlu2 %v3281_v39, %s5239_s22 }
 0xd97   :  { %3544 = vrot.lane.b32.xlu1 %v3271_v1, %s5238_s21 }
 0xd98   :  { %v5145_v34 = vpop.eup %5144 }
 0xd99   :  { %v3147_v56 = vmul.f32 %v5145_v34, %v3124_v33  ;;  %vm3153_vm3 = vweird.f32 %v5145_v34 }
 0xd9a   :  { %vm3154_vm2 = vmor %vm3152_vm12, %vm3153_vm3 }
 0xd9b   :  { %v3148_v43 = vmul.f32 %v5145_v34, %v3147_v56  ;;  %vm7316_vm3 = vmmov %vm7314_vm8 }
 0xd9d   :  { %v3149_v45 = vmul.f32 0.5, %v3148_v43 }
 0xd9e   :  { %3681 = vrot.lane.b32.xlu2 %v6655_v61, %s5237_s20  ;;  %v3174_v61 = vmul.f32 %v6628_v13, %v3169_v25 }
 0xd9f   :  { %v3150_v58 = vsub.f32 1.5, %v3149_v45  ;;  %3679 = vrot.lane.b32.xlu1 %v3272_v8, %s5240_s23 }
 0xda0   :  { %v6727_v19 = vadd.f32 %v6630_v10, %v3174_v61 }
 0xda1   :  { %v3151_v35 = vmul.f32 %v5145_v34, %v3150_v58 }
 0xda3   :  { %v3155_v47 = vsel %vm3154_vm2, %v5145_v34, %v3151_v35 }
 0xda4   :  { %v3168_v50 = vmul.f32 %v3155_v47, %v3100_v41 }
 0xda6   :  { %3546 = vrot.lane.b32.xlu2 %v3272_v8, %s5238_s21  ;;  %v3173_v57 = vmul.f32 %v6628_v13, %v3168_v50 }
 0xda8   :  { %v6719_v59 = vadd.f32 %v6630_v10, %v3173_v57  ;;  %v3549_v10 = vpop.permute.xlu0 %3548 }
 0xdaa   :  { %4949 = vmatmul.msk.f32.gmra.mxu2 %vm852_vm7, %v6719_v59  ;;  %4953 = vmatmul.msk.f32.gmra.mxu3 %vm852_vm7, %v6719_v59 }
 0xdb0   :  { %v3678_v11 = vpop.permute.xlu0 %3677 }
 0xdb2   :  { %4950 = vmatmul.msk.f32.gmra.mxu2 %vm852_vm7, %v6727_v19  ;;  %4954 = vmatmul.msk.f32.gmra.mxu3 %vm852_vm7, %v6727_v19 }
 0xde1   :  { %v3330_v24 = vpop.xlane.xlu1 %3329 }
 0xde9   :  { %v3333_v39 = vpop.xlane.xlu2 %3332 }
 0xdf1   :  { %v3417_v2 = vpop.permute.xlu2 %3416 }
 0xdf2   :  { %4962 = vmatpush.xpose.msk.msra.mxu2 %vm1768_vm10, %v3417_v2 }
 0xdf6   :  { %4963 = vmatpush.xpose.msk.msra.mxu2 %vm1768_vm10, %v3415_v52 }
 0xdf9   :  { %v3411_v42 = vpop.permute.xlu1 %3410  ;;  %v3551_v13 = vpop.permute.xlu2 %3550 }
 0xdfa   :  { %4964 = vmatmul.msk.f32.vlgmr.msra.gmra.mxu2 %vm1768_vm10, %v3411_v42  ;;  %4969 = vmatpush.xpose.msk.msrb.mxu1 %vm1768_vm10, %v3551_v13 }
 0xdfe   :  { %4970 = vmatpush.xpose.msk.msrb.mxu1 %vm1768_vm10, %v3549_v10 }
 0xe01   :  { %v3684_v5 = vpop.permute.xlu1 %3683  ;;  %v3682_v4 = vpop.permute.xlu2 %3681 }
 0xe02   :  { %4965 = vmatmul.msk.f32.gmra.mxu2 %vm1768_vm10, %v3413_v48  ;;  %4976 = vmatpush.xpose.msk.msra.mxu3 %vm1768_vm10, %v3684_v5 }
 0xe06   :  { %4977 = vmatpush.xpose.msk.msra.mxu3 %vm1768_vm10, %v3682_v4 }
 0xe09   :  { %v6741_v54 = vpop.permute.xlu1 %3544  ;;  %4978 = vmatmul.msk.f32.vlgmr.msra.gmra.mxu3 %vm1768_vm10, %v3678_v11  ;;  %v6785_v3 = vpop.permute.xlu2 %3546 }
 0xe11   :  { %v3680_v7 = vpop.permute.xlu1 %3679 }
 0xe12   :  { %4979 = vmatmul.msk.f32.gmra.mxu3 %vm1768_vm10, %v3680_v7 }
 0xe2d   :  { %v3235_v14 = vpop.f32.mrf.mxu2  ;;  %v6777_v63 = vpop.f32.mrf.mxu3 }
 0xe2e   :  { %v3282_v1 = vadd.f32 %v6652_v20, %v3235_v14  ;;  %v6756_v17 = vadd.f32 %v6681_v9, %v3235_v14 }
 0xe30   :  { %3812 = vrot.lane.b32.xlu1 %v3282_v1, %s5234_s30 }
 0xe35   :  { %v3238_v8 = vpop.f32.mrf.mxu2 }
 0xe36   :  { %v6748_v38 = vadd.f32 %v6681_v9, %v3238_v8  ;;  %v3283_v18 = vadd.f32 %v6652_v20, %v3238_v8  ;;  %v3334_v20 = vsub.f32 %v6698_v16, %v3330_v24  ;;  %v3335_v9 = vsub.f32 %v6702_v26, %v3333_v39  ;;  %v6780_v16 = vpop.f32.mrf.mxu3 }
 0xe38   :  { %3937 = vrot.lane.b32.xlu2 %v3283_v18, %s5236_s7  ;;  %3814 = vrot.lane.b32.xlu0 %v3283_v18, %s5234_s30  ;;  %v3336_v15 = vmul.f32 1.442695, %v3334_v20  ;;  %v3338_v30 = vmul.f32 1.442695, %v3335_v9 }
 0xe39   :  { %3933 = vrot.lane.b32.xlu1 %v6748_v38, %s5235_s2 }
 0xe3a   :  { %5146 = vpow2.f32 %v3336_v15 }
 0xe3b   :  { %5148 = vpow2.f32 %v3338_v30 }
 0xe40   :  { %3931 = vrot.lane.b32.xlu2 %v6756_v17, %s5235_s2  ;;  %3935 = vrot.lane.b32.xlu0 %v3282_v1, %s5236_s7  ;;  %v6769_v36 = vpop.eup %5146 }
 0xe41   :  { %4069 = vrot.lane.b32.xlu1 %v3282_v1, %s5239_s22  ;;  %v6771_v23 = vpop.eup %5148  ;;  %v3340_v41 = vsel %vm1802_vm11, %v6769_v36, 0.0 }
 0xe42   :  { %v3343_v60 = vsel %vm7314_vm8, %v6771_v23, 0.0 }
 0xe48   :  { %4204 = vrot.lane.b32.xlu2 %v3283_v18, %s5237_s20 }
 0xe50   :  { %4065 = vrot.lane.b32.xlu2 %v6756_v17, %s5238_s21 }
 0xe58   :  { %4200 = vrot.lane.b32.xlu2 %v6748_v38, %s5240_s23 }
 0xe6a   :  { %3341 = vadd.xlane.f32.xlu0 %v3340_v41 }
 0xe6b   :  { %3344 = vadd.xlane.f32.xlu1 %v3343_v60 }
 0xe7d   :  { %v6796_v21 = vpop.f32.mrf.mxu2 }
 0xe7e   :  { %4071 = vrot.lane.b32.xlu0 %v3283_v18, %s5239_s22  ;;  %v3449_v32 = vsel %vm1802_vm11, %v6796_v21, -inf }
 0xe84   :  { %4198 = vrot.lane.b32.xlu1 %v6756_v17, %s5240_s23 }
 0xe85   :  { %v6801_v34 = vpop.f32.mrf.mxu2 }
 0xe86   :  { %4202 = vrot.lane.b32.xlu0 %v3282_v1, %s5237_s20  ;;  %v3452_v56 = vsel %vm7316_vm3, %v6801_v34, -inf }
 0xe8c   :  { %v6787_v26 = vpop.f32.mrf.mxu3 }
 0xe8d   :  { %v3716_v40 = vsel %vm1802_vm11, %v6787_v26, -inf }
 0xe8e   :  { %4067 = vrot.lane.b32.xlu0 %v6748_v38, %s5238_s21 }
 0xe92   :  { %v3938_v27 = vpop.permute.xlu2 %3937 }
 0xe93   :  { %4990 = vmatpush.xpose.msk.msrb.mxu3 %vm1768_vm10, %v3938_v27 }
 0xe95   :  { %v6792_v51 = vpop.f32.mrf.mxu3 }
 0xe96   :  { %v3719_v12 = vsel %vm7315_vm13, %v6792_v51, -inf }
 0xe97   :  { %3720 = vmax.xlane.f32.xlu2 %v3719_v12 }
 0xe9a   :  { %v3932_v0 = vpop.permute.xlu2 %3931 }
 0xea2   :  { %v3813_v37 = vpop.permute.xlu1 %3812  ;;  %v4205_v22 = vpop.permute.xlu2 %4204 }
 0xeaa   :  { %v3815_v31 = vpop.permute.xlu0 %3814  ;;  %v4066_v20 = vpop.permute.xlu2 %4065 }
 0xeab   :  { %v3934_v43 = vpop.permute.xlu1 %3933 }
 0xeae   :  { %3450 = vmax.xlane.f32.xlu1 %v3449_v32 }
 0xeb2   :  { %v3936_v33 = vpop.permute.xlu0 %3935  ;;  %v4201_v15 = vpop.permute.xlu2 %4200 }
 0xeb3   :  { %4991 = vmatpush.xpose.msk.msrb.mxu3 %vm1768_vm10, %v3936_v33  ;;  %v4070_v44 = vpop.permute.xlu1 %4069 }
 0xeb6   :  { %3717 = vmax.xlane.f32.xlu1 %v3716_v40  ;;  %4992 = vmatmul.msk.f32.vlgmr.msrb.gmra.mxu3 %vm1768_vm10, %v3932_v0 }
 0xeb7   :  { %5004 = vmatpush.xpose.msk.msra.mxu3 %vm1768_vm10, %v4205_v22 }
 0xeb8   :  { %3453 = vmax.xlane.f32.xlu0 %v3452_v56 }
 0xebe   :  { %4993 = vmatmul.msk.f32.gmra.mxu3 %vm1768_vm10, %v3934_v43 }
 0xedd   :  { %v3342_v45 = vpop.xlane.xlu0 %3341 }
 0xede   :  { %5150 = vrcp.f32 %v3342_v45  ;;  %v3345_v58 = vpop.xlane.xlu1 %3344  ;;  %v3357_v57 = vand.u32 2147483648, %v3342_v45  ;;  %v3355_v52 = vand.u32 2147483647, %v3342_v45  ;;  %vm3351_vm12 = vweird.f32 %v3342_v45 }
 0xedf   :  { %5152 = vrcp.f32 %v3345_v58  ;;  %v3372_v10 = vand.u32 2147483648, %v3345_v58  ;;  %vm3366_vm8 = vweird.f32 %v3345_v58  ;;  %v3370_v4 = vand.u32 2147483647, %v3345_v58 }
 0xee0   :  { %v3358_v2 = vor.u32 1.1754944e-38, %v3357_v57  ;;  %vm3356_vm6 = vcmp.eq.f32.partialorder %v3355_v52, 8.507059e+37 }
 0xee1   :  { %v3373_v14 = vor.u32 1.1754944e-38, %v3372_v10  ;;  %vm3371_vm3 = vcmp.eq.f32.partialorder %v3370_v4, 8.507059e+37 }
 0xee4   :  { %v5151_v46 = vpop.eup %5150 }
 0xee5   :  { %v5153_v35 = vpop.eup %5152  ;;  %v3347_v47 = vmul.f32 %v5151_v46, %v3342_v45  ;;  %vm3352_vm9 = vweird.f32 %v5151_v46 }
 0xee6   :  { %v3362_v50 = vmul.f32 %v5153_v35, %v3345_v58  ;;  %vm3353_vm2 = vmor %vm3351_vm12, %vm3352_vm9  ;;  %vm3367_vm14 = vweird.f32 %v5153_v35  ;;  %vm7317_vm9 = vcmask 120832  }
 0xee7   :  { %v3348_v55 = vsub.f32 1.0, %v3347_v47  ;;  %vm3368_vm13 = vmor %vm3366_vm8, %vm3367_vm14 }
 0xee8   :  { %v3363_v25 = vsub.f32 1.0, %v3362_v50  ;;  %vm7318_vm12 = vmmov %vm7317_vm9 }
 0xee9   :  { %v3349_v61 = vmul.f32 %v5151_v46, %v3348_v55 }
 0xeea   :  { %v3364_v39 = vmul.f32 %v5153_v35, %v3363_v25  ;;  %v6883_v25 = vadd.f32 %v6660_v62, %v6780_v16 }
 0xeeb   :  { %v3350_v24 = vadd.f32 %v5151_v46, %v3349_v61 }
 0xeec   :  { %v3365_v42 = vadd.f32 %v5153_v35, %v3364_v39 }
 0xeed   :  { %v3354_v48 = vsel %vm3353_vm2, %v5151_v46, %v3350_v24  ;;  %vm7319_vm2 = vmmov %vm7317_vm9 }
 0xeee   :  { %v3359_v13 = vsel %vm3356_vm6, %v3358_v2, %v3354_v48  ;;  %v3369_v7 = vsel %vm3368_vm13, %v5153_v35, %v3365_v42  ;;  %vm7320_vm6 = vmmov %vm7319_vm2 }
 0xeef   :  { %v3360_v5 = vmul.f32 %v6769_v36, %v3359_v13  ;;  %v3374_v1 = vsel %vm3371_vm3, %v3373_v14, %v3369_v7  ;;  %vm7321_vm14 = vmmov %vm7319_vm2 }
 0xef0   :  { %v4072_v11 = vpop.permute.xlu0 %4071  ;;  %v3375_v8 = vmul.f32 %v6771_v23, %v3374_v1  ;;  %vm7322_vm8 = vmmov %vm7319_vm2 }
 0xef1   :  { %4960 = vmatmul.msk.f32.vlgmr.msra.gmra.mxu1 %vm1802_vm11, %v3360_v5  ;;  %vm7323_vm13 = vmmov %vm7319_vm2 }
 0xef2   :  { %4983 = vmatpush.xpose.msk.msra.mxu1 %vm1768_vm10, %v3815_v31 }
 0xef6   :  { %4984 = vmatpush.xpose.msk.msra.mxu1 %vm1768_vm10, %v3813_v37  ;;  %v4199_v9 = vpop.permute.xlu1 %4198 }
 0xef8   :  { %v4203_v18 = vpop.permute.xlu0 %4202 }
 0xef9   :  { %4961 = vmatmul.msk.f32.gmra.mxu1 %vm1802_vm11, %v3375_v8  ;;  %5005 = vmatpush.xpose.msk.msra.mxu3 %vm1768_vm10, %v4203_v18 }
 0xefc   :  { %5006 = vmatmul.msk.f32.vlgmr.msra.gmra.mxu3 %vm1768_vm10, %v4199_v9  ;;  %v6911_v9 = vadd.f32 %v6660_v62, %v6777_v63 }
 0xf00   :  { %v4068_v30 = vpop.permute.xlu0 %4067 }
 0xf01   :  { %4971 = vmatmul.msk.f32.vlgmr.msrb.gmra.mxu1 %vm1768_vm10, %v6741_v54 }
 0xf02   :  { %4997 = vmatpush.xpose.msk.msrb.mxu1 %vm1768_vm10, %v4072_v11 }
 0xf04   :  { %5007 = vmatmul.msk.f32.gmra.mxu3 %vm1768_vm10, %v4201_v15 }
 0xf06   :  { %4998 = vmatpush.xpose.msk.msrb.mxu1 %vm1768_vm10, %v4070_v44 }
 0xf09   :  { %4972 = vmatmul.msk.f32.gmra.mxu1 %vm1768_vm10, %v6785_v3 }
 0xf0a   :  { %v3721_v12 = vpop.xlane.xlu2 %3720 }
 0xf11   :  { %4985 = vmatmul.msk.f32.vlgmr.msra.gmra.mxu1 %vm1768_vm10, %v6756_v17 }
 0xf19   :  { %4986 = vmatmul.msk.f32.gmra.mxu1 %vm1768_vm10, %v6748_v38 }
 0xf21   :  { %4999 = vmatmul.msk.f32.vlgmr.msrb.gmra.mxu1 %vm1768_vm10, %v4066_v20  ;;  %v3451_v54 = vpop.xlane.xlu1 %3450 }
 0xf22   :  { %v3455_v36 = vsub.f32 %v6796_v21, %v3451_v54  ;;  %v3723_v21 = vsub.f32 %v6792_v51, %v3721_v12 }
 0xf24   :  { %v3457_v23 = vmul.f32 1.442695, %v3455_v36  ;;  %v3726_v31 = vmul.f32 1.442695, %v3723_v21 }
 0xf26   :  { %5154 = vpow2.f32 %v3457_v23 }
 0xf27   :  { %5156 = vpow2.f32 %v3726_v31 }
 0xf29   :  { %5000 = vmatmul.msk.f32.gmra.mxu1 %vm1768_vm10, %v4068_v30  ;;  %v3718_v33 = vpop.xlane.xlu1 %3717 }
 0xf2a   :  { %v3722_v40 = vsub.f32 %v6787_v26, %v3718_v33 }
 0xf2b   :  { %v3454_v43 = vpop.xlane.xlu0 %3453 }
 0xf2c   :  { %v6833_v3 = vpop.eup %5154  ;;  %v3724_v44 = vmul.f32 1.442695, %v3722_v40  ;;  %v3456_v45 = vsub.f32 %v6801_v34, %v3454_v43 }
 0xf2d   :  { %v3461_v38 = vsel %vm1802_vm11, %v6833_v3, 0.0  ;;  %v6849_v37 = vpop.eup %5156 }
 0xf2e   :  { %v3731_v51 = vsel %vm7318_vm12, %v6849_v37, 0.0  ;;  %5158 = vpow2.f32 %v3724_v44  ;;  %v3459_v35 = vmul.f32 1.442695, %v3456_v45 }
 0xf30   :  { %5160 = vpow2.f32 %v3459_v35 }
 0xf34   :  { %v6869_v50 = vpop.eup %5158 }
 0xf35   :  { %v3728_v34 = vsel %vm1802_vm11, %v6869_v50, 0.0 }
 0xf36   :  { %v6873_v55 = vpop.eup %5160 }
 0xf37   :  { %v3464_v57 = vsel %vm7321_vm14, %v6873_v55, 0.0  ;;  %vm7324_vm14 = vmmov %vm7320_vm6 }
 0xf39   :  { %v3964_v41 = vpop.f32.mrf.mxu3 }
 0xf3a   :  { %v3970_v60 = vsel %vm1802_vm11, %v3964_v41, -inf }
 0xf3b   :  { %3971 = vmax.xlane.f32.xlu0 %v3970_v60 }
 0xf41   :  { %v3967_v17 = vpop.f32.mrf.mxu3 }
 0xf42   :  { %v3973_v27 = vsel %vm7317_vm9, %v3967_v17, -inf }
 0xf43   :  { %3462 = vadd.xlane.f32.xlu0 %v3461_v38  ;;  %3974 = vmax.xlane.f32.xlu1 %v3973_v27 }
 0xf57   :  { %3631 = vrot.lane.b32.xlu0 %v6667_v29, %s5238_s21 }
 0xf5c   :  { %3500 = vrot.lane.b32.xlu1 %v6664_v28, %s5235_s2 }
 0xf64   :  { %3633 = vrot.lane.b32.xlu1 %v6664_v28, %s5238_s21 }
 0xf6c   :  { %3766 = vrot.lane.b32.xlu1 %v6664_v28, %s5240_s23 }
 0xf6e   :  { %v3402_v0 = vpop.f32.mrf.mxu1 }
 0xf6f   :  { %3408 = vst.msk [vmem:[#allocation4] sm:$0xff] %vm1768_vm10, %v3402_v0 }
 0xf76   :  { %v3405_v32 = vpop.f32.mrf.mxu1 }
 0xf77   :  { %3409 = vst.msk [vmem:[#allocation4 + $0x8] sm:$0x7f] %vm1885_vm5, %v3405_v32 }
 0xf7e   :  { %v6851_v22 = vpop.f32.mrf.mxu1 }
 0xf7f   :  { %v6854_v56 = vpop.f32.mrf.mxu3  ;;  %v3583_v20 = vsel %vm1802_vm11, %v6851_v22, -inf }
 0xf80   :  { %v4237_v28 = vsel %vm1802_vm11, %v6854_v56, -inf }
 0xf81   :  { %4238 = vmax.xlane.f32.xlu2 %v4237_v28  ;;  %3732 = vadd.xlane.f32.xlu0 %v3731_v51 }
 0xf86   :  { %v6861_v58 = vpop.f32.mrf.mxu1 }
 0xf87   :  { %v6863_v46 = vpop.f32.mrf.mxu3  ;;  %v3586_v26 = vsel %vm7319_vm2, %v6861_v58, -inf }
 0xf88   :  { %v4240_v47 = vsel %vm7320_vm6, %v6863_v46, -inf }
 0xf89   :  { %4241 = vmax.xlane.f32.xlu2 %v4240_v47  ;;  %3587 = vmax.xlane.f32.xlu0 %v3586_v26 }
 0xf8e   :  { %v6887_v52 = vpop.f32.mrf.mxu1 }
 0xf8f   :  { %v3849_v18 = vsel %vm1802_vm11, %v6887_v52, -inf }
 0xf91   :  { %3729 = vadd.xlane.f32.xlu2 %v3728_v34 }
 0xf96   :  { %3465 = vadd.xlane.f32.xlu1 %v3464_v57  ;;  %v6889_v42 = vpop.f32.mrf.mxu1 }
 0xf97   :  { %v3852_v26 = vsel %vm7320_vm6, %v6889_v42, -inf }
 0xf9d   :  { %3764 = vrot.lane.b32.xlu0 %v6667_v29, %s5240_s23 }
 0xf9e   :  { %v6895_v10 = vpop.f32.mrf.mxu1 }
 0xf9f   :  { %v4104_v11 = vsel %vm1802_vm11, %v6895_v10, -inf }
 0xfa6   :  { %v6916_v15 = vpop.f32.mrf.mxu1 }
 0xfa7   :  { %v4107_v30 = vsel %vm7323_vm13, %v6916_v15, -inf }
 0xfa9   :  { %3498 = vrot.lane.b32.xlu2 %v6667_v29, %s5235_s2 }
 0xfae   :  { %v3972_v2 = vpop.xlane.xlu0 %3971 }
 0xfaf   :  { %4021 = vrot.lane.b32.xlu1 %v6883_v25, %s5235_s2  ;;  %v3976_v48 = vsub.f32 %v3964_v41, %v3972_v2 }
 0xfb1   :  { %v3978_v29 = vmul.f32 1.442695, %v3976_v48 }
 0xfb6   :  { %v3975_v61 = vpop.xlane.xlu1 %3974  ;;  %v3463_v7 = vpop.xlane.xlu0 %3462 }
 0xfb7   :  { %v3977_v39 = vsub.f32 %v3967_v17, %v3975_v61  ;;  %v3478_v33 = vand.u32 2147483648, %v3463_v7  ;;  %vm3472_vm9 = vweird.f32 %v3463_v7  ;;  %v3476_v40 = vand.u32 2147483647, %v3463_v7 }
 0xfb9   :  { %v3980_v24 = vmul.f32 1.442695, %v3977_v39  ;;  %v3479_v51 = vor.u32 1.1754944e-38, %v3478_v33  ;;  %vm3477_vm2 = vcmp.eq.f32.partialorder %v3476_v40, 8.507059e+37 }
 0xfbb   :  { %5162 = vpow2.f32 %v3980_v24 }
 0xfbc   :  { %5164 = vpow2.f32 %v3978_v29 }
 0xfbd   :  { %5166 = vrcp.f32 %v3463_v7 }
 0xfc1   :  { %v6891_v13 = vpop.eup %5162 }
 0xfc2   :  { %v3985_v16 = vsel %vm7322_vm8, %v6891_v13, 0.0  ;;  %v6897_v5 = vpop.eup %5164 }
 0xfc3   :  { %v3982_v14 = vsel %vm1802_vm11, %v6897_v5, 0.0  ;;  %v5167_v54 = vpop.eup %5166 }
 0xfc4   :  { %v3468_v23 = vmul.f32 %v5167_v54, %v3463_v7  ;;  %vm3473_vm3 = vweird.f32 %v5167_v54 }
 0xfc5   :  { %vm3474_vm12 = vmor %vm3472_vm9, %vm3473_vm3 }
 0xfc6   :  { %v3469_v63 = vsub.f32 1.0, %v3468_v23 }
 0xfc7   :  { %3986 = vadd.xlane.f32.xlu0 %v3985_v16 }
 0xfc8   :  { %v3470_v27 = vmul.f32 %v5167_v54, %v3469_v63 }
 0xfc9   :  { %v3632_v8 = vpop.permute.xlu0 %3631 }
 0xfca   :  { %v3471_v32 = vadd.f32 %v5167_v54, %v3470_v27 }
 0xfcc   :  { %v3475_v28 = vsel %vm3474_vm12, %v5167_v54, %v3471_v32 }
 0xfcd   :  { %v3480_v45 = vsel %vm3477_vm2, %v3479_v51, %v3475_v28 }
 0xfce   :  { %v3501_v4 = vpop.permute.xlu1 %3500  ;;  %v3481_v34 = vmul.f32 %v6833_v3, %v3480_v45 }
 0xfcf   :  { %4966 = vmatpush.msk.msra.mxu0 %vm396_vm4, %v3501_v4  ;;  %4105 = vmax.xlane.f32.xlu0 %v4104_v11 }
 0xfd2   :  { %3983 = vadd.xlane.f32.xlu2 %v3982_v14 }
 0xfd6   :  { %v3634_v1 = vpop.permute.xlu1 %3633 }
 0xfd7   :  { %4973 = vmatpush.msk.msrb.mxu2 %vm396_vm4, %v3634_v1 }
 0xfd9   :  { %3850 = vmax.xlane.f32.xlu1 %v3849_v18  ;;  %3659 = vmatpush.msrb.mxu2 %v3632_v8 }
 0xfda   :  { %3584 = vmax.xlane.f32.xlu2 %v3583_v20 }
 0xfdb   :  { %4987 = vmatpush.msk.msra.mxu2 %vm396_vm4, %v6883_v25 }
 0xfdd   :  { %3921 = vmatpush.msra.mxu2 %v6911_v9 }
 0xfde   :  { %v3767_v21 = vpop.permute.xlu1 %3766 }
 0xfe1   :  { %4108 = vmax.xlane.f32.xlu1 %v4107_v30 }
 0xff4   :  { %v4239_v36 = vpop.xlane.xlu2 %4238  ;;  %v6923_v17 = vpop.xlane.xlu0 %3732 }
 0xff5   :  { %v4243_v41 = vsub.f32 %v6854_v56, %v4239_v36 }
 0xff7   :  { %v4245_v62 = vmul.f32 1.442695, %v4243_v41 }
 0xff9   :  { %5168 = vpow2.f32 %v4245_v62 }
 0xffa   :  { %4152 = vrot.lane.b32.xlu1 %v6911_v9, %s5238_s21 }
 0xffc   :  { %v4242_v60 = vpop.xlane.xlu2 %4241  ;;  %v6930_v43 = vpop.xlane.xlu0 %3587 }
 0xffd   :  { %v4244_v38 = vsub.f32 %v6863_v46, %v4242_v60 }
 0xfff   :  { %v4247_v12 = vmul.f32 1.442695, %v4244_v38  ;;  %v6926_v0 = vpop.eup %5168 }
0x1000   :  { %v4249_v31 = vsel %vm1802_vm11, %v6926_v0, 0.0 }
0x1001   :  { %5170 = vpow2.f32 %v4247_v12  ;;  %4250 = vadd.xlane.f32.xlu2 %v4249_v31 }
0x1004   :  { %v3730_v56 = vpop.xlane.xlu2 %3729 }
0x1005   :  { %5172 = vrcp.f32 %v3730_v56  ;;  %v3745_v54 = vand.u32 2147483648, %v3730_v56  ;;  %vm3739_vm2 = vweird.f32 %v3730_v56  ;;  %v3743_v23 = vand.u32 2147483647, %v3730_v56 }
0x1007   :  { %v6932_v44 = vpop.eup %5170  ;;  %v3746_v60 = vor.u32 1.1754944e-38, %v3745_v54 }
0x1008   :  { %v4252_v35 = vsel %vm7324_vm14, %v6932_v44, 0.0  ;;  %vm3744_vm14 = vcmp.eq.f32.partialorder %v3743_v23, 8.507059e+37 }
0x1009   :  { %v3466_v46 = vpop.xlane.xlu1 %3465  ;;  %3853 = vmax.xlane.f32.xlu2 %v3852_v26  ;;  %4253 = vadd.xlane.f32.xlu0 %v4252_v35 }
0x100a   :  { %5174 = vrcp.f32 %v3466_v46  ;;  %v3493_v11 = vand.u32 2147483648, %v3466_v46  ;;  %v3491_v3 = vand.u32 2147483647, %v3466_v46  ;;  %vm3487_vm13 = vweird.f32 %v3466_v46 }
0x100b   :  { %v5173_v47 = vpop.eup %5172  ;;  %5176 = vrcp.f32 %v6923_v17 }
0x100c   :  { %v3499_v57 = vpop.permute.xlu2 %3498  ;;  %v3735_v61 = vmul.f32 %v5173_v47, %v3730_v56  ;;  %v3494_v18 = vor.u32 1.1754944e-38, %v3493_v11  ;;  %vm3740_vm9 = vweird.f32 %v5173_v47  ;;  %vm3492_vm12 = vcmp.eq.f32.partialorder %v3491_v3, 8.507059e+37 }
0x100d   :  { %3526 = vmatpush.msra.mxu0 %v3499_v57  ;;  %vm3741_vm6 = vmor %vm3739_vm2, %vm3740_vm9 }
0x100e   :  { %4967 = vmatmul.msk.f32.vlgmr.msra.gmra.mxu0 %vm1802_vm11, %v3481_v34  ;;  %v3736_v48 = vsub.f32 1.0, %v3735_v61 }
0x100f   :  { %4980 = vmatpush.msk.msrb.mxu0 %vm396_vm4, %v3767_v21  ;;  %v3765_v39 = vpop.permute.xlu0 %3764  ;;  %v3760_v21 = vand.u32 2147483648, %v6923_v17 }
0x1010   :  { %v5175_v24 = vpop.eup %5174  ;;  %v3737_v7 = vmul.f32 %v5173_v47, %v3736_v48 }
0x1011   :  { %v5177_v2 = vpop.eup %5176  ;;  %v3483_v29 = vmul.f32 %v5175_v24, %v3466_v46  ;;  %3792 = vmatpush.msrb.mxu0 %v3765_v39  ;;  %vm3488_vm8 = vweird.f32 %v5175_v24  ;;  %v3761_v33 = vor.u32 1.1754944e-38, %v3760_v21 }
0x1012   :  { %v3750_v4 = vmul.f32 %v5177_v2, %v6923_v17  ;;  %vm3489_vm3 = vmor %vm3487_vm13, %vm3488_vm8  ;;  %v3738_v20 = vadd.f32 %v5173_v47, %v3737_v7  ;;  %vm3755_vm8 = vweird.f32 %v5177_v2  ;;  %vm3754_vm13 = vweird.f32 %v6923_v17 }
0x1013   :  { %v3484_v16 = vsub.f32 1.0, %v3483_v29 }
0x1014   :  { %v3751_v8 = vsub.f32 1.0, %v3750_v4  ;;  %v3742_v63 = vsel %vm3741_vm6, %v5173_v47, %v3738_v20 }
0x1015   :  { %v3485_v14 = vmul.f32 %v5175_v24, %v3484_v16  ;;  %v3747_v38 = vsel %vm3744_vm14, %v3746_v60, %v3742_v63 }
0x1016   :  { %v3752_v62 = vmul.f32 %v5177_v2, %v3751_v8  ;;  %v3748_v31 = vmul.f32 %v6869_v50, %v3747_v38 }
0x1017   :  { %v3486_v1 = vadd.f32 %v5175_v24, %v3485_v14 }
0x1018   :  { %v3753_v27 = vadd.f32 %v5177_v2, %v3752_v62 }
0x1019   :  { %v3490_v30 = vsel %vm3489_vm3, %v5175_v24, %v3486_v1  ;;  %vm3756_vm3 = vmor %vm3754_vm13, %vm3755_vm8 }
0x101a   :  { %v3495_v36 = vsel %vm3492_vm12, %v3494_v18, %v3490_v30  ;;  %v3757_v32 = vsel %vm3756_vm3, %v5177_v2, %v3753_v27  ;;  %vm7325_vm12 = vcmask 120832  }
0x101b   :  { %v3496_v41 = vmul.f32 %v6873_v55, %v3495_v36  ;;  %v3758_v55 = vand.u32 2147483647, %v6923_v17  ;;  %vm7326_vm2 = vmmov %vm7325_vm12 }
0x101d   :  { %4968 = vmatmul.msk.f32.gmra.mxu0 %vm1802_vm11, %v3496_v41  ;;  %vm3759_vm9 = vcmp.eq.f32.partialorder %v3758_v55, 8.507059e+37 }
0x101e   :  { %v3762_v40 = vsel %vm3759_vm9, %v3761_v33, %v3757_v32 }
0x101f   :  { %v3763_v56 = vmul.f32 %v6849_v37, %v3762_v40  ;;  %v3590_v37 = vsub.f32 %v6861_v58, %v6930_v43 }
0x1021   :  { %v4022_v12 = vpop.permute.xlu1 %4021  ;;  %4019 = vrot.lane.b32.xlu2 %v6911_v9, %s5235_s2  ;;  %v3593_v61 = vmul.f32 1.442695, %v3590_v37 }
0x1022   :  { %4994 = vmatpush.msk.msra.mxu0 %vm396_vm4, %v4022_v12 }
0x1025   :  { %4981 = vmatmul.msk.f32.vlgmr.msrb.gmra.mxu0 %vm1802_vm11, %v3748_v31 }
0x102d   :  { %4982 = vmatmul.msk.f32.gmra.mxu0 %vm1802_vm11, %v3763_v56 }
0x103a   :  { %v6955_v28 = vpop.xlane.xlu0 %3986 }
0x103b   :  { %v4014_v12 = vand.u32 2147483648, %v6955_v28  ;;  %vm4008_vm9 = vweird.f32 %v6955_v28  ;;  %v4012_v21 = vand.u32 2147483647, %v6955_v28 }
0x103d   :  { %v4015_v32 = vor.u32 1.1754944e-38, %v4014_v12 }
0x1042   :  { %v4106_v51 = vpop.xlane.xlu0 %4105 }
0x1043   :  { %v4110_v45 = vsub.f32 %v6895_v10, %v4106_v51 }
0x1045   :  { %v4112_v46 = vmul.f32 1.442695, %v4110_v45  ;;  %v3984_v17 = vpop.xlane.xlu2 %3983 }
0x1046   :  { %v3999_v54 = vand.u32 2147483648, %v3984_v17  ;;  %vm3993_vm14 = vweird.f32 %v3984_v17  ;;  %v3997_v36 = vand.u32 2147483647, %v3984_v17 }
0x1047   :  { %5178 = vpow2.f32 %v4112_v46 }
0x1048   :  { %v4000_v60 = vor.u32 1.1754944e-38, %v3999_v54  ;;  %vm3998_vm13 = vcmp.eq.f32.partialorder %v3997_v36, 8.507059e+37 }
0x104c   :  { %v3851_v50 = vpop.xlane.xlu1 %3850 }
0x104d   :  { %v6958_v26 = vpop.eup %5178  ;;  %v3585_v35 = vpop.xlane.xlu2 %3584  ;;  %v3855_v48 = vsub.f32 %v6887_v52, %v3851_v50 }
0x104e   :  { %v3589_v47 = vsub.f32 %v6851_v22, %v3585_v35  ;;  %v4116_v34 = vsel %vm1802_vm11, %v6958_v26, 0.0 }
0x104f   :  { %4117 = vadd.xlane.f32.xlu2 %v4116_v34  ;;  %v3857_v29 = vmul.f32 1.442695, %v3855_v48 }
0x1050   :  { %v3591_v57 = vmul.f32 1.442695, %v3589_v47 }
0x1052   :  { %5180 = vpow2.f32 %v3591_v57 }
0x1053   :  { %5182 = vpow2.f32 %v3593_v61 }
0x1054   :  { %v4109_v10 = vpop.xlane.xlu1 %4108 }
0x1055   :  { %v4111_v39 = vsub.f32 %v6916_v15, %v4109_v10 }
0x1057   :  { %v4114_v24 = vmul.f32 1.442695, %v4111_v39 }
0x1058   :  { %v6966_v2 = vpop.eup %5180 }
0x1059   :  { %5184 = vpow2.f32 %v4114_v24  ;;  %v3595_v22 = vsel %vm1802_vm11, %v6966_v2, 0.0  ;;  %v6971_v16 = vpop.eup %5182 }
0x105a   :  { %3596 = vadd.xlane.f32.xlu0 %v3595_v22  ;;  %5186 = vpow2.f32 %v3857_v29  ;;  %v3598_v43 = vsel %vm7326_vm2, %v6971_v16, 0.0  ;;  %vm4013_vm2 = vcmp.eq.f32.partialorder %v4012_v21, 8.507059e+37 }
0x105b   :  { %5188 = vrcp.f32 %v3984_v17 }
0x105c   :  { %5190 = vrcp.f32 %v6955_v28 }
0x105f   :  { %v6973_v58 = vpop.eup %5184 }
0x1060   :  { %v4119_v15 = vsel %vm7325_vm12, %v6973_v58, 0.0  ;;  %v6979_v52 = vpop.eup %5186 }
0x1061   :  { %4120 = vadd.xlane.f32.xlu2 %v4119_v15  ;;  %v3861_v4 = vsel %vm1802_vm11, %v6979_v52, 0.0  ;;  %v5189_v11 = vpop.eup %5188 }
0x1062   :  { %3599 = vadd.xlane.f32.xlu0 %v3598_v43  ;;  %v3989_v7 = vmul.f32 %v5189_v11, %v3984_v17  ;;  %v5191_v3 = vpop.eup %5190  ;;  %vm3994_vm6 = vweird.f32 %v5189_v11 }
0x1063   :  { %v4004_v8 = vmul.f32 %v5191_v3, %v6955_v28  ;;  %vm3995_vm8 = vmor %vm3993_vm14, %vm3994_vm6  ;;  %vm4009_vm3 = vweird.f32 %v5191_v3  ;;  %vm7327_vm6 = vcmask 120832  }
0x1064   :  { %v3990_v14 = vsub.f32 1.0, %v3989_v7  ;;  %vm4010_vm12 = vmor %vm4008_vm9, %vm4009_vm3 }
0x1065   :  { %v4005_v20 = vsub.f32 1.0, %v4004_v8 }
0x1066   :  { %v3991_v18 = vmul.f32 %v5189_v11, %v3990_v14 }
0x1067   :  { %v4006_v41 = vmul.f32 %v5191_v3, %v4005_v20 }
0x1068   :  { %v3992_v30 = vadd.f32 %v5189_v11, %v3991_v18 }
0x106a   :  { %3862 = vadd.xlane.f32.xlu0 %v3861_v4  ;;  %v3996_v62 = vsel %vm3995_vm8, %v5189_v11, %v3992_v30 }
0x106b   :  { %v4001_v27 = vsel %vm3998_vm13, %v4000_v60, %v3996_v62 }
0x106c   :  { %v4002_v55 = vmul.f32 %v6897_v5, %v4001_v27 }
0x1074   :  { %v6984_v1 = vpop.xlane.xlu2 %4250 }
0x1079   :  { %4285 = vrot.lane.b32.xlu2 %v6911_v9, %s5240_s23  ;;  %v4007_v9 = vadd.f32 %v5191_v3, %v4006_v41 }
0x107c   :  { %v3854_v23 = vpop.xlane.xlu2 %3853  ;;  %v7009_v17 = vpop.xlane.xlu0 %4253 }
0x107d   :  { %v3856_v63 = vsub.f32 %v6889_v42, %v3854_v23  ;;  %v4011_v42 = vsel %vm4010_vm12, %v5191_v3, %v4007_v9 }
0x107e   :  { %4154 = vrot.lane.b32.xlu0 %v6883_v25, %s5238_s21  ;;  %v4016_v56 = vsel %vm4013_vm2, %v4015_v32, %v4011_v42 }
0x107f   :  { %v3859_v38 = vmul.f32 1.442695, %v3856_v63  ;;  %v4017_v5 = vmul.f32 %v6891_v13, %v4016_v56 }
0x1081   :  { %5192 = vpow2.f32 %v3859_v38 }
0x1084   :  { %v4020_v31 = vpop.permute.xlu2 %4019 }
0x1085   :  { %4047 = vmatpush.msra.mxu0 %v4020_v31 }
0x1086   :  { %4995 = vmatmul.msk.f32.vlgmr.msra.gmra.mxu0 %vm1802_vm11, %v4002_v55 }
0x1087   :  { %v6997_v33 = vpop.eup %5192 }
0x1088   :  { %v3864_v40 = vsel %vm7327_vm6, %v6997_v33, 0.0 }
0x1089   :  { %3865 = vadd.xlane.f32.xlu1 %v3864_v40 }
0x108b   :  { %v3528_v51 = vpop.f32.mrf.mxu0 }
0x108c   :  { %3536 = vrot.lane.b32.xlu0 %v3528_v51, %s5237_s20 }
0x108e   :  { %4996 = vmatmul.msk.f32.gmra.mxu0 %vm1802_vm11, %v4017_v5 }
0x109a   :  { %v3531_v28 = vpop.f32.mrf.mxu0 }
0x109b   :  { %3538 = vrot.lane.b32.xlu0 %v3531_v28, %s5237_s20 }
0x10a2   :  { %v3794_v45 = vpop.f32.mrf.mxu0  ;;  %4287 = vrot.lane.b32.xlu1 %v6883_v25, %s5240_s23 }
0x10a3   :  { %3802 = vrot.lane.b32.xlu2 %v3794_v45, %s5236_s7 }
0x10aa   :  { %v3797_v46 = vpop.f32.mrf.mxu0 }
0x10ab   :  { %3804 = vrot.lane.b32.xlu2 %v3797_v46, %s5236_s7 }
0x10c2   :  { %v7018_v12 = vpop.xlane.xlu2 %4117 }
0x10cd   :  { %v3597_v50 = vpop.xlane.xlu0 %3596 }
0x10ce   :  { %5194 = vrcp.f32 %v3597_v50  ;;  %v3612_v37 = vand.u32 2147483648, %v3597_v50  ;;  %v3610_v61 = vand.u32 2147483647, %v3597_v50  ;;  %vm3606_vm8 = vweird.f32 %v3597_v50 }
0x10d0   :  { %v3613_v25 = vor.u32 1.1754944e-38, %v3612_v37  ;;  %vm3611_vm3 = vcmp.eq.f32.partialorder %v3610_v61, 8.507059e+37 }
0x10d4   :  { %v5195_v35 = vpop.eup %5194  ;;  %v7024_v55 = vpop.xlane.xlu2 %4120 }
0x10d5   :  { %v3602_v13 = vmul.f32 %v5195_v35, %v3597_v50  ;;  %v3600_v47 = vpop.xlane.xlu0 %3599  ;;  %vm3607_vm14 = vweird.f32 %v5195_v35 }
0x10d6   :  { %5196 = vrcp.f32 %v3600_v47  ;;  %vm3608_vm13 = vmor %vm3606_vm8, %vm3607_vm14  ;;  %v3627_v4 = vand.u32 2147483648, %v3600_v47  ;;  %v3625_v7 = vand.u32 2147483647, %v3600_v47  ;;  %vm3621_vm12 = vweird.f32 %v3600_v47 }
0x10d7   :  { %v3603_v34 = vsub.f32 1.0, %v3602_v13 }
0x10d8   :  { %v3628_v8 = vor.u32 1.1754944e-38, %v3627_v4  ;;  %vm3626_vm6 = vcmp.eq.f32.partialorder %v3625_v7, 8.507059e+37  ;;  %v4133_v7 = vand.u32 2147483648, %v7018_v12 }
0x10d9   :  { %v3604_v57 = vmul.f32 %v5195_v35, %v3603_v34 }
0x10db   :  { %v3605_v10 = vadd.f32 %v5195_v35, %v3604_v57 }
0x10dc   :  { %v5197_v39 = vpop.eup %5196 }
0x10dd   :  { %v3609_v24 = vsel %vm3608_vm13, %v5195_v35, %v3605_v10  ;;  %v3617_v48 = vmul.f32 %v5197_v39, %v3600_v47  ;;  %v3863_v22 = vpop.xlane.xlu0 %3862  ;;  %vm3622_vm9 = vweird.f32 %v5197_v39 }
0x10de   :  { %v3614_v29 = vsel %vm3611_vm3, %v3613_v25, %v3609_v24  ;;  %5198 = vrcp.f32 %v3863_v22  ;;  %vm3623_vm2 = vmor %vm3621_vm12, %vm3622_vm9  ;;  %v3876_v41 = vand.u32 2147483647, %v3863_v22  ;;  %vm3872_vm8 = vweird.f32 %v3863_v22 }
0x10df   :  { %v3615_v15 = vmul.f32 %v6966_v2, %v3614_v29  ;;  %v3618_v43 = vsub.f32 1.0, %v3617_v48  ;;  %v3878_v2 = vand.u32 2147483648, %v3863_v22  ;;  %5200 = vrcp.f32 %v6984_v1 }
0x10e0   :  { %vm3877_vm3 = vcmp.eq.f32.partialorder %v3876_v41, 8.507059e+37  ;;  %5202 = vrcp.f32 %v7018_v12 }
0x10e1   :  { %v3619_v11 = vmul.f32 %v5197_v39, %v3618_v43  ;;  %4974 = vmatmul.msk.f32.vlgmr.msrb.gmra.mxu2 %vm1802_vm11, %v3615_v15  ;;  %v3879_v63 = vor.u32 1.1754944e-38, %v3878_v2 }
0x10e3   :  { %v3620_v14 = vadd.f32 %v5197_v39, %v3619_v11  ;;  %v4266_v11 = vand.u32 2147483648, %v6984_v1 }
0x10e4   :  { %v5199_v3 = vpop.eup %5198 }
0x10e5   :  { %v3868_v18 = vmul.f32 %v5199_v3, %v3863_v22  ;;  %v3624_v20 = vsel %vm3623_vm2, %v5197_v39, %v3620_v14  ;;  %vm3873_vm14 = vweird.f32 %v5199_v3  ;;  %v7022_v21 = vpop.eup %5200 }
0x10e6   :  { %v3629_v30 = vsel %vm3626_vm6, %v3628_v8, %v3624_v20  ;;  %vm3874_vm13 = vmor %vm3872_vm8, %vm3873_vm14  ;;  %v7026_v31 = vpop.eup %5202  ;;  %v4256_v32 = vmul.f32 %v7022_v21, %v6984_v1  ;;  %vm4261_vm12 = vweird.f32 %v7022_v21  ;;  %v4264_v8 = vand.u32 2147483647, %v6984_v1 }
0x10e7   :  { %v3869_v54 = vsub.f32 1.0, %v3868_v18  ;;  %v3630_v36 = vmul.f32 %v6971_v16, %v3629_v30  ;;  %v4153_v16 = vpop.permute.xlu1 %4152  ;;  %v4123_v40 = vmul.f32 %v7026_v31, %v7018_v12  ;;  %vm4128_vm6 = vweird.f32 %v7026_v31 }
0x10e8   :  { %v4257_v5 = vsub.f32 1.0, %v4256_v32  ;;  %v4131_v18 = vand.u32 2147483647, %v7018_v12 }
0x10e9   :  { %v3870_v23 = vmul.f32 %v5199_v3, %v3869_v54  ;;  %4975 = vmatmul.msk.f32.gmra.mxu2 %vm1802_vm11, %v3630_v36  ;;  %v4124_v28 = vsub.f32 1.0, %v4123_v40 }
0x10ea   :  { %v4258_v13 = vmul.f32 %v7022_v21, %v4257_v5 }
0x10eb   :  { %v3871_v62 = vadd.f32 %v5199_v3, %v3870_v23  ;;  %v4125_v34 = vmul.f32 %v7026_v31, %v4124_v28  ;;  %v4134_v23 = vor.u32 1.1754944e-38, %v4133_v7 }
0x10ec   :  { %v4259_v24 = vadd.f32 %v7022_v21, %v4258_v13 }
0x10ed   :  { %v3875_v60 = vsel %vm3874_vm13, %v5199_v3, %v3871_v62  ;;  %v4126_v15 = vadd.f32 %v7026_v31, %v4125_v34  ;;  %vm4260_vm13 = vweird.f32 %v6984_v1  ;;  %v4267_v1 = vor.u32 1.1754944e-38, %v4266_v11 }
0x10ee   :  { %v3880_v38 = vsel %vm3877_vm3, %v3879_v63, %v3875_v60  ;;  %vm7057_vm3 = vmor %vm4260_vm13, %vm4261_vm12  ;;  %vm4265_vm12 = vcmp.eq.f32.partialorder %v4264_v8, 8.507059e+37  ;;  %vm4275_vm13 = vweird.f32 %v7009_v17 }
0x10ef   :  { %v3881_v27 = vmul.f32 %v6979_v52, %v3880_v38  ;;  %v4263_v30 = vsel %vm7057_vm3, %v7022_v21, %v4259_v24  ;;  %v4279_v38 = vand.u32 2147483647, %v7009_v17 }
0x10f0   :  { %v4155_v9 = vpop.permute.xlu0 %4154 }
0x10f1   :  { %4988 = vmatmul.msk.f32.vlgmr.msra.gmra.mxu2 %vm1802_vm11, %v3881_v27  ;;  %v4281_v27 = vand.u32 2147483648, %v7009_v17 }
0x10f2   :  { %5001 = vmatpush.msk.msrb.mxu2 %vm396_vm4, %v4155_v9  ;;  %v4148_v9 = vand.u32 2147483648, %v7024_v55 }
0x10f4   :  { %4180 = vmatpush.msrb.mxu2 %v4153_v16  ;;  %v4149_v32 = vor.u32 1.1754944e-38, %v4148_v9 }
0x10fc   :  { %v3866_v52 = vpop.xlane.xlu1 %3865 }
0x10fd   :  { %5204 = vrcp.f32 %v3866_v52  ;;  %v3893_v37 = vand.u32 2147483648, %v3866_v52  ;;  %v3891_v10 = vand.u32 2147483647, %v3866_v52  ;;  %vm3887_vm2 = vweird.f32 %v3866_v52 }
0x10fe   :  { %v3537_v42 = vpop.permute.xlu0 %3536  ;;  %5206 = vrcp.f32 %v7009_v17 }
0x10ff   :  { %3542 = vst.msk [vmem:[#allocation4] sm:$0xff] %vm2019_vm0, %v3537_v42  ;;  %5208 = vrcp.f32 %v7024_v55  ;;  %v3894_v22 = vor.u32 1.1754944e-38, %v3893_v37  ;;  %vm3892_vm8 = vcmp.eq.f32.partialorder %v3891_v10, 8.507059e+37  ;;  %v4282_v42 = vor.u32 1.1754944e-38, %v4281_v27  ;;  %v5013_v10 = vld [vmem:[%s7300_s10 + $0x50] sm:$0xff] }
0x1103   :  { %v4049_v56 = vpop.f32.mrf.mxu0  ;;  %v5205_v51 = vpop.eup %5204 }
0x1104   :  { %4057 = vrot.lane.b32.xlu0 %v4049_v56, %s5237_s20  ;;  %v7036_v45 = vpop.eup %5206  ;;  %v3883_v46 = vmul.f32 %v5205_v51, %v3866_v52  ;;  %vm3888_vm9 = vweird.f32 %v5205_v51  ;;  %v4286_v52 = vpop.permute.xlu2 %4285 }
0x1105   :  { %v7038_v50 = vpop.eup %5208  ;;  %v4271_v47 = vmul.f32 %v7036_v45, %v7009_v17  ;;  %vm3889_vm14 = vmor %vm3887_vm2, %vm3888_vm9  ;;  %vm4127_vm9 = vweird.f32 %v7018_v12 }
0x1106   :  { %v3884_v35 = vsub.f32 1.0, %v3883_v46  ;;  %v4138_v57 = vmul.f32 %v7038_v50, %v7024_v55  ;;  %vm4129_vm2 = vmor %vm4127_vm9, %vm4128_vm6  ;;  %vm4143_vm6 = vweird.f32 %v7038_v50  ;;  %vm4142_vm9 = vweird.f32 %v7024_v55  ;;  %v5016_v46 = vld [vmem:[%s7300_s10 + $0x68] sm:$0xff] }
0x1107   :  { %v4272_v48 = vsub.f32 1.0, %v4271_v47  ;;  %v4130_v36 = vsel %vm4129_vm2, %v7026_v31, %v4126_v15  ;;  %v4146_v31 = vand.u32 2147483647, %v7024_v55  ;;  %vm4144_vm2 = vmor %vm4142_vm9, %vm4143_vm6 }
0x1108   :  { %v3885_v61 = vmul.f32 %v5205_v51, %v3884_v35  ;;  %v4139_v43 = vsub.f32 1.0, %v4138_v57  ;;  %v5015_v57 = vld [vmem:[%s7300_s10 + $0x60] sm:$0xff] }
0x1109   :  { %v4273_v54 = vmul.f32 %v7036_v45, %v4272_v48 }
0x110a   :  { %v3886_v39 = vadd.f32 %v5205_v51, %v3885_v61  ;;  %v4140_v2 = vmul.f32 %v7038_v50, %v4139_v43  ;;  %v5014_v61 = vld [vmem:[%s7300_s10 + $0x58] sm:$0xff] }
0x110b   :  { %v4052_v25 = vpop.f32.mrf.mxu0  ;;  %v4274_v62 = vadd.f32 %v7036_v45, %v4273_v54 }
0x110c   :  { %4059 = vrot.lane.b32.xlu0 %v4052_v25, %s5237_s20  ;;  %v3890_v4 = vsel %vm3889_vm14, %v5205_v51, %v3886_v39  ;;  %vm4132_vm14 = vcmp.eq.f32.partialorder %v4131_v18, 8.507059e+37  ;;  %v4141_v63 = vadd.f32 %v7038_v50, %v4140_v2  ;;  %v5012_v39 = vld [vmem:[%s7300_s10 + $0x48] sm:$0xff]  ;;  %v5011_v25 = vld [vmem:[%s7300_s10 + $0x40] sm:$0xff]  ;;  %v3803_v24 = vpop.permute.xlu2 %3802  ;;  %v7150_v18 = vld [vmem:[%s7299_s13 + $0x10] sm:$0xff] }
0x110d   :  { %v3539_v29 = vpop.permute.xlu0 %3538  ;;  %v3895_v14 = vsel %vm3892_vm8, %v3894_v22, %v3890_v4  ;;  %vm4276_vm8 = vweird.f32 %v7036_v45  ;;  %v4135_v41 = vsel %vm4132_vm14, %v4134_v23, %v4130_v36 }
0x110e   :  { %3543 = vst.msk [vmem:[#allocation4 + $0x8] sm:$0x7f] %vm2021_vm15, %v3539_v29  ;;  %v3896_v20 = vmul.f32 %v6997_v33, %v3895_v14  ;;  %v4268_v33 = vsel %vm4265_vm12, %v4267_v1, %v4263_v30  ;;  %vm7084_vm3 = vmor %vm4275_vm13, %vm4276_vm8  ;;  %v4136_v21 = vmul.f32 %v6958_v26, %v4135_v41  ;;  %v4145_v17 = vsel %vm4144_vm2, %v7038_v50, %v4141_v63 }
0x110f   :  { %v4269_v16 = vmul.f32 %v6926_v0, %v4268_v33  ;;  %v4278_v0 = vsel %vm7084_vm3, %v7036_v45, %v4274_v62  ;;  %vm4147_vm12 = vcmp.eq.f32.partialorder %v4146_v31, 8.507059e+37 }
0x1110   :  { %4989 = vmatmul.msk.f32.gmra.mxu2 %vm1802_vm11, %v3896_v20  ;;  %v4150_v26 = vsel %vm4147_vm12, %v4149_v32, %v4145_v17  ;;  %v4344_v20 = vperm.slane %v7150_v18, 3 }
0x1111   :  { %v4151_v55 = vmul.f32 %v6973_v58, %v4150_v26  ;;  %v5017_v58 = vld [vmem:[%s7300_s10 + $0x70] sm:$0xff] }
0x1114   :  { %v4288_v60 = vpop.permute.xlu1 %4287  ;;  %v3805_v29 = vpop.permute.xlu2 %3804 }
0x1115   :  { %5008 = vmatpush.msk.msrb.mxu0 %vm396_vm4, %v4288_v60  ;;  %vm4280_vm4 = vcmp.eq.f32.partialorder %v4279_v38, 8.507059e+37 }
0x1116   :  { %v4283_v40 = vsel %vm4280_vm4, %v4282_v42, %v4278_v0 }
0x1117   :  { %4313 = vmatpush.msrb.mxu0 %v4286_v52  ;;  %v4284_v56 = vmul.f32 %v6932_v44, %v4283_v40  ;;  %v5018_v44 = vld [vmem:[%s7300_s10 + $0x78] sm:$0xff] }
0x1118   :  { %5002 = vmatmul.msk.f32.vlgmr.msrb.gmra.mxu2 %vm1802_vm11, %v4136_v21  ;;  %5009 = vmatmul.msk.f32.vlgmr.msrb.gmra.mxu0 %vm1802_vm11, %v4269_v16 }
0x1119   :  { %4365 = vmatpush.msra.mxu1 %v5018_v44 }
0x111b   :  { %4366 = vmatpush.msra.mxu1 %v5017_v58  ;;  %v5030_v58 = vld [vmem:[%s7301_s11 + $0x78] sm:$0xff] }
0x111c   :  { %4518 = vmatpush.msra.mxu2 %v5030_v58 }
0x111d   :  { %4367 = vmatpush.msra.mxu1 %v5016_v46  ;;  %v5029_v46 = vld [vmem:[%s7301_s11 + $0x70] sm:$0xff] }
0x111e   :  { %4519 = vmatpush.msra.mxu2 %v5029_v46 }
0x111f   :  { %4368 = vmatpush.msra.mxu1 %v5015_v57 }
0x1120   :  { %5003 = vmatmul.msk.f32.gmra.mxu2 %vm1802_vm11, %v4151_v55  ;;  %5010 = vmatmul.msk.f32.gmra.mxu0 %vm1802_vm11, %v4284_v56  ;;  %vm7333_vm11 = vcmask 523648  }
0x1121   :  { %4369 = vmatpush.msra.mxu1 %v5014_v61  ;;  %vm7337_vm14 = vmmov %vm7333_vm11 }
0x1123   :  { %4370 = vmatpush.msra.mxu1 %v5013_v10 }
0x1125   :  { %4371 = vmatpush.msra.mxu1 %v5012_v39 }
0x1127   :  { %4372 = vmatpush.msra.mxu1 %v5011_v25 }
0x1164   :  { %v3661_v51 = vpop.f32.mrf.mxu2 }
0x1165   :  { %3669 = vrot.lane.b32.xlu1 %v3661_v51, %s5239_s22 }
0x116c   :  { %v3664_v5 = vpop.f32.mrf.mxu2 }
0x116d   :  { %3671 = vrot.lane.b32.xlu1 %v3664_v5, %s5239_s22 }
0x1174   :  { %v3923_v28 = vpop.f32.mrf.mxu2 }
0x1175   :  { %3929 = vst.msk [vmem:[#allocation4 + $0x10] sm:$0xff] %vm1768_vm10, %v3923_v28  ;;  %vm7332_vm10 = vcmask 392448  }
0x1176   :  { %v4058_v45 = vpop.permute.xlu0 %4057 }
0x1177   :  { %4063 = vst.msk [vmem:[#allocation4 + $0x10] sm:$0xff] %vm2019_vm0, %v4058_v45  ;;  %vm7335_vm0 = vcmask 522624  }
0x1178   :  { %vm7339_vm6 = vmmov %vm7335_vm0 }
0x117e   :  { %v4060_v35 = vpop.permute.xlu0 %4059 }
0x1193   :  { %v3926_v50 = vpop.f32.mrf.mxu2 }
0x1194   :  { %3930 = vst.msk [vmem:[#allocation4 + $0x18] sm:$0x7f] %vm1885_vm5, %v3926_v50  ;;  %vm7334_vm5 = vcmask 391424   ;;  %v5028_v50 = vld [vmem:[%s7301_s11 + $0x68] sm:$0xff] }
0x1195   :  { %4064 = vst.msk [vmem:[#allocation4 + $0x18] sm:$0x7f] %vm2021_vm15, %v4060_v35  ;;  %v4315_v13 = vpop.f32.mrf.mxu0  ;;  %vm7336_vm15 = vmmov %vm7332_vm10  ;;  %4520 = vmatpush.msra.mxu2 %v5028_v50  ;;  %v5027_v35 = vld [vmem:[%s7301_s11 + $0x60] sm:$0xff] }
0x1196   :  { %4323 = vrot.lane.b32.xlu2 %v4315_v13, %s5236_s7  ;;  %vm7338_vm8 = vmmov %vm7334_vm5  ;;  %v5026_v13 = vld [vmem:[%s7301_s11 + $0x58] sm:$0xff] }
0x1197   :  { %4521 = vmatpush.msra.mxu2 %v5027_v35  ;;  %v5036_v35 = vld [vmem:[%s7302_s12 + $0x28] sm:$0xff] }
0x1199   :  { %4522 = vmatpush.msra.mxu2 %v5026_v13  ;;  %v5035_v13 = vld [vmem:[%s7302_s12 + $0x20] sm:$0xff] }
0x119b   :  { %v4182_v47 = vpop.f32.mrf.mxu2 }
0x119c   :  { %4190 = vrot.lane.b32.xlu1 %v4182_v47, %s5239_s22  ;;  %v5025_v47 = vld [vmem:[%s7301_s11 + $0x50] sm:$0xff] }
0x119d   :  { %v4318_v34 = vpop.f32.mrf.mxu0  ;;  %4523 = vmatpush.msra.mxu2 %v5025_v47 }
0x119e   :  { %4325 = vrot.lane.b32.xlu2 %v4318_v34, %s5236_s7  ;;  %v5024_v34 = vld [vmem:[%s7301_s11 + $0x48] sm:$0xff] }
0x119f   :  { %4524 = vmatpush.msra.mxu2 %v5024_v34 }
0x11a3   :  { %v4185_v37 = vpop.f32.mrf.mxu2 }
0x11a4   :  { %4192 = vrot.lane.b32.xlu1 %v4185_v37, %s5239_s22  ;;  %v5023_v37 = vld [vmem:[%s7301_s11 + $0x40] sm:$0xff] }
0x11a5   :  { %4525 = vmatpush.msra.mxu2 %v5023_v37 }
0x11d7   :  { %v3670_v48 = vpop.permute.xlu1 %3669 }
0x11d8   :  { %3675 = vst.msk [vmem:[#allocation4] sm:$0xff] %vm7332_vm10, %v3670_v48 }
0x11d9   :  { %3808 = vst.msk [vmem:[#allocation4] sm:$0xff] %vm7333_vm11, %v3803_v24 }
0x11df   :  { %v3672_v22 = vpop.permute.xlu1 %3671 }
0x11e0   :  { %3676 = vst.msk [vmem:[#allocation4 + $0x8] sm:$0x7f] %vm7334_vm5, %v3672_v22  ;;  %v4331_v15 = vld [vmem:[#allocation4] sm:$0xff] }
0x11e1   :  { %3809 = vst.msk [vmem:[#allocation4 + $0x8] sm:$0x7f] %vm7335_vm0, %v3805_v29  ;;  %5019 = vmatmul.msk.f32.vlgmr.msra.gmra.mxu1 %vm852_vm7, %v4331_v15 }
0x11e8   :  { %v4332_v43 = vld [vmem:[#allocation4 + $0x8] sm:$0xff] }
0x11e9   :  { %5020 = vmatmul.msk.f32.gmra.mxu1 %vm852_vm7, %v4332_v43 }
0x11f0   :  { %v4324_v4 = vpop.permute.xlu2 %4323 }
0x11f8   :  { %v4326_v14 = vpop.permute.xlu2 %4325 }
0x120e   :  { %v4191_v11 = vpop.permute.xlu1 %4190 }
0x120f   :  { %4196 = vst.msk [vmem:[#allocation4 + $0x10] sm:$0xff] %vm7336_vm15, %v4191_v11 }
0x1210   :  { %4329 = vst.msk [vmem:[#allocation4 + $0x10] sm:$0xff] %vm7337_vm14, %v4324_v4 }
0x1216   :  { %v4193_v7 = vpop.permute.xlu1 %4192 }
0x1217   :  { %4197 = vst.msk [vmem:[#allocation4 + $0x18] sm:$0x7f] %vm7338_vm8, %v4193_v7  ;;  %v4333_v3 = vld [vmem:[#allocation4 + $0x10] sm:$0xff] }
0x1218   :  { %4330 = vst.msk [vmem:[#allocation4 + $0x18] sm:$0x7f] %vm7339_vm6, %v4326_v14  ;;  %5021 = vmatmul.msk.f32.gmra.mxu1 %vm852_vm7, %v4333_v3  ;;  %v4478_v14 = vperm.slane %v7150_v18, 6 }
0x121f   :  { %v4334_v8 = vld [vmem:[#allocation4 + $0x18] sm:$0xff] }
0x1220   :  { %5022 = vmatmul.msk.f32.gmra.mxu1 %vm852_vm7, %v4334_v8 }
0x125e   :  { %v4374_v30 = vpop.f32.mrf.mxu1 }
0x125f   :  { %v4375_v54 = vadd.f32 %v4374_v30, %v4344_v20 }
0x1261   :  { %v4386_v36 = vadd.f32 %v4375_v54, %v6635_v53 }
0x1263   :  { %v4390_v2 = vsel %vm852_vm7, %v4386_v36, 0.0 }
0x1264   :  { %4391 = vadd.xlane.f32.xlu0 %v4390_v2 }
0x1266   :  { %v4377_v1 = vpop.f32.mrf.mxu1 }
0x1267   :  { %v4378_v23 = vadd.f32 %v4377_v1, %v4344_v20 }
0x1269   :  { %v4387_v33 = vadd.f32 %v4378_v23, %v6644_v49 }
0x126b   :  { %v4393_v41 = vsel %vm852_vm7, %v4387_v33, 0.0 }
0x126c   :  { %4394 = vadd.xlane.f32.xlu1 %v4393_v41 }
0x1295   :  { %v4380_v62 = vpop.f32.mrf.mxu1 }
0x1296   :  { %v4381_v63 = vadd.f32 %v4380_v62, %v4344_v20 }
0x1298   :  { %v4388_v60 = vadd.f32 %v4381_v63, %v6719_v59 }
0x129a   :  { %v4396_v38 = vsel %vm852_vm7, %v4388_v60, 0.0 }
0x129b   :  { %4397 = vadd.xlane.f32.xlu2 %v4396_v38 }
0x129d   :  { %v4383_v27 = vpop.f32.mrf.mxu1 }
0x129e   :  { %v4384_v9 = vadd.f32 %v4383_v27, %v4344_v20  ;;  %v4483_v20 = vperm.slane %v7150_v18, 7 }
0x12a0   :  { %v4389_v53 = vadd.f32 %v4384_v9, %v6727_v19  ;;  %v5038_v9 = vld [vmem:[%s7302_s12 + $0x38] sm:$0xff] }
0x12a1   :  { %4573 = vmatpush.msrb.mxu3 %v5038_v9 }
0x12a2   :  { %v4399_v16 = vsel %vm852_vm7, %v4389_v53, 0.0 }
0x12a3   :  { %4400 = vadd.xlane.f32.xlu2 %v4399_v16 }
0x12d7   :  { %v4392_v12 = vpop.xlane.xlu0 %4391 }
0x12d8   :  { %v4402_v49 = vmul.f32 %v4392_v12, %v6442_v6 }
0x12da   :  { %v4406_v21 = vsub.f32 %v4386_v36, %v4402_v49 }
0x12dc   :  { %v4410_v31 = vmul.f32 %v4406_v21, %v4406_v21 }
0x12de   :  { %v4414_v52 = vsel %vm852_vm7, %v4410_v31, 0.0 }
0x12df   :  { %4415 = vadd.xlane.f32.xlu0 %v4414_v52  ;;  %v4395_v17 = vpop.xlane.xlu1 %4394 }
0x12e0   :  { %v4403_v59 = vmul.f32 %v4395_v17, %v6442_v6 }
0x12e2   :  { %v7164_v0 = vsub.f32 %v4387_v33, %v4403_v59 }
0x12e4   :  { %v4411_v42 = vmul.f32 %v7164_v0, %v7164_v0 }
0x12e6   :  { %v4417_v19 = vsel %vm852_vm7, %v4411_v42, 0.0 }
0x12e7   :  { %4418 = vadd.xlane.f32.xlu1 %v4417_v19 }
0x130e   :  { %v4398_v32 = vpop.xlane.xlu2 %4397 }
0x130f   :  { %v4404_v26 = vmul.f32 %v4398_v32, %v6442_v6 }
0x1311   :  { %v7170_v40 = vsub.f32 %v4388_v60, %v4404_v26 }
0x1313   :  { %v4412_v55 = vmul.f32 %v7170_v40, %v7170_v40 }
0x1315   :  { %v4420_v56 = vsel %vm852_vm7, %v4412_v55, 0.0 }
0x1316   :  { %4421 = vadd.xlane.f32.xlu2 %v4420_v56  ;;  %v4401_v51 = vpop.xlane.xlu2 %4400 }
0x1317   :  { %v4405_v5 = vmul.f32 %v4401_v51, %v6442_v6 }
0x1319   :  { %v7176_v28 = vsub.f32 %v4389_v53, %v4405_v5 }
0x131b   :  { %v4413_v45 = vmul.f32 %v7176_v28, %v7176_v28 }
0x131d   :  { %v4423_v44 = vsel %vm852_vm7, %v4413_v45, 0.0 }
0x131e   :  { %4424 = vadd.xlane.f32.xlu0 %v4423_v44 }
0x1352   :  { %v4416_v57 = vpop.xlane.xlu0 %4415 }
0x1353   :  { %v4426_v61 = vmul.f32 %v4416_v57, %v6442_v6 }
0x1355   :  { %v4430_v10 = vadd.f32 1e-05, %v4426_v61 }
0x1357   :  { %5210 = vrsqrt.f32 %v4430_v10  ;;  %vm4440_vm3 = vweird.f32 %v4430_v10 }
0x135a   :  { %v4419_v39 = vpop.xlane.xlu1 %4418 }
0x135b   :  { %v4427_v25 = vmul.f32 %v4419_v39, %v6442_v6 }
0x135d   :  { %v5211_v24 = vpop.eup %5210  ;;  %v4431_v48 = vadd.f32 1e-05, %v4427_v25 }
0x135e   :  { %v4435_v22 = vmul.f32 %v5211_v24, %v4430_v10  ;;  %vm4441_vm13 = vweird.f32 %v5211_v24 }
0x135f   :  { %5212 = vrsqrt.f32 %v4431_v48  ;;  %vm4442_vm9 = vmor %vm4440_vm3, %vm4441_vm13  ;;  %vm4450_vm4 = vweird.f32 %v4431_v48 }
0x1360   :  { %v4436_v29 = vmul.f32 %v5211_v24, %v4435_v22 }
0x1362   :  { %v4437_v15 = vmul.f32 0.5, %v4436_v29 }
0x1364   :  { %v4438_v43 = vsub.f32 1.5, %v4437_v15  ;;  %v4548_v15 = vperm.slane %v7150_v18, 5 }
0x1365   :  { %v5213_v4 = vpop.eup %5212 }
0x1366   :  { %v4439_v11 = vmul.f32 %v5211_v24, %v4438_v43  ;;  %v4445_v7 = vmul.f32 %v5213_v4, %v4431_v48  ;;  %vm4451_vm2 = vweird.f32 %v5213_v4 }
0x1367   :  { %vm4452_vm12 = vmor %vm4450_vm4, %vm4451_vm2 }
0x1368   :  { %v4443_v3 = vsel %vm4442_vm9, %v5211_v24, %v4439_v11  ;;  %v4446_v8 = vmul.f32 %v5213_v4, %v4445_v7 }
0x1369   :  { %v4474_v30 = vmul.f32 %v4443_v3, %v4406_v21 }
0x136a   :  { %v4447_v54 = vmul.f32 0.5, %v4446_v8 }
0x136b   :  { %v4479_v36 = vmul.f32 %v4478_v14, %v4474_v30 }
0x136c   :  { %v4448_v2 = vsub.f32 1.5, %v4447_v54 }
0x136d   :  { %v7209_v1 = vadd.f32 %v4483_v20, %v4479_v36 }
0x136e   :  { %v4449_v23 = vmul.f32 %v5213_v4, %v4448_v2 }
0x136f   :  { %5031 = vmatmul.msk.f32.vlgmr.msra.gmra.mxu2 %vm852_vm7, %v7209_v1 }
0x1370   :  { %v4453_v33 = vsel %vm4452_vm12, %v5213_v4, %v4449_v23 }
0x1371   :  { %v4475_v41 = vmul.f32 %v4453_v33, %v7164_v0 }
0x1373   :  { %v4480_v62 = vmul.f32 %v4478_v14, %v4475_v41 }
0x1375   :  { %v7214_v63 = vadd.f32 %v4483_v20, %v4480_v62 }
0x1377   :  { %5032 = vmatmul.msk.f32.gmra.mxu2 %vm852_vm7, %v7214_v63 }
0x1389   :  { %v4422_v60 = vpop.xlane.xlu2 %4421 }
0x138a   :  { %v4428_v38 = vmul.f32 %v4422_v60, %v6442_v6 }
0x138c   :  { %v4432_v27 = vadd.f32 1e-05, %v4428_v38 }
0x138e   :  { %5214 = vrsqrt.f32 %v4432_v27  ;;  %vm4460_vm11 = vweird.f32 %v4432_v27 }
0x1391   :  { %v4425_v53 = vpop.xlane.xlu0 %4424 }
0x1392   :  { %v4429_v16 = vmul.f32 %v4425_v53, %v6442_v6 }
0x1394   :  { %v5215_v12 = vpop.eup %5214  ;;  %v4433_v49 = vadd.f32 1e-05, %v4429_v16 }
0x1395   :  { %v4455_v21 = vmul.f32 %v5215_v12, %v4432_v27  ;;  %vm4461_vm10 = vweird.f32 %v5215_v12 }
0x1396   :  { %5216 = vrsqrt.f32 %v4433_v49  ;;  %vm4462_vm5 = vmor %vm4460_vm11, %vm4461_vm10  ;;  %vm4470_vm15 = vweird.f32 %v4433_v49 }
0x1397   :  { %v4456_v31 = vmul.f32 %v5215_v12, %v4455_v21 }
0x1399   :  { %v4457_v52 = vmul.f32 0.5, %v4456_v31 }
0x139b   :  { %v4458_v17 = vsub.f32 1.5, %v4457_v52 }
0x139c   :  { %v5217_v59 = vpop.eup %5216 }
0x139d   :  { %v4459_v0 = vmul.f32 %v5215_v12, %v4458_v17  ;;  %v4465_v42 = vmul.f32 %v5217_v59, %v4433_v49  ;;  %vm4471_vm0 = vweird.f32 %v5217_v59 }
0x139e   :  { %vm4472_vm14 = vmor %vm4470_vm15, %vm4471_vm0 }
0x139f   :  { %v4463_v19 = vsel %vm4462_vm5, %v5215_v12, %v4459_v0  ;;  %v4466_v32 = vmul.f32 %v5217_v59, %v4465_v42 }
0x13a0   :  { %v4476_v26 = vmul.f32 %v4463_v19, %v7170_v40  ;;  %v5037_v40 = vld [vmem:[%s7302_s12 + $0x30] sm:$0xff] }
0x13a1   :  { %v4467_v55 = vmul.f32 0.5, %v4466_v32  ;;  %4574 = vmatpush.msrb.mxu3 %v5037_v40  ;;  %v4930_v40 = vld [vmem:[%s7299_s13 + $0x18] sm:$0x3] }
0x13a2   :  { %v4481_v56 = vmul.f32 %v4478_v14, %v4476_v26 }
0x13a3   :  { %v4468_v51 = vsub.f32 1.5, %v4467_v55  ;;  %4575 = vmatpush.msrb.mxu3 %v5036_v35 }
0x13a4   :  { %v4486_v5 = vadd.f32 %v4483_v20, %v4481_v56 }
0x13a5   :  { %v4469_v45 = vmul.f32 %v5217_v59, %v4468_v51  ;;  %4576 = vmatpush.msrb.mxu3 %v5035_v13 }
0x13a6   :  { %5033 = vmatmul.msk.f32.gmra.mxu2 %vm852_vm7, %v4486_v5 }
0x13a7   :  { %v4473_v44 = vsel %vm4472_vm14, %v5217_v59, %v4469_v45 }
0x13a8   :  { %v4477_v58 = vmul.f32 %v4473_v44, %v7176_v28  ;;  %v4497_v28 = vperm.slane %v7150_v18, 4 }
0x13aa   :  { %v4482_v46 = vmul.f32 %v4478_v14, %v4477_v58 }
0x13ac   :  { %v4487_v50 = vadd.f32 %v4483_v20, %v4482_v46 }
0x13ae   :  { %5034 = vmatmul.msk.f32.gmra.mxu2 %vm852_vm7, %v4487_v50 }
0x13f2   :  { %v4527_v47 = vpop.f32.mrf.mxu2 }
0x13f3   :  { %v4528_v34 = vadd.f32 %v4527_v47, %v4497_v28 }
0x13f5   :  { %v4539_v37 = vmax.f32 %v4528_v34, 0.0  ;;  %v4682_v34 = vperm.slane %v4930_v40, 0 }
0x13f7   :  { %5039 = vmatmul.msk.f32.vlgmr.msrb.gmra.mxu3 %vm3036_vm1, %v4539_v37 }
0x13fa   :  { %v4530_v57 = vpop.f32.mrf.mxu2 }
0x13fb   :  { %v4531_v61 = vadd.f32 %v4530_v57, %v4497_v28 }
0x13fd   :  { %v4540_v10 = vmax.f32 %v4531_v61, 0.0  ;;  %v4687_v61 = vperm.slane %v4930_v40, 1 }
0x13ff   :  { %5040 = vmatmul.msk.f32.gmra.mxu3 %vm3036_vm1, %v4540_v10 }
0x1429   :  { %v4533_v39 = vpop.f32.mrf.mxu2 }
0x142a   :  { %v4534_v25 = vadd.f32 %v4533_v39, %v4497_v28 }
0x142c   :  { %v4541_v24 = vmax.f32 %v4534_v25, 0.0 }
0x142e   :  { %5041 = vmatmul.msk.f32.gmra.mxu3 %vm3036_vm1, %v4541_v24 }
0x1431   :  { %v4536_v48 = vpop.f32.mrf.mxu2 }
0x1432   :  { %v4537_v22 = vadd.f32 %v4536_v48, %v4497_v28 }
0x1434   :  { %v4542_v29 = vmax.f32 %v4537_v22, 0.0 }
0x1436   :  { %5042 = vmatmul.msk.f32.gmra.mxu3 %vm3036_vm1, %v4542_v29 }
0x147a   :  { %v4578_v43 = vpop.f32.mrf.mxu3 }
0x147b   :  { %v4579_v4 = vadd.f32 %v4578_v43, %v4548_v15 }
0x147d   :  { %v4590_v11 = vadd.f32 %v4579_v4, %v7209_v1 }
0x147f   :  { %v4594_v7 = vsel %vm852_vm7, %v4590_v11, 0.0 }
0x1480   :  { %4595 = vadd.xlane.f32.xlu1 %v4594_v7 }
0x1482   :  { %v4581_v14 = vpop.f32.mrf.mxu3 }
0x1483   :  { %v4582_v3 = vadd.f32 %v4581_v14, %v4548_v15 }
0x1485   :  { %v4591_v8 = vadd.f32 %v4582_v3, %v7214_v63 }
0x1487   :  { %v4597_v20 = vsel %vm852_vm7, %v4591_v8, 0.0 }
0x1488   :  { %4598 = vadd.xlane.f32.xlu2 %v4597_v20 }
0x14b1   :  { %v4584_v30 = vpop.f32.mrf.mxu3 }
0x14b2   :  { %v4585_v54 = vadd.f32 %v4584_v30, %v4548_v15 }
0x14b4   :  { %v4592_v36 = vadd.f32 %v4585_v54, %v4486_v5 }
0x14b6   :  { %v4600_v2 = vsel %vm852_vm7, %v4592_v36, 0.0 }
0x14b7   :  { %4601 = vadd.xlane.f32.xlu0 %v4600_v2 }
0x14b9   :  { %v4587_v18 = vpop.f32.mrf.mxu3 }
0x14ba   :  { %v4588_v23 = vadd.f32 %v4587_v18, %v4548_v15 }
0x14bc   :  { %v4593_v33 = vadd.f32 %v4588_v23, %v4487_v50 }
0x14be   :  { %v4603_v1 = vsel %vm852_vm7, %v4593_v33, 0.0 }
0x14bf   :  { %4604 = vadd.xlane.f32.xlu1 %v4603_v1 }
0x14f3   :  { %v4596_v41 = vpop.xlane.xlu1 %4595 }
0x14f4   :  { %v4606_v62 = vmul.f32 %v4596_v41, %v6442_v6 }
0x14f6   :  { %v4610_v60 = vsub.f32 %v4590_v11, %v4606_v62 }
0x14f8   :  { %v4614_v63 = vmul.f32 %v4610_v60, %v4610_v60 }
0x14fa   :  { %v4618_v38 = vsel %vm852_vm7, %v4614_v63, 0.0 }
0x14fb   :  { %4619 = vadd.xlane.f32.xlu2 %v4618_v38  ;;  %v4599_v27 = vpop.xlane.xlu2 %4598 }
0x14fc   :  { %v4607_v9 = vmul.f32 %v4599_v27, %v6442_v6 }
0x14fe   :  { %v4611_v53 = vsub.f32 %v4591_v8, %v4607_v9 }
0x1500   :  { %v4615_v16 = vmul.f32 %v4611_v53, %v4611_v53 }
0x1502   :  { %v4621_v12 = vsel %vm852_vm7, %v4615_v16, 0.0 }
0x1503   :  { %4622 = vadd.xlane.f32.xlu0 %v4621_v12 }
0x152a   :  { %v4602_v49 = vpop.xlane.xlu0 %4601 }
0x152b   :  { %v4608_v21 = vmul.f32 %v4602_v49, %v6442_v6 }
0x152d   :  { %v7253_v31 = vsub.f32 %v4592_v36, %v4608_v21 }
0x152f   :  { %v4616_v52 = vmul.f32 %v7253_v31, %v7253_v31 }
0x1531   :  { %v4624_v17 = vsel %vm852_vm7, %v4616_v52, 0.0 }
0x1532   :  { %v4605_v59 = vpop.xlane.xlu1 %4604  ;;  %4625 = vadd.xlane.f32.xlu1 %v4624_v17 }
0x1533   :  { %v4609_v0 = vmul.f32 %v4605_v59, %v6442_v6 }
0x1535   :  { %v7259_v42 = vsub.f32 %v4593_v33, %v4609_v0 }
0x1537   :  { %v4617_v19 = vmul.f32 %v7259_v42, %v7259_v42 }
0x1539   :  { %v4627_v32 = vsel %vm852_vm7, %v4617_v19, 0.0 }
0x153a   :  { %4628 = vadd.xlane.f32.xlu2 %v4627_v32 }
0x156e   :  { %v4620_v26 = vpop.xlane.xlu2 %4619 }
0x156f   :  { %v4630_v55 = vmul.f32 %v4620_v26, %v6442_v6 }
0x1571   :  { %v4634_v56 = vadd.f32 1e-05, %v4630_v55 }
0x1573   :  { %5218 = vrsqrt.f32 %v4634_v56  ;;  %vm4644_vm8 = vweird.f32 %v4634_v56 }
0x1576   :  { %v4623_v51 = vpop.xlane.xlu0 %4622 }
0x1577   :  { %v4631_v5 = vmul.f32 %v4623_v51, %v6442_v6 }
0x1579   :  { %v5219_v45 = vpop.eup %5218  ;;  %v4635_v44 = vadd.f32 1e-05, %v4631_v5 }
0x157a   :  { %v4639_v58 = vmul.f32 %v5219_v45, %v4634_v56  ;;  %vm4645_vm1 = vweird.f32 %v5219_v45 }
0x157b   :  { %5220 = vrsqrt.f32 %v4635_v44  ;;  %vm4646_vm6 = vmor %vm4644_vm8, %vm4645_vm1  ;;  %vm4654_vm3 = vweird.f32 %v4635_v44 }
0x157c   :  { %v4640_v46 = vmul.f32 %v5219_v45, %v4639_v58 }
0x157e   :  { %v4641_v50 = vmul.f32 0.5, %v4640_v46 }
0x1580   :  { %v4642_v35 = vsub.f32 1.5, %v4641_v50 }
0x1581   :  { %v5221_v13 = vpop.eup %5220 }
0x1582   :  { %v4643_v28 = vmul.f32 %v5219_v45, %v4642_v35  ;;  %v4649_v47 = vmul.f32 %v5221_v13, %v4635_v44  ;;  %vm4655_vm13 = vweird.f32 %v5221_v13 }
0x1583   :  { %vm4656_vm9 = vmor %vm4654_vm3, %vm4655_vm13 }
0x1584   :  { %v4647_v37 = vsel %vm4646_vm6, %v5219_v45, %v4643_v28  ;;  %v4650_v57 = vmul.f32 %v5221_v13, %v4649_v47 }
0x1585   :  { %v4678_v10 = vmul.f32 %v4647_v37, %v4610_v60 }
0x1586   :  { %v4651_v39 = vmul.f32 0.5, %v4650_v57 }
0x1587   :  { %v4683_v25 = vmul.f32 %v4682_v34, %v4678_v10 }
0x1588   :  { %v4652_v24 = vsub.f32 1.5, %v4651_v39 }
0x1589   :  { %v4688_v48 = vadd.f32 %v4687_v61, %v4683_v25 }
0x158a   :  { %v4653_v22 = vmul.f32 %v5221_v13, %v4652_v24 }
0x158b   :  { %4692 = vst.msk [vmem:[%s7303_s14] sm:$0xff] %vm852_vm7, %v4688_v48 }
0x158c   :  { %v4657_v29 = vsel %vm4656_vm9, %v5221_v13, %v4653_v22 }
0x158d   :  { %v4679_v15 = vmul.f32 %v4657_v29, %v4611_v53 }
0x158f   :  { %v4684_v43 = vmul.f32 %v4682_v34, %v4679_v15 }
0x1591   :  { %v4689_v4 = vadd.f32 %v4687_v61, %v4684_v43 }
0x1593   :  { %4693 = vst.msk [vmem:[%s7303_s14 + $0x8] sm:$0xff] %vm852_vm7, %v4689_v4 }
0x15a5   :  { %v4626_v11 = vpop.xlane.xlu1 %4625 }
0x15a6   :  { %v4632_v7 = vmul.f32 %v4626_v11, %v6442_v6 }
0x15a8   :  { %v4636_v14 = vadd.f32 1e-05, %v4632_v7 }
0x15aa   :  { %5222 = vrsqrt.f32 %v4636_v14  ;;  %vm4664_vm4 = vweird.f32 %v4636_v14 }
0x15ad   :  { %v4629_v3 = vpop.xlane.xlu2 %4628 }
0x15ae   :  { %v4633_v8 = vmul.f32 %v4629_v3, %v6442_v6 }
0x15b0   :  { %v5223_v20 = vpop.eup %5222  ;;  %v4637_v30 = vadd.f32 1e-05, %v4633_v8 }
0x15b1   :  { %v4659_v54 = vmul.f32 %v5223_v20, %v4636_v14  ;;  %vm4665_vm2 = vweird.f32 %v5223_v20 }
0x15b2   :  { %5224 = vrsqrt.f32 %v4637_v30  ;;  %vm4666_vm12 = vmor %vm4664_vm4, %vm4665_vm2  ;;  %vm4674_vm11 = vweird.f32 %v4637_v30 }
0x15b3   :  { %v4660_v36 = vmul.f32 %v5223_v20, %v4659_v54 }
0x15b5   :  { %v4661_v2 = vmul.f32 0.5, %v4660_v36 }
0x15b7   :  { %v4662_v18 = vsub.f32 1.5, %v4661_v2 }
0x15b8   :  { %v5225_v23 = vpop.eup %5224 }
0x15b9   :  { %v4663_v33 = vmul.f32 %v5223_v20, %v4662_v18  ;;  %v4669_v1 = vmul.f32 %v5225_v23, %v4637_v30  ;;  %vm4675_vm10 = vweird.f32 %v5225_v23 }
0x15ba   :  { %vm4676_vm5 = vmor %vm4674_vm11, %vm4675_vm10 }
0x15bb   :  { %v4667_v41 = vsel %vm4666_vm12, %v5223_v20, %v4663_v33  ;;  %v4670_v62 = vmul.f32 %v5225_v23, %v4669_v1 }
0x15bc   :  { %v4680_v60 = vmul.f32 %v4667_v41, %v7253_v31 }
0x15bd   :  { %v4671_v63 = vmul.f32 0.5, %v4670_v62 }
0x15be   :  { %v4685_v38 = vmul.f32 %v4682_v34, %v4680_v60 }
0x15bf   :  { %v4672_v6 = vsub.f32 1.5, %v4671_v63 }
0x15c0   :  { %v4690_v27 = vadd.f32 %v4687_v61, %v4685_v38 }
0x15c1   :  { %v4673_v9 = vmul.f32 %v5225_v23, %v4672_v6 }
0x15c2   :  { %4694 = vst.msk [vmem:[%s7303_s14 + $0x10] sm:$0xff] %vm852_vm7, %v4690_v27 }
0x15c3   :  { %v4677_v53 = vsel %vm4676_vm5, %v5225_v23, %v4673_v9 }
0x15c4   :  { %v4681_v16 = vmul.f32 %v4677_v53, %v7259_v42 }
0x15c6   :  { %v4686_v12 = vmul.f32 %v4682_v34, %v4681_v16 }
0x15c8   :  { %v4691_v49 = vadd.f32 %v4687_v61, %v4686_v12 }
0x15ca   :  { %4695 = vst.msk [vmem:[%s7303_s14 + $0x18] sm:$0xff] %vm852_vm7, %v4691_v49 }

</bundles_post_ra>
